<compile_context>
chip_gen: v6e
topology: v6e:2x2x1
jax: 0.10.0
libtpu: 0.0.40
codegen_flags: <defaults>
</compile_context>

<pallas_src>
import math
import functools

import jax
import jax.numpy as jnp
from jax.experimental import pallas as pl
from jax.experimental.pallas import tpu as pltpu


_EPS = 1e-5


# ----------------------------------------------------------------------------
# In-kernel helpers (operate on VMEM-resident values for a single batch element)
# ----------------------------------------------------------------------------

def _layer_norm(x, gamma, beta, eps):
    """LayerNorm over last dim. x: (L, C), gamma/beta: (1, C)."""
    mean = jnp.mean(x, axis=-1, keepdims=True)
    var = jnp.mean(jnp.square(x - mean), axis=-1, keepdims=True)
    return (x - mean) * jax.lax.rsqrt(var + eps) * gamma + beta


def _mha(q_in, kv_in, w_in, b_in, w_out, b_out, nhead, *, fused_qkv):
    """Multi-head attention for one batch element, entirely in VMEM.

    q_in:  (Lq, C)   queries source
    kv_in: (Lk, C)   keys/values source
    w_in:  (C, 3C)   pre-transposed in_proj_weight
    b_in:  (1, 3C)
    w_out: (C, C)    pre-transposed out_proj weight
    b_out: (1, C)
    fused_qkv: True for self-attention (q_in is kv_in) → single (L,C)@(C,3C) matmul.
    """
    C = q_in.shape[-1]
    dh = C // nhead
    scale = 1.0 / math.sqrt(dh)

    if fused_qkv:
        qkv = jnp.dot(q_in, w_in, preferred_element_type=jnp.float32) + b_in
        q = qkv[:, :C]
        k = qkv[:, C:2 * C]
        v = qkv[:, 2 * C:]
    else:
        q = jnp.dot(q_in, w_in[:, :C], preferred_element_type=jnp.float32) + b_in[:, :C]
        kv = jnp.dot(kv_in, w_in[:, C:], preferred_element_type=jnp.float32) + b_in[:, C:]
        k = kv[:, :C]
        v = kv[:, C:]

    # Per-head attention; out-projection contributions are accumulated so no concat is needed:
    #   o @ W_out == sum_h o[:, h*dh:(h+1)*dh] @ W_out[h*dh:(h+1)*dh, :]
    acc = None
    for h in range(nhead):
        lo, hi = h * dh, (h + 1) * dh
        qh = q[:, lo:hi] * scale
        kh = k[:, lo:hi]
        vh = v[:, lo:hi]
        s = jax.lax.dot_general(qh, kh, (((1,), (1,)), ((), ())),
                                preferred_element_type=jnp.float32)        # (Lq, Lk)
        m = jnp.max(s, axis=-1, keepdims=True)
        p = jnp.exp(s - m)
        denom = jnp.sum(p, axis=-1, keepdims=True)
        p = p * pl.reciprocal(denom, approx=True)
        oh = jnp.dot(p, vh, preferred_element_type=jnp.float32)            # (Lq, dh)
        contrib = jnp.dot(oh, w_out[lo:hi, :],
                          preferred_element_type=jnp.float32)              # (Lq, C)
        acc = contrib if acc is None else acc + contrib
    return acc + b_out


# ----------------------------------------------------------------------------
# Fused decoder-layer kernel (one pallas_call per nn.TransformerDecoderLayer).
# Optionally applies an extra trailing LayerNorm (used to fuse `norm_rev` into
# the last reverse decoder layer).
# ----------------------------------------------------------------------------

def _decoder_layer_kernel(tgt_ref, mem_ref, *rest, nhead, eps, has_final_norm):
    if has_final_norm:
        (sa_in_w_ref, sa_in_b_ref, sa_out_w_ref, sa_out_b_ref,
         ca_in_w_ref, ca_in_b_ref, ca_out_w_ref, ca_out_b_ref,
         n1w_ref, n1b_ref, n2w_ref, n2b_ref,
         l1w_ref, l1b_ref, l2w_ref, l2b_ref,
         n3w_ref, n3b_ref, fn_w_ref, fn_b_ref, out_ref) = rest
    else:
        (sa_in_w_ref, sa_in_b_ref, sa_out_w_ref, sa_out_b_ref,
         ca_in_w_ref, ca_in_b_ref, ca_out_w_ref, ca_out_b_ref,
         n1w_ref, n1b_ref, n2w_ref, n2b_ref,
         l1w_ref, l1b_ref, l2w_ref, l2b_ref,
         n3w_ref, n3b_ref, out_ref) = rest
        fn_w_ref = fn_b_ref = None

    x = tgt_ref[0].astype(jnp.float32)       # (L, C)
    mem = mem_ref[0].astype(jnp.float32)     # (Lm, C)

    # --- self-attention block ---
    sa = _mha(x, x, sa_in_w_ref[...], sa_in_b_ref[...],
              sa_out_w_ref[...], sa_out_b_ref[...], nhead, fused_qkv=True)
    x = _layer_norm(x + sa, n1w_ref[...], n1b_ref[...], eps)

    # --- cross-attention block ---
    ca = _mha(x, mem, ca_in_w_ref[...], ca_in_b_ref[...],
              ca_out_w_ref[...], ca_out_b_ref[...], nhead, fused_qkv=False)
    x = _layer_norm(x + ca, n2w_ref[...], n2b_ref[...], eps)

    # --- feed-forward block ---
    h = jnp.dot(x, l1w_ref[...], preferred_element_type=jnp.float32) + l1b_ref[...]
    h = jnp.maximum(h, 0.0)
    f = jnp.dot(h, l2w_ref[...], preferred_element_type=jnp.float32) + l2b_ref[...]
    x = _layer_norm(x + f, n3w_ref[...], n3b_ref[...], eps)

    if has_final_norm:
        x = _layer_norm(x, fn_w_ref[...], fn_b_ref[...], eps)

    out_ref[0] = x.astype(out_ref.dtype)


def decoder_layer_pallas(tgt, memory, p, nhead, final_norm=None):
    """Fused nn.TransformerDecoderLayer forward (norm_first=False, relu, dropout=identity).

    tgt: (N, L, C), memory: (N, Lm, C). One pallas_call, grid over batch.
    `final_norm` (optional): (gamma2d, beta2d) applied after the layer (fuses norm_rev).
    """
    N, L, C = tgt.shape
    Lm = memory.shape[1]

    param_list = [
        p["sa_in_w"], p["sa_in_b"], p["sa_out_w"], p["sa_out_b"],
        p["ca_in_w"], p["ca_in_b"], p["ca_out_w"], p["ca_out_b"],
        p["norm1_w"], p["norm1_b"], p["norm2_w"], p["norm2_b"],
        p["lin1_w"], p["lin1_b"], p["lin2_w"], p["lin2_b"],
        p["norm3_w"], p["norm3_b"],
    ]
    has_final_norm = final_norm is not None
    if has_final_norm:
        param_list = param_list + [final_norm[0], final_norm[1]]

    in_specs = [
        pl.BlockSpec((1, L, C), lambda n: (n, 0, 0)),
        pl.BlockSpec((1, Lm, C), lambda n: (n, 0, 0)),
    ] + [pl.BlockSpec(w.shape, lambda n: (0, 0)) for w in param_list]

    kernel = functools.partial(_decoder_layer_kernel, nhead=nhead, eps=_EPS,
                               has_final_norm=has_final_norm)
    return pl.pallas_call(
        kernel,
        out_shape=jax.ShapeDtypeStruct((N, L, C), tgt.dtype),
        grid=(N,),
        in_specs=in_specs,
        out_specs=pl.BlockSpec((1, L, C), lambda n: (n, 0, 0)),
        compiler_params=pltpu.CompilerParams(
            dimension_semantics=("parallel",)),
    )(tgt, memory, *param_list)


# ----------------------------------------------------------------------------
# Standalone LayerNorm kernel (fallback path when there are no reverse layers)
# ----------------------------------------------------------------------------

def _layernorm_kernel(x_ref, g_ref, b_ref, o_ref, *, eps):
    x = x_ref[...].astype(jnp.float32)
    o_ref[...] = _layer_norm(x, g_ref[...], b_ref[...], eps).astype(o_ref.dtype)


def layernorm_pallas(x, gamma2d, beta2d, eps=_EPS):
    """LayerNorm over last dim. x: (M, C), gamma2d/beta2d: (1, C)."""
    M, C = x.shape
    return pl.pallas_call(
        functools.partial(_layernorm_kernel, eps=eps),
        out_shape=jax.ShapeDtypeStruct((M, C), x.dtype),
        grid=(1,),
        in_specs=[pl.BlockSpec((M, C), lambda i: (0, 0)),
                  pl.BlockSpec((1, C), lambda i: (0, 0)),
                  pl.BlockSpec((1, C), lambda i: (0, 0))],
        out_specs=pl.BlockSpec((M, C), lambda i: (0, 0)),
    )(x, gamma2d, beta2d)


# ----------------------------------------------------------------------------
# InteractionBlock forward
# ----------------------------------------------------------------------------

def interaction_block_forward(params, projected_piece_vector, conv_features,
                              nhead, board_height, board_width):
    """Mirror of InteractionBlock.forward.

    projected_piece_vector: (N, P, C)
    conv_features:          (N, C, H, W)  (NCHW, as in PyTorch)
    returns (updated_piece_vector (N,P,C), updated_conv_features (N,C,H,W))
    """
    N, C, H, W = conv_features.shape
    mem = conv_features.reshape(N, C, H * W).transpose(0, 2, 1)   # (N, H*W, C)

    # forward interaction: pieces attend to conv features
    x = projected_piece_vector
    for lp in params["fwd_layers"]:
        x = decoder_layer_pallas(x, mem, lp, nhead)
    updated_piece = x

    # reverse interaction: conv features attend to updated pieces.
    # The final norm_rev LayerNorm is fused into the last reverse decoder layer.
    y = mem
    rev_layers = params["rev_layers"]
    n_rev = len(rev_layers)
    for i, lp in enumerate(rev_layers):
        fn = (params["norm_rev_w"], params["norm_rev_b"]) if i == n_rev - 1 else None
        y = decoder_layer_pallas(y, updated_piece, lp, nhead, final_norm=fn)
    if n_rev == 0:  # fallback: apply norm_rev standalone
        L = H * W
        y = layernorm_pallas(y.reshape(N * L, C),
                             params["norm_rev_w"], params["norm_rev_b"]).reshape(N, L, C)

    updated_conv = y.transpose(0, 2, 1).reshape(N, C, board_height, board_width)
    return updated_piece, updated_conv


# ----------------------------------------------------------------------------
# Deterministic parameter initialization.
# Weights are stored PRE-TRANSPOSED as (in_features, out_features) — i.e. PyTorch weight.T —
# so no transposes happen inside the jitted forward.  Biases / norm params are (1, dim).
# ----------------------------------------------------------------------------

def _init_mha_params(key, d_model, prefix):
    k1, k2 = jax.random.split(key)
    return {
        f"{prefix}_in_w": 0.05 * jax.random.normal(k1, (d_model, 3 * d_model), jnp.float32),
        f"{prefix}_in_b": jnp.zeros((1, 3 * d_model), jnp.float32),
        f"{prefix}_out_w": 0.05 * jax.random.normal(k2, (d_model, d_model), jnp.float32),
        f"{prefix}_out_b": jnp.zeros((1, d_model), jnp.float32),
    }


def _init_decoder_layer_params(key, d_model, dim_feedforward):
    keys = jax.random.split(key, 4)
    p = {}
    p.update(_init_mha_params(keys[0], d_model, "sa"))
    p.update(_init_mha_params(keys[1], d_model, "ca"))
    p["lin1_w"] = 0.05 * jax.random.normal(keys[2], (d_model, dim_feedforward), jnp.float32)
    p["lin1_b"] = jnp.zeros((1, dim_feedforward), jnp.float32)
    p["lin2_w"] = 0.05 * jax.random.normal(keys[3], (dim_feedforward, d_model), jnp.float32)
    p["lin2_b"] = jnp.zeros((1, d_model), jnp.float32)
    for name in ("norm1", "norm2", "norm3"):
        p[f"{name}_w"] = jnp.ones((1, d_model), jnp.float32)
        p[f"{name}_b"] = jnp.zeros((1, d_model), jnp.float32)
    return p


def init_interaction_block_params(key, d_model, dim_feedforward, num_layers=2):
    keys = jax.random.split(key, 2 * num_layers)
    return {
        "fwd_layers": [_init_decoder_layer_params(keys[i], d_model, dim_feedforward)
                       for i in range(num_layers)],
        "rev_layers": [_init_decoder_layer_params(keys[num_layers + i], d_model, dim_feedforward)
                       for i in range(num_layers)],
        "norm_rev_w": jnp.ones((1, d_model), jnp.float32),
        "norm_rev_b": jnp.zeros((1, d_model), jnp.float32),
    }


# ----------------------------------------------------------------------------
# Main
# ----------------------------------------------------------------------------

if __name__ == "__main__":
    # small shapes consistent with the module
    N = 2          # batch
    d_model = 32   # channels / C
    nhead = 4
    dim_feedforward = 64
    board_height, board_width = 4, 4
    P = 8          # number of pieces

    key = jax.random.PRNGKey(0)
    k_piece, k_conv = jax.random.split(key)
    projected_piece_vector = jax.random.normal(k_piece, (N, P, d_model), jnp.float32)
    conv_features = jax.random.normal(k_conv, (N, d_model, board_height, board_width),
                                      jnp.float32)

    params = init_interaction_block_params(jax.random.PRNGKey(1), d_model, dim_feedforward,
                                            num_layers=2)

    fwd = jax.jit(functools.partial(interaction_block_forward,
                                    nhead=nhead,
                                    board_height=board_height,
                                    board_width=board_width))
    updated_piece, updated_conv = fwd(params, projected_piece_vector, conv_features)
    jax.block_until_ready((updated_piece, updated_conv))

    assert updated_piece.shape == (N, P, d_model)
    assert updated_conv.shape == (N, d_model, board_height, board_width)
    assert bool(jnp.all(jnp.isfinite(updated_piece))) and bool(jnp.all(jnp.isfinite(updated_conv)))
    print("KERNEL_OK")
</pallas_src>

<mosaic_0001>
module attributes {stable_mosaic.version = 11 : i64} {
  func.func @_decoder_layer_kernel(%arg0: i32, %arg1: memref<1x8x32xf32, #tpu.memory_space<vmem>>, %arg2: memref<1x16x32xf32, #tpu.memory_space<vmem>>, %arg3: memref<32x96xf32, #tpu.memory_space<vmem>>, %arg4: memref<1x96xf32, #tpu.memory_space<vmem>>, %arg5: memref<32x32xf32, #tpu.memory_space<vmem>>, %arg6: memref<1x32xf32, #tpu.memory_space<vmem>>, %arg7: memref<32x96xf32, #tpu.memory_space<vmem>>, %arg8: memref<1x96xf32, #tpu.memory_space<vmem>>, %arg9: memref<32x32xf32, #tpu.memory_space<vmem>>, %arg10: memref<1x32xf32, #tpu.memory_space<vmem>>, %arg11: memref<1x32xf32, #tpu.memory_space<vmem>>, %arg12: memref<1x32xf32, #tpu.memory_space<vmem>>, %arg13: memref<1x32xf32, #tpu.memory_space<vmem>>, %arg14: memref<1x32xf32, #tpu.memory_space<vmem>>, %arg15: memref<32x64xf32, #tpu.memory_space<vmem>>, %arg16: memref<1x64xf32, #tpu.memory_space<vmem>>, %arg17: memref<64x32xf32, #tpu.memory_space<vmem>>, %arg18: memref<1x32xf32, #tpu.memory_space<vmem>>, %arg19: memref<1x32xf32, #tpu.memory_space<vmem>>, %arg20: memref<1x32xf32, #tpu.memory_space<vmem>>, %arg21: memref<1x8x32xf32, #tpu.memory_space<vmem>>) attributes {dimension_semantics = [#tpu.dimension_semantics<parallel>], iteration_bounds = array<i64: 2>, scalar_prefetch = 0 : i64, scratch_operands = 0 : i64, tpu.core_type = #tpu.core_type<tc>, window_params = [{transform_indices = @transform_0, window_bounds = array<i64: 1, 8, 32>}, {transform_indices = @transform_1, window_bounds = array<i64: 1, 16, 32>}, {pipeline_mode = #tpu.pipeline_mode<synchronous>, transform_indices = @transform_2, window_bounds = array<i64: 32, 96>}, {pipeline_mode = #tpu.pipeline_mode<synchronous>, transform_indices = @transform_3, window_bounds = array<i64: 1, 96>}, {pipeline_mode = #tpu.pipeline_mode<synchronous>, transform_indices = @transform_4, window_bounds = array<i64: 32, 32>}, {pipeline_mode = #tpu.pipeline_mode<synchronous>, transform_indices = @transform_5, window_bounds = array<i64: 1, 32>}, {pipeline_mode = #tpu.pipeline_mode<synchronous>, transform_indices = @transform_6, window_bounds = array<i64: 32, 96>}, {pipeline_mode = #tpu.pipeline_mode<synchronous>, transform_indices = @transform_7, window_bounds = array<i64: 1, 96>}, {pipeline_mode = #tpu.pipeline_mode<synchronous>, transform_indices = @transform_8, window_bounds = array<i64: 32, 32>}, {pipeline_mode = #tpu.pipeline_mode<synchronous>, transform_indices = @transform_9, window_bounds = array<i64: 1, 32>}, {pipeline_mode = #tpu.pipeline_mode<synchronous>, transform_indices = @transform_10, window_bounds = array<i64: 1, 32>}, {pipeline_mode = #tpu.pipeline_mode<synchronous>, transform_indices = @transform_11, window_bounds = array<i64: 1, 32>}, {pipeline_mode = #tpu.pipeline_mode<synchronous>, transform_indices = @transform_12, window_bounds = array<i64: 1, 32>}, {pipeline_mode = #tpu.pipeline_mode<synchronous>, transform_indices = @transform_13, window_bounds = array<i64: 1, 32>}, {pipeline_mode = #tpu.pipeline_mode<synchronous>, transform_indices = @transform_14, window_bounds = array<i64: 32, 64>}, {pipeline_mode = #tpu.pipeline_mode<synchronous>, transform_indices = @transform_15, window_bounds = array<i64: 1, 64>}, {pipeline_mode = #tpu.pipeline_mode<synchronous>, transform_indices = @transform_16, window_bounds = array<i64: 64, 32>}, {pipeline_mode = #tpu.pipeline_mode<synchronous>, transform_indices = @transform_17, window_bounds = array<i64: 1, 32>}, {pipeline_mode = #tpu.pipeline_mode<synchronous>, transform_indices = @transform_18, window_bounds = array<i64: 1, 32>}, {pipeline_mode = #tpu.pipeline_mode<synchronous>, transform_indices = @transform_19, window_bounds = array<i64: 1, 32>}, {transform_indices = @transform_20, window_bounds = array<i64: 1, 8, 32>}]} {
    %c0 = arith.constant 0 : index
    %c0_0 = arith.constant 0 : index
    %c0_1 = arith.constant 0 : index
    %0 = vector.load %arg1[%c0, %c0_0, %c0_1] : memref<1x8x32xf32, #tpu.memory_space<vmem>>, vector<1x8x32xf32>
    %1 = vector.shape_cast %0 : vector<1x8x32xf32> to vector<8x32xf32>
    %c0_2 = arith.constant 0 : index
    %c0_3 = arith.constant 0 : index
    %c0_4 = arith.constant 0 : index
    %2 = vector.load %arg2[%c0_2, %c0_3, %c0_4] : memref<1x16x32xf32, #tpu.memory_space<vmem>>, vector<1x16x32xf32>
    %3 = vector.shape_cast %2 : vector<1x16x32xf32> to vector<16x32xf32>
    %c0_5 = arith.constant 0 : index
    %c0_6 = arith.constant 0 : index
    %4 = vector.load %arg3[%c0_5, %c0_6] : memref<32x96xf32, #tpu.memory_space<vmem>>, vector<32x96xf32>
    %c0_7 = arith.constant 0 : index
    %c0_8 = arith.constant 0 : index
    %5 = vector.load %arg4[%c0_7, %c0_8] : memref<1x96xf32, #tpu.memory_space<vmem>>, vector<1x96xf32>
    %c0_9 = arith.constant 0 : index
    %c0_10 = arith.constant 0 : index
    %6 = vector.load %arg5[%c0_9, %c0_10] : memref<32x32xf32, #tpu.memory_space<vmem>>, vector<32x32xf32>
    %c0_11 = arith.constant 0 : index
    %c0_12 = arith.constant 0 : index
    %7 = vector.load %arg6[%c0_11, %c0_12] : memref<1x32xf32, #tpu.memory_space<vmem>>, vector<1x32xf32>
    %cst = arith.constant dense<0.000000e+00> : vector<8x96xf32>
    %8 = tpu.matmul %1, %4, %cst {dimension_numbers = #tpu.dot_dimension_numbers<[1], [0], [0], [1], [0, 0, 1, 1], [], []>} : vector<8x32xf32>, vector<32x96xf32>, vector<8x96xf32> -> vector<8x96xf32>
    %9 = vector.broadcast %5 : vector<1x96xf32> to vector<8x96xf32>
    %10 = arith.addf %8, %9 : vector<8x96xf32>
    %11 = vector.extract_strided_slice %10 {offsets = [0, 0], sizes = [8, 32], strides = [1, 1]} : vector<8x96xf32> to vector<8x32xf32>
    %12 = vector.extract_strided_slice %10 {offsets = [0, 32], sizes = [8, 32], strides = [1, 1]} : vector<8x96xf32> to vector<8x32xf32>
    %13 = vector.extract_strided_slice %10 {offsets = [0, 64], sizes = [8, 32], strides = [1, 1]} : vector<8x96xf32> to vector<8x32xf32>
    %14 = vector.extract_strided_slice %11 {offsets = [0, 0], sizes = [8, 8], strides = [1, 1]} : vector<8x32xf32> to vector<8x8xf32>
    %cst_13 = arith.constant 0.353553385 : f32
    %15 = vector.broadcast %cst_13 : f32 to vector<8x8xf32>
    %16 = arith.mulf %14, %15 : vector<8x8xf32>
    %17 = vector.extract_strided_slice %12 {offsets = [0, 0], sizes = [8, 8], strides = [1, 1]} : vector<8x32xf32> to vector<8x8xf32>
    %18 = vector.extract_strided_slice %13 {offsets = [0, 0], sizes = [8, 8], strides = [1, 1]} : vector<8x32xf32> to vector<8x8xf32>
    %cst_14 = arith.constant dense<0.000000e+00> : vector<8x8xf32>
    %19 = tpu.matmul %16, %17, %cst_14 {dimension_numbers = #tpu.dot_dimension_numbers<[1], [1], [0], [0], [0, 0, 1, 0], [], []>} : vector<8x8xf32>, vector<8x8xf32>, vector<8x8xf32> -> vector<8x8xf32>
    %cst_15 = arith.constant dense<0xFF800000> : vector<8xf32>
    %20 = vector.multi_reduction <maximumf>, %19, %cst_15 [1] : vector<8x8xf32> to vector<8xf32>
    %21 = vector.shape_cast %20 : vector<8xf32> to vector<8x1xf32>
    %22 = vector.broadcast %21 : vector<8x1xf32> to vector<8x8xf32>
    %23 = arith.subf %19, %22 : vector<8x8xf32>
    %24 = math.exp %23 : vector<8x8xf32>
    %cst_16 = arith.constant dense<0.000000e+00> : vector<8xf32>
    %25 = vector.multi_reduction <add>, %24, %cst_16 [1] : vector<8x8xf32> to vector<8xf32>
    %26 = vector.shape_cast %25 : vector<8xf32> to vector<8x1xf32>
    %27 = tpu.reciprocal %26 {approx = true} : vector<8x1xf32> -> vector<8x1xf32>
    %28 = vector.broadcast %27 : vector<8x1xf32> to vector<8x8xf32>
    %29 = arith.mulf %24, %28 : vector<8x8xf32>
    %cst_17 = arith.constant dense<0.000000e+00> : vector<8x8xf32>
    %30 = tpu.matmul %29, %18, %cst_17 {dimension_numbers = #tpu.dot_dimension_numbers<[1], [0], [0], [1], [0, 0, 1, 1], [], []>} : vector<8x8xf32>, vector<8x8xf32>, vector<8x8xf32> -> vector<8x8xf32>
    %31 = vector.extract_strided_slice %6 {offsets = [0, 0], sizes = [8, 32], strides = [1, 1]} : vector<32x32xf32> to vector<8x32xf32>
    %cst_18 = arith.constant dense<0.000000e+00> : vector<8x32xf32>
    %32 = tpu.matmul %30, %31, %cst_18 {dimension_numbers = #tpu.dot_dimension_numbers<[1], [0], [0], [1], [0, 0, 1, 1], [], []>} : vector<8x8xf32>, vector<8x32xf32>, vector<8x32xf32> -> vector<8x32xf32>
    %33 = vector.extract_strided_slice %11 {offsets = [0, 8], sizes = [8, 8], strides = [1, 1]} : vector<8x32xf32> to vector<8x8xf32>
    %cst_19 = arith.constant 0.353553385 : f32
    %34 = vector.broadcast %cst_19 : f32 to vector<8x8xf32>
    %35 = arith.mulf %33, %34 : vector<8x8xf32>
    %36 = vector.extract_strided_slice %12 {offsets = [0, 8], sizes = [8, 8], strides = [1, 1]} : vector<8x32xf32> to vector<8x8xf32>
    %37 = vector.extract_strided_slice %13 {offsets = [0, 8], sizes = [8, 8], strides = [1, 1]} : vector<8x32xf32> to vector<8x8xf32>
    %cst_20 = arith.constant dense<0.000000e+00> : vector<8x8xf32>
    %38 = tpu.matmul %35, %36, %cst_20 {dimension_numbers = #tpu.dot_dimension_numbers<[1], [1], [0], [0], [0, 0, 1, 0], [], []>} : vector<8x8xf32>, vector<8x8xf32>, vector<8x8xf32> -> vector<8x8xf32>
    %cst_21 = arith.constant dense<0xFF800000> : vector<8xf32>
    %39 = vector.multi_reduction <maximumf>, %38, %cst_21 [1] : vector<8x8xf32> to vector<8xf32>
    %40 = vector.shape_cast %39 : vector<8xf32> to vector<8x1xf32>
    %41 = vector.broadcast %40 : vector<8x1xf32> to vector<8x8xf32>
    %42 = arith.subf %38, %41 : vector<8x8xf32>
    %43 = math.exp %42 : vector<8x8xf32>
    %cst_22 = arith.constant dense<0.000000e+00> : vector<8xf32>
    %44 = vector.multi_reduction <add>, %43, %cst_22 [1] : vector<8x8xf32> to vector<8xf32>
    %45 = vector.shape_cast %44 : vector<8xf32> to vector<8x1xf32>
    %46 = tpu.reciprocal %45 {approx = true} : vector<8x1xf32> -> vector<8x1xf32>
    %47 = vector.broadcast %46 : vector<8x1xf32> to vector<8x8xf32>
    %48 = arith.mulf %43, %47 : vector<8x8xf32>
    %cst_23 = arith.constant dense<0.000000e+00> : vector<8x8xf32>
    %49 = tpu.matmul %48, %37, %cst_23 {dimension_numbers = #tpu.dot_dimension_numbers<[1], [0], [0], [1], [0, 0, 1, 1], [], []>} : vector<8x8xf32>, vector<8x8xf32>, vector<8x8xf32> -> vector<8x8xf32>
    %50 = vector.extract_strided_slice %6 {offsets = [8, 0], sizes = [8, 32], strides = [1, 1]} : vector<32x32xf32> to vector<8x32xf32>
    %cst_24 = arith.constant dense<0.000000e+00> : vector<8x32xf32>
    %51 = tpu.matmul %49, %50, %cst_24 {dimension_numbers = #tpu.dot_dimension_numbers<[1], [0], [0], [1], [0, 0, 1, 1], [], []>} : vector<8x8xf32>, vector<8x32xf32>, vector<8x32xf32> -> vector<8x32xf32>
    %52 = arith.addf %32, %51 : vector<8x32xf32>
    %53 = vector.extract_strided_slice %11 {offsets = [0, 16], sizes = [8, 8], strides = [1, 1]} : vector<8x32xf32> to vector<8x8xf32>
    %cst_25 = arith.constant 0.353553385 : f32
    %54 = vector.broadcast %cst_25 : f32 to vector<8x8xf32>
    %55 = arith.mulf %53, %54 : vector<8x8xf32>
    %56 = vector.extract_strided_slice %12 {offsets = [0, 16], sizes = [8, 8], strides = [1, 1]} : vector<8x32xf32> to vector<8x8xf32>
    %57 = vector.extract_strided_slice %13 {offsets = [0, 16], sizes = [8, 8], strides = [1, 1]} : vector<8x32xf32> to vector<8x8xf32>
    %cst_26 = arith.constant dense<0.000000e+00> : vector<8x8xf32>
    %58 = tpu.matmul %55, %56, %cst_26 {dimension_numbers = #tpu.dot_dimension_numbers<[1], [1], [0], [0], [0, 0, 1, 0], [], []>} : vector<8x8xf32>, vector<8x8xf32>, vector<8x8xf32> -> vector<8x8xf32>
    %cst_27 = arith.constant dense<0xFF800000> : vector<8xf32>
    %59 = vector.multi_reduction <maximumf>, %58, %cst_27 [1] : vector<8x8xf32> to vector<8xf32>
    %60 = vector.shape_cast %59 : vector<8xf32> to vector<8x1xf32>
    %61 = vector.broadcast %60 : vector<8x1xf32> to vector<8x8xf32>
    %62 = arith.subf %58, %61 : vector<8x8xf32>
    %63 = math.exp %62 : vector<8x8xf32>
    %cst_28 = arith.constant dense<0.000000e+00> : vector<8xf32>
    %64 = vector.multi_reduction <add>, %63, %cst_28 [1] : vector<8x8xf32> to vector<8xf32>
    %65 = vector.shape_cast %64 : vector<8xf32> to vector<8x1xf32>
    %66 = tpu.reciprocal %65 {approx = true} : vector<8x1xf32> -> vector<8x1xf32>
    %67 = vector.broadcast %66 : vector<8x1xf32> to vector<8x8xf32>
    %68 = arith.mulf %63, %67 : vector<8x8xf32>
    %cst_29 = arith.constant dense<0.000000e+00> : vector<8x8xf32>
    %69 = tpu.matmul %68, %57, %cst_29 {dimension_numbers = #tpu.dot_dimension_numbers<[1], [0], [0], [1], [0, 0, 1, 1], [], []>} : vector<8x8xf32>, vector<8x8xf32>, vector<8x8xf32> -> vector<8x8xf32>
    %70 = vector.extract_strided_slice %6 {offsets = [16, 0], sizes = [8, 32], strides = [1, 1]} : vector<32x32xf32> to vector<8x32xf32>
    %cst_30 = arith.constant dense<0.000000e+00> : vector<8x32xf32>
    %71 = tpu.matmul %69, %70, %cst_30 {dimension_numbers = #tpu.dot_dimension_numbers<[1], [0], [0], [1], [0, 0, 1, 1], [], []>} : vector<8x8xf32>, vector<8x32xf32>, vector<8x32xf32> -> vector<8x32xf32>
    %72 = arith.addf %52, %71 : vector<8x32xf32>
    %73 = vector.extract_strided_slice %11 {offsets = [0, 24], sizes = [8, 8], strides = [1, 1]} : vector<8x32xf32> to vector<8x8xf32>
    %cst_31 = arith.constant 0.353553385 : f32
    %74 = vector.broadcast %cst_31 : f32 to vector<8x8xf32>
    %75 = arith.mulf %73, %74 : vector<8x8xf32>
    %76 = vector.extract_strided_slice %12 {offsets = [0, 24], sizes = [8, 8], strides = [1, 1]} : vector<8x32xf32> to vector<8x8xf32>
    %77 = vector.extract_strided_slice %13 {offsets = [0, 24], sizes = [8, 8], strides = [1, 1]} : vector<8x32xf32> to vector<8x8xf32>
    %cst_32 = arith.constant dense<0.000000e+00> : vector<8x8xf32>
    %78 = tpu.matmul %75, %76, %cst_32 {dimension_numbers = #tpu.dot_dimension_numbers<[1], [1], [0], [0], [0, 0, 1, 0], [], []>} : vector<8x8xf32>, vector<8x8xf32>, vector<8x8xf32> -> vector<8x8xf32>
    %cst_33 = arith.constant dense<0xFF800000> : vector<8xf32>
    %79 = vector.multi_reduction <maximumf>, %78, %cst_33 [1] : vector<8x8xf32> to vector<8xf32>
    %80 = vector.shape_cast %79 : vector<8xf32> to vector<8x1xf32>
    %81 = vector.broadcast %80 : vector<8x1xf32> to vector<8x8xf32>
    %82 = arith.subf %78, %81 : vector<8x8xf32>
    %83 = math.exp %82 : vector<8x8xf32>
    %cst_34 = arith.constant dense<0.000000e+00> : vector<8xf32>
    %84 = vector.multi_reduction <add>, %83, %cst_34 [1] : vector<8x8xf32> to vector<8xf32>
    %85 = vector.shape_cast %84 : vector<8xf32> to vector<8x1xf32>
    %86 = tpu.reciprocal %85 {approx = true} : vector<8x1xf32> -> vector<8x1xf32>
    %87 = vector.broadcast %86 : vector<8x1xf32> to vector<8x8xf32>
    %88 = arith.mulf %83, %87 : vector<8x8xf32>
    %cst_35 = arith.constant dense<0.000000e+00> : vector<8x8xf32>
    %89 = tpu.matmul %88, %77, %cst_35 {dimension_numbers = #tpu.dot_dimension_numbers<[1], [0], [0], [1], [0, 0, 1, 1], [], []>} : vector<8x8xf32>, vector<8x8xf32>, vector<8x8xf32> -> vector<8x8xf32>
    %90 = vector.extract_strided_slice %6 {offsets = [24, 0], sizes = [8, 32], strides = [1, 1]} : vector<32x32xf32> to vector<8x32xf32>
    %cst_36 = arith.constant dense<0.000000e+00> : vector<8x32xf32>
    %91 = tpu.matmul %89, %90, %cst_36 {dimension_numbers = #tpu.dot_dimension_numbers<[1], [0], [0], [1], [0, 0, 1, 1], [], []>} : vector<8x8xf32>, vector<8x32xf32>, vector<8x32xf32> -> vector<8x32xf32>
    %92 = arith.addf %72, %91 : vector<8x32xf32>
    %93 = vector.broadcast %7 : vector<1x32xf32> to vector<8x32xf32>
    %94 = arith.addf %92, %93 : vector<8x32xf32>
    %95 = arith.addf %1, %94 : vector<8x32xf32>
    %c0_37 = arith.constant 0 : index
    %c0_38 = arith.constant 0 : index
    %96 = vector.load %arg11[%c0_37, %c0_38] : memref<1x32xf32, #tpu.memory_space<vmem>>, vector<1x32xf32>
    %c0_39 = arith.constant 0 : index
    %c0_40 = arith.constant 0 : index
    %97 = vector.load %arg12[%c0_39, %c0_40] : memref<1x32xf32, #tpu.memory_space<vmem>>, vector<1x32xf32>
    %cst_41 = arith.constant dense<0.000000e+00> : vector<8xf32>
    %98 = vector.multi_reduction <add>, %95, %cst_41 [1] : vector<8x32xf32> to vector<8xf32>
    %99 = vector.shape_cast %98 : vector<8xf32> to vector<8x1xf32>
    %cst_42 = arith.constant 3.200000e+01 : f32
    %100 = vector.broadcast %cst_42 : f32 to vector<8x1xf32>
    %101 = arith.divf %99, %100 : vector<8x1xf32>
    %102 = vector.broadcast %101 : vector<8x1xf32> to vector<8x32xf32>
    %103 = arith.subf %95, %102 : vector<8x32xf32>
    %104 = arith.mulf %103, %103 : vector<8x32xf32>
    %cst_43 = arith.constant dense<0.000000e+00> : vector<8xf32>
    %105 = vector.multi_reduction <add>, %104, %cst_43 [1] : vector<8x32xf32> to vector<8xf32>
    %106 = vector.shape_cast %105 : vector<8xf32> to vector<8x1xf32>
    %cst_44 = arith.constant 3.200000e+01 : f32
    %107 = vector.broadcast %cst_44 : f32 to vector<8x1xf32>
    %108 = arith.divf %106, %107 : vector<8x1xf32>
    %109 = vector.broadcast %101 : vector<8x1xf32> to vector<8x32xf32>
    %110 = arith.subf %95, %109 : vector<8x32xf32>
    %cst_45 = arith.constant 9.99999974E-6 : f32
    %111 = vector.broadcast %cst_45 : f32 to vector<8x1xf32>
    %112 = arith.addf %108, %111 : vector<8x1xf32>
    %113 = math.rsqrt %112 : vector<8x1xf32>
    %114 = vector.broadcast %113 : vector<8x1xf32> to vector<8x32xf32>
    %115 = arith.mulf %110, %114 : vector<8x32xf32>
    %116 = vector.broadcast %96 : vector<1x32xf32> to vector<8x32xf32>
    %117 = arith.mulf %115, %116 : vector<8x32xf32>
    %118 = vector.broadcast %97 : vector<1x32xf32> to vector<8x32xf32>
    %119 = arith.addf %117, %118 : vector<8x32xf32>
    %c0_46 = arith.constant 0 : index
    %c0_47 = arith.constant 0 : index
    %120 = vector.load %arg7[%c0_46, %c0_47] : memref<32x96xf32, #tpu.memory_space<vmem>>, vector<32x96xf32>
    %c0_48 = arith.constant 0 : index
    %c0_49 = arith.constant 0 : index
    %121 = vector.load %arg8[%c0_48, %c0_49] : memref<1x96xf32, #tpu.memory_space<vmem>>, vector<1x96xf32>
    %c0_50 = arith.constant 0 : index
    %c0_51 = arith.constant 0 : index
    %122 = vector.load %arg9[%c0_50, %c0_51] : memref<32x32xf32, #tpu.memory_space<vmem>>, vector<32x32xf32>
    %c0_52 = arith.constant 0 : index
    %c0_53 = arith.constant 0 : index
    %123 = vector.load %arg10[%c0_52, %c0_53] : memref<1x32xf32, #tpu.memory_space<vmem>>, vector<1x32xf32>
    %124 = vector.extract_strided_slice %120 {offsets = [0, 0], sizes = [32, 32], strides = [1, 1]} : vector<32x96xf32> to vector<32x32xf32>
    %cst_54 = arith.constant dense<0.000000e+00> : vector<8x32xf32>
    %125 = tpu.matmul %119, %124, %cst_54 {dimension_numbers = #tpu.dot_dimension_numbers<[1], [0], [0], [1], [0, 0, 1, 1], [], []>} : vector<8x32xf32>, vector<32x32xf32>, vector<8x32xf32> -> vector<8x32xf32>
    %126 = vector.extract_strided_slice %121 {offsets = [0, 0], sizes = [1, 32], strides = [1, 1]} : vector<1x96xf32> to vector<1x32xf32>
    %127 = vector.broadcast %126 : vector<1x32xf32> to vector<8x32xf32>
    %128 = arith.addf %125, %127 : vector<8x32xf32>
    %129 = vector.extract_strided_slice %120 {offsets = [0, 32], sizes = [32, 64], strides = [1, 1]} : vector<32x96xf32> to vector<32x64xf32>
    %cst_55 = arith.constant dense<0.000000e+00> : vector<16x64xf32>
    %130 = tpu.matmul %3, %129, %cst_55 {dimension_numbers = #tpu.dot_dimension_numbers<[1], [0], [0], [1], [0, 0, 1, 1], [], []>} : vector<16x32xf32>, vector<32x64xf32>, vector<16x64xf32> -> vector<16x64xf32>
    %131 = vector.extract_strided_slice %121 {offsets = [0, 32], sizes = [1, 64], strides = [1, 1]} : vector<1x96xf32> to vector<1x64xf32>
    %132 = vector.broadcast %131 : vector<1x64xf32> to vector<16x64xf32>
    %133 = arith.addf %130, %132 : vector<16x64xf32>
    %134 = vector.extract_strided_slice %133 {offsets = [0, 0], sizes = [16, 32], strides = [1, 1]} : vector<16x64xf32> to vector<16x32xf32>
    %135 = vector.extract_strided_slice %133 {offsets = [0, 32], sizes = [16, 32], strides = [1, 1]} : vector<16x64xf32> to vector<16x32xf32>
    %136 = vector.extract_strided_slice %128 {offsets = [0, 0], sizes = [8, 8], strides = [1, 1]} : vector<8x32xf32> to vector<8x8xf32>
    %cst_56 = arith.constant 0.353553385 : f32
    %137 = vector.broadcast %cst_56 : f32 to vector<8x8xf32>
    %138 = arith.mulf %136, %137 : vector<8x8xf32>
    %139 = vector.extract_strided_slice %134 {offsets = [0, 0], sizes = [16, 8], strides = [1, 1]} : vector<16x32xf32> to vector<16x8xf32>
    %140 = vector.extract_strided_slice %135 {offsets = [0, 0], sizes = [16, 8], strides = [1, 1]} : vector<16x32xf32> to vector<16x8xf32>
    %cst_57 = arith.constant dense<0.000000e+00> : vector<8x16xf32>
    %141 = tpu.matmul %138, %139, %cst_57 {dimension_numbers = #tpu.dot_dimension_numbers<[1], [1], [0], [0], [0, 0, 1, 0], [], []>} : vector<8x8xf32>, vector<16x8xf32>, vector<8x16xf32> -> vector<8x16xf32>
    %cst_58 = arith.constant dense<0xFF800000> : vector<8xf32>
    %142 = vector.multi_reduction <maximumf>, %141, %cst_58 [1] : vector<8x16xf32> to vector<8xf32>
    %143 = vector.shape_cast %142 : vector<8xf32> to vector<8x1xf32>
    %144 = vector.broadcast %143 : vector<8x1xf32> to vector<8x16xf32>
    %145 = arith.subf %141, %144 : vector<8x16xf32>
    %146 = math.exp %145 : vector<8x16xf32>
    %cst_59 = arith.constant dense<0.000000e+00> : vector<8xf32>
    %147 = vector.multi_reduction <add>, %146, %cst_59 [1] : vector<8x16xf32> to vector<8xf32>
    %148 = vector.shape_cast %147 : vector<8xf32> to vector<8x1xf32>
    %149 = tpu.reciprocal %148 {approx = true} : vector<8x1xf32> -> vector<8x1xf32>
    %150 = vector.broadcast %149 : vector<8x1xf32> to vector<8x16xf32>
    %151 = arith.mulf %146, %150 : vector<8x16xf32>
    %cst_60 = arith.constant dense<0.000000e+00> : vector<8x8xf32>
    %152 = tpu.matmul %151, %140, %cst_60 {dimension_numbers = #tpu.dot_dimension_numbers<[1], [0], [0], [1], [0, 0, 1, 1], [], []>} : vector<8x16xf32>, vector<16x8xf32>, vector<8x8xf32> -> vector<8x8xf32>
    %153 = vector.extract_strided_slice %122 {offsets = [0, 0], sizes = [8, 32], strides = [1, 1]} : vector<32x32xf32> to vector<8x32xf32>
    %cst_61 = arith.constant dense<0.000000e+00> : vector<8x32xf32>
    %154 = tpu.matmul %152, %153, %cst_61 {dimension_numbers = #tpu.dot_dimension_numbers<[1], [0], [0], [1], [0, 0, 1, 1], [], []>} : vector<8x8xf32>, vector<8x32xf32>, vector<8x32xf32> -> vector<8x32xf32>
    %155 = vector.extract_strided_slice %128 {offsets = [0, 8], sizes = [8, 8], strides = [1, 1]} : vector<8x32xf32> to vector<8x8xf32>
    %cst_62 = arith.constant 0.353553385 : f32
    %156 = vector.broadcast %cst_62 : f32 to vector<8x8xf32>
    %157 = arith.mulf %155, %156 : vector<8x8xf32>
    %158 = vector.extract_strided_slice %134 {offsets = [0, 8], sizes = [16, 8], strides = [1, 1]} : vector<16x32xf32> to vector<16x8xf32>
    %159 = vector.extract_strided_slice %135 {offsets = [0, 8], sizes = [16, 8], strides = [1, 1]} : vector<16x32xf32> to vector<16x8xf32>
    %cst_63 = arith.constant dense<0.000000e+00> : vector<8x16xf32>
    %160 = tpu.matmul %157, %158, %cst_63 {dimension_numbers = #tpu.dot_dimension_numbers<[1], [1], [0], [0], [0, 0, 1, 0], [], []>} : vector<8x8xf32>, vector<16x8xf32>, vector<8x16xf32> -> vector<8x16xf32>
    %cst_64 = arith.constant dense<0xFF800000> : vector<8xf32>
    %161 = vector.multi_reduction <maximumf>, %160, %cst_64 [1] : vector<8x16xf32> to vector<8xf32>
    %162 = vector.shape_cast %161 : vector<8xf32> to vector<8x1xf32>
    %163 = vector.broadcast %162 : vector<8x1xf32> to vector<8x16xf32>
    %164 = arith.subf %160, %163 : vector<8x16xf32>
    %165 = math.exp %164 : vector<8x16xf32>
    %cst_65 = arith.constant dense<0.000000e+00> : vector<8xf32>
    %166 = vector.multi_reduction <add>, %165, %cst_65 [1] : vector<8x16xf32> to vector<8xf32>
    %167 = vector.shape_cast %166 : vector<8xf32> to vector<8x1xf32>
    %168 = tpu.reciprocal %167 {approx = true} : vector<8x1xf32> -> vector<8x1xf32>
    %169 = vector.broadcast %168 : vector<8x1xf32> to vector<8x16xf32>
    %170 = arith.mulf %165, %169 : vector<8x16xf32>
    %cst_66 = arith.constant dense<0.000000e+00> : vector<8x8xf32>
    %171 = tpu.matmul %170, %159, %cst_66 {dimension_numbers = #tpu.dot_dimension_numbers<[1], [0], [0], [1], [0, 0, 1, 1], [], []>} : vector<8x16xf32>, vector<16x8xf32>, vector<8x8xf32> -> vector<8x8xf32>
    %172 = vector.extract_strided_slice %122 {offsets = [8, 0], sizes = [8, 32], strides = [1, 1]} : vector<32x32xf32> to vector<8x32xf32>
    %cst_67 = arith.constant dense<0.000000e+00> : vector<8x32xf32>
    %173 = tpu.matmul %171, %172, %cst_67 {dimension_numbers = #tpu.dot_dimension_numbers<[1], [0], [0], [1], [0, 0, 1, 1], [], []>} : vector<8x8xf32>, vector<8x32xf32>, vector<8x32xf32> -> vector<8x32xf32>
    %174 = arith.addf %154, %173 : vector<8x32xf32>
    %175 = vector.extract_strided_slice %128 {offsets = [0, 16], sizes = [8, 8], strides = [1, 1]} : vector<8x32xf32> to vector<8x8xf32>
    %cst_68 = arith.constant 0.353553385 : f32
    %176 = vector.broadcast %cst_68 : f32 to vector<8x8xf32>
    %177 = arith.mulf %175, %176 : vector<8x8xf32>
    %178 = vector.extract_strided_slice %134 {offsets = [0, 16], sizes = [16, 8], strides = [1, 1]} : vector<16x32xf32> to vector<16x8xf32>
    %179 = vector.extract_strided_slice %135 {offsets = [0, 16], sizes = [16, 8], strides = [1, 1]} : vector<16x32xf32> to vector<16x8xf32>
    %cst_69 = arith.constant dense<0.000000e+00> : vector<8x16xf32>
    %180 = tpu.matmul %177, %178, %cst_69 {dimension_numbers = #tpu.dot_dimension_numbers<[1], [1], [0], [0], [0, 0, 1, 0], [], []>} : vector<8x8xf32>, vector<16x8xf32>, vector<8x16xf32> -> vector<8x16xf32>
    %cst_70 = arith.constant dense<0xFF800000> : vector<8xf32>
    %181 = vector.multi_reduction <maximumf>, %180, %cst_70 [1] : vector<8x16xf32> to vector<8xf32>
    %182 = vector.shape_cast %181 : vector<8xf32> to vector<8x1xf32>
    %183 = vector.broadcast %182 : vector<8x1xf32> to vector<8x16xf32>
    %184 = arith.subf %180, %183 : vector<8x16xf32>
    %185 = math.exp %184 : vector<8x16xf32>
    %cst_71 = arith.constant dense<0.000000e+00> : vector<8xf32>
    %186 = vector.multi_reduction <add>, %185, %cst_71 [1] : vector<8x16xf32> to vector<8xf32>
    %187 = vector.shape_cast %186 : vector<8xf32> to vector<8x1xf32>
    %188 = tpu.reciprocal %187 {approx = true} : vector<8x1xf32> -> vector<8x1xf32>
    %189 = vector.broadcast %188 : vector<8x1xf32> to vector<8x16xf32>
    %190 = arith.mulf %185, %189 : vector<8x16xf32>
    %cst_72 = arith.constant dense<0.000000e+00> : vector<8x8xf32>
    %191 = tpu.matmul %190, %179, %cst_72 {dimension_numbers = #tpu.dot_dimension_numbers<[1], [0], [0], [1], [0, 0, 1, 1], [], []>} : vector<8x16xf32>, vector<16x8xf32>, vector<8x8xf32> -> vector<8x8xf32>
    %192 = vector.extract_strided_slice %122 {offsets = [16, 0], sizes = [8, 32], strides = [1, 1]} : vector<32x32xf32> to vector<8x32xf32>
    %cst_73 = arith.constant dense<0.000000e+00> : vector<8x32xf32>
    %193 = tpu.matmul %191, %192, %cst_73 {dimension_numbers = #tpu.dot_dimension_numbers<[1], [0], [0], [1], [0, 0, 1, 1], [], []>} : vector<8x8xf32>, vector<8x32xf32>, vector<8x32xf32> -> vector<8x32xf32>
    %194 = arith.addf %174, %193 : vector<8x32xf32>
    %195 = vector.extract_strided_slice %128 {offsets = [0, 24], sizes = [8, 8], strides = [1, 1]} : vector<8x32xf32> to vector<8x8xf32>
    %cst_74 = arith.constant 0.353553385 : f32
    %196 = vector.broadcast %cst_74 : f32 to vector<8x8xf32>
    %197 = arith.mulf %195, %196 : vector<8x8xf32>
    %198 = vector.extract_strided_slice %134 {offsets = [0, 24], sizes = [16, 8], strides = [1, 1]} : vector<16x32xf32> to vector<16x8xf32>
    %199 = vector.extract_strided_slice %135 {offsets = [0, 24], sizes = [16, 8], strides = [1, 1]} : vector<16x32xf32> to vector<16x8xf32>
    %cst_75 = arith.constant dense<0.000000e+00> : vector<8x16xf32>
    %200 = tpu.matmul %197, %198, %cst_75 {dimension_numbers = #tpu.dot_dimension_numbers<[1], [1], [0], [0], [0, 0, 1, 0], [], []>} : vector<8x8xf32>, vector<16x8xf32>, vector<8x16xf32> -> vector<8x16xf32>
    %cst_76 = arith.constant dense<0xFF800000> : vector<8xf32>
    %201 = vector.multi_reduction <maximumf>, %200, %cst_76 [1] : vector<8x16xf32> to vector<8xf32>
    %202 = vector.shape_cast %201 : vector<8xf32> to vector<8x1xf32>
    %203 = vector.broadcast %202 : vector<8x1xf32> to vector<8x16xf32>
    %204 = arith.subf %200, %203 : vector<8x16xf32>
    %205 = math.exp %204 : vector<8x16xf32>
    %cst_77 = arith.constant dense<0.000000e+00> : vector<8xf32>
    %206 = vector.multi_reduction <add>, %205, %cst_77 [1] : vector<8x16xf32> to vector<8xf32>
    %207 = vector.shape_cast %206 : vector<8xf32> to vector<8x1xf32>
    %208 = tpu.reciprocal %207 {approx = true} : vector<8x1xf32> -> vector<8x1xf32>
    %209 = vector.broadcast %208 : vector<8x1xf32> to vector<8x16xf32>
    %210 = arith.mulf %205, %209 : vector<8x16xf32>
    %cst_78 = arith.constant dense<0.000000e+00> : vector<8x8xf32>
    %211 = tpu.matmul %210, %199, %cst_78 {dimension_numbers = #tpu.dot_dimension_numbers<[1], [0], [0], [1], [0, 0, 1, 1], [], []>} : vector<8x16xf32>, vector<16x8xf32>, vector<8x8xf32> -> vector<8x8xf32>
    %212 = vector.extract_strided_slice %122 {offsets = [24, 0], sizes = [8, 32], strides = [1, 1]} : vector<32x32xf32> to vector<8x32xf32>
    %cst_79 = arith.constant dense<0.000000e+00> : vector<8x32xf32>
    %213 = tpu.matmul %211, %212, %cst_79 {dimension_numbers = #tpu.dot_dimension_numbers<[1], [0], [0], [1], [0, 0, 1, 1], [], []>} : vector<8x8xf32>, vector<8x32xf32>, vector<8x32xf32> -> vector<8x32xf32>
    %214 = arith.addf %194, %213 : vector<8x32xf32>
    %215 = vector.broadcast %123 : vector<1x32xf32> to vector<8x32xf32>
    %216 = arith.addf %214, %215 : vector<8x32xf32>
    %217 = arith.addf %119, %216 : vector<8x32xf32>
    %c0_80 = arith.constant 0 : index
    %c0_81 = arith.constant 0 : index
    %218 = vector.load %arg13[%c0_80, %c0_81] : memref<1x32xf32, #tpu.memory_space<vmem>>, vector<1x32xf32>
    %c0_82 = arith.constant 0 : index
    %c0_83 = arith.constant 0 : index
    %219 = vector.load %arg14[%c0_82, %c0_83] : memref<1x32xf32, #tpu.memory_space<vmem>>, vector<1x32xf32>
    %cst_84 = arith.constant dense<0.000000e+00> : vector<8xf32>
    %220 = vector.multi_reduction <add>, %217, %cst_84 [1] : vector<8x32xf32> to vector<8xf32>
    %221 = vector.shape_cast %220 : vector<8xf32> to vector<8x1xf32>
    %cst_85 = arith.constant 3.200000e+01 : f32
    %222 = vector.broadcast %cst_85 : f32 to vector<8x1xf32>
    %223 = arith.divf %221, %222 : vector<8x1xf32>
    %224 = vector.broadcast %223 : vector<8x1xf32> to vector<8x32xf32>
    %225 = arith.subf %217, %224 : vector<8x32xf32>
    %226 = arith.mulf %225, %225 : vector<8x32xf32>
    %cst_86 = arith.constant dense<0.000000e+00> : vector<8xf32>
    %227 = vector.multi_reduction <add>, %226, %cst_86 [1] : vector<8x32xf32> to vector<8xf32>
    %228 = vector.shape_cast %227 : vector<8xf32> to vector<8x1xf32>
    %cst_87 = arith.constant 3.200000e+01 : f32
    %229 = vector.broadcast %cst_87 : f32 to vector<8x1xf32>
    %230 = arith.divf %228, %229 : vector<8x1xf32>
    %231 = vector.broadcast %223 : vector<8x1xf32> to vector<8x32xf32>
    %232 = arith.subf %217, %231 : vector<8x32xf32>
    %cst_88 = arith.constant 9.99999974E-6 : f32
    %233 = vector.broadcast %cst_88 : f32 to vector<8x1xf32>
    %234 = arith.addf %230, %233 : vector<8x1xf32>
    %235 = math.rsqrt %234 : vector<8x1xf32>
    %236 = vector.broadcast %235 : vector<8x1xf32> to vector<8x32xf32>
    %237 = arith.mulf %232, %236 : vector<8x32xf32>
    %238 = vector.broadcast %218 : vector<1x32xf32> to vector<8x32xf32>
    %239 = arith.mulf %237, %238 : vector<8x32xf32>
    %240 = vector.broadcast %219 : vector<1x32xf32> to vector<8x32xf32>
    %241 = arith.addf %239, %240 : vector<8x32xf32>
    %c0_89 = arith.constant 0 : index
    %c0_90 = arith.constant 0 : index
    %242 = vector.load %arg15[%c0_89, %c0_90] : memref<32x64xf32, #tpu.memory_space<vmem>>, vector<32x64xf32>
    %cst_91 = arith.constant dense<0.000000e+00> : vector<8x64xf32>
    %243 = tpu.matmul %241, %242, %cst_91 {dimension_numbers = #tpu.dot_dimension_numbers<[1], [0], [0], [1], [0, 0, 1, 1], [], []>} : vector<8x32xf32>, vector<32x64xf32>, vector<8x64xf32> -> vector<8x64xf32>
    %c0_92 = arith.constant 0 : index
    %c0_93 = arith.constant 0 : index
    %244 = vector.load %arg16[%c0_92, %c0_93] : memref<1x64xf32, #tpu.memory_space<vmem>>, vector<1x64xf32>
    %245 = vector.broadcast %244 : vector<1x64xf32> to vector<8x64xf32>
    %246 = arith.addf %243, %245 : vector<8x64xf32>
    %cst_94 = arith.constant 0.000000e+00 : f32
    %247 = vector.broadcast %cst_94 : f32 to vector<8x64xf32>
    %248 = arith.maximumf %246, %247 : vector<8x64xf32>
    %c0_95 = arith.constant 0 : index
    %c0_96 = arith.constant 0 : index
    %249 = vector.load %arg17[%c0_95, %c0_96] : memref<64x32xf32, #tpu.memory_space<vmem>>, vector<64x32xf32>
    %cst_97 = arith.constant dense<0.000000e+00> : vector<8x32xf32>
    %250 = tpu.matmul %248, %249, %cst_97 {dimension_numbers = #tpu.dot_dimension_numbers<[1], [0], [0], [1], [0, 0, 1, 1], [], []>} : vector<8x64xf32>, vector<64x32xf32>, vector<8x32xf32> -> vector<8x32xf32>
    %c0_98 = arith.constant 0 : index
    %c0_99 = arith.constant 0 : index
    %251 = vector.load %arg18[%c0_98, %c0_99] : memref<1x32xf32, #tpu.memory_space<vmem>>, vector<1x32xf32>
    %252 = vector.broadcast %251 : vector<1x32xf32> to vector<8x32xf32>
    %253 = arith.addf %250, %252 : vector<8x32xf32>
    %254 = arith.addf %241, %253 : vector<8x32xf32>
    %c0_100 = arith.constant 0 : index
    %c0_101 = arith.constant 0 : index
    %255 = vector.load %arg19[%c0_100, %c0_101] : memref<1x32xf32, #tpu.memory_space<vmem>>, vector<1x32xf32>
    %c0_102 = arith.constant 0 : index
    %c0_103 = arith.constant 0 : index
    %256 = vector.load %arg20[%c0_102, %c0_103] : memref<1x32xf32, #tpu.memory_space<vmem>>, vector<1x32xf32>
    %cst_104 = arith.constant dense<0.000000e+00> : vector<8xf32>
    %257 = vector.multi_reduction <add>, %254, %cst_104 [1] : vector<8x32xf32> to vector<8xf32>
    %258 = vector.shape_cast %257 : vector<8xf32> to vector<8x1xf32>
    %cst_105 = arith.constant 3.200000e+01 : f32
    %259 = vector.broadcast %cst_105 : f32 to vector<8x1xf32>
    %260 = arith.divf %258, %259 : vector<8x1xf32>
    %261 = vector.broadcast %260 : vector<8x1xf32> to vector<8x32xf32>
    %262 = arith.subf %254, %261 : vector<8x32xf32>
    %263 = arith.mulf %262, %262 : vector<8x32xf32>
    %cst_106 = arith.constant dense<0.000000e+00> : vector<8xf32>
    %264 = vector.multi_reduction <add>, %263, %cst_106 [1] : vector<8x32xf32> to vector<8xf32>
    %265 = vector.shape_cast %264 : vector<8xf32> to vector<8x1xf32>
    %cst_107 = arith.constant 3.200000e+01 : f32
    %266 = vector.broadcast %cst_107 : f32 to vector<8x1xf32>
    %267 = arith.divf %265, %266 : vector<8x1xf32>
    %268 = vector.broadcast %260 : vector<8x1xf32> to vector<8x32xf32>
    %269 = arith.subf %254, %268 : vector<8x32xf32>
    %cst_108 = arith.constant 9.99999974E-6 : f32
    %270 = vector.broadcast %cst_108 : f32 to vector<8x1xf32>
    %271 = arith.addf %267, %270 : vector<8x1xf32>
    %272 = math.rsqrt %271 : vector<8x1xf32>
    %273 = vector.broadcast %272 : vector<8x1xf32> to vector<8x32xf32>
    %274 = arith.mulf %269, %273 : vector<8x32xf32>
    %275 = vector.broadcast %255 : vector<1x32xf32> to vector<8x32xf32>
    %276 = arith.mulf %274, %275 : vector<8x32xf32>
    %277 = vector.broadcast %256 : vector<1x32xf32> to vector<8x32xf32>
    %278 = arith.addf %276, %277 : vector<8x32xf32>
    %c0_109 = arith.constant 0 : index
    %c0_110 = arith.constant 0 : index
    %c0_111 = arith.constant 0 : index
    %279 = vector.load %arg21[%c0_109, %c0_110, %c0_111] : memref<1x8x32xf32, #tpu.memory_space<vmem>>, vector<1x8x32xf32>
    %280 = vector.shape_cast %279 : vector<1x8x32xf32> to vector<8x32xf32>
    %281 = vector.shape_cast %278 : vector<8x32xf32> to vector<1x8x32xf32>
    tpu.vector_store %arg21[%c0_109, %c0_110, %c0_111], %281 {strides = array<i32>} : memref<1x8x32xf32, #tpu.memory_space<vmem>>, vector<1x8x32xf32>,
    return
  }
  func.func @transform_0(%arg0: i32) -> (i32, i32, i32) {
    %c0_i32 = arith.constant 0 : i32
    %c0_i32_0 = arith.constant 0 : i32
    %c0_i32_1 = arith.constant 0 : i32
    return %arg0, %c0_i32, %c0_i32_0 : i32, i32, i32
  }
  func.func @transform_1(%arg0: i32) -> (i32, i32, i32) {
    %c0_i32 = arith.constant 0 : i32
    %c0_i32_0 = arith.constant 0 : i32
    %c0_i32_1 = arith.constant 0 : i32
    return %arg0, %c0_i32, %c0_i32_0 : i32, i32, i32
  }
  func.func @transform_2(%arg0: i32) -> (i32, i32) {
    %c0_i32 = arith.constant 0 : i32
    %c0_i32_0 = arith.constant 0 : i32
    %c0_i32_1 = arith.constant 0 : i32
    return %c0_i32, %c0_i32_0 : i32, i32
  }
  func.func @transform_3(%arg0: i32) -> (i32, i32) {
    %c0_i32 = arith.constant 0 : i32
    %c0_i32_0 = arith.constant 0 : i32
    %c0_i32_1 = arith.constant 0 : i32
    return %c0_i32, %c0_i32_0 : i32, i32
  }
  func.func @transform_4(%arg0: i32) -> (i32, i32) {
    %c0_i32 = arith.constant 0 : i32
    %c0_i32_0 = arith.constant 0 : i32
    %c0_i32_1 = arith.constant 0 : i32
    return %c0_i32, %c0_i32_0 : i32, i32
  }
  func.func @transform_5(%arg0: i32) -> (i32, i32) {
    %c0_i32 = arith.constant 0 : i32
    %c0_i32_0 = arith.constant 0 : i32
    %c0_i32_1 = arith.constant 0 : i32
    return %c0_i32, %c0_i32_0 : i32, i32
  }
  func.func @transform_6(%arg0: i32) -> (i32, i32) {
    %c0_i32 = arith.constant 0 : i32
    %c0_i32_0 = arith.constant 0 : i32
    %c0_i32_1 = arith.constant 0 : i32
    return %c0_i32, %c0_i32_0 : i32, i32
  }
  func.func @transform_7(%arg0: i32) -> (i32, i32) {
    %c0_i32 = arith.constant 0 : i32
    %c0_i32_0 = arith.constant 0 : i32
    %c0_i32_1 = arith.constant 0 : i32
    return %c0_i32, %c0_i32_0 : i32, i32
  }
  func.func @transform_8(%arg0: i32) -> (i32, i32) {
    %c0_i32 = arith.constant 0 : i32
    %c0_i32_0 = arith.constant 0 : i32
    %c0_i32_1 = arith.constant 0 : i32
    return %c0_i32, %c0_i32_0 : i32, i32
  }
  func.func @transform_9(%arg0: i32) -> (i32, i32) {
    %c0_i32 = arith.constant 0 : i32
    %c0_i32_0 = arith.constant 0 : i32
    %c0_i32_1 = arith.constant 0 : i32
    return %c0_i32, %c0_i32_0 : i32, i32
  }
  func.func @transform_10(%arg0: i32) -> (i32, i32) {
    %c0_i32 = arith.constant 0 : i32
    %c0_i32_0 = arith.constant 0 : i32
    %c0_i32_1 = arith.constant 0 : i32
    return %c0_i32, %c0_i32_0 : i32, i32
  }
  func.func @transform_11(%arg0: i32) -> (i32, i32) {
    %c0_i32 = arith.constant 0 : i32
    %c0_i32_0 = arith.constant 0 : i32
    %c0_i32_1 = arith.constant 0 : i32
    return %c0_i32, %c0_i32_0 : i32, i32
  }
  func.func @transform_12(%arg0: i32) -> (i32, i32) {
    %c0_i32 = arith.constant 0 : i32
    %c0_i32_0 = arith.constant 0 : i32
    %c0_i32_1 = arith.constant 0 : i32
    return %c0_i32, %c0_i32_0 : i32, i32
  }
  func.func @transform_13(%arg0: i32) -> (i32, i32) {
    %c0_i32 = arith.constant 0 : i32
    %c0_i32_0 = arith.constant 0 : i32
    %c0_i32_1 = arith.constant 0 : i32
    return %c0_i32, %c0_i32_0 : i32, i32
  }
  func.func @transform_14(%arg0: i32) -> (i32, i32) {
    %c0_i32 = arith.constant 0 : i32
    %c0_i32_0 = arith.constant 0 : i32
    %c0_i32_1 = arith.constant 0 : i32
    return %c0_i32, %c0_i32_0 : i32, i32
  }
  func.func @transform_15(%arg0: i32) -> (i32, i32) {
    %c0_i32 = arith.constant 0 : i32
    %c0_i32_0 = arith.constant 0 : i32
    %c0_i32_1 = arith.constant 0 : i32
    return %c0_i32, %c0_i32_0 : i32, i32
  }
  func.func @transform_16(%arg0: i32) -> (i32, i32) {
    %c0_i32 = arith.constant 0 : i32
    %c0_i32_0 = arith.constant 0 : i32
    %c0_i32_1 = arith.constant 0 : i32
    return %c0_i32, %c0_i32_0 : i32, i32
  }
  func.func @transform_17(%arg0: i32) -> (i32, i32) {
    %c0_i32 = arith.constant 0 : i32
    %c0_i32_0 = arith.constant 0 : i32
    %c0_i32_1 = arith.constant 0 : i32
    return %c0_i32, %c0_i32_0 : i32, i32
  }
  func.func @transform_18(%arg0: i32) -> (i32, i32) {
    %c0_i32 = arith.constant 0 : i32
    %c0_i32_0 = arith.constant 0 : i32
    %c0_i32_1 = arith.constant 0 : i32
    return %c0_i32, %c0_i32_0 : i32, i32
  }
  func.func @transform_19(%arg0: i32) -> (i32, i32) {
    %c0_i32 = arith.constant 0 : i32
    %c0_i32_0 = arith.constant 0 : i32
    %c0_i32_1 = arith.constant 0 : i32
    return %c0_i32, %c0_i32_0 : i32, i32
  }
  func.func @transform_20(%arg0: i32) -> (i32, i32, i32) {
    %c0_i32 = arith.constant 0 : i32
    %c0_i32_0 = arith.constant 0 : i32
    %c0_i32_1 = arith.constant 0 : i32
    return %arg0, %c0_i32, %c0_i32_0 : i32, i32, i32
  }
}

module attributes {stable_mosaic.version = 11 : i64} {
  func.func @_decoder_layer_kernel(%arg0: i32, %arg1: memref<1x8x32xf32, #tpu.memory_space<vmem>>, %arg2: memref<1x16x32xf32, #tpu.memory_space<vmem>>, %arg3: memref<32x96xf32, #tpu.memory_space<vmem>>, %arg4: memref<1x96xf32, #tpu.memory_space<vmem>>, %arg5: memref<32x32xf32, #tpu.memory_space<vmem>>, %arg6: memref<1x32xf32, #tpu.memory_space<vmem>>, %arg7: memref<32x96xf32, #tpu.memory_space<vmem>>, %arg8: memref<1x96xf32, #tpu.memory_space<vmem>>, %arg9: memref<32x32xf32, #tpu.memory_space<vmem>>, %arg10: memref<1x32xf32, #tpu.memory_space<vmem>>, %arg11: memref<1x32xf32, #tpu.memory_space<vmem>>, %arg12: memref<1x32xf32, #tpu.memory_space<vmem>>, %arg13: memref<1x32xf32, #tpu.memory_space<vmem>>, %arg14: memref<1x32xf32, #tpu.memory_space<vmem>>, %arg15: memref<32x64xf32, #tpu.memory_space<vmem>>, %arg16: memref<1x64xf32, #tpu.memory_space<vmem>>, %arg17: memref<64x32xf32, #tpu.memory_space<vmem>>, %arg18: memref<1x32xf32, #tpu.memory_space<vmem>>, %arg19: memref<1x32xf32, #tpu.memory_space<vmem>>, %arg20: memref<1x32xf32, #tpu.memory_space<vmem>>, %arg21: memref<1x8x32xf32, #tpu.memory_space<vmem>>) attributes {dimension_semantics = [#tpu.dimension_semantics<parallel>], iteration_bounds = array<i64: 2>, scalar_prefetch = 0 : i64, scratch_operands = 0 : i64, tpu.core_type = #tpu.core_type<tc>, window_params = [{transform_indices = @transform_0, window_bounds = array<i64: 1, 8, 32>}, {transform_indices = @transform_1, window_bounds = array<i64: 1, 16, 32>}, {pipeline_mode = #tpu.pipeline_mode<synchronous>, transform_indices = @transform_2, window_bounds = array<i64: 32, 96>}, {pipeline_mode = #tpu.pipeline_mode<synchronous>, transform_indices = @transform_3, window_bounds = array<i64: 1, 96>}, {pipeline_mode = #tpu.pipeline_mode<synchronous>, transform_indices = @transform_4, window_bounds = array<i64: 32, 32>}, {pipeline_mode = #tpu.pipeline_mode<synchronous>, transform_indices = @transform_5, window_bounds = array<i64: 1, 32>}, {pipeline_mode = #tpu.pipeline_mode<synchronous>, transform_indices = @transform_6, window_bounds = array<i64: 32, 96>}, {pipeline_mode = #tpu.pipeline_mode<synchronous>, transform_indices = @transform_7, window_bounds = array<i64: 1, 96>}, {pipeline_mode = #tpu.pipeline_mode<synchronous>, transform_indices = @transform_8, window_bounds = array<i64: 32, 32>}, {pipeline_mode = #tpu.pipeline_mode<synchronous>, transform_indices = @transform_9, window_bounds = array<i64: 1, 32>}, {pipeline_mode = #tpu.pipeline_mode<synchronous>, transform_indices = @transform_10, window_bounds = array<i64: 1, 32>}, {pipeline_mode = #tpu.pipeline_mode<synchronous>, transform_indices = @transform_11, window_bounds = array<i64: 1, 32>}, {pipeline_mode = #tpu.pipeline_mode<synchronous>, transform_indices = @transform_12, window_bounds = array<i64: 1, 32>}, {pipeline_mode = #tpu.pipeline_mode<synchronous>, transform_indices = @transform_13, window_bounds = array<i64: 1, 32>}, {pipeline_mode = #tpu.pipeline_mode<synchronous>, transform_indices = @transform_14, window_bounds = array<i64: 32, 64>}, {pipeline_mode = #tpu.pipeline_mode<synchronous>, transform_indices = @transform_15, window_bounds = array<i64: 1, 64>}, {pipeline_mode = #tpu.pipeline_mode<synchronous>, transform_indices = @transform_16, window_bounds = array<i64: 64, 32>}, {pipeline_mode = #tpu.pipeline_mode<synchronous>, transform_indices = @transform_17, window_bounds = array<i64: 1, 32>}, {pipeline_mode = #tpu.pipeline_mode<synchronous>, transform_indices = @transform_18, window_bounds = array<i64: 1, 32>}, {pipeline_mode = #tpu.pipeline_mode<synchronous>, transform_indices = @transform_19, window_bounds = array<i64: 1, 32>}, {transform_indices = @transform_20, window_bounds = array<i64: 1, 8, 32>}]} {
    %c0 = arith.constant 0 : index
    %c0_0 = arith.constant 0 : index
    %c0_1 = arith.constant 0 : index
    %0 = vector.load %arg1[%c0, %c0_0, %c0_1] : memref<1x8x32xf32, #tpu.memory_space<vmem>>, vector<1x8x32xf32>
    %1 = vector.shape_cast %0 : vector<1x8x32xf32> to vector<8x32xf32>
    %c0_2 = arith.constant 0 : index
    %c0_3 = arith.constant 0 : index
    %c0_4 = arith.constant 0 : index
    %2 = vector.load %arg2[%c0_2, %c0_3, %c0_4] : memref<1x16x32xf32, #tpu.memory_space<vmem>>, vector<1x16x32xf32>
    %3 = vector.shape_cast %2 : vector<1x16x32xf32> to vector<16x32xf32>
    %c0_5 = arith.constant 0 : index
    %c0_6 = arith.constant 0 : index
    %4 = vector.load %arg3[%c0_5, %c0_6] : memref<32x96xf32, #tpu.memory_space<vmem>>, vector<32x96xf32>
    %c0_7 = arith.constant 0 : index
    %c0_8 = arith.constant 0 : index
    %5 = vector.load %arg4[%c0_7, %c0_8] : memref<1x96xf32, #tpu.memory_space<vmem>>, vector<1x96xf32>
    %c0_9 = arith.constant 0 : index
    %c0_10 = arith.constant 0 : index
    %6 = vector.load %arg5[%c0_9, %c0_10] : memref<32x32xf32, #tpu.memory_space<vmem>>, vector<32x32xf32>
    %c0_11 = arith.constant 0 : index
    %c0_12 = arith.constant 0 : index
    %7 = vector.load %arg6[%c0_11, %c0_12] : memref<1x32xf32, #tpu.memory_space<vmem>>, vector<1x32xf32>
    %cst = arith.constant dense<0.000000e+00> : vector<8x96xf32>
    %8 = tpu.matmul %1, %4, %cst {dimension_numbers = #tpu.dot_dimension_numbers<[1], [0], [0], [1], [0, 0, 1, 1], [], []>} : vector<8x32xf32>, vector<32x96xf32>, vector<8x96xf32> -> vector<8x96xf32>
    %9 = vector.broadcast %5 : vector<1x96xf32> to vector<8x96xf32>
    %10 = arith.addf %8, %9 : vector<8x96xf32>
    %11 = vector.extract_strided_slice %10 {offsets = [0, 0], sizes = [8, 32], strides = [1, 1]} : vector<8x96xf32> to vector<8x32xf32>
    %12 = vector.extract_strided_slice %10 {offsets = [0, 32], sizes = [8, 32], strides = [1, 1]} : vector<8x96xf32> to vector<8x32xf32>
    %13 = vector.extract_strided_slice %10 {offsets = [0, 64], sizes = [8, 32], strides = [1, 1]} : vector<8x96xf32> to vector<8x32xf32>
    %14 = vector.extract_strided_slice %11 {offsets = [0, 0], sizes = [8, 8], strides = [1, 1]} : vector<8x32xf32> to vector<8x8xf32>
    %cst_13 = arith.constant 0.353553385 : f32
    %15 = vector.broadcast %cst_13 : f32 to vector<8x8xf32>
    %16 = arith.mulf %14, %15 : vector<8x8xf32>
    %17 = vector.extract_strided_slice %12 {offsets = [0, 0], sizes = [8, 8], strides = [1, 1]} : vector<8x32xf32> to vector<8x8xf32>
    %18 = vector.extract_strided_slice %13 {offsets = [0, 0], sizes = [8, 8], strides = [1, 1]} : vector<8x32xf32> to vector<8x8xf32>
    %cst_14 = arith.constant dense<0.000000e+00> : vector<8x8xf32>
    %19 = tpu.matmul %16, %17, %cst_14 {dimension_numbers = #tpu.dot_dimension_numbers<[1], [1], [0], [0], [0, 0, 1, 0], [], []>} : vector<8x8xf32>, vector<8x8xf32>, vector<8x8xf32> -> vector<8x8xf32>
    %cst_15 = arith.constant dense<0xFF800000> : vector<8xf32>
    %20 = vector.multi_reduction <maximumf>, %19, %cst_15 [1] : vector<8x8xf32> to vector<8xf32>
    %21 = vector.shape_cast %20 : vector<8xf32> to vector<8x1xf32>
    %22 = vector.broadcast %21 : vector<8x1xf32> to vector<8x8xf32>
    %23 = arith.subf %19, %22 : vector<8x8xf32>
    %24 = math.exp %23 : vector<8x8xf32>
    %cst_16 = arith.constant dense<0.000000e+00> : vector<8xf32>
    %25 = vector.multi_reduction <add>, %24, %cst_16 [1] : vector<8x8xf32> to vector<8xf32>
    %26 = vector.shape_cast %25 : vector<8xf32> to vector<8x1xf32>
    %27 = tpu.reciprocal %26 {approx = true} : vector<8x1xf32> -> vector<8x1xf32>
    %28 = vector.broadcast %27 : vector<8x1xf32> to vector<8x8xf32>
    %29 = arith.mulf %24, %28 : vector<8x8xf32>
    %cst_17 = arith.constant dense<0.000000e+00> : vector<8x8xf32>
    %30 = tpu.matmul %29, %18, %cst_17 {dimension_numbers = #tpu.dot_dimension_numbers<[1], [0], [0], [1], [0, 0, 1, 1], [], []>} : vector<8x8xf32>, vector<8x8xf32>, vector<8x8xf32> -> vector<8x8xf32>
    %31 = vector.extract_strided_slice %6 {offsets = [0, 0], sizes = [8, 32], strides = [1, 1]} : vector<32x32xf32> to vector<8x32xf32>
    %cst_18 = arith.constant dense<0.000000e+00> : vector<8x32xf32>
    %32 = tpu.matmul %30, %31, %cst_18 {dimension_numbers = #tpu.dot_dimension_numbers<[1], [0], [0], [1], [0, 0, 1, 1], [], []>} : vector<8x8xf32>, vector<8x32xf32>, vector<8x32xf32> -> vector<8x32xf32>
    %33 = vector.extract_strided_slice %11 {offsets = [0, 8], sizes = [8, 8], strides = [1, 1]} : vector<8x32xf32> to vector<8x8xf32>
    %cst_19 = arith.constant 0.353553385 : f32
    %34 = vector.broadcast %cst_19 : f32 to vector<8x8xf32>
    %35 = arith.mulf %33, %34 : vector<8x8xf32>
    %36 = vector.extract_strided_slice %12 {offsets = [0, 8], sizes = [8, 8], strides = [1, 1]} : vector<8x32xf32> to vector<8x8xf32>
    %37 = vector.extract_strided_slice %13 {offsets = [0, 8], sizes = [8, 8], strides = [1, 1]} : vector<8x32xf32> to vector<8x8xf32>
    %cst_20 = arith.constant dense<0.000000e+00> : vector<8x8xf32>
    %38 = tpu.matmul %35, %36, %cst_20 {dimension_numbers = #tpu.dot_dimension_numbers<[1], [1], [0], [0], [0, 0, 1, 0], [], []>} : vector<8x8xf32>, vector<8x8xf32>, vector<8x8xf32> -> vector<8x8xf32>
    %cst_21 = arith.constant dense<0xFF800000> : vector<8xf32>
    %39 = vector.multi_reduction <maximumf>, %38, %cst_21 [1] : vector<8x8xf32> to vector<8xf32>
    %40 = vector.shape_cast %39 : vector<8xf32> to vector<8x1xf32>
    %41 = vector.broadcast %40 : vector<8x1xf32> to vector<8x8xf32>
    %42 = arith.subf %38, %41 : vector<8x8xf32>
    %43 = math.exp %42 : vector<8x8xf32>
    %cst_22 = arith.constant dense<0.000000e+00> : vector<8xf32>
    %44 = vector.multi_reduction <add>, %43, %cst_22 [1] : vector<8x8xf32> to vector<8xf32>
    %45 = vector.shape_cast %44 : vector<8xf32> to vector<8x1xf32>
    %46 = tpu.reciprocal %45 {approx = true} : vector<8x1xf32> -> vector<8x1xf32>
    %47 = vector.broadcast %46 : vector<8x1xf32> to vector<8x8xf32>
    %48 = arith.mulf %43, %47 : vector<8x8xf32>
    %cst_23 = arith.constant dense<0.000000e+00> : vector<8x8xf32>
    %49 = tpu.matmul %48, %37, %cst_23 {dimension_numbers = #tpu.dot_dimension_numbers<[1], [0], [0], [1], [0, 0, 1, 1], [], []>} : vector<8x8xf32>, vector<8x8xf32>, vector<8x8xf32> -> vector<8x8xf32>
    %50 = vector.extract_strided_slice %6 {offsets = [8, 0], sizes = [8, 32], strides = [1, 1]} : vector<32x32xf32> to vector<8x32xf32>
    %cst_24 = arith.constant dense<0.000000e+00> : vector<8x32xf32>
    %51 = tpu.matmul %49, %50, %cst_24 {dimension_numbers = #tpu.dot_dimension_numbers<[1], [0], [0], [1], [0, 0, 1, 1], [], []>} : vector<8x8xf32>, vector<8x32xf32>, vector<8x32xf32> -> vector<8x32xf32>
    %52 = arith.addf %32, %51 : vector<8x32xf32>
    %53 = vector.extract_strided_slice %11 {offsets = [0, 16], sizes = [8, 8], strides = [1, 1]} : vector<8x32xf32> to vector<8x8xf32>
    %cst_25 = arith.constant 0.353553385 : f32
    %54 = vector.broadcast %cst_25 : f32 to vector<8x8xf32>
    %55 = arith.mulf %53, %54 : vector<8x8xf32>
    %56 = vector.extract_strided_slice %12 {offsets = [0, 16], sizes = [8, 8], strides = [1, 1]} : vector<8x32xf32> to vector<8x8xf32>
    %57 = vector.extract_strided_slice %13 {offsets = [0, 16], sizes = [8, 8], strides = [1, 1]} : vector<8x32xf32> to vector<8x8xf32>
    %cst_26 = arith.constant dense<0.000000e+00> : vector<8x8xf32>
    %58 = tpu.matmul %55, %56, %cst_26 {dimension_numbers = #tpu.dot_dimension_numbers<[1], [1], [0], [0], [0, 0, 1, 0], [], []>} : vector<8x8xf32>, vector<8x8xf32>, vector<8x8xf32> -> vector<8x8xf32>
    %cst_27 = arith.constant dense<0xFF800000> : vector<8xf32>
    %59 = vector.multi_reduction <maximumf>, %58, %cst_27 [1] : vector<8x8xf32> to vector<8xf32>
    %60 = vector.shape_cast %59 : vector<8xf32> to vector<8x1xf32>
    %61 = vector.broadcast %60 : vector<8x1xf32> to vector<8x8xf32>
    %62 = arith.subf %58, %61 : vector<8x8xf32>
    %63 = math.exp %62 : vector<8x8xf32>
    %cst_28 = arith.constant dense<0.000000e+00> : vector<8xf32>
    %64 = vector.multi_reduction <add>, %63, %cst_28 [1] : vector<8x8xf32> to vector<8xf32>
    %65 = vector.shape_cast %64 : vector<8xf32> to vector<8x1xf32>
    %66 = tpu.reciprocal %65 {approx = true} : vector<8x1xf32> -> vector<8x1xf32>
    %67 = vector.broadcast %66 : vector<8x1xf32> to vector<8x8xf32>
    %68 = arith.mulf %63, %67 : vector<8x8xf32>
    %cst_29 = arith.constant dense<0.000000e+00> : vector<8x8xf32>
    %69 = tpu.matmul %68, %57, %cst_29 {dimension_numbers = #tpu.dot_dimension_numbers<[1], [0], [0], [1], [0, 0, 1, 1], [], []>} : vector<8x8xf32>, vector<8x8xf32>, vector<8x8xf32> -> vector<8x8xf32>
    %70 = vector.extract_strided_slice %6 {offsets = [16, 0], sizes = [8, 32], strides = [1, 1]} : vector<32x32xf32> to vector<8x32xf32>
    %cst_30 = arith.constant dense<0.000000e+00> : vector<8x32xf32>
    %71 = tpu.matmul %69, %70, %cst_30 {dimension_numbers = #tpu.dot_dimension_numbers<[1], [0], [0], [1], [0, 0, 1, 1], [], []>} : vector<8x8xf32>, vector<8x32xf32>, vector<8x32xf32> -> vector<8x32xf32>
    %72 = arith.addf %52, %71 : vector<8x32xf32>
    %73 = vector.extract_strided_slice %11 {offsets = [0, 24], sizes = [8, 8], strides = [1, 1]} : vector<8x32xf32> to vector<8x8xf32>
    %cst_31 = arith.constant 0.353553385 : f32
    %74 = vector.broadcast %cst_31 : f32 to vector<8x8xf32>
    %75 = arith.mulf %73, %74 : vector<8x8xf32>
    %76 = vector.extract_strided_slice %12 {offsets = [0, 24], sizes = [8, 8], strides = [1, 1]} : vector<8x32xf32> to vector<8x8xf32>
    %77 = vector.extract_strided_slice %13 {offsets = [0, 24], sizes = [8, 8], strides = [1, 1]} : vector<8x32xf32> to vector<8x8xf32>
    %cst_32 = arith.constant dense<0.000000e+00> : vector<8x8xf32>
    %78 = tpu.matmul %75, %76, %cst_32 {dimension_numbers = #tpu.dot_dimension_numbers<[1], [1], [0], [0], [0, 0, 1, 0], [], []>} : vector<8x8xf32>, vector<8x8xf32>, vector<8x8xf32> -> vector<8x8xf32>
    %cst_33 = arith.constant dense<0xFF800000> : vector<8xf32>
    %79 = vector.multi_reduction <maximumf>, %78, %cst_33 [1] : vector<8x8xf32> to vector<8xf32>
    %80 = vector.shape_cast %79 : vector<8xf32> to vector<8x1xf32>
    %81 = vector.broadcast %80 : vector<8x1xf32> to vector<8x8xf32>
    %82 = arith.subf %78, %81 : vector<8x8xf32>
    %83 = math.exp %82 : vector<8x8xf32>
    %cst_34 = arith.constant dense<0.000000e+00> : vector<8xf32>
    %84 = vector.multi_reduction <add>, %83, %cst_34 [1] : vector<8x8xf32> to vector<8xf32>
    %85 = vector.shape_cast %84 : vector<8xf32> to vector<8x1xf32>
    %86 = tpu.reciprocal %85 {approx = true} : vector<8x1xf32> -> vector<8x1xf32>
    %87 = vector.broadcast %86 : vector<8x1xf32> to vector<8x8xf32>
    %88 = arith.mulf %83, %87 : vector<8x8xf32>
    %cst_35 = arith.constant dense<0.000000e+00> : vector<8x8xf32>
    %89 = tpu.matmul %88, %77, %cst_35 {dimension_numbers = #tpu.dot_dimension_numbers<[1], [0], [0], [1], [0, 0, 1, 1], [], []>} : vector<8x8xf32>, vector<8x8xf32>, vector<8x8xf32> -> vector<8x8xf32>
    %90 = vector.extract_strided_slice %6 {offsets = [24, 0], sizes = [8, 32], strides = [1, 1]} : vector<32x32xf32> to vector<8x32xf32>
    %cst_36 = arith.constant dense<0.000000e+00> : vector<8x32xf32>
    %91 = tpu.matmul %89, %90, %cst_36 {dimension_numbers = #tpu.dot_dimension_numbers<[1], [0], [0], [1], [0, 0, 1, 1], [], []>} : vector<8x8xf32>, vector<8x32xf32>, vector<8x32xf32> -> vector<8x32xf32>
    %92 = arith.addf %72, %91 : vector<8x32xf32>
    %93 = vector.broadcast %7 : vector<1x32xf32> to vector<8x32xf32>
    %94 = arith.addf %92, %93 : vector<8x32xf32>
    %95 = arith.addf %1, %94 : vector<8x32xf32>
    %c0_37 = arith.constant 0 : index
    %c0_38 = arith.constant 0 : index
    %96 = vector.load %arg11[%c0_37, %c0_38] : memref<1x32xf32, #tpu.memory_space<vmem>>, vector<1x32xf32>
    %c0_39 = arith.constant 0 : index
    %c0_40 = arith.constant 0 : index
    %97 = vector.load %arg12[%c0_39, %c0_40] : memref<1x32xf32, #tpu.memory_space<vmem>>, vector<1x32xf32>
    %cst_41 = arith.constant dense<0.000000e+00> : vector<8xf32>
    %98 = vector.multi_reduction <add>, %95, %cst_41 [1] : vector<8x32xf32> to vector<8xf32>
    %99 = vector.shape_cast %98 : vector<8xf32> to vector<8x1xf32>
    %cst_42 = arith.constant 3.200000e+01 : f32
    %100 = vector.broadcast %cst_42 : f32 to vector<8x1xf32>
    %101 = arith.divf %99, %100 : vector<8x1xf32>
    %102 = vector.broadcast %101 : vector<8x1xf32> to vector<8x32xf32>
    %103 = arith.subf %95, %102 : vector<8x32xf32>
    %104 = arith.mulf %103, %103 : vector<8x32xf32>
    %cst_43 = arith.constant dense<0.000000e+00> : vector<8xf32>
    %105 = vector.multi_reduction <add>, %104, %cst_43 [1] : vector<8x32xf32> to vector<8xf32>
    %106 = vector.shape_cast %105 : vector<8xf32> to vector<8x1xf32>
    %cst_44 = arith.constant 3.200000e+01 : f32
    %107 = vector.broadcast %cst_44 : f32 to vector<8x1xf32>
    %108 = arith.divf %106, %107 : vector<8x1xf32>
    %109 = vector.broadcast %101 : vector<8x1xf32> to vector<8x32xf32>
    %110 = arith.subf %95, %109 : vector<8x32xf32>
    %cst_45 = arith.constant 9.99999974E-6 : f32
    %111 = vector.broadcast %cst_45 : f32 to vector<8x1xf32>
    %112 = arith.addf %108, %111 : vector<8x1xf32>
    %113 = math.rsqrt %112 : vector<8x1xf32>
    %114 = vector.broadcast %113 : vector<8x1xf32> to vector<8x32xf32>
    %115 = arith.mulf %110, %114 : vector<8x32xf32>
    %116 = vector.broadcast %96 : vector<1x32xf32> to vector<8x32xf32>
    %117 = arith.mulf %115, %116 : vector<8x32xf32>
    %118 = vector.broadcast %97 : vector<1x32xf32> to vector<8x32xf32>
    %119 = arith.addf %117, %118 : vector<8x32xf32>
    %c0_46 = arith.constant 0 : index
    %c0_47 = arith.constant 0 : index
    %120 = vector.load %arg7[%c0_46, %c0_47] : memref<32x96xf32, #tpu.memory_space<vmem>>, vector<32x96xf32>
    %c0_48 = arith.constant 0 : index
    %c0_49 = arith.constant 0 : index
    %121 = vector.load %arg8[%c0_48, %c0_49] : memref<1x96xf32, #tpu.memory_space<vmem>>, vector<1x96xf32>
    %c0_50 = arith.constant 0 : index
    %c0_51 = arith.constant 0 : index
    %122 = vector.load %arg9[%c0_50, %c0_51] : memref<32x32xf32, #tpu.memory_space<vmem>>, vector<32x32xf32>
    %c0_52 = arith.constant 0 : index
    %c0_53 = arith.constant 0 : index
    %123 = vector.load %arg10[%c0_52, %c0_53] : memref<1x32xf32, #tpu.memory_space<vmem>>, vector<1x32xf32>
    %124 = vector.extract_strided_slice %120 {offsets = [0, 0], sizes = [32, 32], strides = [1, 1]} : vector<32x96xf32> to vector<32x32xf32>
    %cst_54 = arith.constant dense<0.000000e+00> : vector<8x32xf32>
    %125 = tpu.matmul %119, %124, %cst_54 {dimension_numbers = #tpu.dot_dimension_numbers<[1], [0], [0], [1], [0, 0, 1, 1], [], []>} : vector<8x32xf32>, vector<32x32xf32>, vector<8x32xf32> -> vector<8x32xf32>
    %126 = vector.extract_strided_slice %121 {offsets = [0, 0], sizes = [1, 32], strides = [1, 1]} : vector<1x96xf32> to vector<1x32xf32>
    %127 = vector.broadcast %126 : vector<1x32xf32> to vector<8x32xf32>
    %128 = arith.addf %125, %127 : vector<8x32xf32>
    %129 = vector.extract_strided_slice %120 {offsets = [0, 32], sizes = [32, 64], strides = [1, 1]} : vector<32x96xf32> to vector<32x64xf32>
    %cst_55 = arith.constant dense<0.000000e+00> : vector<16x64xf32>
    %130 = tpu.matmul %3, %129, %cst_55 {dimension_numbers = #tpu.dot_dimension_numbers<[1], [0], [0], [1], [0, 0, 1, 1], [], []>} : vector<16x32xf32>, vector<32x64xf32>, vector<16x64xf32> -> vector<16x64xf32>
    %131 = vector.extract_strided_slice %121 {offsets = [0, 32], sizes = [1, 64], strides = [1, 1]} : vector<1x96xf32> to vector<1x64xf32>
    %132 = vector.broadcast %131 : vector<1x64xf32> to vector<16x64xf32>
    %133 = arith.addf %130, %132 : vector<16x64xf32>
    %134 = vector.extract_strided_slice %133 {offsets = [0, 0], sizes = [16, 32], strides = [1, 1]} : vector<16x64xf32> to vector<16x32xf32>
    %135 = vector.extract_strided_slice %133 {offsets = [0, 32], sizes = [16, 32], strides = [1, 1]} : vector<16x64xf32> to vector<16x32xf32>
    %136 = vector.extract_strided_slice %128 {offsets = [0, 0], sizes = [8, 8], strides = [1, 1]} : vector<8x32xf32> to vector<8x8xf32>
    %cst_56 = arith.constant 0.353553385 : f32
    %137 = vector.broadcast %cst_56 : f32 to vector<8x8xf32>
    %138 = arith.mulf %136, %137 : vector<8x8xf32>
    %139 = vector.extract_strided_slice %134 {offsets = [0, 0], sizes = [16, 8], strides = [1, 1]} : vector<16x32xf32> to vector<16x8xf32>
    %140 = vector.extract_strided_slice %135 {offsets = [0, 0], sizes = [16, 8], strides = [1, 1]} : vector<16x32xf32> to vector<16x8xf32>
    %cst_57 = arith.constant dense<0.000000e+00> : vector<8x16xf32>
    %141 = tpu.matmul %138, %139, %cst_57 {dimension_numbers = #tpu.dot_dimension_numbers<[1], [1], [0], [0], [0, 0, 1, 0], [], []>} : vector<8x8xf32>, vector<16x8xf32>, vector<8x16xf32> -> vector<8x16xf32>
    %cst_58 = arith.constant dense<0xFF800000> : vector<8xf32>
    %142 = vector.multi_reduction <maximumf>, %141, %cst_58 [1] : vector<8x16xf32> to vector<8xf32>
    %143 = vector.shape_cast %142 : vector<8xf32> to vector<8x1xf32>
    %144 = vector.broadcast %143 : vector<8x1xf32> to vector<8x16xf32>
    %145 = arith.subf %141, %144 : vector<8x16xf32>
    %146 = math.exp %145 : vector<8x16xf32>
    %cst_59 = arith.constant dense<0.000000e+00> : vector<8xf32>
    %147 = vector.multi_reduction <add>, %146, %cst_59 [1] : vector<8x16xf32> to vector<8xf32>
    %148 = vector.shape_cast %147 : vector<8xf32> to vector<8x1xf32>
    %149 = tpu.reciprocal %148 {approx = true} : vector<8x1xf32> -> vector<8x1xf32>
    %150 = vector.broadcast %149 : vector<8x1xf32> to vector<8x16xf32>
    %151 = arith.mulf %146, %150 : vector<8x16xf32>
    %cst_60 = arith.constant dense<0.000000e+00> : vector<8x8xf32>
    %152 = tpu.matmul %151, %140, %cst_60 {dimension_numbers = #tpu.dot_dimension_numbers<[1], [0], [0], [1], [0, 0, 1, 1], [], []>} : vector<8x16xf32>, vector<16x8xf32>, vector<8x8xf32> -> vector<8x8xf32>
    %153 = vector.extract_strided_slice %122 {offsets = [0, 0], sizes = [8, 32], strides = [1, 1]} : vector<32x32xf32> to vector<8x32xf32>
    %cst_61 = arith.constant dense<0.000000e+00> : vector<8x32xf32>
    %154 = tpu.matmul %152, %153, %cst_61 {dimension_numbers = #tpu.dot_dimension_numbers<[1], [0], [0], [1], [0, 0, 1, 1], [], []>} : vector<8x8xf32>, vector<8x32xf32>, vector<8x32xf32> -> vector<8x32xf32>
    %155 = vector.extract_strided_slice %128 {offsets = [0, 8], sizes = [8, 8], strides = [1, 1]} : vector<8x32xf32> to vector<8x8xf32>
    %cst_62 = arith.constant 0.353553385 : f32
    %156 = vector.broadcast %cst_62 : f32 to vector<8x8xf32>
    %157 = arith.mulf %155, %156 : vector<8x8xf32>
    %158 = vector.extract_strided_slice %134 {offsets = [0, 8], sizes = [16, 8], strides = [1, 1]} : vector<16x32xf32> to vector<16x8xf32>
    %159 = vector.extract_strided_slice %135 {offsets = [0, 8], sizes = [16, 8], strides = [1, 1]} : vector<16x32xf32> to vector<16x8xf32>
    %cst_63 = arith.constant dense<0.000000e+00> : vector<8x16xf32>
    %160 = tpu.matmul %157, %158, %cst_63 {dimension_numbers = #tpu.dot_dimension_numbers<[1], [1], [0], [0], [0, 0, 1, 0], [], []>} : vector<8x8xf32>, vector<16x8xf32>, vector<8x16xf32> -> vector<8x16xf32>
    %cst_64 = arith.constant dense<0xFF800000> : vector<8xf32>
    %161 = vector.multi_reduction <maximumf>, %160, %cst_64 [1] : vector<8x16xf32> to vector<8xf32>
    %162 = vector.shape_cast %161 : vector<8xf32> to vector<8x1xf32>
    %163 = vector.broadcast %162 : vector<8x1xf32> to vector<8x16xf32>
    %164 = arith.subf %160, %163 : vector<8x16xf32>
    %165 = math.exp %164 : vector<8x16xf32>
    %cst_65 = arith.constant dense<0.000000e+00> : vector<8xf32>
    %166 = vector.multi_reduction <add>, %165, %cst_65 [1] : vector<8x16xf32> to vector<8xf32>
    %167 = vector.shape_cast %166 : vector<8xf32> to vector<8x1xf32>
    %168 = tpu.reciprocal %167 {approx = true} : vector<8x1xf32> -> vector<8x1xf32>
    %169 = vector.broadcast %168 : vector<8x1xf32> to vector<8x16xf32>
    %170 = arith.mulf %165, %169 : vector<8x16xf32>
    %cst_66 = arith.constant dense<0.000000e+00> : vector<8x8xf32>
    %171 = tpu.matmul %170, %159, %cst_66 {dimension_numbers = #tpu.dot_dimension_numbers<[1], [0], [0], [1], [0, 0, 1, 1], [], []>} : vector<8x16xf32>, vector<16x8xf32>, vector<8x8xf32> -> vector<8x8xf32>
    %172 = vector.extract_strided_slice %122 {offsets = [8, 0], sizes = [8, 32], strides = [1, 1]} : vector<32x32xf32> to vector<8x32xf32>
    %cst_67 = arith.constant dense<0.000000e+00> : vector<8x32xf32>
    %173 = tpu.matmul %171, %172, %cst_67 {dimension_numbers = #tpu.dot_dimension_numbers<[1], [0], [0], [1], [0, 0, 1, 1], [], []>} : vector<8x8xf32>, vector<8x32xf32>, vector<8x32xf32> -> vector<8x32xf32>
    %174 = arith.addf %154, %173 : vector<8x32xf32>
    %175 = vector.extract_strided_slice %128 {offsets = [0, 16], sizes = [8, 8], strides = [1, 1]} : vector<8x32xf32> to vector<8x8xf32>
    %cst_68 = arith.constant 0.353553385 : f32
    %176 = vector.broadcast %cst_68 : f32 to vector<8x8xf32>
    %177 = arith.mulf %175, %176 : vector<8x8xf32>
    %178 = vector.extract_strided_slice %134 {offsets = [0, 16], sizes = [16, 8], strides = [1, 1]} : vector<16x32xf32> to vector<16x8xf32>
    %179 = vector.extract_strided_slice %135 {offsets = [0, 16], sizes = [16, 8], strides = [1, 1]} : vector<16x32xf32> to vector<16x8xf32>
    %cst_69 = arith.constant dense<0.000000e+00> : vector<8x16xf32>
    %180 = tpu.matmul %177, %178, %cst_69 {dimension_numbers = #tpu.dot_dimension_numbers<[1], [1], [0], [0], [0, 0, 1, 0], [], []>} : vector<8x8xf32>, vector<16x8xf32>, vector<8x16xf32> -> vector<8x16xf32>
    %cst_70 = arith.constant dense<0xFF800000> : vector<8xf32>
    %181 = vector.multi_reduction <maximumf>, %180, %cst_70 [1] : vector<8x16xf32> to vector<8xf32>
    %182 = vector.shape_cast %181 : vector<8xf32> to vector<8x1xf32>
    %183 = vector.broadcast %182 : vector<8x1xf32> to vector<8x16xf32>
    %184 = arith.subf %180, %183 : vector<8x16xf32>
    %185 = math.exp %184 : vector<8x16xf32>
    %cst_71 = arith.constant dense<0.000000e+00> : vector<8xf32>
    %186 = vector.multi_reduction <add>, %185, %cst_71 [1] : vector<8x16xf32> to vector<8xf32>
    %187 = vector.shape_cast %186 : vector<8xf32> to vector<8x1xf32>
    %188 = tpu.reciprocal %187 {approx = true} : vector<8x1xf32> -> vector<8x1xf32>
    %189 = vector.broadcast %188 : vector<8x1xf32> to vector<8x16xf32>
    %190 = arith.mulf %185, %189 : vector<8x16xf32>
    %cst_72 = arith.constant dense<0.000000e+00> : vector<8x8xf32>
    %191 = tpu.matmul %190, %179, %cst_72 {dimension_numbers = #tpu.dot_dimension_numbers<[1], [0], [0], [1], [0, 0, 1, 1], [], []>} : vector<8x16xf32>, vector<16x8xf32>, vector<8x8xf32> -> vector<8x8xf32>
    %192 = vector.extract_strided_slice %122 {offsets = [16, 0], sizes = [8, 32], strides = [1, 1]} : vector<32x32xf32> to vector<8x32xf32>
    %cst_73 = arith.constant dense<0.000000e+00> : vector<8x32xf32>
    %193 = tpu.matmul %191, %192, %cst_73 {dimension_numbers = #tpu.dot_dimension_numbers<[1], [0], [0], [1], [0, 0, 1, 1], [], []>} : vector<8x8xf32>, vector<8x32xf32>, vector<8x32xf32> -> vector<8x32xf32>
    %194 = arith.addf %174, %193 : vector<8x32xf32>
    %195 = vector.extract_strided_slice %128 {offsets = [0, 24], sizes = [8, 8], strides = [1, 1]} : vector<8x32xf32> to vector<8x8xf32>
    %cst_74 = arith.constant 0.353553385 : f32
    %196 = vector.broadcast %cst_74 : f32 to vector<8x8xf32>
    %197 = arith.mulf %195, %196 : vector<8x8xf32>
    %198 = vector.extract_strided_slice %134 {offsets = [0, 24], sizes = [16, 8], strides = [1, 1]} : vector<16x32xf32> to vector<16x8xf32>
    %199 = vector.extract_strided_slice %135 {offsets = [0, 24], sizes = [16, 8], strides = [1, 1]} : vector<16x32xf32> to vector<16x8xf32>
    %cst_75 = arith.constant dense<0.000000e+00> : vector<8x16xf32>
    %200 = tpu.matmul %197, %198, %cst_75 {dimension_numbers = #tpu.dot_dimension_numbers<[1], [1], [0], [0], [0, 0, 1, 0], [], []>} : vector<8x8xf32>, vector<16x8xf32>, vector<8x16xf32> -> vector<8x16xf32>
    %cst_76 = arith.constant dense<0xFF800000> : vector<8xf32>
    %201 = vector.multi_reduction <maximumf>, %200, %cst_76 [1] : vector<8x16xf32> to vector<8xf32>
    %202 = vector.shape_cast %201 : vector<8xf32> to vector<8x1xf32>
    %203 = vector.broadcast %202 : vector<8x1xf32> to vector<8x16xf32>
    %204 = arith.subf %200, %203 : vector<8x16xf32>
    %205 = math.exp %204 : vector<8x16xf32>
    %cst_77 = arith.constant dense<0.000000e+00> : vector<8xf32>
    %206 = vector.multi_reduction <add>, %205, %cst_77 [1] : vector<8x16xf32> to vector<8xf32>
    %207 = vector.shape_cast %206 : vector<8xf32> to vector<8x1xf32>
    %208 = tpu.reciprocal %207 {approx = true} : vector<8x1xf32> -> vector<8x1xf32>
    %209 = vector.broadcast %208 : vector<8x1xf32> to vector<8x16xf32>
    %210 = arith.mulf %205, %209 : vector<8x16xf32>
    %cst_78 = arith.constant dense<0.000000e+00> : vector<8x8xf32>
    %211 = tpu.matmul %210, %199, %cst_78 {dimension_numbers = #tpu.dot_dimension_numbers<[1], [0], [0], [1], [0, 0, 1, 1], [], []>} : vector<8x16xf32>, vector<16x8xf32>, vector<8x8xf32> -> vector<8x8xf32>
    %212 = vector.extract_strided_slice %122 {offsets = [24, 0], sizes = [8, 32], strides = [1, 1]} : vector<32x32xf32> to vector<8x32xf32>
    %cst_79 = arith.constant dense<0.000000e+00> : vector<8x32xf32>
    %213 = tpu.matmul %211, %212, %cst_79 {dimension_numbers = #tpu.dot_dimension_numbers<[1], [0], [0], [1], [0, 0, 1, 1], [], []>} : vector<8x8xf32>, vector<8x32xf32>, vector<8x32xf32> -> vector<8x32xf32>
    %214 = arith.addf %194, %213 : vector<8x32xf32>
    %215 = vector.broadcast %123 : vector<1x32xf32> to vector<8x32xf32>
    %216 = arith.addf %214, %215 : vector<8x32xf32>
    %217 = arith.addf %119, %216 : vector<8x32xf32>
    %c0_80 = arith.constant 0 : index
    %c0_81 = arith.constant 0 : index
    %218 = vector.load %arg13[%c0_80, %c0_81] : memref<1x32xf32, #tpu.memory_space<vmem>>, vector<1x32xf32>
    %c0_82 = arith.constant 0 : index
    %c0_83 = arith.constant 0 : index
    %219 = vector.load %arg14[%c0_82, %c0_83] : memref<1x32xf32, #tpu.memory_space<vmem>>, vector<1x32xf32>
    %cst_84 = arith.constant dense<0.000000e+00> : vector<8xf32>
    %220 = vector.multi_reduction <add>, %217, %cst_84 [1] : vector<8x32xf32> to vector<8xf32>
    %221 = vector.shape_cast %220 : vector<8xf32> to vector<8x1xf32>
    %cst_85 = arith.constant 3.200000e+01 : f32
    %222 = vector.broadcast %cst_85 : f32 to vector<8x1xf32>
    %223 = arith.divf %221, %222 : vector<8x1xf32>
    %224 = vector.broadcast %223 : vector<8x1xf32> to vector<8x32xf32>
    %225 = arith.subf %217, %224 : vector<8x32xf32>
    %226 = arith.mulf %225, %225 : vector<8x32xf32>
    %cst_86 = arith.constant dense<0.000000e+00> : vector<8xf32>
    %227 = vector.multi_reduction <add>, %226, %cst_86 [1] : vector<8x32xf32> to vector<8xf32>
    %228 = vector.shape_cast %227 : vector<8xf32> to vector<8x1xf32>
    %cst_87 = arith.constant 3.200000e+01 : f32
    %229 = vector.broadcast %cst_87 : f32 to vector<8x1xf32>
    %230 = arith.divf %228, %229 : vector<8x1xf32>
    %231 = vector.broadcast %223 : vector<8x1xf32> to vector<8x32xf32>
    %232 = arith.subf %217, %231 : vector<8x32xf32>
    %cst_88 = arith.constant 9.99999974E-6 : f32
    %233 = vector.broadcast %cst_88 : f32 to vector<8x1xf32>
    %234 = arith.addf %230, %233 : vector<8x1xf32>
    %235 = math.rsqrt %234 : vector<8x1xf32>
    %236 = vector.broadcast %235 : vector<8x1xf32> to vector<8x32xf32>
    %237 = arith.mulf %232, %236 : vector<8x32xf32>
    %238 = vector.broadcast %218 : vector<1x32xf32> to vector<8x32xf32>
    %239 = arith.mulf %237, %238 : vector<8x32xf32>
    %240 = vector.broadcast %219 : vector<1x32xf32> to vector<8x32xf32>
    %241 = arith.addf %239, %240 : vector<8x32xf32>
    %c0_89 = arith.constant 0 : index
    %c0_90 = arith.constant 0 : index
    %242 = vector.load %arg15[%c0_89, %c0_90] : memref<32x64xf32, #tpu.memory_space<vmem>>, vector<32x64xf32>
    %cst_91 = arith.constant dense<0.000000e+00> : vector<8x64xf32>
    %243 = tpu.matmul %241, %242, %cst_91 {dimension_numbers = #tpu.dot_dimension_numbers<[1], [0], [0], [1], [0, 0, 1, 1], [], []>} : vector<8x32xf32>, vector<32x64xf32>, vector<8x64xf32> -> vector<8x64xf32>
    %c0_92 = arith.constant 0 : index
    %c0_93 = arith.constant 0 : index
    %244 = vector.load %arg16[%c0_92, %c0_93] : memref<1x64xf32, #tpu.memory_space<vmem>>, vector<1x64xf32>
    %245 = vector.broadcast %244 : vector<1x64xf32> to vector<8x64xf32>
    %246 = arith.addf %243, %245 : vector<8x64xf32>
    %cst_94 = arith.constant 0.000000e+00 : f32
    %247 = vector.broadcast %cst_94 : f32 to vector<8x64xf32>
    %248 = arith.maximumf %246, %247 : vector<8x64xf32>
    %c0_95 = arith.constant 0 : index
    %c0_96 = arith.constant 0 : index
    %249 = vector.load %arg17[%c0_95, %c0_96] : memref<64x32xf32, #tpu.memory_space<vmem>>, vector<64x32xf32>
    %cst_97 = arith.constant dense<0.000000e+00> : vector<8x32xf32>
    %250 = tpu.matmul %248, %249, %cst_97 {dimension_numbers = #tpu.dot_dimension_numbers<[1], [0], [0], [1], [0, 0, 1, 1], [], []>} : vector<8x64xf32>, vector<64x32xf32>, vector<8x32xf32> -> vector<8x32xf32>
    %c0_98 = arith.constant 0 : index
    %c0_99 = arith.constant 0 : index
    %251 = vector.load %arg18[%c0_98, %c0_99] : memref<1x32xf32, #tpu.memory_space<vmem>>, vector<1x32xf32>
    %252 = vector.broadcast %251 : vector<1x32xf32> to vector<8x32xf32>
    %253 = arith.addf %250, %252 : vector<8x32xf32>
    %254 = arith.addf %241, %253 : vector<8x32xf32>
    %c0_100 = arith.constant 0 : index
    %c0_101 = arith.constant 0 : index
    %255 = vector.load %arg19[%c0_100, %c0_101] : memref<1x32xf32, #tpu.memory_space<vmem>>, vector<1x32xf32>
    %c0_102 = arith.constant 0 : index
    %c0_103 = arith.constant 0 : index
    %256 = vector.load %arg20[%c0_102, %c0_103] : memref<1x32xf32, #tpu.memory_space<vmem>>, vector<1x32xf32>
    %cst_104 = arith.constant dense<0.000000e+00> : vector<8xf32>
    %257 = vector.multi_reduction <add>, %254, %cst_104 [1] : vector<8x32xf32> to vector<8xf32>
    %258 = vector.shape_cast %257 : vector<8xf32> to vector<8x1xf32>
    %cst_105 = arith.constant 3.200000e+01 : f32
    %259 = vector.broadcast %cst_105 : f32 to vector<8x1xf32>
    %260 = arith.divf %258, %259 : vector<8x1xf32>
    %261 = vector.broadcast %260 : vector<8x1xf32> to vector<8x32xf32>
    %262 = arith.subf %254, %261 : vector<8x32xf32>
    %263 = arith.mulf %262, %262 : vector<8x32xf32>
    %cst_106 = arith.constant dense<0.000000e+00> : vector<8xf32>
    %264 = vector.multi_reduction <add>, %263, %cst_106 [1] : vector<8x32xf32> to vector<8xf32>
    %265 = vector.shape_cast %264 : vector<8xf32> to vector<8x1xf32>
    %cst_107 = arith.constant 3.200000e+01 : f32
    %266 = vector.broadcast %cst_107 : f32 to vector<8x1xf32>
    %267 = arith.divf %265, %266 : vector<8x1xf32>
    %268 = vector.broadcast %260 : vector<8x1xf32> to vector<8x32xf32>
    %269 = arith.subf %254, %268 : vector<8x32xf32>
    %cst_108 = arith.constant 9.99999974E-6 : f32
    %270 = vector.broadcast %cst_108 : f32 to vector<8x1xf32>
    %271 = arith.addf %267, %270 : vector<8x1xf32>
    %272 = math.rsqrt %271 : vector<8x1xf32>
    %273 = vector.broadcast %272 : vector<8x1xf32> to vector<8x32xf32>
    %274 = arith.mulf %269, %273 : vector<8x32xf32>
    %275 = vector.broadcast %255 : vector<1x32xf32> to vector<8x32xf32>
    %276 = arith.mulf %274, %275 : vector<8x32xf32>
    %277 = vector.broadcast %256 : vector<1x32xf32> to vector<8x32xf32>
    %278 = arith.addf %276, %277 : vector<8x32xf32>
    %c0_109 = arith.constant 0 : index
    %c0_110 = arith.constant 0 : index
    %c0_111 = arith.constant 0 : index
    %279 = vector.load %arg21[%c0_109, %c0_110, %c0_111] : memref<1x8x32xf32, #tpu.memory_space<vmem>>, vector<1x8x32xf32>
    %280 = vector.shape_cast %279 : vector<1x8x32xf32> to vector<8x32xf32>
    %281 = vector.shape_cast %278 : vector<8x32xf32> to vector<1x8x32xf32>
    tpu.vector_store %arg21[%c0_109, %c0_110, %c0_111], %281 {strides = array<i32>} : memref<1x8x32xf32, #tpu.memory_space<vmem>>, vector<1x8x32xf32>,
    return
  }
  func.func @transform_0(%arg0: i32) -> (i32, i32, i32) {
    %c0_i32 = arith.constant 0 : i32
    %c0_i32_0 = arith.constant 0 : i32
    %c0_i32_1 = arith.constant 0 : i32
    return %arg0, %c0_i32, %c0_i32_0 : i32, i32, i32
  }
  func.func @transform_1(%arg0: i32) -> (i32, i32, i32) {
    %c0_i32 = arith.constant 0 : i32
    %c0_i32_0 = arith.constant 0 : i32
    %c0_i32_1 = arith.constant 0 : i32
    return %arg0, %c0_i32, %c0_i32_0 : i32, i32, i32
  }
  func.func @transform_2(%arg0: i32) -> (i32, i32) {
    %c0_i32 = arith.constant 0 : i32
    %c0_i32_0 = arith.constant 0 : i32
    %c0_i32_1 = arith.constant 0 : i32
    return %c0_i32, %c0_i32_0 : i32, i32
  }
  func.func @transform_3(%arg0: i32) -> (i32, i32) {
    %c0_i32 = arith.constant 0 : i32
    %c0_i32_0 = arith.constant 0 : i32
    %c0_i32_1 = arith.constant 0 : i32
    return %c0_i32, %c0_i32_0 : i32, i32
  }
  func.func @transform_4(%arg0: i32) -> (i32, i32) {
    %c0_i32 = arith.constant 0 : i32
    %c0_i32_0 = arith.constant 0 : i32
    %c0_i32_1 = arith.constant 0 : i32
    return %c0_i32, %c0_i32_0 : i32, i32
  }
  func.func @transform_5(%arg0: i32) -> (i32, i32) {
    %c0_i32 = arith.constant 0 : i32
    %c0_i32_0 = arith.constant 0 : i32
    %c0_i32_1 = arith.constant 0 : i32
    return %c0_i32, %c0_i32_0 : i32, i32
  }
  func.func @transform_6(%arg0: i32) -> (i32, i32) {
    %c0_i32 = arith.constant 0 : i32
    %c0_i32_0 = arith.constant 0 : i32
    %c0_i32_1 = arith.constant 0 : i32
    return %c0_i32, %c0_i32_0 : i32, i32
  }
  func.func @transform_7(%arg0: i32) -> (i32, i32) {
    %c0_i32 = arith.constant 0 : i32
    %c0_i32_0 = arith.constant 0 : i32
    %c0_i32_1 = arith.constant 0 : i32
    return %c0_i32, %c0_i32_0 : i32, i32
  }
  func.func @transform_8(%arg0: i32) -> (i32, i32) {
    %c0_i32 = arith.constant 0 : i32
    %c0_i32_0 = arith.constant 0 : i32
    %c0_i32_1 = arith.constant 0 : i32
    return %c0_i32, %c0_i32_0 : i32, i32
  }
  func.func @transform_9(%arg0: i32) -> (i32, i32) {
    %c0_i32 = arith.constant 0 : i32
    %c0_i32_0 = arith.constant 0 : i32
    %c0_i32_1 = arith.constant 0 : i32
    return %c0_i32, %c0_i32_0 : i32, i32
  }
  func.func @transform_10(%arg0: i32) -> (i32, i32) {
    %c0_i32 = arith.constant 0 : i32
    %c0_i32_0 = arith.constant 0 : i32
    %c0_i32_1 = arith.constant 0 : i32
    return %c0_i32, %c0_i32_0 : i32, i32
  }
  func.func @transform_11(%arg0: i32) -> (i32, i32) {
    %c0_i32 = arith.constant 0 : i32
    %c0_i32_0 = arith.constant 0 : i32
    %c0_i32_1 = arith.constant 0 : i32
    return %c0_i32, %c0_i32_0 : i32, i32
  }
  func.func @transform_12(%arg0: i32) -> (i32, i32) {
    %c0_i32 = arith.constant 0 : i32
    %c0_i32_0 = arith.constant 0 : i32
    %c0_i32_1 = arith.constant 0 : i32
    return %c0_i32, %c0_i32_0 : i32, i32
  }
  func.func @transform_13(%arg0: i32) -> (i32, i32) {
    %c0_i32 = arith.constant 0 : i32
    %c0_i32_0 = arith.constant 0 : i32
    %c0_i32_1 = arith.constant 0 : i32
    return %c0_i32, %c0_i32_0 : i32, i32
  }
  func.func @transform_14(%arg0: i32) -> (i32, i32) {
    %c0_i32 = arith.constant 0 : i32
    %c0_i32_0 = arith.constant 0 : i32
    %c0_i32_1 = arith.constant 0 : i32
    return %c0_i32, %c0_i32_0 : i32, i32
  }
  func.func @transform_15(%arg0: i32) -> (i32, i32) {
    %c0_i32 = arith.constant 0 : i32
    %c0_i32_0 = arith.constant 0 : i32
    %c0_i32_1 = arith.constant 0 : i32
    return %c0_i32, %c0_i32_0 : i32, i32
  }
  func.func @transform_16(%arg0: i32) -> (i32, i32) {
    %c0_i32 = arith.constant 0 : i32
    %c0_i32_0 = arith.constant 0 : i32
    %c0_i32_1 = arith.constant 0 : i32
    return %c0_i32, %c0_i32_0 : i32, i32
  }
  func.func @transform_17(%arg0: i32) -> (i32, i32) {
    %c0_i32 = arith.constant 0 : i32
    %c0_i32_0 = arith.constant 0 : i32
    %c0_i32_1 = arith.constant 0 : i32
    return %c0_i32, %c0_i32_0 : i32, i32
  }
  func.func @transform_18(%arg0: i32) -> (i32, i32) {
    %c0_i32 = arith.constant 0 : i32
    %c0_i32_0 = arith.constant 0 : i32
    %c0_i32_1 = arith.constant 0 : i32
    return %c0_i32, %c0_i32_0 : i32, i32
  }
  func.func @transform_19(%arg0: i32) -> (i32, i32) {
    %c0_i32 = arith.constant 0 : i32
    %c0_i32_0 = arith.constant 0 : i32
    %c0_i32_1 = arith.constant 0 : i32
    return %c0_i32, %c0_i32_0 : i32, i32
  }
  func.func @transform_20(%arg0: i32) -> (i32, i32, i32) {
    %c0_i32 = arith.constant 0 : i32
    %c0_i32_0 = arith.constant 0 : i32
    %c0_i32_1 = arith.constant 0 : i32
    return %arg0, %c0_i32, %c0_i32_0 : i32, i32, i32
  }
}

module attributes {stable_mosaic.version = 11 : i64} {
  func.func @_decoder_layer_kernel(%arg0: i32, %arg1: memref<1x16x32xf32, #tpu.memory_space<vmem>>, %arg2: memref<1x8x32xf32, #tpu.memory_space<vmem>>, %arg3: memref<32x96xf32, #tpu.memory_space<vmem>>, %arg4: memref<1x96xf32, #tpu.memory_space<vmem>>, %arg5: memref<32x32xf32, #tpu.memory_space<vmem>>, %arg6: memref<1x32xf32, #tpu.memory_space<vmem>>, %arg7: memref<32x96xf32, #tpu.memory_space<vmem>>, %arg8: memref<1x96xf32, #tpu.memory_space<vmem>>, %arg9: memref<32x32xf32, #tpu.memory_space<vmem>>, %arg10: memref<1x32xf32, #tpu.memory_space<vmem>>, %arg11: memref<1x32xf32, #tpu.memory_space<vmem>>, %arg12: memref<1x32xf32, #tpu.memory_space<vmem>>, %arg13: memref<1x32xf32, #tpu.memory_space<vmem>>, %arg14: memref<1x32xf32, #tpu.memory_space<vmem>>, %arg15: memref<32x64xf32, #tpu.memory_space<vmem>>, %arg16: memref<1x64xf32, #tpu.memory_space<vmem>>, %arg17: memref<64x32xf32, #tpu.memory_space<vmem>>, %arg18: memref<1x32xf32, #tpu.memory_space<vmem>>, %arg19: memref<1x32xf32, #tpu.memory_space<vmem>>, %arg20: memref<1x32xf32, #tpu.memory_space<vmem>>, %arg21: memref<1x16x32xf32, #tpu.memory_space<vmem>>) attributes {dimension_semantics = [#tpu.dimension_semantics<parallel>], iteration_bounds = array<i64: 2>, scalar_prefetch = 0 : i64, scratch_operands = 0 : i64, tpu.core_type = #tpu.core_type<tc>, window_params = [{transform_indices = @transform_0, window_bounds = array<i64: 1, 16, 32>}, {transform_indices = @transform_1, window_bounds = array<i64: 1, 8, 32>}, {pipeline_mode = #tpu.pipeline_mode<synchronous>, transform_indices = @transform_2, window_bounds = array<i64: 32, 96>}, {pipeline_mode = #tpu.pipeline_mode<synchronous>, transform_indices = @transform_3, window_bounds = array<i64: 1, 96>}, {pipeline_mode = #tpu.pipeline_mode<synchronous>, transform_indices = @transform_4, window_bounds = array<i64: 32, 32>}, {pipeline_mode = #tpu.pipeline_mode<synchronous>, transform_indices = @transform_5, window_bounds = array<i64: 1, 32>}, {pipeline_mode = #tpu.pipeline_mode<synchronous>, transform_indices = @transform_6, window_bounds = array<i64: 32, 96>}, {pipeline_mode = #tpu.pipeline_mode<synchronous>, transform_indices = @transform_7, window_bounds = array<i64: 1, 96>}, {pipeline_mode = #tpu.pipeline_mode<synchronous>, transform_indices = @transform_8, window_bounds = array<i64: 32, 32>}, {pipeline_mode = #tpu.pipeline_mode<synchronous>, transform_indices = @transform_9, window_bounds = array<i64: 1, 32>}, {pipeline_mode = #tpu.pipeline_mode<synchronous>, transform_indices = @transform_10, window_bounds = array<i64: 1, 32>}, {pipeline_mode = #tpu.pipeline_mode<synchronous>, transform_indices = @transform_11, window_bounds = array<i64: 1, 32>}, {pipeline_mode = #tpu.pipeline_mode<synchronous>, transform_indices = @transform_12, window_bounds = array<i64: 1, 32>}, {pipeline_mode = #tpu.pipeline_mode<synchronous>, transform_indices = @transform_13, window_bounds = array<i64: 1, 32>}, {pipeline_mode = #tpu.pipeline_mode<synchronous>, transform_indices = @transform_14, window_bounds = array<i64: 32, 64>}, {pipeline_mode = #tpu.pipeline_mode<synchronous>, transform_indices = @transform_15, window_bounds = array<i64: 1, 64>}, {pipeline_mode = #tpu.pipeline_mode<synchronous>, transform_indices = @transform_16, window_bounds = array<i64: 64, 32>}, {pipeline_mode = #tpu.pipeline_mode<synchronous>, transform_indices = @transform_17, window_bounds = array<i64: 1, 32>}, {pipeline_mode = #tpu.pipeline_mode<synchronous>, transform_indices = @transform_18, window_bounds = array<i64: 1, 32>}, {pipeline_mode = #tpu.pipeline_mode<synchronous>, transform_indices = @transform_19, window_bounds = array<i64: 1, 32>}, {transform_indices = @transform_20, window_bounds = array<i64: 1, 16, 32>}]} {
    %c0 = arith.constant 0 : index
    %c0_0 = arith.constant 0 : index
    %c0_1 = arith.constant 0 : index
    %0 = vector.load %arg1[%c0, %c0_0, %c0_1] : memref<1x16x32xf32, #tpu.memory_space<vmem>>, vector<1x16x32xf32>
    %1 = vector.shape_cast %0 : vector<1x16x32xf32> to vector<16x32xf32>
    %c0_2 = arith.constant 0 : index
    %c0_3 = arith.constant 0 : index
    %c0_4 = arith.constant 0 : index
    %2 = vector.load %arg2[%c0_2, %c0_3, %c0_4] : memref<1x8x32xf32, #tpu.memory_space<vmem>>, vector<1x8x32xf32>
    %3 = vector.shape_cast %2 : vector<1x8x32xf32> to vector<8x32xf32>
    %c0_5 = arith.constant 0 : index
    %c0_6 = arith.constant 0 : index
    %4 = vector.load %arg3[%c0_5, %c0_6] : memref<32x96xf32, #tpu.memory_space<vmem>>, vector<32x96xf32>
    %c0_7 = arith.constant 0 : index
    %c0_8 = arith.constant 0 : index
    %5 = vector.load %arg4[%c0_7, %c0_8] : memref<1x96xf32, #tpu.memory_space<vmem>>, vector<1x96xf32>
    %c0_9 = arith.constant 0 : index
    %c0_10 = arith.constant 0 : index
    %6 = vector.load %arg5[%c0_9, %c0_10] : memref<32x32xf32, #tpu.memory_space<vmem>>, vector<32x32xf32>
    %c0_11 = arith.constant 0 : index
    %c0_12 = arith.constant 0 : index
    %7 = vector.load %arg6[%c0_11, %c0_12] : memref<1x32xf32, #tpu.memory_space<vmem>>, vector<1x32xf32>
    %cst = arith.constant dense<0.000000e+00> : vector<16x96xf32>
    %8 = tpu.matmul %1, %4, %cst {dimension_numbers = #tpu.dot_dimension_numbers<[1], [0], [0], [1], [0, 0, 1, 1], [], []>} : vector<16x32xf32>, vector<32x96xf32>, vector<16x96xf32> -> vector<16x96xf32>
    %9 = vector.broadcast %5 : vector<1x96xf32> to vector<16x96xf32>
    %10 = arith.addf %8, %9 : vector<16x96xf32>
    %11 = vector.extract_strided_slice %10 {offsets = [0, 0], sizes = [16, 32], strides = [1, 1]} : vector<16x96xf32> to vector<16x32xf32>
    %12 = vector.extract_strided_slice %10 {offsets = [0, 32], sizes = [16, 32], strides = [1, 1]} : vector<16x96xf32> to vector<16x32xf32>
    %13 = vector.extract_strided_slice %10 {offsets = [0, 64], sizes = [16, 32], strides = [1, 1]} : vector<16x96xf32> to vector<16x32xf32>
    %14 = vector.extract_strided_slice %11 {offsets = [0, 0], sizes = [16, 8], strides = [1, 1]} : vector<16x32xf32> to vector<16x8xf32>
    %cst_13 = arith.constant 0.353553385 : f32
    %15 = vector.broadcast %cst_13 : f32 to vector<16x8xf32>
    %16 = arith.mulf %14, %15 : vector<16x8xf32>
    %17 = vector.extract_strided_slice %12 {offsets = [0, 0], sizes = [16, 8], strides = [1, 1]} : vector<16x32xf32> to vector<16x8xf32>
    %18 = vector.extract_strided_slice %13 {offsets = [0, 0], sizes = [16, 8], strides = [1, 1]} : vector<16x32xf32> to vector<16x8xf32>
    %cst_14 = arith.constant dense<0.000000e+00> : vector<16x16xf32>
    %19 = tpu.matmul %16, %17, %cst_14 {dimension_numbers = #tpu.dot_dimension_numbers<[1], [1], [0], [0], [0, 0, 1, 0], [], []>} : vector<16x8xf32>, vector<16x8xf32>, vector<16x16xf32> -> vector<16x16xf32>
    %cst_15 = arith.constant dense<0xFF800000> : vector<16xf32>
    %20 = vector.multi_reduction <maximumf>, %19, %cst_15 [1] : vector<16x16xf32> to vector<16xf32>
    %21 = vector.shape_cast %20 : vector<16xf32> to vector<16x1xf32>
    %22 = vector.broadcast %21 : vector<16x1xf32> to vector<16x16xf32>
    %23 = arith.subf %19, %22 : vector<16x16xf32>
    %24 = math.exp %23 : vector<16x16xf32>
    %cst_16 = arith.constant dense<0.000000e+00> : vector<16xf32>
    %25 = vector.multi_reduction <add>, %24, %cst_16 [1] : vector<16x16xf32> to vector<16xf32>
    %26 = vector.shape_cast %25 : vector<16xf32> to vector<16x1xf32>
    %27 = tpu.reciprocal %26 {approx = true} : vector<16x1xf32> -> vector<16x1xf32>
    %28 = vector.broadcast %27 : vector<16x1xf32> to vector<16x16xf32>
    %29 = arith.mulf %24, %28 : vector<16x16xf32>
    %cst_17 = arith.constant dense<0.000000e+00> : vector<16x8xf32>
    %30 = tpu.matmul %29, %18, %cst_17 {dimension_numbers = #tpu.dot_dimension_numbers<[1], [0], [0], [1], [0, 0, 1, 1], [], []>} : vector<16x16xf32>, vector<16x8xf32>, vector<16x8xf32> -> vector<16x8xf32>
    %31 = vector.extract_strided_slice %6 {offsets = [0, 0], sizes = [8, 32], strides = [1, 1]} : vector<32x32xf32> to vector<8x32xf32>
    %cst_18 = arith.constant dense<0.000000e+00> : vector<16x32xf32>
    %32 = tpu.matmul %30, %31, %cst_18 {dimension_numbers = #tpu.dot_dimension_numbers<[1], [0], [0], [1], [0, 0, 1, 1], [], []>} : vector<16x8xf32>, vector<8x32xf32>, vector<16x32xf32> -> vector<16x32xf32>
    %33 = vector.extract_strided_slice %11 {offsets = [0, 8], sizes = [16, 8], strides = [1, 1]} : vector<16x32xf32> to vector<16x8xf32>
    %cst_19 = arith.constant 0.353553385 : f32
    %34 = vector.broadcast %cst_19 : f32 to vector<16x8xf32>
    %35 = arith.mulf %33, %34 : vector<16x8xf32>
    %36 = vector.extract_strided_slice %12 {offsets = [0, 8], sizes = [16, 8], strides = [1, 1]} : vector<16x32xf32> to vector<16x8xf32>
    %37 = vector.extract_strided_slice %13 {offsets = [0, 8], sizes = [16, 8], strides = [1, 1]} : vector<16x32xf32> to vector<16x8xf32>
    %cst_20 = arith.constant dense<0.000000e+00> : vector<16x16xf32>
    %38 = tpu.matmul %35, %36, %cst_20 {dimension_numbers = #tpu.dot_dimension_numbers<[1], [1], [0], [0], [0, 0, 1, 0], [], []>} : vector<16x8xf32>, vector<16x8xf32>, vector<16x16xf32> -> vector<16x16xf32>
    %cst_21 = arith.constant dense<0xFF800000> : vector<16xf32>
    %39 = vector.multi_reduction <maximumf>, %38, %cst_21 [1] : vector<16x16xf32> to vector<16xf32>
    %40 = vector.shape_cast %39 : vector<16xf32> to vector<16x1xf32>
    %41 = vector.broadcast %40 : vector<16x1xf32> to vector<16x16xf32>
    %42 = arith.subf %38, %41 : vector<16x16xf32>
    %43 = math.exp %42 : vector<16x16xf32>
    %cst_22 = arith.constant dense<0.000000e+00> : vector<16xf32>
    %44 = vector.multi_reduction <add>, %43, %cst_22 [1] : vector<16x16xf32> to vector<16xf32>
    %45 = vector.shape_cast %44 : vector<16xf32> to vector<16x1xf32>
    %46 = tpu.reciprocal %45 {approx = true} : vector<16x1xf32> -> vector<16x1xf32>
    %47 = vector.broadcast %46 : vector<16x1xf32> to vector<16x16xf32>
    %48 = arith.mulf %43, %47 : vector<16x16xf32>
    %cst_23 = arith.constant dense<0.000000e+00> : vector<16x8xf32>
    %49 = tpu.matmul %48, %37, %cst_23 {dimension_numbers = #tpu.dot_dimension_numbers<[1], [0], [0], [1], [0, 0, 1, 1], [], []>} : vector<16x16xf32>, vector<16x8xf32>, vector<16x8xf32> -> vector<16x8xf32>
    %50 = vector.extract_strided_slice %6 {offsets = [8, 0], sizes = [8, 32], strides = [1, 1]} : vector<32x32xf32> to vector<8x32xf32>
    %cst_24 = arith.constant dense<0.000000e+00> : vector<16x32xf32>
    %51 = tpu.matmul %49, %50, %cst_24 {dimension_numbers = #tpu.dot_dimension_numbers<[1], [0], [0], [1], [0, 0, 1, 1], [], []>} : vector<16x8xf32>, vector<8x32xf32>, vector<16x32xf32> -> vector<16x32xf32>
    %52 = arith.addf %32, %51 : vector<16x32xf32>
    %53 = vector.extract_strided_slice %11 {offsets = [0, 16], sizes = [16, 8], strides = [1, 1]} : vector<16x32xf32> to vector<16x8xf32>
    %cst_25 = arith.constant 0.353553385 : f32
    %54 = vector.broadcast %cst_25 : f32 to vector<16x8xf32>
    %55 = arith.mulf %53, %54 : vector<16x8xf32>
    %56 = vector.extract_strided_slice %12 {offsets = [0, 16], sizes = [16, 8], strides = [1, 1]} : vector<16x32xf32> to vector<16x8xf32>
    %57 = vector.extract_strided_slice %13 {offsets = [0, 16], sizes = [16, 8], strides = [1, 1]} : vector<16x32xf32> to vector<16x8xf32>
    %cst_26 = arith.constant dense<0.000000e+00> : vector<16x16xf32>
    %58 = tpu.matmul %55, %56, %cst_26 {dimension_numbers = #tpu.dot_dimension_numbers<[1], [1], [0], [0], [0, 0, 1, 0], [], []>} : vector<16x8xf32>, vector<16x8xf32>, vector<16x16xf32> -> vector<16x16xf32>
    %cst_27 = arith.constant dense<0xFF800000> : vector<16xf32>
    %59 = vector.multi_reduction <maximumf>, %58, %cst_27 [1] : vector<16x16xf32> to vector<16xf32>
    %60 = vector.shape_cast %59 : vector<16xf32> to vector<16x1xf32>
    %61 = vector.broadcast %60 : vector<16x1xf32> to vector<16x16xf32>
    %62 = arith.subf %58, %61 : vector<16x16xf32>
    %63 = math.exp %62 : vector<16x16xf32>
    %cst_28 = arith.constant dense<0.000000e+00> : vector<16xf32>
    %64 = vector.multi_reduction <add>, %63, %cst_28 [1] : vector<16x16xf32> to vector<16xf32>
    %65 = vector.shape_cast %64 : vector<16xf32> to vector<16x1xf32>
    %66 = tpu.reciprocal %65 {approx = true} : vector<16x1xf32> -> vector<16x1xf32>
    %67 = vector.broadcast %66 : vector<16x1xf32> to vector<16x16xf32>
    %68 = arith.mulf %63, %67 : vector<16x16xf32>
    %cst_29 = arith.constant dense<0.000000e+00> : vector<16x8xf32>
    %69 = tpu.matmul %68, %57, %cst_29 {dimension_numbers = #tpu.dot_dimension_numbers<[1], [0], [0], [1], [0, 0, 1, 1], [], []>} : vector<16x16xf32>, vector<16x8xf32>, vector<16x8xf32> -> vector<16x8xf32>
    %70 = vector.extract_strided_slice %6 {offsets = [16, 0], sizes = [8, 32], strides = [1, 1]} : vector<32x32xf32> to vector<8x32xf32>
    %cst_30 = arith.constant dense<0.000000e+00> : vector<16x32xf32>
    %71 = tpu.matmul %69, %70, %cst_30 {dimension_numbers = #tpu.dot_dimension_numbers<[1], [0], [0], [1], [0, 0, 1, 1], [], []>} : vector<16x8xf32>, vector<8x32xf32>, vector<16x32xf32> -> vector<16x32xf32>
    %72 = arith.addf %52, %71 : vector<16x32xf32>
    %73 = vector.extract_strided_slice %11 {offsets = [0, 24], sizes = [16, 8], strides = [1, 1]} : vector<16x32xf32> to vector<16x8xf32>
    %cst_31 = arith.constant 0.353553385 : f32
    %74 = vector.broadcast %cst_31 : f32 to vector<16x8xf32>
    %75 = arith.mulf %73, %74 : vector<16x8xf32>
    %76 = vector.extract_strided_slice %12 {offsets = [0, 24], sizes = [16, 8], strides = [1, 1]} : vector<16x32xf32> to vector<16x8xf32>
    %77 = vector.extract_strided_slice %13 {offsets = [0, 24], sizes = [16, 8], strides = [1, 1]} : vector<16x32xf32> to vector<16x8xf32>
    %cst_32 = arith.constant dense<0.000000e+00> : vector<16x16xf32>
    %78 = tpu.matmul %75, %76, %cst_32 {dimension_numbers = #tpu.dot_dimension_numbers<[1], [1], [0], [0], [0, 0, 1, 0], [], []>} : vector<16x8xf32>, vector<16x8xf32>, vector<16x16xf32> -> vector<16x16xf32>
    %cst_33 = arith.constant dense<0xFF800000> : vector<16xf32>
    %79 = vector.multi_reduction <maximumf>, %78, %cst_33 [1] : vector<16x16xf32> to vector<16xf32>
    %80 = vector.shape_cast %79 : vector<16xf32> to vector<16x1xf32>
    %81 = vector.broadcast %80 : vector<16x1xf32> to vector<16x16xf32>
    %82 = arith.subf %78, %81 : vector<16x16xf32>
    %83 = math.exp %82 : vector<16x16xf32>
    %cst_34 = arith.constant dense<0.000000e+00> : vector<16xf32>
    %84 = vector.multi_reduction <add>, %83, %cst_34 [1] : vector<16x16xf32> to vector<16xf32>
    %85 = vector.shape_cast %84 : vector<16xf32> to vector<16x1xf32>
    %86 = tpu.reciprocal %85 {approx = true} : vector<16x1xf32> -> vector<16x1xf32>
    %87 = vector.broadcast %86 : vector<16x1xf32> to vector<16x16xf32>
    %88 = arith.mulf %83, %87 : vector<16x16xf32>
    %cst_35 = arith.constant dense<0.000000e+00> : vector<16x8xf32>
    %89 = tpu.matmul %88, %77, %cst_35 {dimension_numbers = #tpu.dot_dimension_numbers<[1], [0], [0], [1], [0, 0, 1, 1], [], []>} : vector<16x16xf32>, vector<16x8xf32>, vector<16x8xf32> -> vector<16x8xf32>
    %90 = vector.extract_strided_slice %6 {offsets = [24, 0], sizes = [8, 32], strides = [1, 1]} : vector<32x32xf32> to vector<8x32xf32>
    %cst_36 = arith.constant dense<0.000000e+00> : vector<16x32xf32>
    %91 = tpu.matmul %89, %90, %cst_36 {dimension_numbers = #tpu.dot_dimension_numbers<[1], [0], [0], [1], [0, 0, 1, 1], [], []>} : vector<16x8xf32>, vector<8x32xf32>, vector<16x32xf32> -> vector<16x32xf32>
    %92 = arith.addf %72, %91 : vector<16x32xf32>
    %93 = vector.broadcast %7 : vector<1x32xf32> to vector<16x32xf32>
    %94 = arith.addf %92, %93 : vector<16x32xf32>
    %95 = arith.addf %1, %94 : vector<16x32xf32>
    %c0_37 = arith.constant 0 : index
    %c0_38 = arith.constant 0 : index
    %96 = vector.load %arg11[%c0_37, %c0_38] : memref<1x32xf32, #tpu.memory_space<vmem>>, vector<1x32xf32>
    %c0_39 = arith.constant 0 : index
    %c0_40 = arith.constant 0 : index
    %97 = vector.load %arg12[%c0_39, %c0_40] : memref<1x32xf32, #tpu.memory_space<vmem>>, vector<1x32xf32>
    %cst_41 = arith.constant dense<0.000000e+00> : vector<16xf32>
    %98 = vector.multi_reduction <add>, %95, %cst_41 [1] : vector<16x32xf32> to vector<16xf32>
    %99 = vector.shape_cast %98 : vector<16xf32> to vector<16x1xf32>
    %cst_42 = arith.constant 3.200000e+01 : f32
    %100 = vector.broadcast %cst_42 : f32 to vector<16x1xf32>
    %101 = arith.divf %99, %100 : vector<16x1xf32>
    %102 = vector.broadcast %101 : vector<16x1xf32> to vector<16x32xf32>
    %103 = arith.subf %95, %102 : vector<16x32xf32>
    %104 = arith.mulf %103, %103 : vector<16x32xf32>
    %cst_43 = arith.constant dense<0.000000e+00> : vector<16xf32>
    %105 = vector.multi_reduction <add>, %104, %cst_43 [1] : vector<16x32xf32> to vector<16xf32>
    %106 = vector.shape_cast %105 : vector<16xf32> to vector<16x1xf32>
    %cst_44 = arith.constant 3.200000e+01 : f32
    %107 = vector.broadcast %cst_44 : f32 to vector<16x1xf32>
    %108 = arith.divf %106, %107 : vector<16x1xf32>
    %109 = vector.broadcast %101 : vector<16x1xf32> to vector<16x32xf32>
    %110 = arith.subf %95, %109 : vector<16x32xf32>
    %cst_45 = arith.constant 9.99999974E-6 : f32
    %111 = vector.broadcast %cst_45 : f32 to vector<16x1xf32>
    %112 = arith.addf %108, %111 : vector<16x1xf32>
    %113 = math.rsqrt %112 : vector<16x1xf32>
    %114 = vector.broadcast %113 : vector<16x1xf32> to vector<16x32xf32>
    %115 = arith.mulf %110, %114 : vector<16x32xf32>
    %116 = vector.broadcast %96 : vector<1x32xf32> to vector<16x32xf32>
    %117 = arith.mulf %115, %116 : vector<16x32xf32>
    %118 = vector.broadcast %97 : vector<1x32xf32> to vector<16x32xf32>
    %119 = arith.addf %117, %118 : vector<16x32xf32>
    %c0_46 = arith.constant 0 : index
    %c0_47 = arith.constant 0 : index
    %120 = vector.load %arg7[%c0_46, %c0_47] : memref<32x96xf32, #tpu.memory_space<vmem>>, vector<32x96xf32>
    %c0_48 = arith.constant 0 : index
    %c0_49 = arith.constant 0 : index
    %121 = vector.load %arg8[%c0_48, %c0_49] : memref<1x96xf32, #tpu.memory_space<vmem>>, vector<1x96xf32>
    %c0_50 = arith.constant 0 : index
    %c0_51 = arith.constant 0 : index
    %122 = vector.load %arg9[%c0_50, %c0_51] : memref<32x32xf32, #tpu.memory_space<vmem>>, vector<32x32xf32>
    %c0_52 = arith.constant 0 : index
    %c0_53 = arith.constant 0 : index
    %123 = vector.load %arg10[%c0_52, %c0_53] : memref<1x32xf32, #tpu.memory_space<vmem>>, vector<1x32xf32>
    %124 = vector.extract_strided_slice %120 {offsets = [0, 0], sizes = [32, 32], strides = [1, 1]} : vector<32x96xf32> to vector<32x32xf32>
    %cst_54 = arith.constant dense<0.000000e+00> : vector<16x32xf32>
    %125 = tpu.matmul %119, %124, %cst_54 {dimension_numbers = #tpu.dot_dimension_numbers<[1], [0], [0], [1], [0, 0, 1, 1], [], []>} : vector<16x32xf32>, vector<32x32xf32>, vector<16x32xf32> -> vector<16x32xf32>
    %126 = vector.extract_strided_slice %121 {offsets = [0, 0], sizes = [1, 32], strides = [1, 1]} : vector<1x96xf32> to vector<1x32xf32>
    %127 = vector.broadcast %126 : vector<1x32xf32> to vector<16x32xf32>
    %128 = arith.addf %125, %127 : vector<16x32xf32>
    %129 = vector.extract_strided_slice %120 {offsets = [0, 32], sizes = [32, 64], strides = [1, 1]} : vector<32x96xf32> to vector<32x64xf32>
    %cst_55 = arith.constant dense<0.000000e+00> : vector<8x64xf32>
    %130 = tpu.matmul %3, %129, %cst_55 {dimension_numbers = #tpu.dot_dimension_numbers<[1], [0], [0], [1], [0, 0, 1, 1], [], []>} : vector<8x32xf32>, vector<32x64xf32>, vector<8x64xf32> -> vector<8x64xf32>
    %131 = vector.extract_strided_slice %121 {offsets = [0, 32], sizes = [1, 64], strides = [1, 1]} : vector<1x96xf32> to vector<1x64xf32>
    %132 = vector.broadcast %131 : vector<1x64xf32> to vector<8x64xf32>
    %133 = arith.addf %130, %132 : vector<8x64xf32>
    %134 = vector.extract_strided_slice %133 {offsets = [0, 0], sizes = [8, 32], strides = [1, 1]} : vector<8x64xf32> to vector<8x32xf32>
    %135 = vector.extract_strided_slice %133 {offsets = [0, 32], sizes = [8, 32], strides = [1, 1]} : vector<8x64xf32> to vector<8x32xf32>
    %136 = vector.extract_strided_slice %128 {offsets = [0, 0], sizes = [16, 8], strides = [1, 1]} : vector<16x32xf32> to vector<16x8xf32>
    %cst_56 = arith.constant 0.353553385 : f32
    %137 = vector.broadcast %cst_56 : f32 to vector<16x8xf32>
    %138 = arith.mulf %136, %137 : vector<16x8xf32>
    %139 = vector.extract_strided_slice %134 {offsets = [0, 0], sizes = [8, 8], strides = [1, 1]} : vector<8x32xf32> to vector<8x8xf32>
    %140 = vector.extract_strided_slice %135 {offsets = [0, 0], sizes = [8, 8], strides = [1, 1]} : vector<8x32xf32> to vector<8x8xf32>
    %cst_57 = arith.constant dense<0.000000e+00> : vector<16x8xf32>
    %141 = tpu.matmul %138, %139, %cst_57 {dimension_numbers = #tpu.dot_dimension_numbers<[1], [1], [0], [0], [0, 0, 1, 0], [], []>} : vector<16x8xf32>, vector<8x8xf32>, vector<16x8xf32> -> vector<16x8xf32>
    %cst_58 = arith.constant dense<0xFF800000> : vector<16xf32>
    %142 = vector.multi_reduction <maximumf>, %141, %cst_58 [1] : vector<16x8xf32> to vector<16xf32>
    %143 = vector.shape_cast %142 : vector<16xf32> to vector<16x1xf32>
    %144 = vector.broadcast %143 : vector<16x1xf32> to vector<16x8xf32>
    %145 = arith.subf %141, %144 : vector<16x8xf32>
    %146 = math.exp %145 : vector<16x8xf32>
    %cst_59 = arith.constant dense<0.000000e+00> : vector<16xf32>
    %147 = vector.multi_reduction <add>, %146, %cst_59 [1] : vector<16x8xf32> to vector<16xf32>
    %148 = vector.shape_cast %147 : vector<16xf32> to vector<16x1xf32>
    %149 = tpu.reciprocal %148 {approx = true} : vector<16x1xf32> -> vector<16x1xf32>
    %150 = vector.broadcast %149 : vector<16x1xf32> to vector<16x8xf32>
    %151 = arith.mulf %146, %150 : vector<16x8xf32>
    %cst_60 = arith.constant dense<0.000000e+00> : vector<16x8xf32>
    %152 = tpu.matmul %151, %140, %cst_60 {dimension_numbers = #tpu.dot_dimension_numbers<[1], [0], [0], [1], [0, 0, 1, 1], [], []>} : vector<16x8xf32>, vector<8x8xf32>, vector<16x8xf32> -> vector<16x8xf32>
    %153 = vector.extract_strided_slice %122 {offsets = [0, 0], sizes = [8, 32], strides = [1, 1]} : vector<32x32xf32> to vector<8x32xf32>
    %cst_61 = arith.constant dense<0.000000e+00> : vector<16x32xf32>
    %154 = tpu.matmul %152, %153, %cst_61 {dimension_numbers = #tpu.dot_dimension_numbers<[1], [0], [0], [1], [0, 0, 1, 1], [], []>} : vector<16x8xf32>, vector<8x32xf32>, vector<16x32xf32> -> vector<16x32xf32>
    %155 = vector.extract_strided_slice %128 {offsets = [0, 8], sizes = [16, 8], strides = [1, 1]} : vector<16x32xf32> to vector<16x8xf32>
    %cst_62 = arith.constant 0.353553385 : f32
    %156 = vector.broadcast %cst_62 : f32 to vector<16x8xf32>
    %157 = arith.mulf %155, %156 : vector<16x8xf32>
    %158 = vector.extract_strided_slice %134 {offsets = [0, 8], sizes = [8, 8], strides = [1, 1]} : vector<8x32xf32> to vector<8x8xf32>
    %159 = vector.extract_strided_slice %135 {offsets = [0, 8], sizes = [8, 8], strides = [1, 1]} : vector<8x32xf32> to vector<8x8xf32>
    %cst_63 = arith.constant dense<0.000000e+00> : vector<16x8xf32>
    %160 = tpu.matmul %157, %158, %cst_63 {dimension_numbers = #tpu.dot_dimension_numbers<[1], [1], [0], [0], [0, 0, 1, 0], [], []>} : vector<16x8xf32>, vector<8x8xf32>, vector<16x8xf32> -> vector<16x8xf32>
    %cst_64 = arith.constant dense<0xFF800000> : vector<16xf32>
    %161 = vector.multi_reduction <maximumf>, %160, %cst_64 [1] : vector<16x8xf32> to vector<16xf32>
    %162 = vector.shape_cast %161 : vector<16xf32> to vector<16x1xf32>
    %163 = vector.broadcast %162 : vector<16x1xf32> to vector<16x8xf32>
    %164 = arith.subf %160, %163 : vector<16x8xf32>
    %165 = math.exp %164 : vector<16x8xf32>
    %cst_65 = arith.constant dense<0.000000e+00> : vector<16xf32>
    %166 = vector.multi_reduction <add>, %165, %cst_65 [1] : vector<16x8xf32> to vector<16xf32>
    %167 = vector.shape_cast %166 : vector<16xf32> to vector<16x1xf32>
    %168 = tpu.reciprocal %167 {approx = true} : vector<16x1xf32> -> vector<16x1xf32>
    %169 = vector.broadcast %168 : vector<16x1xf32> to vector<16x8xf32>
    %170 = arith.mulf %165, %169 : vector<16x8xf32>
    %cst_66 = arith.constant dense<0.000000e+00> : vector<16x8xf32>
    %171 = tpu.matmul %170, %159, %cst_66 {dimension_numbers = #tpu.dot_dimension_numbers<[1], [0], [0], [1], [0, 0, 1, 1], [], []>} : vector<16x8xf32>, vector<8x8xf32>, vector<16x8xf32> -> vector<16x8xf32>
    %172 = vector.extract_strided_slice %122 {offsets = [8, 0], sizes = [8, 32], strides = [1, 1]} : vector<32x32xf32> to vector<8x32xf32>
    %cst_67 = arith.constant dense<0.000000e+00> : vector<16x32xf32>
    %173 = tpu.matmul %171, %172, %cst_67 {dimension_numbers = #tpu.dot_dimension_numbers<[1], [0], [0], [1], [0, 0, 1, 1], [], []>} : vector<16x8xf32>, vector<8x32xf32>, vector<16x32xf32> -> vector<16x32xf32>
    %174 = arith.addf %154, %173 : vector<16x32xf32>
    %175 = vector.extract_strided_slice %128 {offsets = [0, 16], sizes = [16, 8], strides = [1, 1]} : vector<16x32xf32> to vector<16x8xf32>
    %cst_68 = arith.constant 0.353553385 : f32
    %176 = vector.broadcast %cst_68 : f32 to vector<16x8xf32>
    %177 = arith.mulf %175, %176 : vector<16x8xf32>
    %178 = vector.extract_strided_slice %134 {offsets = [0, 16], sizes = [8, 8], strides = [1, 1]} : vector<8x32xf32> to vector<8x8xf32>
    %179 = vector.extract_strided_slice %135 {offsets = [0, 16], sizes = [8, 8], strides = [1, 1]} : vector<8x32xf32> to vector<8x8xf32>
    %cst_69 = arith.constant dense<0.000000e+00> : vector<16x8xf32>
    %180 = tpu.matmul %177, %178, %cst_69 {dimension_numbers = #tpu.dot_dimension_numbers<[1], [1], [0], [0], [0, 0, 1, 0], [], []>} : vector<16x8xf32>, vector<8x8xf32>, vector<16x8xf32> -> vector<16x8xf32>
    %cst_70 = arith.constant dense<0xFF800000> : vector<16xf32>
    %181 = vector.multi_reduction <maximumf>, %180, %cst_70 [1] : vector<16x8xf32> to vector<16xf32>
    %182 = vector.shape_cast %181 : vector<16xf32> to vector<16x1xf32>
    %183 = vector.broadcast %182 : vector<16x1xf32> to vector<16x8xf32>
    %184 = arith.subf %180, %183 : vector<16x8xf32>
    %185 = math.exp %184 : vector<16x8xf32>
    %cst_71 = arith.constant dense<0.000000e+00> : vector<16xf32>
    %186 = vector.multi_reduction <add>, %185, %cst_71 [1] : vector<16x8xf32> to vector<16xf32>
    %187 = vector.shape_cast %186 : vector<16xf32> to vector<16x1xf32>
    %188 = tpu.reciprocal %187 {approx = true} : vector<16x1xf32> -> vector<16x1xf32>
    %189 = vector.broadcast %188 : vector<16x1xf32> to vector<16x8xf32>
    %190 = arith.mulf %185, %189 : vector<16x8xf32>
    %cst_72 = arith.constant dense<0.000000e+00> : vector<16x8xf32>
    %191 = tpu.matmul %190, %179, %cst_72 {dimension_numbers = #tpu.dot_dimension_numbers<[1], [0], [0], [1], [0, 0, 1, 1], [], []>} : vector<16x8xf32>, vector<8x8xf32>, vector<16x8xf32> -> vector<16x8xf32>
    %192 = vector.extract_strided_slice %122 {offsets = [16, 0], sizes = [8, 32], strides = [1, 1]} : vector<32x32xf32> to vector<8x32xf32>
    %cst_73 = arith.constant dense<0.000000e+00> : vector<16x32xf32>
    %193 = tpu.matmul %191, %192, %cst_73 {dimension_numbers = #tpu.dot_dimension_numbers<[1], [0], [0], [1], [0, 0, 1, 1], [], []>} : vector<16x8xf32>, vector<8x32xf32>, vector<16x32xf32> -> vector<16x32xf32>
    %194 = arith.addf %174, %193 : vector<16x32xf32>
    %195 = vector.extract_strided_slice %128 {offsets = [0, 24], sizes = [16, 8], strides = [1, 1]} : vector<16x32xf32> to vector<16x8xf32>
    %cst_74 = arith.constant 0.353553385 : f32
    %196 = vector.broadcast %cst_74 : f32 to vector<16x8xf32>
    %197 = arith.mulf %195, %196 : vector<16x8xf32>
    %198 = vector.extract_strided_slice %134 {offsets = [0, 24], sizes = [8, 8], strides = [1, 1]} : vector<8x32xf32> to vector<8x8xf32>
    %199 = vector.extract_strided_slice %135 {offsets = [0, 24], sizes = [8, 8], strides = [1, 1]} : vector<8x32xf32> to vector<8x8xf32>
    %cst_75 = arith.constant dense<0.000000e+00> : vector<16x8xf32>
    %200 = tpu.matmul %197, %198, %cst_75 {dimension_numbers = #tpu.dot_dimension_numbers<[1], [1], [0], [0], [0, 0, 1, 0], [], []>} : vector<16x8xf32>, vector<8x8xf32>, vector<16x8xf32> -> vector<16x8xf32>
    %cst_76 = arith.constant dense<0xFF800000> : vector<16xf32>
    %201 = vector.multi_reduction <maximumf>, %200, %cst_76 [1] : vector<16x8xf32> to vector<16xf32>
    %202 = vector.shape_cast %201 : vector<16xf32> to vector<16x1xf32>
    %203 = vector.broadcast %202 : vector<16x1xf32> to vector<16x8xf32>
    %204 = arith.subf %200, %203 : vector<16x8xf32>
    %205 = math.exp %204 : vector<16x8xf32>
    %cst_77 = arith.constant dense<0.000000e+00> : vector<16xf32>
    %206 = vector.multi_reduction <add>, %205, %cst_77 [1] : vector<16x8xf32> to vector<16xf32>
    %207 = vector.shape_cast %206 : vector<16xf32> to vector<16x1xf32>
    %208 = tpu.reciprocal %207 {approx = true} : vector<16x1xf32> -> vector<16x1xf32>
    %209 = vector.broadcast %208 : vector<16x1xf32> to vector<16x8xf32>
    %210 = arith.mulf %205, %209 : vector<16x8xf32>
    %cst_78 = arith.constant dense<0.000000e+00> : vector<16x8xf32>
    %211 = tpu.matmul %210, %199, %cst_78 {dimension_numbers = #tpu.dot_dimension_numbers<[1], [0], [0], [1], [0, 0, 1, 1], [], []>} : vector<16x8xf32>, vector<8x8xf32>, vector<16x8xf32> -> vector<16x8xf32>
    %212 = vector.extract_strided_slice %122 {offsets = [24, 0], sizes = [8, 32], strides = [1, 1]} : vector<32x32xf32> to vector<8x32xf32>
    %cst_79 = arith.constant dense<0.000000e+00> : vector<16x32xf32>
    %213 = tpu.matmul %211, %212, %cst_79 {dimension_numbers = #tpu.dot_dimension_numbers<[1], [0], [0], [1], [0, 0, 1, 1], [], []>} : vector<16x8xf32>, vector<8x32xf32>, vector<16x32xf32> -> vector<16x32xf32>
    %214 = arith.addf %194, %213 : vector<16x32xf32>
    %215 = vector.broadcast %123 : vector<1x32xf32> to vector<16x32xf32>
    %216 = arith.addf %214, %215 : vector<16x32xf32>
    %217 = arith.addf %119, %216 : vector<16x32xf32>
    %c0_80 = arith.constant 0 : index
    %c0_81 = arith.constant 0 : index
    %218 = vector.load %arg13[%c0_80, %c0_81] : memref<1x32xf32, #tpu.memory_space<vmem>>, vector<1x32xf32>
    %c0_82 = arith.constant 0 : index
    %c0_83 = arith.constant 0 : index
    %219 = vector.load %arg14[%c0_82, %c0_83] : memref<1x32xf32, #tpu.memory_space<vmem>>, vector<1x32xf32>
    %cst_84 = arith.constant dense<0.000000e+00> : vector<16xf32>
    %220 = vector.multi_reduction <add>, %217, %cst_84 [1] : vector<16x32xf32> to vector<16xf32>
    %221 = vector.shape_cast %220 : vector<16xf32> to vector<16x1xf32>
    %cst_85 = arith.constant 3.200000e+01 : f32
    %222 = vector.broadcast %cst_85 : f32 to vector<16x1xf32>
    %223 = arith.divf %221, %222 : vector<16x1xf32>
    %224 = vector.broadcast %223 : vector<16x1xf32> to vector<16x32xf32>
    %225 = arith.subf %217, %224 : vector<16x32xf32>
    %226 = arith.mulf %225, %225 : vector<16x32xf32>
    %cst_86 = arith.constant dense<0.000000e+00> : vector<16xf32>
    %227 = vector.multi_reduction <add>, %226, %cst_86 [1] : vector<16x32xf32> to vector<16xf32>
    %228 = vector.shape_cast %227 : vector<16xf32> to vector<16x1xf32>
    %cst_87 = arith.constant 3.200000e+01 : f32
    %229 = vector.broadcast %cst_87 : f32 to vector<16x1xf32>
    %230 = arith.divf %228, %229 : vector<16x1xf32>
    %231 = vector.broadcast %223 : vector<16x1xf32> to vector<16x32xf32>
    %232 = arith.subf %217, %231 : vector<16x32xf32>
    %cst_88 = arith.constant 9.99999974E-6 : f32
    %233 = vector.broadcast %cst_88 : f32 to vector<16x1xf32>
    %234 = arith.addf %230, %233 : vector<16x1xf32>
    %235 = math.rsqrt %234 : vector<16x1xf32>
    %236 = vector.broadcast %235 : vector<16x1xf32> to vector<16x32xf32>
    %237 = arith.mulf %232, %236 : vector<16x32xf32>
    %238 = vector.broadcast %218 : vector<1x32xf32> to vector<16x32xf32>
    %239 = arith.mulf %237, %238 : vector<16x32xf32>
    %240 = vector.broadcast %219 : vector<1x32xf32> to vector<16x32xf32>
    %241 = arith.addf %239, %240 : vector<16x32xf32>
    %c0_89 = arith.constant 0 : index
    %c0_90 = arith.constant 0 : index
    %242 = vector.load %arg15[%c0_89, %c0_90] : memref<32x64xf32, #tpu.memory_space<vmem>>, vector<32x64xf32>
    %cst_91 = arith.constant dense<0.000000e+00> : vector<16x64xf32>
    %243 = tpu.matmul %241, %242, %cst_91 {dimension_numbers = #tpu.dot_dimension_numbers<[1], [0], [0], [1], [0, 0, 1, 1], [], []>} : vector<16x32xf32>, vector<32x64xf32>, vector<16x64xf32> -> vector<16x64xf32>
    %c0_92 = arith.constant 0 : index
    %c0_93 = arith.constant 0 : index
    %244 = vector.load %arg16[%c0_92, %c0_93] : memref<1x64xf32, #tpu.memory_space<vmem>>, vector<1x64xf32>
    %245 = vector.broadcast %244 : vector<1x64xf32> to vector<16x64xf32>
    %246 = arith.addf %243, %245 : vector<16x64xf32>
    %cst_94 = arith.constant 0.000000e+00 : f32
    %247 = vector.broadcast %cst_94 : f32 to vector<16x64xf32>
    %248 = arith.maximumf %246, %247 : vector<16x64xf32>
    %c0_95 = arith.constant 0 : index
    %c0_96 = arith.constant 0 : index
    %249 = vector.load %arg17[%c0_95, %c0_96] : memref<64x32xf32, #tpu.memory_space<vmem>>, vector<64x32xf32>
    %cst_97 = arith.constant dense<0.000000e+00> : vector<16x32xf32>
    %250 = tpu.matmul %248, %249, %cst_97 {dimension_numbers = #tpu.dot_dimension_numbers<[1], [0], [0], [1], [0, 0, 1, 1], [], []>} : vector<16x64xf32>, vector<64x32xf32>, vector<16x32xf32> -> vector<16x32xf32>
    %c0_98 = arith.constant 0 : index
    %c0_99 = arith.constant 0 : index
    %251 = vector.load %arg18[%c0_98, %c0_99] : memref<1x32xf32, #tpu.memory_space<vmem>>, vector<1x32xf32>
    %252 = vector.broadcast %251 : vector<1x32xf32> to vector<16x32xf32>
    %253 = arith.addf %250, %252 : vector<16x32xf32>
    %254 = arith.addf %241, %253 : vector<16x32xf32>
    %c0_100 = arith.constant 0 : index
    %c0_101 = arith.constant 0 : index
    %255 = vector.load %arg19[%c0_100, %c0_101] : memref<1x32xf32, #tpu.memory_space<vmem>>, vector<1x32xf32>
    %c0_102 = arith.constant 0 : index
    %c0_103 = arith.constant 0 : index
    %256 = vector.load %arg20[%c0_102, %c0_103] : memref<1x32xf32, #tpu.memory_space<vmem>>, vector<1x32xf32>
    %cst_104 = arith.constant dense<0.000000e+00> : vector<16xf32>
    %257 = vector.multi_reduction <add>, %254, %cst_104 [1] : vector<16x32xf32> to vector<16xf32>
    %258 = vector.shape_cast %257 : vector<16xf32> to vector<16x1xf32>
    %cst_105 = arith.constant 3.200000e+01 : f32
    %259 = vector.broadcast %cst_105 : f32 to vector<16x1xf32>
    %260 = arith.divf %258, %259 : vector<16x1xf32>
    %261 = vector.broadcast %260 : vector<16x1xf32> to vector<16x32xf32>
    %262 = arith.subf %254, %261 : vector<16x32xf32>
    %263 = arith.mulf %262, %262 : vector<16x32xf32>
    %cst_106 = arith.constant dense<0.000000e+00> : vector<16xf32>
    %264 = vector.multi_reduction <add>, %263, %cst_106 [1] : vector<16x32xf32> to vector<16xf32>
    %265 = vector.shape_cast %264 : vector<16xf32> to vector<16x1xf32>
    %cst_107 = arith.constant 3.200000e+01 : f32
    %266 = vector.broadcast %cst_107 : f32 to vector<16x1xf32>
    %267 = arith.divf %265, %266 : vector<16x1xf32>
    %268 = vector.broadcast %260 : vector<16x1xf32> to vector<16x32xf32>
    %269 = arith.subf %254, %268 : vector<16x32xf32>
    %cst_108 = arith.constant 9.99999974E-6 : f32
    %270 = vector.broadcast %cst_108 : f32 to vector<16x1xf32>
    %271 = arith.addf %267, %270 : vector<16x1xf32>
    %272 = math.rsqrt %271 : vector<16x1xf32>
    %273 = vector.broadcast %272 : vector<16x1xf32> to vector<16x32xf32>
    %274 = arith.mulf %269, %273 : vector<16x32xf32>
    %275 = vector.broadcast %255 : vector<1x32xf32> to vector<16x32xf32>
    %276 = arith.mulf %274, %275 : vector<16x32xf32>
    %277 = vector.broadcast %256 : vector<1x32xf32> to vector<16x32xf32>
    %278 = arith.addf %276, %277 : vector<16x32xf32>
    %c0_109 = arith.constant 0 : index
    %c0_110 = arith.constant 0 : index
    %c0_111 = arith.constant 0 : index
    %279 = vector.load %arg21[%c0_109, %c0_110, %c0_111] : memref<1x16x32xf32, #tpu.memory_space<vmem>>, vector<1x16x32xf32>
    %280 = vector.shape_cast %279 : vector<1x16x32xf32> to vector<16x32xf32>
    %281 = vector.shape_cast %278 : vector<16x32xf32> to vector<1x16x32xf32>
    tpu.vector_store %arg21[%c0_109, %c0_110, %c0_111], %281 {strides = array<i32>} : memref<1x16x32xf32, #tpu.memory_space<vmem>>, vector<1x16x32xf32>,
    return
  }
  func.func @transform_0(%arg0: i32) -> (i32, i32, i32) {
    %c0_i32 = arith.constant 0 : i32
    %c0_i32_0 = arith.constant 0 : i32
    %c0_i32_1 = arith.constant 0 : i32
    return %arg0, %c0_i32, %c0_i32_0 : i32, i32, i32
  }
  func.func @transform_1(%arg0: i32) -> (i32, i32, i32) {
    %c0_i32 = arith.constant 0 : i32
    %c0_i32_0 = arith.constant 0 : i32
    %c0_i32_1 = arith.constant 0 : i32
    return %arg0, %c0_i32, %c0_i32_0 : i32, i32, i32
  }
  func.func @transform_2(%arg0: i32) -> (i32, i32) {
    %c0_i32 = arith.constant 0 : i32
    %c0_i32_0 = arith.constant 0 : i32
    %c0_i32_1 = arith.constant 0 : i32
    return %c0_i32, %c0_i32_0 : i32, i32
  }
  func.func @transform_3(%arg0: i32) -> (i32, i32) {
    %c0_i32 = arith.constant 0 : i32
    %c0_i32_0 = arith.constant 0 : i32
    %c0_i32_1 = arith.constant 0 : i32
    return %c0_i32, %c0_i32_0 : i32, i32
  }
  func.func @transform_4(%arg0: i32) -> (i32, i32) {
    %c0_i32 = arith.constant 0 : i32
    %c0_i32_0 = arith.constant 0 : i32
    %c0_i32_1 = arith.constant 0 : i32
    return %c0_i32, %c0_i32_0 : i32, i32
  }
  func.func @transform_5(%arg0: i32) -> (i32, i32) {
    %c0_i32 = arith.constant 0 : i32
    %c0_i32_0 = arith.constant 0 : i32
    %c0_i32_1 = arith.constant 0 : i32
    return %c0_i32, %c0_i32_0 : i32, i32
  }
  func.func @transform_6(%arg0: i32) -> (i32, i32) {
    %c0_i32 = arith.constant 0 : i32
    %c0_i32_0 = arith.constant 0 : i32
    %c0_i32_1 = arith.constant 0 : i32
    return %c0_i32, %c0_i32_0 : i32, i32
  }
  func.func @transform_7(%arg0: i32) -> (i32, i32) {
    %c0_i32 = arith.constant 0 : i32
    %c0_i32_0 = arith.constant 0 : i32
    %c0_i32_1 = arith.constant 0 : i32
    return %c0_i32, %c0_i32_0 : i32, i32
  }
  func.func @transform_8(%arg0: i32) -> (i32, i32) {
    %c0_i32 = arith.constant 0 : i32
    %c0_i32_0 = arith.constant 0 : i32
    %c0_i32_1 = arith.constant 0 : i32
    return %c0_i32, %c0_i32_0 : i32, i32
  }
  func.func @transform_9(%arg0: i32) -> (i32, i32) {
    %c0_i32 = arith.constant 0 : i32
    %c0_i32_0 = arith.constant 0 : i32
    %c0_i32_1 = arith.constant 0 : i32
    return %c0_i32, %c0_i32_0 : i32, i32
  }
  func.func @transform_10(%arg0: i32) -> (i32, i32) {
    %c0_i32 = arith.constant 0 : i32
    %c0_i32_0 = arith.constant 0 : i32
    %c0_i32_1 = arith.constant 0 : i32
    return %c0_i32, %c0_i32_0 : i32, i32
  }
  func.func @transform_11(%arg0: i32) -> (i32, i32) {
    %c0_i32 = arith.constant 0 : i32
    %c0_i32_0 = arith.constant 0 : i32
    %c0_i32_1 = arith.constant 0 : i32
    return %c0_i32, %c0_i32_0 : i32, i32
  }
  func.func @transform_12(%arg0: i32) -> (i32, i32) {
    %c0_i32 = arith.constant 0 : i32
    %c0_i32_0 = arith.constant 0 : i32
    %c0_i32_1 = arith.constant 0 : i32
    return %c0_i32, %c0_i32_0 : i32, i32
  }
  func.func @transform_13(%arg0: i32) -> (i32, i32) {
    %c0_i32 = arith.constant 0 : i32
    %c0_i32_0 = arith.constant 0 : i32
    %c0_i32_1 = arith.constant 0 : i32
    return %c0_i32, %c0_i32_0 : i32, i32
  }
  func.func @transform_14(%arg0: i32) -> (i32, i32) {
    %c0_i32 = arith.constant 0 : i32
    %c0_i32_0 = arith.constant 0 : i32
    %c0_i32_1 = arith.constant 0 : i32
    return %c0_i32, %c0_i32_0 : i32, i32
  }
  func.func @transform_15(%arg0: i32) -> (i32, i32) {
    %c0_i32 = arith.constant 0 : i32
    %c0_i32_0 = arith.constant 0 : i32
    %c0_i32_1 = arith.constant 0 : i32
    return %c0_i32, %c0_i32_0 : i32, i32
  }
  func.func @transform_16(%arg0: i32) -> (i32, i32) {
    %c0_i32 = arith.constant 0 : i32
    %c0_i32_0 = arith.constant 0 : i32
    %c0_i32_1 = arith.constant 0 : i32
    return %c0_i32, %c0_i32_0 : i32, i32
  }
  func.func @transform_17(%arg0: i32) -> (i32, i32) {
    %c0_i32 = arith.constant 0 : i32
    %c0_i32_0 = arith.constant 0 : i32
    %c0_i32_1 = arith.constant 0 : i32
    return %c0_i32, %c0_i32_0 : i32, i32
  }
  func.func @transform_18(%arg0: i32) -> (i32, i32) {
    %c0_i32 = arith.constant 0 : i32
    %c0_i32_0 = arith.constant 0 : i32
    %c0_i32_1 = arith.constant 0 : i32
    return %c0_i32, %c0_i32_0 : i32, i32
  }
  func.func @transform_19(%arg0: i32) -> (i32, i32) {
    %c0_i32 = arith.constant 0 : i32
    %c0_i32_0 = arith.constant 0 : i32
    %c0_i32_1 = arith.constant 0 : i32
    return %c0_i32, %c0_i32_0 : i32, i32
  }
  func.func @transform_20(%arg0: i32) -> (i32, i32, i32) {
    %c0_i32 = arith.constant 0 : i32
    %c0_i32_0 = arith.constant 0 : i32
    %c0_i32_1 = arith.constant 0 : i32
    return %arg0, %c0_i32, %c0_i32_0 : i32, i32, i32
  }
}

module attributes {stable_mosaic.version = 11 : i64} {
  func.func @_decoder_layer_kernel(%arg0: i32, %arg1: memref<1x16x32xf32, #tpu.memory_space<vmem>>, %arg2: memref<1x8x32xf32, #tpu.memory_space<vmem>>, %arg3: memref<32x96xf32, #tpu.memory_space<vmem>>, %arg4: memref<1x96xf32, #tpu.memory_space<vmem>>, %arg5: memref<32x32xf32, #tpu.memory_space<vmem>>, %arg6: memref<1x32xf32, #tpu.memory_space<vmem>>, %arg7: memref<32x96xf32, #tpu.memory_space<vmem>>, %arg8: memref<1x96xf32, #tpu.memory_space<vmem>>, %arg9: memref<32x32xf32, #tpu.memory_space<vmem>>, %arg10: memref<1x32xf32, #tpu.memory_space<vmem>>, %arg11: memref<1x32xf32, #tpu.memory_space<vmem>>, %arg12: memref<1x32xf32, #tpu.memory_space<vmem>>, %arg13: memref<1x32xf32, #tpu.memory_space<vmem>>, %arg14: memref<1x32xf32, #tpu.memory_space<vmem>>, %arg15: memref<32x64xf32, #tpu.memory_space<vmem>>, %arg16: memref<1x64xf32, #tpu.memory_space<vmem>>, %arg17: memref<64x32xf32, #tpu.memory_space<vmem>>, %arg18: memref<1x32xf32, #tpu.memory_space<vmem>>, %arg19: memref<1x32xf32, #tpu.memory_space<vmem>>, %arg20: memref<1x32xf32, #tpu.memory_space<vmem>>, %arg21: memref<1x32xf32, #tpu.memory_space<vmem>>, %arg22: memref<1x32xf32, #tpu.memory_space<vmem>>, %arg23: memref<1x16x32xf32, #tpu.memory_space<vmem>>) attributes {dimension_semantics = [#tpu.dimension_semantics<parallel>], iteration_bounds = array<i64: 2>, scalar_prefetch = 0 : i64, scratch_operands = 0 : i64, tpu.core_type = #tpu.core_type<tc>, window_params = [{transform_indices = @transform_0, window_bounds = array<i64: 1, 16, 32>}, {transform_indices = @transform_1, window_bounds = array<i64: 1, 8, 32>}, {pipeline_mode = #tpu.pipeline_mode<synchronous>, transform_indices = @transform_2, window_bounds = array<i64: 32, 96>}, {pipeline_mode = #tpu.pipeline_mode<synchronous>, transform_indices = @transform_3, window_bounds = array<i64: 1, 96>}, {pipeline_mode = #tpu.pipeline_mode<synchronous>, transform_indices = @transform_4, window_bounds = array<i64: 32, 32>}, {pipeline_mode = #tpu.pipeline_mode<synchronous>, transform_indices = @transform_5, window_bounds = array<i64: 1, 32>}, {pipeline_mode = #tpu.pipeline_mode<synchronous>, transform_indices = @transform_6, window_bounds = array<i64: 32, 96>}, {pipeline_mode = #tpu.pipeline_mode<synchronous>, transform_indices = @transform_7, window_bounds = array<i64: 1, 96>}, {pipeline_mode = #tpu.pipeline_mode<synchronous>, transform_indices = @transform_8, window_bounds = array<i64: 32, 32>}, {pipeline_mode = #tpu.pipeline_mode<synchronous>, transform_indices = @transform_9, window_bounds = array<i64: 1, 32>}, {pipeline_mode = #tpu.pipeline_mode<synchronous>, transform_indices = @transform_10, window_bounds = array<i64: 1, 32>}, {pipeline_mode = #tpu.pipeline_mode<synchronous>, transform_indices = @transform_11, window_bounds = array<i64: 1, 32>}, {pipeline_mode = #tpu.pipeline_mode<synchronous>, transform_indices = @transform_12, window_bounds = array<i64: 1, 32>}, {pipeline_mode = #tpu.pipeline_mode<synchronous>, transform_indices = @transform_13, window_bounds = array<i64: 1, 32>}, {pipeline_mode = #tpu.pipeline_mode<synchronous>, transform_indices = @transform_14, window_bounds = array<i64: 32, 64>}, {pipeline_mode = #tpu.pipeline_mode<synchronous>, transform_indices = @transform_15, window_bounds = array<i64: 1, 64>}, {pipeline_mode = #tpu.pipeline_mode<synchronous>, transform_indices = @transform_16, window_bounds = array<i64: 64, 32>}, {pipeline_mode = #tpu.pipeline_mode<synchronous>, transform_indices = @transform_17, window_bounds = array<i64: 1, 32>}, {pipeline_mode = #tpu.pipeline_mode<synchronous>, transform_indices = @transform_18, window_bounds = array<i64: 1, 32>}, {pipeline_mode = #tpu.pipeline_mode<synchronous>, transform_indices = @transform_19, window_bounds = array<i64: 1, 32>}, {pipeline_mode = #tpu.pipeline_mode<synchronous>, transform_indices = @transform_20, window_bounds = array<i64: 1, 32>}, {pipeline_mode = #tpu.pipeline_mode<synchronous>, transform_indices = @transform_21, window_bounds = array<i64: 1, 32>}, {transform_indices = @transform_22, window_bounds = array<i64: 1, 16, 32>}]} {
    %c0 = arith.constant 0 : index
    %c0_0 = arith.constant 0 : index
    %c0_1 = arith.constant 0 : index
    %0 = vector.load %arg1[%c0, %c0_0, %c0_1] : memref<1x16x32xf32, #tpu.memory_space<vmem>>, vector<1x16x32xf32>
    %1 = vector.shape_cast %0 : vector<1x16x32xf32> to vector<16x32xf32>
    %c0_2 = arith.constant 0 : index
    %c0_3 = arith.constant 0 : index
    %c0_4 = arith.constant 0 : index
    %2 = vector.load %arg2[%c0_2, %c0_3, %c0_4] : memref<1x8x32xf32, #tpu.memory_space<vmem>>, vector<1x8x32xf32>
    %3 = vector.shape_cast %2 : vector<1x8x32xf32> to vector<8x32xf32>
    %c0_5 = arith.constant 0 : index
    %c0_6 = arith.constant 0 : index
    %4 = vector.load %arg3[%c0_5, %c0_6] : memref<32x96xf32, #tpu.memory_space<vmem>>, vector<32x96xf32>
    %c0_7 = arith.constant 0 : index
    %c0_8 = arith.constant 0 : index
    %5 = vector.load %arg4[%c0_7, %c0_8] : memref<1x96xf32, #tpu.memory_space<vmem>>, vector<1x96xf32>
    %c0_9 = arith.constant 0 : index
    %c0_10 = arith.constant 0 : index
    %6 = vector.load %arg5[%c0_9, %c0_10] : memref<32x32xf32, #tpu.memory_space<vmem>>, vector<32x32xf32>
    %c0_11 = arith.constant 0 : index
    %c0_12 = arith.constant 0 : index
    %7 = vector.load %arg6[%c0_11, %c0_12] : memref<1x32xf32, #tpu.memory_space<vmem>>, vector<1x32xf32>
    %cst = arith.constant dense<0.000000e+00> : vector<16x96xf32>
    %8 = tpu.matmul %1, %4, %cst {dimension_numbers = #tpu.dot_dimension_numbers<[1], [0], [0], [1], [0, 0, 1, 1], [], []>} : vector<16x32xf32>, vector<32x96xf32>, vector<16x96xf32> -> vector<16x96xf32>
    %9 = vector.broadcast %5 : vector<1x96xf32> to vector<16x96xf32>
    %10 = arith.addf %8, %9 : vector<16x96xf32>
    %11 = vector.extract_strided_slice %10 {offsets = [0, 0], sizes = [16, 32], strides = [1, 1]} : vector<16x96xf32> to vector<16x32xf32>
    %12 = vector.extract_strided_slice %10 {offsets = [0, 32], sizes = [16, 32], strides = [1, 1]} : vector<16x96xf32> to vector<16x32xf32>
    %13 = vector.extract_strided_slice %10 {offsets = [0, 64], sizes = [16, 32], strides = [1, 1]} : vector<16x96xf32> to vector<16x32xf32>
    %14 = vector.extract_strided_slice %11 {offsets = [0, 0], sizes = [16, 8], strides = [1, 1]} : vector<16x32xf32> to vector<16x8xf32>
    %cst_13 = arith.constant 0.353553385 : f32
    %15 = vector.broadcast %cst_13 : f32 to vector<16x8xf32>
    %16 = arith.mulf %14, %15 : vector<16x8xf32>
    %17 = vector.extract_strided_slice %12 {offsets = [0, 0], sizes = [16, 8], strides = [1, 1]} : vector<16x32xf32> to vector<16x8xf32>
    %18 = vector.extract_strided_slice %13 {offsets = [0, 0], sizes = [16, 8], strides = [1, 1]} : vector<16x32xf32> to vector<16x8xf32>
    %cst_14 = arith.constant dense<0.000000e+00> : vector<16x16xf32>
    %19 = tpu.matmul %16, %17, %cst_14 {dimension_numbers = #tpu.dot_dimension_numbers<[1], [1], [0], [0], [0, 0, 1, 0], [], []>} : vector<16x8xf32>, vector<16x8xf32>, vector<16x16xf32> -> vector<16x16xf32>
    %cst_15 = arith.constant dense<0xFF800000> : vector<16xf32>
    %20 = vector.multi_reduction <maximumf>, %19, %cst_15 [1] : vector<16x16xf32> to vector<16xf32>
    %21 = vector.shape_cast %20 : vector<16xf32> to vector<16x1xf32>
    %22 = vector.broadcast %21 : vector<16x1xf32> to vector<16x16xf32>
    %23 = arith.subf %19, %22 : vector<16x16xf32>
    %24 = math.exp %23 : vector<16x16xf32>
    %cst_16 = arith.constant dense<0.000000e+00> : vector<16xf32>
    %25 = vector.multi_reduction <add>, %24, %cst_16 [1] : vector<16x16xf32> to vector<16xf32>
    %26 = vector.shape_cast %25 : vector<16xf32> to vector<16x1xf32>
    %27 = tpu.reciprocal %26 {approx = true} : vector<16x1xf32> -> vector<16x1xf32>
    %28 = vector.broadcast %27 : vector<16x1xf32> to vector<16x16xf32>
    %29 = arith.mulf %24, %28 : vector<16x16xf32>
    %cst_17 = arith.constant dense<0.000000e+00> : vector<16x8xf32>
    %30 = tpu.matmul %29, %18, %cst_17 {dimension_numbers = #tpu.dot_dimension_numbers<[1], [0], [0], [1], [0, 0, 1, 1], [], []>} : vector<16x16xf32>, vector<16x8xf32>, vector<16x8xf32> -> vector<16x8xf32>
    %31 = vector.extract_strided_slice %6 {offsets = [0, 0], sizes = [8, 32], strides = [1, 1]} : vector<32x32xf32> to vector<8x32xf32>
    %cst_18 = arith.constant dense<0.000000e+00> : vector<16x32xf32>
    %32 = tpu.matmul %30, %31, %cst_18 {dimension_numbers = #tpu.dot_dimension_numbers<[1], [0], [0], [1], [0, 0, 1, 1], [], []>} : vector<16x8xf32>, vector<8x32xf32>, vector<16x32xf32> -> vector<16x32xf32>
    %33 = vector.extract_strided_slice %11 {offsets = [0, 8], sizes = [16, 8], strides = [1, 1]} : vector<16x32xf32> to vector<16x8xf32>
    %cst_19 = arith.constant 0.353553385 : f32
    %34 = vector.broadcast %cst_19 : f32 to vector<16x8xf32>
    %35 = arith.mulf %33, %34 : vector<16x8xf32>
    %36 = vector.extract_strided_slice %12 {offsets = [0, 8], sizes = [16, 8], strides = [1, 1]} : vector<16x32xf32> to vector<16x8xf32>
    %37 = vector.extract_strided_slice %13 {offsets = [0, 8], sizes = [16, 8], strides = [1, 1]} : vector<16x32xf32> to vector<16x8xf32>
    %cst_20 = arith.constant dense<0.000000e+00> : vector<16x16xf32>
    %38 = tpu.matmul %35, %36, %cst_20 {dimension_numbers = #tpu.dot_dimension_numbers<[1], [1], [0], [0], [0, 0, 1, 0], [], []>} : vector<16x8xf32>, vector<16x8xf32>, vector<16x16xf32> -> vector<16x16xf32>
    %cst_21 = arith.constant dense<0xFF800000> : vector<16xf32>
    %39 = vector.multi_reduction <maximumf>, %38, %cst_21 [1] : vector<16x16xf32> to vector<16xf32>
    %40 = vector.shape_cast %39 : vector<16xf32> to vector<16x1xf32>
    %41 = vector.broadcast %40 : vector<16x1xf32> to vector<16x16xf32>
    %42 = arith.subf %38, %41 : vector<16x16xf32>
    %43 = math.exp %42 : vector<16x16xf32>
    %cst_22 = arith.constant dense<0.000000e+00> : vector<16xf32>
    %44 = vector.multi_reduction <add>, %43, %cst_22 [1] : vector<16x16xf32> to vector<16xf32>
    %45 = vector.shape_cast %44 : vector<16xf32> to vector<16x1xf32>
    %46 = tpu.reciprocal %45 {approx = true} : vector<16x1xf32> -> vector<16x1xf32>
    %47 = vector.broadcast %46 : vector<16x1xf32> to vector<16x16xf32>
    %48 = arith.mulf %43, %47 : vector<16x16xf32>
    %cst_23 = arith.constant dense<0.000000e+00> : vector<16x8xf32>
    %49 = tpu.matmul %48, %37, %cst_23 {dimension_numbers = #tpu.dot_dimension_numbers<[1], [0], [0], [1], [0, 0, 1, 1], [], []>} : vector<16x16xf32>, vector<16x8xf32>, vector<16x8xf32> -> vector<16x8xf32>
    %50 = vector.extract_strided_slice %6 {offsets = [8, 0], sizes = [8, 32], strides = [1, 1]} : vector<32x32xf32> to vector<8x32xf32>
    %cst_24 = arith.constant dense<0.000000e+00> : vector<16x32xf32>
    %51 = tpu.matmul %49, %50, %cst_24 {dimension_numbers = #tpu.dot_dimension_numbers<[1], [0], [0], [1], [0, 0, 1, 1], [], []>} : vector<16x8xf32>, vector<8x32xf32>, vector<16x32xf32> -> vector<16x32xf32>
    %52 = arith.addf %32, %51 : vector<16x32xf32>
    %53 = vector.extract_strided_slice %11 {offsets = [0, 16], sizes = [16, 8], strides = [1, 1]} : vector<16x32xf32> to vector<16x8xf32>
    %cst_25 = arith.constant 0.353553385 : f32
    %54 = vector.broadcast %cst_25 : f32 to vector<16x8xf32>
    %55 = arith.mulf %53, %54 : vector<16x8xf32>
    %56 = vector.extract_strided_slice %12 {offsets = [0, 16], sizes = [16, 8], strides = [1, 1]} : vector<16x32xf32> to vector<16x8xf32>
    %57 = vector.extract_strided_slice %13 {offsets = [0, 16], sizes = [16, 8], strides = [1, 1]} : vector<16x32xf32> to vector<16x8xf32>
    %cst_26 = arith.constant dense<0.000000e+00> : vector<16x16xf32>
    %58 = tpu.matmul %55, %56, %cst_26 {dimension_numbers = #tpu.dot_dimension_numbers<[1], [1], [0], [0], [0, 0, 1, 0], [], []>} : vector<16x8xf32>, vector<16x8xf32>, vector<16x16xf32> -> vector<16x16xf32>
    %cst_27 = arith.constant dense<0xFF800000> : vector<16xf32>
    %59 = vector.multi_reduction <maximumf>, %58, %cst_27 [1] : vector<16x16xf32> to vector<16xf32>
    %60 = vector.shape_cast %59 : vector<16xf32> to vector<16x1xf32>
    %61 = vector.broadcast %60 : vector<16x1xf32> to vector<16x16xf32>
    %62 = arith.subf %58, %61 : vector<16x16xf32>
    %63 = math.exp %62 : vector<16x16xf32>
    %cst_28 = arith.constant dense<0.000000e+00> : vector<16xf32>
    %64 = vector.multi_reduction <add>, %63, %cst_28 [1] : vector<16x16xf32> to vector<16xf32>
    %65 = vector.shape_cast %64 : vector<16xf32> to vector<16x1xf32>
    %66 = tpu.reciprocal %65 {approx = true} : vector<16x1xf32> -> vector<16x1xf32>
    %67 = vector.broadcast %66 : vector<16x1xf32> to vector<16x16xf32>
    %68 = arith.mulf %63, %67 : vector<16x16xf32>
    %cst_29 = arith.constant dense<0.000000e+00> : vector<16x8xf32>
    %69 = tpu.matmul %68, %57, %cst_29 {dimension_numbers = #tpu.dot_dimension_numbers<[1], [0], [0], [1], [0, 0, 1, 1], [], []>} : vector<16x16xf32>, vector<16x8xf32>, vector<16x8xf32> -> vector<16x8xf32>
    %70 = vector.extract_strided_slice %6 {offsets = [16, 0], sizes = [8, 32], strides = [1, 1]} : vector<32x32xf32> to vector<8x32xf32>
    %cst_30 = arith.constant dense<0.000000e+00> : vector<16x32xf32>
    %71 = tpu.matmul %69, %70, %cst_30 {dimension_numbers = #tpu.dot_dimension_numbers<[1], [0], [0], [1], [0, 0, 1, 1], [], []>} : vector<16x8xf32>, vector<8x32xf32>, vector<16x32xf32> -> vector<16x32xf32>
    %72 = arith.addf %52, %71 : vector<16x32xf32>
    %73 = vector.extract_strided_slice %11 {offsets = [0, 24], sizes = [16, 8], strides = [1, 1]} : vector<16x32xf32> to vector<16x8xf32>
    %cst_31 = arith.constant 0.353553385 : f32
    %74 = vector.broadcast %cst_31 : f32 to vector<16x8xf32>
    %75 = arith.mulf %73, %74 : vector<16x8xf32>
    %76 = vector.extract_strided_slice %12 {offsets = [0, 24], sizes = [16, 8], strides = [1, 1]} : vector<16x32xf32> to vector<16x8xf32>
    %77 = vector.extract_strided_slice %13 {offsets = [0, 24], sizes = [16, 8], strides = [1, 1]} : vector<16x32xf32> to vector<16x8xf32>
    %cst_32 = arith.constant dense<0.000000e+00> : vector<16x16xf32>
    %78 = tpu.matmul %75, %76, %cst_32 {dimension_numbers = #tpu.dot_dimension_numbers<[1], [1], [0], [0], [0, 0, 1, 0], [], []>} : vector<16x8xf32>, vector<16x8xf32>, vector<16x16xf32> -> vector<16x16xf32>
    %cst_33 = arith.constant dense<0xFF800000> : vector<16xf32>
    %79 = vector.multi_reduction <maximumf>, %78, %cst_33 [1] : vector<16x16xf32> to vector<16xf32>
    %80 = vector.shape_cast %79 : vector<16xf32> to vector<16x1xf32>
    %81 = vector.broadcast %80 : vector<16x1xf32> to vector<16x16xf32>
    %82 = arith.subf %78, %81 : vector<16x16xf32>
    %83 = math.exp %82 : vector<16x16xf32>
    %cst_34 = arith.constant dense<0.000000e+00> : vector<16xf32>
    %84 = vector.multi_reduction <add>, %83, %cst_34 [1] : vector<16x16xf32> to vector<16xf32>
    %85 = vector.shape_cast %84 : vector<16xf32> to vector<16x1xf32>
    %86 = tpu.reciprocal %85 {approx = true} : vector<16x1xf32> -> vector<16x1xf32>
    %87 = vector.broadcast %86 : vector<16x1xf32> to vector<16x16xf32>
    %88 = arith.mulf %83, %87 : vector<16x16xf32>
    %cst_35 = arith.constant dense<0.000000e+00> : vector<16x8xf32>
    %89 = tpu.matmul %88, %77, %cst_35 {dimension_numbers = #tpu.dot_dimension_numbers<[1], [0], [0], [1], [0, 0, 1, 1], [], []>} : vector<16x16xf32>, vector<16x8xf32>, vector<16x8xf32> -> vector<16x8xf32>
    %90 = vector.extract_strided_slice %6 {offsets = [24, 0], sizes = [8, 32], strides = [1, 1]} : vector<32x32xf32> to vector<8x32xf32>
    %cst_36 = arith.constant dense<0.000000e+00> : vector<16x32xf32>
    %91 = tpu.matmul %89, %90, %cst_36 {dimension_numbers = #tpu.dot_dimension_numbers<[1], [0], [0], [1], [0, 0, 1, 1], [], []>} : vector<16x8xf32>, vector<8x32xf32>, vector<16x32xf32> -> vector<16x32xf32>
    %92 = arith.addf %72, %91 : vector<16x32xf32>
    %93 = vector.broadcast %7 : vector<1x32xf32> to vector<16x32xf32>
    %94 = arith.addf %92, %93 : vector<16x32xf32>
    %95 = arith.addf %1, %94 : vector<16x32xf32>
    %c0_37 = arith.constant 0 : index
    %c0_38 = arith.constant 0 : index
    %96 = vector.load %arg11[%c0_37, %c0_38] : memref<1x32xf32, #tpu.memory_space<vmem>>, vector<1x32xf32>
    %c0_39 = arith.constant 0 : index
    %c0_40 = arith.constant 0 : index
    %97 = vector.load %arg12[%c0_39, %c0_40] : memref<1x32xf32, #tpu.memory_space<vmem>>, vector<1x32xf32>
    %cst_41 = arith.constant dense<0.000000e+00> : vector<16xf32>
    %98 = vector.multi_reduction <add>, %95, %cst_41 [1] : vector<16x32xf32> to vector<16xf32>
    %99 = vector.shape_cast %98 : vector<16xf32> to vector<16x1xf32>
    %cst_42 = arith.constant 3.200000e+01 : f32
    %100 = vector.broadcast %cst_42 : f32 to vector<16x1xf32>
    %101 = arith.divf %99, %100 : vector<16x1xf32>
    %102 = vector.broadcast %101 : vector<16x1xf32> to vector<16x32xf32>
    %103 = arith.subf %95, %102 : vector<16x32xf32>
    %104 = arith.mulf %103, %103 : vector<16x32xf32>
    %cst_43 = arith.constant dense<0.000000e+00> : vector<16xf32>
    %105 = vector.multi_reduction <add>, %104, %cst_43 [1] : vector<16x32xf32> to vector<16xf32>
    %106 = vector.shape_cast %105 : vector<16xf32> to vector<16x1xf32>
    %cst_44 = arith.constant 3.200000e+01 : f32
    %107 = vector.broadcast %cst_44 : f32 to vector<16x1xf32>
    %108 = arith.divf %106, %107 : vector<16x1xf32>
    %109 = vector.broadcast %101 : vector<16x1xf32> to vector<16x32xf32>
    %110 = arith.subf %95, %109 : vector<16x32xf32>
    %cst_45 = arith.constant 9.99999974E-6 : f32
    %111 = vector.broadcast %cst_45 : f32 to vector<16x1xf32>
    %112 = arith.addf %108, %111 : vector<16x1xf32>
    %113 = math.rsqrt %112 : vector<16x1xf32>
    %114 = vector.broadcast %113 : vector<16x1xf32> to vector<16x32xf32>
    %115 = arith.mulf %110, %114 : vector<16x32xf32>
    %116 = vector.broadcast %96 : vector<1x32xf32> to vector<16x32xf32>
    %117 = arith.mulf %115, %116 : vector<16x32xf32>
    %118 = vector.broadcast %97 : vector<1x32xf32> to vector<16x32xf32>
    %119 = arith.addf %117, %118 : vector<16x32xf32>
    %c0_46 = arith.constant 0 : index
    %c0_47 = arith.constant 0 : index
    %120 = vector.load %arg7[%c0_46, %c0_47] : memref<32x96xf32, #tpu.memory_space<vmem>>, vector<32x96xf32>
    %c0_48 = arith.constant 0 : index
    %c0_49 = arith.constant 0 : index
    %121 = vector.load %arg8[%c0_48, %c0_49] : memref<1x96xf32, #tpu.memory_space<vmem>>, vector<1x96xf32>
    %c0_50 = arith.constant 0 : index
    %c0_51 = arith.constant 0 : index
    %122 = vector.load %arg9[%c0_50, %c0_51] : memref<32x32xf32, #tpu.memory_space<vmem>>, vector<32x32xf32>
    %c0_52 = arith.constant 0 : index
    %c0_53 = arith.constant 0 : index
    %123 = vector.load %arg10[%c0_52, %c0_53] : memref<1x32xf32, #tpu.memory_space<vmem>>, vector<1x32xf32>
    %124 = vector.extract_strided_slice %120 {offsets = [0, 0], sizes = [32, 32], strides = [1, 1]} : vector<32x96xf32> to vector<32x32xf32>
    %cst_54 = arith.constant dense<0.000000e+00> : vector<16x32xf32>
    %125 = tpu.matmul %119, %124, %cst_54 {dimension_numbers = #tpu.dot_dimension_numbers<[1], [0], [0], [1], [0, 0, 1, 1], [], []>} : vector<16x32xf32>, vector<32x32xf32>, vector<16x32xf32> -> vector<16x32xf32>
    %126 = vector.extract_strided_slice %121 {offsets = [0, 0], sizes = [1, 32], strides = [1, 1]} : vector<1x96xf32> to vector<1x32xf32>
    %127 = vector.broadcast %126 : vector<1x32xf32> to vector<16x32xf32>
    %128 = arith.addf %125, %127 : vector<16x32xf32>
    %129 = vector.extract_strided_slice %120 {offsets = [0, 32], sizes = [32, 64], strides = [1, 1]} : vector<32x96xf32> to vector<32x64xf32>
    %cst_55 = arith.constant dense<0.000000e+00> : vector<8x64xf32>
    %130 = tpu.matmul %3, %129, %cst_55 {dimension_numbers = #tpu.dot_dimension_numbers<[1], [0], [0], [1], [0, 0, 1, 1], [], []>} : vector<8x32xf32>, vector<32x64xf32>, vector<8x64xf32> -> vector<8x64xf32>
    %131 = vector.extract_strided_slice %121 {offsets = [0, 32], sizes = [1, 64], strides = [1, 1]} : vector<1x96xf32> to vector<1x64xf32>
    %132 = vector.broadcast %131 : vector<1x64xf32> to vector<8x64xf32>
    %133 = arith.addf %130, %132 : vector<8x64xf32>
    %134 = vector.extract_strided_slice %133 {offsets = [0, 0], sizes = [8, 32], strides = [1, 1]} : vector<8x64xf32> to vector<8x32xf32>
    %135 = vector.extract_strided_slice %133 {offsets = [0, 32], sizes = [8, 32], strides = [1, 1]} : vector<8x64xf32> to vector<8x32xf32>
    %136 = vector.extract_strided_slice %128 {offsets = [0, 0], sizes = [16, 8], strides = [1, 1]} : vector<16x32xf32> to vector<16x8xf32>
    %cst_56 = arith.constant 0.353553385 : f32
    %137 = vector.broadcast %cst_56 : f32 to vector<16x8xf32>
    %138 = arith.mulf %136, %137 : vector<16x8xf32>
    %139 = vector.extract_strided_slice %134 {offsets = [0, 0], sizes = [8, 8], strides = [1, 1]} : vector<8x32xf32> to vector<8x8xf32>
    %140 = vector.extract_strided_slice %135 {offsets = [0, 0], sizes = [8, 8], strides = [1, 1]} : vector<8x32xf32> to vector<8x8xf32>
    %cst_57 = arith.constant dense<0.000000e+00> : vector<16x8xf32>
    %141 = tpu.matmul %138, %139, %cst_57 {dimension_numbers = #tpu.dot_dimension_numbers<[1], [1], [0], [0], [0, 0, 1, 0], [], []>} : vector<16x8xf32>, vector<8x8xf32>, vector<16x8xf32> -> vector<16x8xf32>
    %cst_58 = arith.constant dense<0xFF800000> : vector<16xf32>
    %142 = vector.multi_reduction <maximumf>, %141, %cst_58 [1] : vector<16x8xf32> to vector<16xf32>
    %143 = vector.shape_cast %142 : vector<16xf32> to vector<16x1xf32>
    %144 = vector.broadcast %143 : vector<16x1xf32> to vector<16x8xf32>
    %145 = arith.subf %141, %144 : vector<16x8xf32>
    %146 = math.exp %145 : vector<16x8xf32>
    %cst_59 = arith.constant dense<0.000000e+00> : vector<16xf32>
    %147 = vector.multi_reduction <add>, %146, %cst_59 [1] : vector<16x8xf32> to vector<16xf32>
    %148 = vector.shape_cast %147 : vector<16xf32> to vector<16x1xf32>
    %149 = tpu.reciprocal %148 {approx = true} : vector<16x1xf32> -> vector<16x1xf32>
    %150 = vector.broadcast %149 : vector<16x1xf32> to vector<16x8xf32>
    %151 = arith.mulf %146, %150 : vector<16x8xf32>
    %cst_60 = arith.constant dense<0.000000e+00> : vector<16x8xf32>
    %152 = tpu.matmul %151, %140, %cst_60 {dimension_numbers = #tpu.dot_dimension_numbers<[1], [0], [0], [1], [0, 0, 1, 1], [], []>} : vector<16x8xf32>, vector<8x8xf32>, vector<16x8xf32> -> vector<16x8xf32>
    %153 = vector.extract_strided_slice %122 {offsets = [0, 0], sizes = [8, 32], strides = [1, 1]} : vector<32x32xf32> to vector<8x32xf32>
    %cst_61 = arith.constant dense<0.000000e+00> : vector<16x32xf32>
    %154 = tpu.matmul %152, %153, %cst_61 {dimension_numbers = #tpu.dot_dimension_numbers<[1], [0], [0], [1], [0, 0, 1, 1], [], []>} : vector<16x8xf32>, vector<8x32xf32>, vector<16x32xf32> -> vector<16x32xf32>
    %155 = vector.extract_strided_slice %128 {offsets = [0, 8], sizes = [16, 8], strides = [1, 1]} : vector<16x32xf32> to vector<16x8xf32>
    %cst_62 = arith.constant 0.353553385 : f32
    %156 = vector.broadcast %cst_62 : f32 to vector<16x8xf32>
    %157 = arith.mulf %155, %156 : vector<16x8xf32>
    %158 = vector.extract_strided_slice %134 {offsets = [0, 8], sizes = [8, 8], strides = [1, 1]} : vector<8x32xf32> to vector<8x8xf32>
    %159 = vector.extract_strided_slice %135 {offsets = [0, 8], sizes = [8, 8], strides = [1, 1]} : vector<8x32xf32> to vector<8x8xf32>
    %cst_63 = arith.constant dense<0.000000e+00> : vector<16x8xf32>
    %160 = tpu.matmul %157, %158, %cst_63 {dimension_numbers = #tpu.dot_dimension_numbers<[1], [1], [0], [0], [0, 0, 1, 0], [], []>} : vector<16x8xf32>, vector<8x8xf32>, vector<16x8xf32> -> vector<16x8xf32>
    %cst_64 = arith.constant dense<0xFF800000> : vector<16xf32>
    %161 = vector.multi_reduction <maximumf>, %160, %cst_64 [1] : vector<16x8xf32> to vector<16xf32>
    %162 = vector.shape_cast %161 : vector<16xf32> to vector<16x1xf32>
    %163 = vector.broadcast %162 : vector<16x1xf32> to vector<16x8xf32>
    %164 = arith.subf %160, %163 : vector<16x8xf32>
    %165 = math.exp %164 : vector<16x8xf32>
    %cst_65 = arith.constant dense<0.000000e+00> : vector<16xf32>
    %166 = vector.multi_reduction <add>, %165, %cst_65 [1] : vector<16x8xf32> to vector<16xf32>
    %167 = vector.shape_cast %166 : vector<16xf32> to vector<16x1xf32>
    %168 = tpu.reciprocal %167 {approx = true} : vector<16x1xf32> -> vector<16x1xf32>
    %169 = vector.broadcast %168 : vector<16x1xf32> to vector<16x8xf32>
    %170 = arith.mulf %165, %169 : vector<16x8xf32>
    %cst_66 = arith.constant dense<0.000000e+00> : vector<16x8xf32>
    %171 = tpu.matmul %170, %159, %cst_66 {dimension_numbers = #tpu.dot_dimension_numbers<[1], [0], [0], [1], [0, 0, 1, 1], [], []>} : vector<16x8xf32>, vector<8x8xf32>, vector<16x8xf32> -> vector<16x8xf32>
    %172 = vector.extract_strided_slice %122 {offsets = [8, 0], sizes = [8, 32], strides = [1, 1]} : vector<32x32xf32> to vector<8x32xf32>
    %cst_67 = arith.constant dense<0.000000e+00> : vector<16x32xf32>
    %173 = tpu.matmul %171, %172, %cst_67 {dimension_numbers = #tpu.dot_dimension_numbers<[1], [0], [0], [1], [0, 0, 1, 1], [], []>} : vector<16x8xf32>, vector<8x32xf32>, vector<16x32xf32> -> vector<16x32xf32>
    %174 = arith.addf %154, %173 : vector<16x32xf32>
    %175 = vector.extract_strided_slice %128 {offsets = [0, 16], sizes = [16, 8], strides = [1, 1]} : vector<16x32xf32> to vector<16x8xf32>
    %cst_68 = arith.constant 0.353553385 : f32
    %176 = vector.broadcast %cst_68 : f32 to vector<16x8xf32>
    %177 = arith.mulf %175, %176 : vector<16x8xf32>
    %178 = vector.extract_strided_slice %134 {offsets = [0, 16], sizes = [8, 8], strides = [1, 1]} : vector<8x32xf32> to vector<8x8xf32>
    %179 = vector.extract_strided_slice %135 {offsets = [0, 16], sizes = [8, 8], strides = [1, 1]} : vector<8x32xf32> to vector<8x8xf32>
    %cst_69 = arith.constant dense<0.000000e+00> : vector<16x8xf32>
    %180 = tpu.matmul %177, %178, %cst_69 {dimension_numbers = #tpu.dot_dimension_numbers<[1], [1], [0], [0], [0, 0, 1, 0], [], []>} : vector<16x8xf32>, vector<8x8xf32>, vector<16x8xf32> -> vector<16x8xf32>
    %cst_70 = arith.constant dense<0xFF800000> : vector<16xf32>
    %181 = vector.multi_reduction <maximumf>, %180, %cst_70 [1] : vector<16x8xf32> to vector<16xf32>
    %182 = vector.shape_cast %181 : vector<16xf32> to vector<16x1xf32>
    %183 = vector.broadcast %182 : vector<16x1xf32> to vector<16x8xf32>
    %184 = arith.subf %180, %183 : vector<16x8xf32>
    %185 = math.exp %184 : vector<16x8xf32>
    %cst_71 = arith.constant dense<0.000000e+00> : vector<16xf32>
    %186 = vector.multi_reduction <add>, %185, %cst_71 [1] : vector<16x8xf32> to vector<16xf32>
    %187 = vector.shape_cast %186 : vector<16xf32> to vector<16x1xf32>
    %188 = tpu.reciprocal %187 {approx = true} : vector<16x1xf32> -> vector<16x1xf32>
    %189 = vector.broadcast %188 : vector<16x1xf32> to vector<16x8xf32>
    %190 = arith.mulf %185, %189 : vector<16x8xf32>
    %cst_72 = arith.constant dense<0.000000e+00> : vector<16x8xf32>
    %191 = tpu.matmul %190, %179, %cst_72 {dimension_numbers = #tpu.dot_dimension_numbers<[1], [0], [0], [1], [0, 0, 1, 1], [], []>} : vector<16x8xf32>, vector<8x8xf32>, vector<16x8xf32> -> vector<16x8xf32>
    %192 = vector.extract_strided_slice %122 {offsets = [16, 0], sizes = [8, 32], strides = [1, 1]} : vector<32x32xf32> to vector<8x32xf32>
    %cst_73 = arith.constant dense<0.000000e+00> : vector<16x32xf32>
    %193 = tpu.matmul %191, %192, %cst_73 {dimension_numbers = #tpu.dot_dimension_numbers<[1], [0], [0], [1], [0, 0, 1, 1], [], []>} : vector<16x8xf32>, vector<8x32xf32>, vector<16x32xf32> -> vector<16x32xf32>
    %194 = arith.addf %174, %193 : vector<16x32xf32>
    %195 = vector.extract_strided_slice %128 {offsets = [0, 24], sizes = [16, 8], strides = [1, 1]} : vector<16x32xf32> to vector<16x8xf32>
    %cst_74 = arith.constant 0.353553385 : f32
    %196 = vector.broadcast %cst_74 : f32 to vector<16x8xf32>
    %197 = arith.mulf %195, %196 : vector<16x8xf32>
    %198 = vector.extract_strided_slice %134 {offsets = [0, 24], sizes = [8, 8], strides = [1, 1]} : vector<8x32xf32> to vector<8x8xf32>
    %199 = vector.extract_strided_slice %135 {offsets = [0, 24], sizes = [8, 8], strides = [1, 1]} : vector<8x32xf32> to vector<8x8xf32>
    %cst_75 = arith.constant dense<0.000000e+00> : vector<16x8xf32>
    %200 = tpu.matmul %197, %198, %cst_75 {dimension_numbers = #tpu.dot_dimension_numbers<[1], [1], [0], [0], [0, 0, 1, 0], [], []>} : vector<16x8xf32>, vector<8x8xf32>, vector<16x8xf32> -> vector<16x8xf32>
    %cst_76 = arith.constant dense<0xFF800000> : vector<16xf32>
    %201 = vector.multi_reduction <maximumf>, %200, %cst_76 [1] : vector<16x8xf32> to vector<16xf32>
    %202 = vector.shape_cast %201 : vector<16xf32> to vector<16x1xf32>
    %203 = vector.broadcast %202 : vector<16x1xf32> to vector<16x8xf32>
    %204 = arith.subf %200, %203 : vector<16x8xf32>
    %205 = math.exp %204 : vector<16x8xf32>
    %cst_77 = arith.constant dense<0.000000e+00> : vector<16xf32>
    %206 = vector.multi_reduction <add>, %205, %cst_77 [1] : vector<16x8xf32> to vector<16xf32>
    %207 = vector.shape_cast %206 : vector<16xf32> to vector<16x1xf32>
    %208 = tpu.reciprocal %207 {approx = true} : vector<16x1xf32> -> vector<16x1xf32>
    %209 = vector.broadcast %208 : vector<16x1xf32> to vector<16x8xf32>
    %210 = arith.mulf %205, %209 : vector<16x8xf32>
    %cst_78 = arith.constant dense<0.000000e+00> : vector<16x8xf32>
    %211 = tpu.matmul %210, %199, %cst_78 {dimension_numbers = #tpu.dot_dimension_numbers<[1], [0], [0], [1], [0, 0, 1, 1], [], []>} : vector<16x8xf32>, vector<8x8xf32>, vector<16x8xf32> -> vector<16x8xf32>
    %212 = vector.extract_strided_slice %122 {offsets = [24, 0], sizes = [8, 32], strides = [1, 1]} : vector<32x32xf32> to vector<8x32xf32>
    %cst_79 = arith.constant dense<0.000000e+00> : vector<16x32xf32>
    %213 = tpu.matmul %211, %212, %cst_79 {dimension_numbers = #tpu.dot_dimension_numbers<[1], [0], [0], [1], [0, 0, 1, 1], [], []>} : vector<16x8xf32>, vector<8x32xf32>, vector<16x32xf32> -> vector<16x32xf32>
    %214 = arith.addf %194, %213 : vector<16x32xf32>
    %215 = vector.broadcast %123 : vector<1x32xf32> to vector<16x32xf32>
    %216 = arith.addf %214, %215 : vector<16x32xf32>
    %217 = arith.addf %119, %216 : vector<16x32xf32>
    %c0_80 = arith.constant 0 : index
    %c0_81 = arith.constant 0 : index
    %218 = vector.load %arg13[%c0_80, %c0_81] : memref<1x32xf32, #tpu.memory_space<vmem>>, vector<1x32xf32>
    %c0_82 = arith.constant 0 : index
    %c0_83 = arith.constant 0 : index
    %219 = vector.load %arg14[%c0_82, %c0_83] : memref<1x32xf32, #tpu.memory_space<vmem>>, vector<1x32xf32>
    %cst_84 = arith.constant dense<0.000000e+00> : vector<16xf32>
    %220 = vector.multi_reduction <add>, %217, %cst_84 [1] : vector<16x32xf32> to vector<16xf32>
    %221 = vector.shape_cast %220 : vector<16xf32> to vector<16x1xf32>
    %cst_85 = arith.constant 3.200000e+01 : f32
    %222 = vector.broadcast %cst_85 : f32 to vector<16x1xf32>
    %223 = arith.divf %221, %222 : vector<16x1xf32>
    %224 = vector.broadcast %223 : vector<16x1xf32> to vector<16x32xf32>
    %225 = arith.subf %217, %224 : vector<16x32xf32>
    %226 = arith.mulf %225, %225 : vector<16x32xf32>
    %cst_86 = arith.constant dense<0.000000e+00> : vector<16xf32>
    %227 = vector.multi_reduction <add>, %226, %cst_86 [1] : vector<16x32xf32> to vector<16xf32>
    %228 = vector.shape_cast %227 : vector<16xf32> to vector<16x1xf32>
    %cst_87 = arith.constant 3.200000e+01 : f32
    %229 = vector.broadcast %cst_87 : f32 to vector<16x1xf32>
    %230 = arith.divf %228, %229 : vector<16x1xf32>
    %231 = vector.broadcast %223 : vector<16x1xf32> to vector<16x32xf32>
    %232 = arith.subf %217, %231 : vector<16x32xf32>
    %cst_88 = arith.constant 9.99999974E-6 : f32
    %233 = vector.broadcast %cst_88 : f32 to vector<16x1xf32>
    %234 = arith.addf %230, %233 : vector<16x1xf32>
    %235 = math.rsqrt %234 : vector<16x1xf32>
    %236 = vector.broadcast %235 : vector<16x1xf32> to vector<16x32xf32>
    %237 = arith.mulf %232, %236 : vector<16x32xf32>
    %238 = vector.broadcast %218 : vector<1x32xf32> to vector<16x32xf32>
    %239 = arith.mulf %237, %238 : vector<16x32xf32>
    %240 = vector.broadcast %219 : vector<1x32xf32> to vector<16x32xf32>
    %241 = arith.addf %239, %240 : vector<16x32xf32>
    %c0_89 = arith.constant 0 : index
    %c0_90 = arith.constant 0 : index
    %242 = vector.load %arg15[%c0_89, %c0_90] : memref<32x64xf32, #tpu.memory_space<vmem>>, vector<32x64xf32>
    %cst_91 = arith.constant dense<0.000000e+00> : vector<16x64xf32>
    %243 = tpu.matmul %241, %242, %cst_91 {dimension_numbers = #tpu.dot_dimension_numbers<[1], [0], [0], [1], [0, 0, 1, 1], [], []>} : vector<16x32xf32>, vector<32x64xf32>, vector<16x64xf32> -> vector<16x64xf32>
    %c0_92 = arith.constant 0 : index
    %c0_93 = arith.constant 0 : index
    %244 = vector.load %arg16[%c0_92, %c0_93] : memref<1x64xf32, #tpu.memory_space<vmem>>, vector<1x64xf32>
    %245 = vector.broadcast %244 : vector<1x64xf32> to vector<16x64xf32>
    %246 = arith.addf %243, %245 : vector<16x64xf32>
    %cst_94 = arith.constant 0.000000e+00 : f32
    %247 = vector.broadcast %cst_94 : f32 to vector<16x64xf32>
    %248 = arith.maximumf %246, %247 : vector<16x64xf32>
    %c0_95 = arith.constant 0 : index
    %c0_96 = arith.constant 0 : index
    %249 = vector.load %arg17[%c0_95, %c0_96] : memref<64x32xf32, #tpu.memory_space<vmem>>, vector<64x32xf32>
    %cst_97 = arith.constant dense<0.000000e+00> : vector<16x32xf32>
    %250 = tpu.matmul %248, %249, %cst_97 {dimension_numbers = #tpu.dot_dimension_numbers<[1], [0], [0], [1], [0, 0, 1, 1], [], []>} : vector<16x64xf32>, vector<64x32xf32>, vector<16x32xf32> -> vector<16x32xf32>
    %c0_98 = arith.constant 0 : index
    %c0_99 = arith.constant 0 : index
    %251 = vector.load %arg18[%c0_98, %c0_99] : memref<1x32xf32, #tpu.memory_space<vmem>>, vector<1x32xf32>
    %252 = vector.broadcast %251 : vector<1x32xf32> to vector<16x32xf32>
    %253 = arith.addf %250, %252 : vector<16x32xf32>
    %254 = arith.addf %241, %253 : vector<16x32xf32>
    %c0_100 = arith.constant 0 : index
    %c0_101 = arith.constant 0 : index
    %255 = vector.load %arg19[%c0_100, %c0_101] : memref<1x32xf32, #tpu.memory_space<vmem>>, vector<1x32xf32>
    %c0_102 = arith.constant 0 : index
    %c0_103 = arith.constant 0 : index
    %256 = vector.load %arg20[%c0_102, %c0_103] : memref<1x32xf32, #tpu.memory_space<vmem>>, vector<1x32xf32>
    %cst_104 = arith.constant dense<0.000000e+00> : vector<16xf32>
    %257 = vector.multi_reduction <add>, %254, %cst_104 [1] : vector<16x32xf32> to vector<16xf32>
    %258 = vector.shape_cast %257 : vector<16xf32> to vector<16x1xf32>
    %cst_105 = arith.constant 3.200000e+01 : f32
    %259 = vector.broadcast %cst_105 : f32 to vector<16x1xf32>
    %260 = arith.divf %258, %259 : vector<16x1xf32>
    %261 = vector.broadcast %260 : vector<16x1xf32> to vector<16x32xf32>
    %262 = arith.subf %254, %261 : vector<16x32xf32>
    %263 = arith.mulf %262, %262 : vector<16x32xf32>
    %cst_106 = arith.constant dense<0.000000e+00> : vector<16xf32>
    %264 = vector.multi_reduction <add>, %263, %cst_106 [1] : vector<16x32xf32> to vector<16xf32>
    %265 = vector.shape_cast %264 : vector<16xf32> to vector<16x1xf32>
    %cst_107 = arith.constant 3.200000e+01 : f32
    %266 = vector.broadcast %cst_107 : f32 to vector<16x1xf32>
    %267 = arith.divf %265, %266 : vector<16x1xf32>
    %268 = vector.broadcast %260 : vector<16x1xf32> to vector<16x32xf32>
    %269 = arith.subf %254, %268 : vector<16x32xf32>
    %cst_108 = arith.constant 9.99999974E-6 : f32
    %270 = vector.broadcast %cst_108 : f32 to vector<16x1xf32>
    %271 = arith.addf %267, %270 : vector<16x1xf32>
    %272 = math.rsqrt %271 : vector<16x1xf32>
    %273 = vector.broadcast %272 : vector<16x1xf32> to vector<16x32xf32>
    %274 = arith.mulf %269, %273 : vector<16x32xf32>
    %275 = vector.broadcast %255 : vector<1x32xf32> to vector<16x32xf32>
    %276 = arith.mulf %274, %275 : vector<16x32xf32>
    %277 = vector.broadcast %256 : vector<1x32xf32> to vector<16x32xf32>
    %278 = arith.addf %276, %277 : vector<16x32xf32>
    %c0_109 = arith.constant 0 : index
    %c0_110 = arith.constant 0 : index
    %279 = vector.load %arg21[%c0_109, %c0_110] : memref<1x32xf32, #tpu.memory_space<vmem>>, vector<1x32xf32>
    %c0_111 = arith.constant 0 : index
    %c0_112 = arith.constant 0 : index
    %280 = vector.load %arg22[%c0_111, %c0_112] : memref<1x32xf32, #tpu.memory_space<vmem>>, vector<1x32xf32>
    %cst_113 = arith.constant dense<0.000000e+00> : vector<16xf32>
    %281 = vector.multi_reduction <add>, %278, %cst_113 [1] : vector<16x32xf32> to vector<16xf32>
    %282 = vector.shape_cast %281 : vector<16xf32> to vector<16x1xf32>
    %cst_114 = arith.constant 3.200000e+01 : f32
    %283 = vector.broadcast %cst_114 : f32 to vector<16x1xf32>
    %284 = arith.divf %282, %283 : vector<16x1xf32>
    %285 = vector.broadcast %284 : vector<16x1xf32> to vector<16x32xf32>
    %286 = arith.subf %278, %285 : vector<16x32xf32>
    %287 = arith.mulf %286, %286 : vector<16x32xf32>
    %cst_115 = arith.constant dense<0.000000e+00> : vector<16xf32>
    %288 = vector.multi_reduction <add>, %287, %cst_115 [1] : vector<16x32xf32> to vector<16xf32>
    %289 = vector.shape_cast %288 : vector<16xf32> to vector<16x1xf32>
    %cst_116 = arith.constant 3.200000e+01 : f32
    %290 = vector.broadcast %cst_116 : f32 to vector<16x1xf32>
    %291 = arith.divf %289, %290 : vector<16x1xf32>
    %292 = vector.broadcast %284 : vector<16x1xf32> to vector<16x32xf32>
    %293 = arith.subf %278, %292 : vector<16x32xf32>
    %cst_117 = arith.constant 9.99999974E-6 : f32
    %294 = vector.broadcast %cst_117 : f32 to vector<16x1xf32>
    %295 = arith.addf %291, %294 : vector<16x1xf32>
    %296 = math.rsqrt %295 : vector<16x1xf32>
    %297 = vector.broadcast %296 : vector<16x1xf32> to vector<16x32xf32>
    %298 = arith.mulf %293, %297 : vector<16x32xf32>
    %299 = vector.broadcast %279 : vector<1x32xf32> to vector<16x32xf32>
    %300 = arith.mulf %298, %299 : vector<16x32xf32>
    %301 = vector.broadcast %280 : vector<1x32xf32> to vector<16x32xf32>
    %302 = arith.addf %300, %301 : vector<16x32xf32>
    %c0_118 = arith.constant 0 : index
    %c0_119 = arith.constant 0 : index
    %c0_120 = arith.constant 0 : index
    %303 = vector.load %arg23[%c0_118, %c0_119, %c0_120] : memref<1x16x32xf32, #tpu.memory_space<vmem>>, vector<1x16x32xf32>
    %304 = vector.shape_cast %303 : vector<1x16x32xf32> to vector<16x32xf32>
    %305 = vector.shape_cast %302 : vector<16x32xf32> to vector<1x16x32xf32>
    tpu.vector_store %arg23[%c0_118, %c0_119, %c0_120], %305 {strides = array<i32>} : memref<1x16x32xf32, #tpu.memory_space<vmem>>, vector<1x16x32xf32>,
    return
  }
  func.func @transform_0(%arg0: i32) -> (i32, i32, i32) {
    %c0_i32 = arith.constant 0 : i32
    %c0_i32_0 = arith.constant 0 : i32
    %c0_i32_1 = arith.constant 0 : i32
    return %arg0, %c0_i32, %c0_i32_0 : i32, i32, i32
  }
  func.func @transform_1(%arg0: i32) -> (i32, i32, i32) {
    %c0_i32 = arith.constant 0 : i32
    %c0_i32_0 = arith.constant 0 : i32
    %c0_i32_1 = arith.constant 0 : i32
    return %arg0, %c0_i32, %c0_i32_0 : i32, i32, i32
  }
  func.func @transform_2(%arg0: i32) -> (i32, i32) {
    %c0_i32 = arith.constant 0 : i32
    %c0_i32_0 = arith.constant 0 : i32
    %c0_i32_1 = arith.constant 0 : i32
    return %c0_i32, %c0_i32_0 : i32, i32
  }
  func.func @transform_3(%arg0: i32) -> (i32, i32) {
    %c0_i32 = arith.constant 0 : i32
    %c0_i32_0 = arith.constant 0 : i32
    %c0_i32_1 = arith.constant 0 : i32
    return %c0_i32, %c0_i32_0 : i32, i32
  }
  func.func @transform_4(%arg0: i32) -> (i32, i32) {
    %c0_i32 = arith.constant 0 : i32
    %c0_i32_0 = arith.constant 0 : i32
    %c0_i32_1 = arith.constant 0 : i32
    return %c0_i32, %c0_i32_0 : i32, i32
  }
  func.func @transform_5(%arg0: i32) -> (i32, i32) {
    %c0_i32 = arith.constant 0 : i32
    %c0_i32_0 = arith.constant 0 : i32
    %c0_i32_1 = arith.constant 0 : i32
    return %c0_i32, %c0_i32_0 : i32, i32
  }
  func.func @transform_6(%arg0: i32) -> (i32, i32) {
    %c0_i32 = arith.constant 0 : i32
    %c0_i32_0 = arith.constant 0 : i32
    %c0_i32_1 = arith.constant 0 : i32
    return %c0_i32, %c0_i32_0 : i32, i32
  }
  func.func @transform_7(%arg0: i32) -> (i32, i32) {
    %c0_i32 = arith.constant 0 : i32
    %c0_i32_0 = arith.constant 0 : i32
    %c0_i32_1 = arith.constant 0 : i32
    return %c0_i32, %c0_i32_0 : i32, i32
  }
  func.func @transform_8(%arg0: i32) -> (i32, i32) {
    %c0_i32 = arith.constant 0 : i32
    %c0_i32_0 = arith.constant 0 : i32
    %c0_i32_1 = arith.constant 0 : i32
    return %c0_i32, %c0_i32_0 : i32, i32
  }
  func.func @transform_9(%arg0: i32) -> (i32, i32) {
    %c0_i32 = arith.constant 0 : i32
    %c0_i32_0 = arith.constant 0 : i32
    %c0_i32_1 = arith.constant 0 : i32
    return %c0_i32, %c0_i32_0 : i32, i32
  }
  func.func @transform_10(%arg0: i32) -> (i32, i32) {
    %c0_i32 = arith.constant 0 : i32
    %c0_i32_0 = arith.constant 0 : i32
    %c0_i32_1 = arith.constant 0 : i32
    return %c0_i32, %c0_i32_0 : i32, i32
  }
  func.func @transform_11(%arg0: i32) -> (i32, i32) {
    %c0_i32 = arith.constant 0 : i32
    %c0_i32_0 = arith.constant 0 : i32
    %c0_i32_1 = arith.constant 0 : i32
    return %c0_i32, %c0_i32_0 : i32, i32
  }
  func.func @transform_12(%arg0: i32) -> (i32, i32) {
    %c0_i32 = arith.constant 0 : i32
    %c0_i32_0 = arith.constant 0 : i32
    %c0_i32_1 = arith.constant 0 : i32
    return %c0_i32, %c0_i32_0 : i32, i32
  }
  func.func @transform_13(%arg0: i32) -> (i32, i32) {
    %c0_i32 = arith.constant 0 : i32
    %c0_i32_0 = arith.constant 0 : i32
    %c0_i32_1 = arith.constant 0 : i32
    return %c0_i32, %c0_i32_0 : i32, i32
  }
  func.func @transform_14(%arg0: i32) -> (i32, i32) {
    %c0_i32 = arith.constant 0 : i32
    %c0_i32_0 = arith.constant 0 : i32
    %c0_i32_1 = arith.constant 0 : i32
    return %c0_i32, %c0_i32_0 : i32, i32
  }
  func.func @transform_15(%arg0: i32) -> (i32, i32) {
    %c0_i32 = arith.constant 0 : i32
    %c0_i32_0 = arith.constant 0 : i32
    %c0_i32_1 = arith.constant 0 : i32
    return %c0_i32, %c0_i32_0 : i32, i32
  }
  func.func @transform_16(%arg0: i32) -> (i32, i32) {
    %c0_i32 = arith.constant 0 : i32
    %c0_i32_0 = arith.constant 0 : i32
    %c0_i32_1 = arith.constant 0 : i32
    return %c0_i32, %c0_i32_0 : i32, i32
  }
  func.func @transform_17(%arg0: i32) -> (i32, i32) {
    %c0_i32 = arith.constant 0 : i32
    %c0_i32_0 = arith.constant 0 : i32
    %c0_i32_1 = arith.constant 0 : i32
    return %c0_i32, %c0_i32_0 : i32, i32
  }
  func.func @transform_18(%arg0: i32) -> (i32, i32) {
    %c0_i32 = arith.constant 0 : i32
    %c0_i32_0 = arith.constant 0 : i32
    %c0_i32_1 = arith.constant 0 : i32
    return %c0_i32, %c0_i32_0 : i32, i32
  }
  func.func @transform_19(%arg0: i32) -> (i32, i32) {
    %c0_i32 = arith.constant 0 : i32
    %c0_i32_0 = arith.constant 0 : i32
    %c0_i32_1 = arith.constant 0 : i32
    return %c0_i32, %c0_i32_0 : i32, i32
  }
  func.func @transform_20(%arg0: i32) -> (i32, i32) {
    %c0_i32 = arith.constant 0 : i32
    %c0_i32_0 = arith.constant 0 : i32
    %c0_i32_1 = arith.constant 0 : i32
    return %c0_i32, %c0_i32_0 : i32, i32
  }
  func.func @transform_21(%arg0: i32) -> (i32, i32) {
    %c0_i32 = arith.constant 0 : i32
    %c0_i32_0 = arith.constant 0 : i32
    %c0_i32_1 = arith.constant 0 : i32
    return %c0_i32, %c0_i32_0 : i32, i32
  }
  func.func @transform_22(%arg0: i32) -> (i32, i32, i32) {
    %c0_i32 = arith.constant 0 : i32
    %c0_i32_0 = arith.constant 0 : i32
    %c0_i32_1 = arith.constant 0 : i32
    return %arg0, %c0_i32, %c0_i32_0 : i32, i32, i32
  }
}

</mosaic_0001>

<bundles_post_ra>
// kernel: interaction_block_forward.5
= control target key start
LH: loop header
LB: loop body
LE: loop exit
PB: predicated region body
PF: predicated region fallthrough
CT: control target
= control target key end

     0   :  { %s4148_s0 = inlined_call_operand.vmem [shape: f32[2,8,32], index: 0, kind: input, shape index: {}]   ;;  %s4149_s1 = inlined_call_operand.vmem [shape: f32[2,16,32], index: 1, kind: input, shape index: {}]   ;;  %s4150_s2 = inlined_call_operand.vmem [shape: f32[32,96], index: 2, kind: input, shape index: {}]   ;;  %s4151_s3 = inlined_call_operand.vmem [shape: f32[1,96], index: 3, kind: input, shape index: {}]   ;;  %s4152_s4 = inlined_call_operand.vmem [shape: f32[32,32], index: 4, kind: input, shape index: {}]   ;;  %s4153_s5 = inlined_call_operand.vmem [shape: f32[1,32], index: 5, kind: input, shape index: {}]   ;;  %s4154_s6 = inlined_call_operand.vmem [shape: f32[32,96], index: 6, kind: input, shape index: {}]   ;;  %s4155_s7 = inlined_call_operand.vmem [shape: f32[1,96], index: 7, kind: input, shape index: {}]   ;;  %s4156_s8 = inlined_call_operand.vmem [shape: f32[32,32], index: 8, kind: input, shape index: {}]   ;;  %s4157_s9 = inlined_call_operand.vmem [shape: f32[1,32], index: 9, kind: input, shape index: {}]   ;;  %s4158_s10 = inlined_call_operand.vmem [shape: f32[1,32], index: 10, kind: input, shape index: {}]   ;;  %s4159_s11 = inlined_call_operand.vmem [shape: f32[1,32], index: 11, kind: input, shape index: {}]   ;;  %s4160_s12 = inlined_call_operand.vmem [shape: f32[1,32], index: 12, kind: input, shape index: {}]   ;;  %s4161_s13 = inlined_call_operand.vmem [shape: f32[1,32], index: 13, kind: input, shape index: {}]   ;;  %s4162_s14 = inlined_call_operand.vmem [shape: f32[32,64], index: 14, kind: input, shape index: {}]   ;;  %s4163_s15 = inlined_call_operand.vmem [shape: f32[1,64], index: 15, kind: input, shape index: {}]   ;;  %s4164_s16 = inlined_call_operand.vmem [shape: f32[64,32], index: 16, kind: input, shape index: {}]   ;;  %s4165_s17 = inlined_call_operand.vmem [shape: f32[1,32], index: 17, kind: input, shape index: {}]   ;;  %s4166_s18 = inlined_call_operand.vmem [shape: f32[1,32], index: 18, kind: input, shape index: {}]   ;;  %s4167_s19 = inlined_call_operand.vmem [shape: f32[1,32], index: 19, kind: input, shape index: {}]   ;;  %s4168_s20 = inlined_call_operand.vmem [shape: f32[2,8,32], index: 20, kind: output, shape index: {}]  }
   0x1   :  { %4178 = sst [smem:[#allocation2_spill]] %s4148_s0 }
   0x2   :  { %4179 = sst [smem:[#allocation3_spill]] %s4149_s1  ;;  %s3745_s1 = smov 0  }
   0x3   :  { %4180 = sst [smem:[#allocation4_spill]] %s4150_s2 }
   0x4   :  { %4181 = sst [smem:[#allocation5_spill]] %s4151_s3 }
   0x5   :  { %4182 = sst [smem:[#allocation6_spill]] %s4152_s4 }
   0x6 LB: > { %s3209_s22 = sadd.s32 4294967295, %s3625_s1   ;;  %p3213_p0 = scmp.ge.s32.totalorder %s3625_s1, 1  ;;  %s3625_s1 = sphi %s3745_s1, %s30_s1  }
   0x7   : > { %p571_p1 = scmp.lt.s32.totalorder %s3625_s1, 3 }
   0x9   : > { %p572_p2 = pnand %p3213_p0, %p571_p1 }
   0xa   : > { %s4183_s2 = sld [smem:[#allocation4_spill]] (!%p572_p2)  ;;  %p632_p3 = scmp.lt.s32.totalorder (!%p572_p2), %s3209_s22, 1 }
   0xb   : > { %575 = sbr.rel (%p572_p2) target bundleno = 6279 (0x1887), region = 100  ;;  %s4184_s21 = sld [smem:[#allocation2_spill]] (!%p572_p2) }
   0xc   : > { %s4185_s3 = sld [smem:[#allocation5_spill]] (!%p572_p2)  ;;  %s3629_s26 = smov (!%p572_p2), 96  }
   0xd   : > { %s3630_s27 = smov (!%p572_p2), 120   ;;  %s3631_s4 = smov (!%p572_p2), 88  }
   0xe   : > { %s3632_s29 = smov (!%p572_p2), 56   ;;  %s3633_s30 = smov (!%p572_p2), 64  }
   0xf   : > { %s4174_s0 = smov (!%p572_p2), 80   ;;  %s4186_s25 = sld [smem:[#allocation6_spill]] (!%p572_p2) }
  0x10   : > { %v651_v0 = vld [vmem:[%s4183_s2 + $0x18] sm:$0xff]  ;;  %v3627_v1 = vmov 0.0   ;;  %v650_v2 = vld [vmem:[%s4183_s2 + $0x10] sm:$0xff]  ;;  %vm3628_vm0 = vmmov 0   ;;  %s4193_s22 = smov (!%p632_p3, %s3209_s22), 1  ;;  %v649_v3 = vld [vmem:[%s4183_s2 + $0x8] sm:$0xff] }
  0x11   : > { %3361 = vmatprep.subr.mxu0 %v3627_v1  ;;  %3369 = vmatprep.mubr.msk.f32.mxu0 %vm3628_vm0, %v3627_v1  ;;  %s4171_s28 = sshll.u32 %s4193_s22, 3  ;;  %v648_v4 = vld [vmem:[%s4183_s2] sm:$0xff]  ;;  %vm664_vm1 = vcmask 261120   ;;  %vm742_vm2 = vcmask 64512   ;;  %s3638_s24 = smov 48   ;;  %vm2001_vm3 = vcmask 130048  }
  0x12   : > { %3362 = vmatpush3.msra.mxu0 %v651_v0  ;;  %3377 = vmatprep.subr.mxu1 %v3627_v1  ;;  %s635_s23 = scalar_lea.vmem %s4184_s21, %s4171_s28  ;;  %v3218_v6 = vld [vmem:[%s4185_s3] ss:$0 sm:$0xff]  ;;  %s3635_s21 = smov 112   ;;  %vm3039_vm4 = vcmask 523264  }
  0x13   : > { %3363 = vmatprep.subr.mxu0 %v3627_v1  ;;  %3379 = vmatprep.mubr.msk.f32.mxu1 %vm3628_vm0, %v3627_v1  ;;  %v3781_v5 = vld [vmem:[%s635_s23] sm:$0xff]  ;;  %s4176_s23 = smov 104   ;;  %s4187_s3 = sld [smem:[#allocation3_spill]] }
  0x14   : > { %3364 = vmatpush3.msra.mxu0 %v650_v2 }
  0x15   : > { %3365 = vmatprep.subr.mxu0 %v3627_v1  ;;  %v653_v38 = vld [vmem:[%s4186_s25] sm:$0xff]  ;;  %v654_v39 = vld [vmem:[%s4186_s25 + $0x8] sm:$0xff]  ;;  %v655_v2 = vld [vmem:[%s4186_s25 + $0x10] sm:$0xff] }
  0x16   : > { %3366 = vmatpush3.msra.mxu0 %v649_v3 }
  0x17   : > { %3367 = vmatprep.subr.mxu0 %v3627_v1 }
  0x18   : > { %3368 = vmatpush3.msra.mxu0 %v648_v4 }
  0x19   : > { %3370 = vmatmul.mubr.msk.f32.vlgmr.msra.gmra.mxu0 %vm664_vm1, %v3781_v5  ;;  %3372 = vmatprep.subr.mxu0 %v3627_v1 }
  0x1a   : > { %3374 = vmatprep.mubr.msk.f32.mxu0 %vm3628_vm0, %v3627_v1 }
  0xd9   : > { %v734_v7 = vpop.f32.mrf.mxu0 }
  0xda   : > { %v3792_v8 = vadd.f32 %v3218_v6, %v734_v7 }
  0xdb   : > { %v3371_v9 = vpop.f32.mrf.mxu0 }
  0xdc   : > { %740 = vrot.lane.b32.xlu0 %v3792_v8, %s3629_s26  ;;  %v3797_v10 = vmul.f32 0.35355338, %v3792_v8 }
  0xde   : > { %905 = vrot.lane.b32.xlu1 %v3797_v10, %s3630_s27 }
  0xe0   : > { %907 = vrot.lane.b32.xlu0 %v3792_v8, %s3631_s4 }
 0x14e   : > { %v741_v11 = vpop.permute.xlu0 %740 }
 0x14f   : > { %3373 = vmatpush3.xpose.msk.msra.mxu0 %vm742_vm2, %v741_v11 }
 0x150   : > { %3382 = vmatprep.subr.mxu0 %v3627_v1  ;;  %v906_v13 = vpop.permute.xlu1 %905 }
 0x152   : > { %v908_v12 = vpop.permute.xlu0 %907  ;;  %3375 = vmatmul.mubr.msk.f32.vlgmr.msra.gmra.mxu0 %vm742_vm2, %v3797_v10 }
 0x153   : > { %3383 = vmatpush3.xpose.msk.msra.mxu0 %vm742_vm2, %v908_v12  ;;  %3384 = vmatprep.mubr.msk.f32.mxu0 %vm3628_vm0, %v3627_v1 }
 0x154   : > { %3392 = vmatprep.subr.mxu0 %v3627_v1 }
 0x156   : > { %3385 = vmatmul.mubr.msk.f32.vlgmr.msra.gmra.mxu0 %vm742_vm2, %v906_v13 }
 0x157   : > { %3394 = vmatprep.mubr.msk.f32.mxu0 %vm3628_vm0, %v3627_v1  ;;  %3393 = vmatpush3.msra.mxu0 %v654_v39 }
 0x158   : > { %3402 = vmatprep.subr.mxu0 %v3627_v1 }
 0x212   : > { %v814_v14 = vpop.f32.mrf.mxu0 }
 0x213   : > { %v818_v15 = vsel %vm742_vm2, %v814_v14, -inf }
 0x214   : > { %819 = vmax.xlane.f32.xlu1 %v818_v15  ;;  %v3376_v16 = vpop.f32.mrf.mxu0 }
 0x215   : > { %v656_v16 = vld [vmem:[%s4186_s25 + $0x18] sm:$0xff] }
 0x216   : > { %v979_v17 = vpop.f32.mrf.mxu0 }
 0x217   : > { %v983_v18 = vsel %vm742_vm2, %v979_v17, -inf }
 0x218   : > { %984 = vmax.xlane.f32.xlu0 %v983_v18  ;;  %v3386_v19 = vpop.f32.mrf.mxu0 }
 0x29d   : > { %v820_v20 = vpop.xlane.xlu1 %819 }
 0x29e   : > { %v821_v21 = vsub.f32 %v814_v14, %v820_v20 }
 0x2a0   : > { %v822_v22 = vmul.f32 1.442695, %v821_v21 }
 0x2a1   : > { %v985_v23 = vpop.xlane.xlu0 %984 }
 0x2a2   : > { %3581 = vpow2.f32 %v822_v22  ;;  %v986_v24 = vsub.f32 %v979_v17, %v985_v23 }
 0x2a4   : > { %v987_v25 = vmul.f32 1.442695, %v986_v24  ;;  %v3236_v24 = vld [vmem:[%s4153_s5] ss:$0 sm:$0xff] }
 0x2a6   : > { %3583 = vpow2.f32 %v987_v25 }
 0x2af   : > { %v3582_v26 = vpop.eup %3581 }
 0x2b0   : > { %v824_v27 = vsel %vm742_vm2, %v3582_v26, 0.0 }
 0x2b1   : > { %825 = vadd.xlane.f32.xlu0 %v824_v27 }
 0x2b3   : > { %v3584_v28 = vpop.eup %3583 }
 0x2b4   : > { %v989_v29 = vsel %vm742_vm2, %v3584_v28, 0.0 }
 0x2b5   : > { %990 = vadd.xlane.f32.xlu1 %v989_v29 }
 0x2c6   : > { %994 = vrot.lane.b32.xlu1 %v3792_v8, %s3632_s29  ;;  %s4190_s29 = smov 72  }
 0x2c7   : > { %829 = vrot.lane.b32.xlu0 %v3792_v8, %s3633_s30  ;;  %s4172_s30 = smov 72  }
 0x2ca   : > { %1218 = vrot.lane.b32.xlu1 %v3792_v8, %s4174_s0  ;;  %s3274_s0 = sshll.u32 %s4193_s22, 4 }
 0x2cb   : > { %1216 = vrot.lane.b32.xlu0 %v3797_v10, %s3635_s21  ;;  %s640_s28 = scalar_lea.vmem %s4187_s3, %s3274_s0  ;;  %s4188_s3 = smov 104  }
 0x2cc   : > { %v646_v39 = vld [vmem:[%s640_s28] sm:$0xff] }
 0x33a   : > { %v826_v30 = vpop.xlane.xlu0 %825 }
 0x33b   : > { %3585 = vrcp.f32 %v826_v30 }
 0x33e   : > { %v991_v31 = vpop.xlane.xlu1 %990  ;;  %v830_v32 = vpop.permute.xlu0 %829 }
 0x33f   : > { %3587 = vrcp.f32 %v991_v31  ;;  %3378 = vmatpush3.msra.mxu1 %v830_v32  ;;  %v1734_v31 = vld [vmem:[%s4154_s6 + $0x10] sm:$0xff]  ;;  %v1735_v32 = vld [vmem:[%s4154_s6 + $0x18] sm:$0xff] }
 0x340   : > { %3387 = vmatprep.subr.mxu1 %v3627_v1 }
 0x342   : > { %v995_v35 = vpop.permute.xlu1 %994  ;;  %v1217_v45 = vpop.permute.xlu0 %1216 }
 0x346   : > { %v1219_v43 = vpop.permute.xlu1 %1218 }
 0x348   : > { %v3586_v33 = vpop.eup %3585 }
 0x349   : > { %v828_v34 = vmul.f32 %v3586_v33, %v3582_v26  ;;  %v1732_v33 = vld [vmem:[%s4154_s6] sm:$0xff] }
 0x34b   : > { %3380 = vmatmul.mubr.msk.f32.vlgmr.msra.gmra.mxu1 %vm742_vm2, %v828_v34 }
 0x34c   : > { %v3588_v36 = vpop.eup %3587  ;;  %3388 = vmatpush3.msra.mxu1 %v995_v35  ;;  %3389 = vmatprep.mubr.msk.f32.mxu1 %vm3628_vm0, %v3627_v1 }
 0x34d   : > { %v993_v37 = vmul.f32 %v3588_v36, %v3584_v28  ;;  %3397 = vmatprep.subr.mxu1 %v3627_v1 }
 0x34f   : > { %3390 = vmatmul.mubr.msk.f32.vlgmr.msra.gmra.mxu1 %vm742_vm2, %v993_v37 }
 0x350   : > { %3399 = vmatprep.mubr.msk.f32.mxu1 %vm3628_vm0, %v3627_v1  ;;  %3398 = vmatpush3.msra.mxu1 %v653_v38 }
 0x351   : > { %3407 = vmatprep.subr.mxu1 %v3627_v1 }
 0x40b   : > { %v901_v40 = vpop.f32.mrf.mxu1 }
 0x40c   : > { %3400 = vmatmul.mubr.msk.f32.vlgmr.msra.gmra.mxu1 %vm742_vm2, %v901_v40  ;;  %v3239_v40 = vld [vmem:[%s4155_s7] ss:$0 sm:$0xff] }
 0x40d   : > { %v3381_v41 = vpop.f32.mrf.mxu1  ;;  %3409 = vmatprep.mubr.msk.f32.mxu1 %vm3628_vm0, %v3627_v1 }
 0x40f   : > { %v1066_v42 = vpop.f32.mrf.mxu1 }
 0x410   : > { %3395 = vmatmul.mubr.msk.f32.vlgmr.msra.gmra.mxu0 %vm742_vm2, %v1066_v42 }
 0x411   : > { %3403 = vmatpush3.xpose.msk.msra.mxu0 %vm742_vm2, %v1219_v43  ;;  %v3391_v44 = vpop.f32.mrf.mxu1  ;;  %3404 = vmatprep.mubr.msk.f32.mxu0 %vm3628_vm0, %v3627_v1 }
 0x412   : > { %3412 = vmatprep.subr.mxu0 %v3627_v1 }
 0x414   : > { %3405 = vmatmul.mubr.msk.f32.vlgmr.msra.gmra.mxu0 %vm742_vm2, %v1217_v45 }
 0x415   : > { %3414 = vmatprep.mubr.msk.f32.mxu0 %vm3628_vm0, %v3627_v1  ;;  %3413 = vmatpush3.msra.mxu0 %v655_v2 }
 0x416   : > { %3422 = vmatprep.subr.mxu0 %v3627_v1 }
 0x4cc   : > { %v1212_v46 = vpop.f32.mrf.mxu1 }
 0x4ce   : > { %v3401_v47 = vpop.f32.mrf.mxu1 }
 0x4d0   : > { %v1139_v48 = vpop.f32.mrf.mxu0 }
 0x4d1   : > { %v1213_v49 = vadd.f32 %v1212_v46, %v1139_v48  ;;  %v647_v48 = vld [vmem:[%s640_s28 + $0x8] sm:$0xff]  ;;  %s4189_s28 = smov 80  }
 0x4d2   : > { %v3396_v50 = vpop.f32.mrf.mxu0 }
 0x4d3   : > { %v3237_v50 = vld [vmem:[%s4158_s10] ss:$0 sm:$0xff] }
 0x4d4   : > { %v1290_v51 = vpop.f32.mrf.mxu0 }
 0x4d5   : > { %v1294_v52 = vsel %vm742_vm2, %v1290_v51, -inf }
 0x4d6   : > { %1295 = vmax.xlane.f32.xlu1 %v1294_v52  ;;  %v3406_v53 = vpop.f32.mrf.mxu0  ;;  %v3238_v52 = vld [vmem:[%s4159_s11] ss:$0 sm:$0xff] }
 0x4e7   : > { %1457 = vrot.lane.b32.xlu1 %v3792_v8, %s4172_s30 }
 0x4eb   : > { %1455 = vrot.lane.b32.xlu1 %v3797_v10, %s4176_s23 }
 0x55f   : > { %v1296_v54 = vpop.xlane.xlu1 %1295 }
 0x560   : > { %v1297_v55 = vsub.f32 %v1290_v51, %v1296_v54 }
 0x562   : > { %v1298_v56 = vmul.f32 1.442695, %v1297_v55 }
 0x563   : > { %v1458_v62 = vpop.permute.xlu1 %1457 }
 0x564   : > { %3589 = vpow2.f32 %v1298_v56 }
 0x567   : > { %v1456_v0 = vpop.permute.xlu1 %1455 }
 0x571   : > { %v3590_v57 = vpop.eup %3589 }
 0x572   : > { %v1300_v58 = vsel %vm742_vm2, %v3590_v57, 0.0 }
 0x573   : > { %1301 = vadd.xlane.f32.xlu0 %v1300_v58 }
 0x589   : > { %1305 = vrot.lane.b32.xlu0 %v3792_v8, %s3638_s24  ;;  %s3639_s24 = smov 40  }
 0x5fc   : > { %v1302_v59 = vpop.xlane.xlu0 %1301 }
 0x5fd   : > { %3591 = vrcp.f32 %v1302_v59 }
 0x600   : > { %v1306_v60 = vpop.permute.xlu0 %1305 }
 0x601   : > { %3408 = vmatpush3.msra.mxu1 %v1306_v60 }
 0x602   : > { %3417 = vmatprep.subr.mxu1 %v3627_v1 }
 0x60a   : > { %v3592_v61 = vpop.eup %3591 }
 0x60b   : > { %v1304_v63 = vmul.f32 %v3592_v61, %v3590_v57 }
 0x60d   : > { %3410 = vmatmul.mubr.msk.f32.vlgmr.msra.gmra.mxu1 %vm742_vm2, %v1304_v63 }
 0x60e   : > { %3418 = vmatpush3.xpose.msk.msra.mxu1 %vm742_vm2, %v1458_v62  ;;  %3419 = vmatprep.mubr.msk.f32.mxu1 %vm3628_vm0, %v3627_v1 }
 0x60f   : > { %3427 = vmatprep.subr.mxu1 %v3627_v1 }
 0x611   : > { %3420 = vmatmul.mubr.msk.f32.vlgmr.msra.gmra.mxu1 %vm742_vm2, %v1456_v0 }
 0x612   : > { %3429 = vmatprep.mubr.msk.f32.mxu1 %vm3628_vm0, %v3627_v1  ;;  %3428 = vmatpush3.msra.mxu1 %v656_v16 }
 0x6cd   : > { %v1377_v3 = vpop.f32.mrf.mxu1 }
 0x6ce   : > { %3415 = vmatmul.mubr.msk.f32.vlgmr.msra.gmra.mxu0 %vm742_vm2, %v1377_v3 }
 0x6cf   : > { %v3411_v4 = vpop.f32.mrf.mxu1  ;;  %3424 = vmatprep.mubr.msk.f32.mxu0 %vm3628_vm0, %v3627_v1 }
 0x6d1   : > { %v1529_v6 = vpop.f32.mrf.mxu1 }
 0x6d2   : > { %v1533_v7 = vsel %vm742_vm2, %v1529_v6, -inf }
 0x6d3   : > { %1534 = vmax.xlane.f32.xlu0 %v1533_v7  ;;  %v3421_v9 = vpop.f32.mrf.mxu1 }
 0x6e9   : > { %1544 = vrot.lane.b32.xlu0 %v3792_v8, %s3639_s24 }
 0x6ed   : > { %1829 = vrot.lane.b32.xlu0 %v1734_v31, %s3629_s26 }
 0x75c   : > { %v1535_v10 = vpop.xlane.xlu0 %1534 }
 0x75d   : > { %v1536_v11 = vsub.f32 %v1529_v6, %v1535_v10 }
 0x75f   : > { %v1537_v12 = vmul.f32 1.442695, %v1536_v11 }
 0x760   : > { %v1545_v13 = vpop.permute.xlu0 %1544 }
 0x761   : > { %3593 = vpow2.f32 %v1537_v12  ;;  %3423 = vmatpush3.msra.mxu0 %v1545_v13 }
 0x762   : > { %3432 = vmatprep.subr.mxu0 %v3627_v1 }
 0x764   : > { %v1830_v41 = vpop.permute.xlu0 %1829 }
 0x76e   : > { %v3594_v14 = vpop.eup %3593 }
 0x76f   : > { %v1539_v15 = vsel %vm742_vm2, %v3594_v14, 0.0 }
 0x770   : > { %1540 = vadd.xlane.f32.xlu1 %v1539_v15 }
 0x78e   : > { %v1450_v17 = vpop.f32.mrf.mxu0 }
 0x78f   : > { %v1454_v18 = vadd.f32 %v1450_v17, %v1213_v49 }
 0x790   : > { %v3416_v8 = vpop.f32.mrf.mxu0 }
 0x791   : > { %v1737_v8 = vld [vmem:[%s4156_s8] sm:$0xff] }
 0x7f9   : > { %v1541_v19 = vpop.xlane.xlu1 %1540 }
 0x7fa   : > { %3595 = vrcp.f32 %v1541_v19 }
 0x807   : > { %v3596_v20 = vpop.eup %3595 }
 0x808   : > { %v1543_v21 = vmul.f32 %v3596_v20, %v3594_v14 }
 0x80a   : > { %3425 = vmatmul.mubr.msk.f32.vlgmr.msra.gmra.mxu0 %vm742_vm2, %v1543_v21 }
 0x80b   : > { %3440 = vmatprep.mubr.msk.f32.mxu0 %vm3628_vm0, %v3627_v1  ;;  %3433 = vmatpush3.msra.mxu0 %v1735_v32 }
 0x80c   : > { %3434 = vmatprep.subr.mxu0 %v3627_v1 }
 0x80d   : > { %3435 = vmatpush3.msra.mxu0 %v1734_v31 }
 0x80e   : > { %3436 = vmatprep.subr.mxu0 %v3627_v1 }
 0x8ca   : > { %v1616_v22 = vpop.f32.mrf.mxu0 }
 0x8cb   : > { %3430 = vmatmul.mubr.msk.f32.vlgmr.msra.gmra.mxu1 %vm742_vm2, %v1616_v22 }
 0x8cc   : > { %v3426_v23 = vpop.f32.mrf.mxu0  ;;  %3451 = vmatprep.mubr.msk.f32.mxu1 %vm664_vm1, %v646_v39 }
 0x98b   : > { %v1689_v25 = vpop.f32.mrf.mxu1 }
 0x98c   : > { %v1693_v26 = vadd.f32 %v1689_v25, %v1454_v18 }
 0x98d   : > { %v3431_v27 = vpop.f32.mrf.mxu1 }
 0x98e   : > { %v1700_v28 = vadd.f32 %v3236_v24, %v1693_v26 }
 0x990   : > { %v1701_v29 = vadd.f32 %v1700_v28, %v3781_v5  ;;  %v1733_v5 = vld [vmem:[%s4154_s6 + $0x8] sm:$0xff] }
 0x991   : > { %1827 = vrot.lane.b32.xlu0 %v1733_v5, %s3629_s26  ;;  %3437 = vmatpush3.msra.mxu0 %v1733_v5 }
 0x992   : > { %v1704_v30 = vsel %vm664_vm1, %v1701_v29, 0.0  ;;  %3438 = vmatprep.subr.mxu0 %v3627_v1 }
 0x993   : > { %1705 = vadd.xlane.f32.xlu1 %v1704_v30  ;;  %3439 = vmatpush3.msra.mxu0 %v1732_v33 }
 0x994   : > { %3454 = vmatprep.subr.mxu0 %v3627_v1 }
 0x995   : > { %1825 = vrot.lane.b32.xlu0 %v1732_v33, %s3629_s26 }
 0xa03   : > { %v1828_v44 = vpop.permute.xlu0 %1827 }
 0xa07   : > { %v1826_v47 = vpop.permute.xlu0 %1825 }
 0xa1c   : > { %v1706_v34 = vpop.xlane.xlu1 %1705 }
 0xa1d   : > { %v1708_v35 = vmul.f32 0.03125, %v1706_v34 }
 0xa1f   : > { %v1709_v36 = vsub.f32 %v1701_v29, %v1708_v35  ;;  %v1738_v35 = vld [vmem:[%s4156_s8 + $0x8] sm:$0xff] }
 0xa21   : > { %v1710_v37 = vmul.f32 %v1709_v36, %v1709_v36 }
 0xa23   : > { %v1711_v38 = vsel %vm664_vm1, %v1710_v37, 0.0 }
 0xa24   : > { %1712 = vadd.xlane.f32.xlu1 %v1711_v38 }
 0xa35   : > { %1831 = vrot.lane.b32.xlu1 %v1735_v32, %s3629_s26 }
 0xa39   : > { %1837 = vrot.lane.b32.xlu1 %v3239_v40, %s3629_s26 }
 0xaad   : > { %v1713_v42 = vpop.xlane.xlu1 %1712 }
 0xaae   : > { %v1714_v43 = vmul.f32 0.03125, %v1713_v42 }
 0xab0   : > { %v1715_v45 = vadd.f32 1e-05, %v1714_v43 }
 0xab1   : > { %v1832_v46 = vpop.permute.xlu1 %1831 }
 0xab2   : > { %3597 = vrsqrt.f32 %v1715_v45  ;;  %3443 = vmatprep.subr.mxu1 %v1832_v46 }
 0xab3   : > { %3444 = vmatpush3.msra.mxu1 %v1832_v46 }
 0xab4   : > { %3445 = vmatprep.subr.mxu1 %v1830_v41 }
 0xab5   : > { %3446 = vmatpush3.msra.mxu1 %v1830_v41  ;;  %v1838_v55 = vpop.permute.xlu1 %1837 }
 0xab6   : > { %3447 = vmatprep.subr.mxu1 %v1828_v44 }
 0xab7   : > { %3448 = vmatpush3.msra.mxu1 %v1828_v44 }
 0xab8   : > { %3449 = vmatprep.subr.mxu1 %v1826_v47 }
 0xab9   : > { %3450 = vmatpush3.msra.mxu1 %v1826_v47 }
 0xaba   : > { %3452 = vmatmul.mubr.msk.f32.vlgmr.msra.gmra.mxu1 %vm664_vm1, %v647_v48  ;;  %3461 = vmatprep.subr.mxu1 %v3627_v1 }
 0xabb   : > { %3465 = vmatprep.mubr.msk.f32.mxu1 %vm3628_vm0, %v3627_v1 }
 0xabf   : > { %v3598_v49 = vpop.eup %3597 }
 0xac0   : > { %v1717_v51 = vmul.f32 %v3598_v49, %v1709_v36 }
 0xac2   : > { %v1724_v53 = vmul.f32 %v3237_v50, %v1717_v51 }
 0xac4   : > { %v3930_v54 = vadd.f32 %v3238_v52, %v1724_v53 }
 0xac6   : > { %3441 = vmatmul.mubr.msk.f32.vlgmr.msra.gmra.mxu0 %vm664_vm1, %v3930_v54 }
 0xac7   : > { %3458 = vmatprep.mubr.msk.f32.mxu0 %vm3628_vm0, %v3627_v1 }
 0xb7a   : > { %v3453_v56 = vpop.f32.mrf.mxu1 }
 0xb7b   : > { %v3936_v57 = vadd.f32 %v3453_v56, %v1838_v55 }
 0xb7c   : > { %v1912_v58 = vpop.f32.mrf.mxu1 }
 0xb7d   : > { %3455 = vmatpush3.xpose.msk.msra.mxu0 %vm742_vm2, %v3936_v57  ;;  %v3940_v59 = vadd.f32 %v1912_v58, %v1838_v55 }
 0xb7e   : > { %3456 = vmatprep.subr.mxu0 %v3627_v1 }
 0xb7f   : > { %2013 = vrot.lane.b32.xlu1 %v3940_v59, %s3629_s26 }
 0xb81   : > { %3457 = vmatpush3.xpose.msk.msra.mxu0 %vm742_vm2, %v3940_v59 }
 0xb82   : > { %3475 = vmatprep.subr.mxu0 %v3627_v1 }
 0xb86   : > { %v1817_v60 = vpop.f32.mrf.mxu0 }
 0xb87   : > { %v1818_v61 = vadd.f32 %v3239_v40, %v1817_v60 }
 0xb88   : > { %v3442_v62 = vpop.f32.mrf.mxu0 }
 0xb89   : > { %v3948_v63 = vmul.f32 0.35355338, %v1818_v61 }
 0xb8b   : > { %3459 = vmatmul.mubr.msk.f32.vlgmr.msra.gmra.mxu0 %vm742_vm2, %v3948_v63 }
 0xb8c   : > { %3479 = vmatprep.mubr.msk.f32.mxu0 %vm3628_vm0, %v3627_v1 }
 0xbf1   : > { %v2014_v10 = vpop.permute.xlu1 %2013 }
 0xc4b   : > { %v1997_v0 = vpop.f32.mrf.mxu0 }
 0xc4c   : > { %v2002_v2 = vsel %vm2001_vm3, %v1997_v0, -inf }
 0xc4d   : > { %2003 = vmax.xlane.f32.xlu0 %v2002_v2  ;;  %v3460_v3 = vpop.f32.mrf.mxu0 }
 0xc63   : > { %2015 = vrot.lane.b32.xlu0 %v3936_v57, %s3629_s26 }
 0xc67   : > { %2096 = vrot.lane.b32.xlu0 %v3936_v57, %s3630_s27 }
 0xc6b   : > { %2092 = vrot.lane.b32.xlu0 %v3948_v63, %s3630_s27 }
 0xcd6   : > { %v2004_v4 = vpop.xlane.xlu0 %2003 }
 0xcd7   : > { %v2005_v6 = vsub.f32 %v1997_v0, %v2004_v4 }
 0xcd9   : > { %v2006_v7 = vmul.f32 1.442695, %v2005_v6 }
 0xcda   : > { %v2016_v9 = vpop.permute.xlu0 %2015 }
 0xcdb   : > { %3599 = vpow2.f32 %v2006_v7  ;;  %3462 = vmatpush3.msra.mxu1 %v2016_v9  ;;  %v1739_v7 = vld [vmem:[%s4156_s8 + $0x10] sm:$0xff] }
 0xcdc   : > { %3463 = vmatprep.subr.mxu1 %v3627_v1 }
 0xcdd   : > { %3464 = vmatpush3.msra.mxu1 %v2014_v10 }
 0xcde   : > { %3468 = vmatprep.subr.mxu1 %v3627_v1  ;;  %v2097_v16 = vpop.permute.xlu0 %2096 }
 0xce2   : > { %v2093_v18 = vpop.permute.xlu0 %2092 }
 0xce8   : > { %v3600_v11 = vpop.eup %3599 }
 0xce9   : > { %v2008_v12 = vsel %vm2001_vm3, %v3600_v11, 0.0 }
 0xcea   : > { %2009 = vadd.xlane.f32.xlu1 %v2008_v12 }
 0xcfb   : > { %2094 = vrot.lane.b32.xlu1 %v3940_v59, %s3630_s27 }
 0xd73   : > { %v2010_v13 = vpop.xlane.xlu1 %2009 }
 0xd74   : > { %3601 = vrcp.f32 %v2010_v13 }
 0xd77   : > { %v2095_v17 = vpop.permute.xlu1 %2094 }
 0xd81   : > { %v3602_v14 = vpop.eup %3601 }
 0xd82   : > { %v2012_v15 = vmul.f32 %v3602_v14, %v3600_v11 }
 0xd84   : > { %3466 = vmatmul.mubr.msk.f32.vlgmr.msra.gmra.mxu1 %vm2001_vm3, %v2012_v15  ;;  %v1740_v15 = vld [vmem:[%s4156_s8 + $0x18] sm:$0xff] }
 0xd85   : > { %3469 = vmatpush3.xpose.msk.msra.mxu1 %vm742_vm2, %v2097_v16  ;;  %3472 = vmatprep.mubr.msk.f32.mxu1 %vm3628_vm0, %v3627_v1 }
 0xd86   : > { %3470 = vmatprep.subr.mxu1 %v3627_v1 }
 0xd89   : > { %3471 = vmatpush3.xpose.msk.msra.mxu1 %vm742_vm2, %v2095_v17 }
 0xd8a   : > { %3487 = vmatprep.subr.mxu1 %v3627_v1 }
 0xd8c   : > { %3473 = vmatmul.mubr.msk.f32.vlgmr.msra.gmra.mxu1 %vm742_vm2, %v2093_v18 }
 0xd8d   : > { %3489 = vmatprep.mubr.msk.f32.mxu1 %vm3628_vm0, %v3627_v1  ;;  %3488 = vmatpush3.msra.mxu1 %v1737_v8 }
 0xd8e   : > { %3499 = vmatprep.subr.mxu1 %v3627_v1 }
 0xe44   : > { %v2088_v19 = vpop.f32.mrf.mxu1 }
 0xe45   : > { %3490 = vmatmul.mubr.msk.f32.vlgmr.msra.gmra.mxu1 %vm742_vm2, %v2088_v19 }
 0xe46   : > { %v3467_v20 = vpop.f32.mrf.mxu1  ;;  %3503 = vmatprep.mubr.msk.f32.mxu1 %vm3628_vm0, %v3627_v1 }
 0xe4c   : > { %v2170_v21 = vpop.f32.mrf.mxu1 }
 0xe4d   : > { %v2174_v22 = vsel %vm2001_vm3, %v2170_v21, -inf }
 0xe4e   : > { %2175 = vmax.xlane.f32.xlu1 %v2174_v22  ;;  %v3474_v23 = vpop.f32.mrf.mxu1 }
 0xe5f   : > { %2185 = vrot.lane.b32.xlu1 %v3940_v59, %s3631_s4 }
 0xe63   : > { %2414 = vrot.lane.b32.xlu1 %v3936_v57, %s3635_s21 }
 0xe67   : > { %2410 = vrot.lane.b32.xlu1 %v3948_v63, %s3635_s21 }
 0xe6b   : > { %2658 = vrot.lane.b32.xlu1 %v3940_v59, %s4188_s3 }
 0xed7   : > { %v2176_v24 = vpop.xlane.xlu1 %2175 }
 0xed8   : > { %v2177_v25 = vsub.f32 %v2170_v21, %v2176_v24  ;;  %v3263_v21 = vld [vmem:[%s4157_s9] ss:$0 sm:$0xff] }
 0xeda   : > { %v2178_v26 = vmul.f32 1.442695, %v2177_v25 }
 0xedb   : > { %v2186_v5 = vpop.permute.xlu1 %2185 }
 0xedc   : > { %3603 = vpow2.f32 %v2178_v26 }
 0xedf   : > { %v2415_v37 = vpop.permute.xlu1 %2414 }
 0xee3   : > { %v2411_v40 = vpop.permute.xlu1 %2410 }
 0xee7   : > { %v2659_v42 = vpop.permute.xlu1 %2658 }
 0xee9   : > { %v3604_v27 = vpop.eup %3603 }
 0xeea   : > { %v2180_v28 = vsel %vm2001_vm3, %v3604_v27, 0.0 }
 0xeeb   : > { %2181 = vadd.xlane.f32.xlu0 %v2180_v28 }
 0xf01   : > { %2187 = vrot.lane.b32.xlu0 %v3936_v57, %s3631_s4 }
 0xf05   : > { %2412 = vrot.lane.b32.xlu0 %v3940_v59, %s3635_s21  ;;  %v3997_v29 = vpop.f32.mrf.mxu1 }
 0xf07   : > { %v3491_v30 = vpop.f32.mrf.mxu1 }
 0xf09   : > { %2660 = vrot.lane.b32.xlu0 %v3936_v57, %s4188_s3 }
 0xf0d   : > { %2656 = vrot.lane.b32.xlu0 %v3948_v63, %s4188_s3 }
 0xf74   : > { %v2182_v31 = vpop.xlane.xlu0 %2181 }
 0xf75   : > { %3605 = vrcp.f32 %v2182_v31 }
 0xf78   : > { %v2188_v32 = vpop.permute.xlu0 %2187 }
 0xf79   : > { %3476 = vmatpush3.msra.mxu0 %v2188_v32 }
 0xf7a   : > { %3477 = vmatprep.subr.mxu0 %v3627_v1 }
 0xf7b   : > { %3478 = vmatpush3.msra.mxu0 %v2186_v5  ;;  %v2942_v5 = vld [vmem:[%s4162_s14 + $0x18] sm:$0xff] }
 0xf7c   : > { %3482 = vmatprep.subr.mxu0 %v3627_v1  ;;  %v2413_v39 = vpop.permute.xlu0 %2412 }
 0xf80   : > { %v2661_v41 = vpop.permute.xlu0 %2660 }
 0xf82   : > { %v3606_v33 = vpop.eup %3605 }
 0xf83   : > { %v2184_v34 = vmul.f32 %v3606_v33, %v3604_v27  ;;  %v2941_v33 = vld [vmem:[%s4162_s14 + $0x10] sm:$0xff] }
 0xf84   : > { %v2657_v43 = vpop.permute.xlu0 %2656 }
 0xf85   : > { %3480 = vmatmul.mubr.msk.f32.vlgmr.msra.gmra.mxu0 %vm2001_vm3, %v2184_v34  ;;  %v2939_v34 = vld [vmem:[%s4162_s14] sm:$0xff] }
 0xf86   : > { %3483 = vmatpush3.msra.mxu0 %v1738_v35  ;;  %3484 = vmatprep.mubr.msk.f32.mxu0 %vm3628_vm0, %v3627_v1  ;;  %v3031_v35 = vld [vmem:[%s4164_s16 + $0x38] sm:$0xff] }
 0xf87   : > { %3492 = vmatprep.subr.mxu0 %v3627_v1 }
0x1045   : > { %v2260_v36 = vpop.f32.mrf.mxu0 }
0x1046   : > { %3485 = vmatmul.mubr.msk.f32.vlgmr.msra.gmra.mxu0 %vm742_vm2, %v2260_v36  ;;  %v3030_v36 = vld [vmem:[%s4164_s16 + $0x30] sm:$0xff] }
0x1047   : > { %3493 = vmatpush3.xpose.msk.msra.mxu0 %vm742_vm2, %v2415_v37  ;;  %v3481_v38 = vpop.f32.mrf.mxu0  ;;  %3496 = vmatprep.mubr.msk.f32.mxu0 %vm3628_vm0, %v3627_v1  ;;  %v3029_v37 = vld [vmem:[%s4164_s16 + $0x28] sm:$0xff] }
0x1048   : > { %3494 = vmatprep.subr.mxu0 %v3627_v1  ;;  %v3028_v38 = vld [vmem:[%s4164_s16 + $0x20] sm:$0xff] }
0x104b   : > { %3495 = vmatpush3.xpose.msk.msra.mxu0 %vm742_vm2, %v2413_v39  ;;  %v3027_v39 = vld [vmem:[%s4164_s16 + $0x18] sm:$0xff] }
0x104c   : > { %3511 = vmatprep.subr.mxu0 %v3627_v1 }
0x104e   : > { %3497 = vmatmul.mubr.msk.f32.vlgmr.msra.gmra.mxu0 %vm742_vm2, %v2411_v40 }
0x104f   : > { %3512 = vmatpush3.xpose.msk.msra.mxu0 %vm742_vm2, %v2661_v41  ;;  %3515 = vmatprep.mubr.msk.f32.mxu0 %vm3628_vm0, %v3627_v1 }
0x1050   : > { %3513 = vmatprep.subr.mxu0 %v3627_v1 }
0x1053   : > { %3514 = vmatpush3.xpose.msk.msra.mxu0 %vm742_vm2, %v2659_v42 }
0x1054   : > { %3530 = vmatprep.subr.mxu0 %v3627_v1 }
0x1056   : > { %3516 = vmatmul.mubr.msk.f32.vlgmr.msra.gmra.mxu0 %vm742_vm2, %v2657_v43 }
0x1057   : > { %3538 = vmatprep.mubr.msk.f32.mxu0 %vm3628_vm0, %v3627_v1  ;;  %3531 = vmatpush3.msra.mxu0 %v2942_v5 }
0x1058   : > { %3532 = vmatprep.subr.mxu0 %v3627_v1 }
0x1059   : > { %3533 = vmatpush3.msra.mxu0 %v2941_v33 }
0x105a   : > { %3534 = vmatprep.subr.mxu0 %v3627_v1 }
0x1106   : > { %v2333_v44 = vpop.f32.mrf.mxu0 }
0x1107   : > { %v2407_v16 = vadd.f32 %v3997_v29, %v2333_v44  ;;  %v3264_v44 = vld [vmem:[%s4160_s12] ss:$0 sm:$0xff] }
0x1108   : > { %v3486_v45 = vpop.f32.mrf.mxu0 }
0x110e   : > { %v2488_v46 = vpop.f32.mrf.mxu0 }
0x110f   : > { %v2492_v47 = vsel %vm2001_vm3, %v2488_v46, -inf }
0x1110   : > { %2493 = vmax.xlane.f32.xlu1 %v2492_v47  ;;  %v3498_v48 = vpop.f32.mrf.mxu0 }
0x1116   : > { %v2734_v49 = vpop.f32.mrf.mxu0 }
0x1117   : > { %v2738_v51 = vsel %vm2001_vm3, %v2734_v49, -inf }
0x1118   : > { %v3517_v50 = vpop.f32.mrf.mxu0 }
0x1119   : > { %v3025_v50 = vld [vmem:[%s4164_s16 + $0x8] sm:$0xff] }
0x1121   : > { %2503 = vrot.lane.b32.xlu1 %v3940_v59, %s4189_s28 }
0x1145   : > { %2739 = vmax.xlane.f32.xlu1 %v2738_v51  ;;  %v3024_v51 = vld [vmem:[%s4164_s16] sm:$0xff] }
0x1156   : > { %2749 = vrot.lane.b32.xlu1 %v3940_v59, %s4190_s29 }
0x1199   : > { %v2494_v52 = vpop.xlane.xlu1 %2493 }
0x119a   : > { %v2495_v53 = vsub.f32 %v2488_v46, %v2494_v52  ;;  %v3265_v46 = vld [vmem:[%s4161_s13] ss:$0 sm:$0xff] }
0x119b   : > { %v3266_v52 = vld [vmem:[%s4163_s15] ss:$0 sm:$0xff] }
0x119c   : > { %v2496_v55 = vmul.f32 1.442695, %v2495_v53 }
0x119d   : > { %v2504_v60 = vpop.permute.xlu1 %2503 }
0x119e   : > { %3607 = vpow2.f32 %v2496_v55 }
0x11ab   : > { %v3608_v56 = vpop.eup %3607 }
0x11ac   : > { %v2498_v58 = vsel %vm2001_vm3, %v3608_v56, 0.0 }
0x11ad   : > { %2499 = vadd.xlane.f32.xlu0 %v2498_v58 }
0x11c3   : > { %2505 = vrot.lane.b32.xlu0 %v3936_v57, %s4189_s28  ;;  %s4191_s28 = sshll.u32 %s4193_s22, 3 }
0x11c4   : > { %s644_s0 = scalar_lea.vmem %s4168_s20, %s4191_s28 }
0x11ce   : > { %v2740_v61 = vpop.xlane.xlu1 %2739 }
0x11cf   : > { %v2741_v62 = vsub.f32 %v2734_v49, %v2740_v61  ;;  %v3026_v49 = vld [vmem:[%s4164_s16 + $0x10] sm:$0xff] }
0x11d1   : > { %v2742_v63 = vmul.f32 1.442695, %v2741_v62 }
0x11d2   : > { %v2750_v13 = vpop.permute.xlu1 %2749 }
0x11d3   : > { %3609 = vpow2.f32 %v2742_v63 }
0x11e0   : > { %v3610_v0 = vpop.eup %3609 }
0x11e1   : > { %v2744_v2 = vsel %vm2001_vm3, %v3610_v0, 0.0 }
0x11e2   : > { %2745 = vadd.xlane.f32.xlu0 %v2744_v2 }
0x11f8   : > { %2751 = vrot.lane.b32.xlu0 %v3936_v57, %s4190_s29 }
0x1236   : > { %v2500_v59 = vpop.xlane.xlu0 %2499 }
0x1237   : > { %3611 = vrcp.f32 %v2500_v59 }
0x123a   : > { %v2506_v3 = vpop.permute.xlu0 %2505 }
0x123b   : > { %3500 = vmatpush3.msra.mxu1 %v2506_v3 }
0x123c   : > { %3501 = vmatprep.subr.mxu1 %v3627_v1 }
0x123d   : > { %3502 = vmatpush3.msra.mxu1 %v2504_v60  ;;  %v3268_v60 = vld [vmem:[%s4165_s17] ss:$0 sm:$0xff] }
0x123e   : > { %3506 = vmatprep.subr.mxu1 %v3627_v1 }
0x1244   : > { %v3612_v4 = vpop.eup %3611 }
0x1245   : > { %v2502_v6 = vmul.f32 %v3612_v4, %v3608_v56 }
0x1247   : > { %3504 = vmatmul.mubr.msk.f32.vlgmr.msra.gmra.mxu1 %vm2001_vm3, %v2502_v6 }
0x1248   : > { %3507 = vmatpush3.msra.mxu1 %v1739_v7  ;;  %3508 = vmatprep.mubr.msk.f32.mxu1 %vm3628_vm0, %v3627_v1 }
0x1249   : > { %3518 = vmatprep.subr.mxu1 %v3627_v1 }
0x126b   : > { %v2746_v57 = vpop.xlane.xlu0 %2745 }
0x126c   : > { %3613 = vrcp.f32 %v2746_v57 }
0x126f   : > { %v2752_v11 = vpop.permute.xlu0 %2751 }
0x1279   : > { %v3614_v9 = vpop.eup %3613 }
0x127a   : > { %v2748_v14 = vmul.f32 %v3614_v9, %v3610_v0 }
0x1307   : > { %v2578_v10 = vpop.f32.mrf.mxu1 }
0x1308   : > { %3509 = vmatmul.mubr.msk.f32.vlgmr.msra.gmra.mxu1 %vm742_vm2, %v2578_v10 }
0x1309   : > { %3519 = vmatpush3.msra.mxu1 %v2752_v11  ;;  %v3505_v12 = vpop.f32.mrf.mxu1  ;;  %3522 = vmatprep.mubr.msk.f32.mxu1 %vm3628_vm0, %v3627_v1  ;;  %v3270_v11 = vld [vmem:[%s4166_s18] ss:$0 sm:$0xff] }
0x130a   : > { %3520 = vmatprep.subr.mxu1 %v3627_v1 }
0x130b   : > { %3521 = vmatpush3.msra.mxu1 %v2750_v13  ;;  %v3271_v13 = vld [vmem:[%s4167_s19] ss:$0 sm:$0xff] }
0x130c   : > { %3523 = vmatmul.mubr.msk.f32.vlgmr.msra.gmra.mxu1 %vm2001_vm3, %v2748_v14  ;;  %3525 = vmatprep.subr.mxu1 %v3627_v1 }
0x130d   : > { %3527 = vmatprep.mubr.msk.f32.mxu1 %vm3628_vm0, %v3627_v1  ;;  %3526 = vmatpush3.msra.mxu1 %v1740_v15 }
0x130e   : > { %3541 = vmatprep.subr.mxu1 %v3627_v1 }
0x13c8   : > { %v2651_v17 = vpop.f32.mrf.mxu1 }
0x13c9   : > { %v2655_v18 = vadd.f32 %v2651_v17, %v2407_v16 }
0x13ca   : > { %v3510_v8 = vpop.f32.mrf.mxu1 }
0x13cc   : > { %v2824_v19 = vpop.f32.mrf.mxu1 }
0x13cd   : > { %3528 = vmatmul.mubr.msk.f32.vlgmr.msra.gmra.mxu1 %vm742_vm2, %v2824_v19 }
0x13ce   : > { %v3524_v20 = vpop.f32.mrf.mxu1  ;;  %3557 = vmatprep.mubr.msk.f32.mxu1 %vm3628_vm0, %v3627_v1  ;;  %3542 = vmatpush3.msra.mxu1 %v3031_v35 }
0x13cf   : > { %3543 = vmatprep.subr.mxu1 %v3627_v1 }
0x13d0   : > { %3544 = vmatpush3.msra.mxu1 %v3030_v36 }
0x13d1   : > { %3545 = vmatprep.subr.mxu1 %v3627_v1 }
0x13d2   : > { %3546 = vmatpush3.msra.mxu1 %v3029_v37 }
0x13d3   : > { %3547 = vmatprep.subr.mxu1 %v3627_v1 }
0x13d4   : > { %3548 = vmatpush3.msra.mxu1 %v3028_v38 }
0x13d5   : > { %3549 = vmatprep.subr.mxu1 %v3627_v1 }
0x13d6   : > { %3550 = vmatpush3.msra.mxu1 %v3027_v39 }
0x13d7   : > { %3551 = vmatprep.subr.mxu1 %v3627_v1 }
0x13d8   : > { %3552 = vmatpush3.msra.mxu1 %v3026_v49 }
0x13d9   : > { %3553 = vmatprep.subr.mxu1 %v3627_v1 }
0x13da   : > { %3554 = vmatpush3.msra.mxu1 %v3025_v50 }
0x13db   : > { %3555 = vmatprep.subr.mxu1 %v3627_v1 }
0x13dc   : > { %3556 = vmatpush3.msra.mxu1 %v3024_v51 }
0x148d   : > { %v2897_v22 = vpop.f32.mrf.mxu1 }
0x148e   : > { %v2901_v23 = vadd.f32 %v2897_v22, %v2655_v18 }
0x148f   : > { %v3529_v24 = vpop.f32.mrf.mxu1 }
0x1490   : > { %v2908_v25 = vadd.f32 %v3263_v21, %v2901_v23 }
0x1492   : > { %v2909_v26 = vadd.f32 %v2908_v25, %v3930_v54  ;;  %v2940_v54 = vld [vmem:[%s4162_s14 + $0x8] sm:$0xff] }
0x1493   : > { %3535 = vmatpush3.msra.mxu0 %v2940_v54 }
0x1494   : > { %v2912_v27 = vsel %vm664_vm1, %v2909_v26, 0.0  ;;  %3536 = vmatprep.subr.mxu0 %v3627_v1 }
0x1495   : > { %2913 = vadd.xlane.f32.xlu1 %v2912_v27  ;;  %3537 = vmatpush3.msra.mxu0 %v2939_v34 }
0x151e   : > { %v2914_v28 = vpop.xlane.xlu1 %2913 }
0x151f   : > { %v2915_v29 = vmul.f32 0.03125, %v2914_v28 }
0x1521   : > { %v2916_v30 = vsub.f32 %v2909_v26, %v2915_v29 }
0x1523   : > { %v2917_v31 = vmul.f32 %v2916_v30, %v2916_v30 }
0x1525   : > { %v2918_v32 = vsel %vm664_vm1, %v2917_v31, 0.0 }
0x1526   : > { %2919 = vadd.xlane.f32.xlu0 %v2918_v32 }
0x15af   : > { %v2920_v40 = vpop.xlane.xlu0 %2919 }
0x15b0   : > { %v2921_v41 = vmul.f32 0.03125, %v2920_v40 }
0x15b2   : > { %v2922_v42 = vadd.f32 1e-05, %v2921_v41 }
0x15b4   : > { %3615 = vrsqrt.f32 %v2922_v42 }
0x15c1   : > { %v3616_v43 = vpop.eup %3615 }
0x15c2   : > { %v2924_v45 = vmul.f32 %v3616_v43, %v2916_v30 }
0x15c4   : > { %v2931_v47 = vmul.f32 %v3264_v44, %v2924_v45 }
0x15c6   : > { %v2938_v48 = vadd.f32 %v3265_v46, %v2931_v47 }
0x15c8   : > { %3539 = vmatmul.mubr.msk.f32.vlgmr.msra.gmra.mxu0 %vm664_vm1, %v2938_v48 }
0x1688   : > { %v3019_v53 = vpop.f32.mrf.mxu0 }
0x1689   : > { %v3020_v55 = vadd.f32 %v3266_v52, %v3019_v53 }
0x168a   : > { %v3540_v56 = vpop.f32.mrf.mxu0 }
0x168b   : > { %v3023_v58 = vmax.f32 %v3020_v55, 0.0 }
0x168d   : > { %3558 = vmatmul.mubr.msk.f32.vlgmr.msra.gmra.mxu1 %vm3039_vm4, %v3023_v58 }
0x174d   : > { %v3109_v61 = vpop.f32.mrf.mxu1 }
0x174e   : > { %v3110_v62 = vadd.f32 %v3268_v60, %v3109_v61 }
0x174f   : > { %v3559_v63 = vpop.f32.mrf.mxu1 }
0x1750   : > { %v3113_v0 = vadd.f32 %v3110_v62, %v2938_v48 }
0x1752   : > { %v3116_v1 = vsel %vm664_vm1, %v3113_v0, 0.0 }
0x1753   : > { %3117 = vadd.xlane.f32.xlu0 %v3116_v1 }
0x17dc   : > { %v3118_v2 = vpop.xlane.xlu0 %3117 }
0x17dd   : > { %v3119_v59 = vmul.f32 0.03125, %v3118_v2 }
0x17df   : > { %v3120_v3 = vsub.f32 %v3113_v0, %v3119_v59 }
0x17e1   : > { %v3121_v4 = vmul.f32 %v3120_v3, %v3120_v3 }
0x17e3   : > { %v3122_v6 = vsel %vm664_vm1, %v3121_v4, 0.0 }
0x17e4   : > { %3123 = vadd.xlane.f32.xlu1 %v3122_v6 }
0x186d   : > { %v3124_v7 = vpop.xlane.xlu1 %3123 }
0x186e   : > { %v3125_v57 = vmul.f32 0.03125, %v3124_v7 }
0x1870   : > { %v3126_v9 = vadd.f32 1e-05, %v3125_v57 }
0x1872   : > { %3617 = vrsqrt.f32 %v3126_v9 }
0x187f   : > { %v3618_v10 = vpop.eup %3617 }
0x1880   : > { %v3128_v12 = vmul.f32 %v3618_v10, %v3120_v3 }
0x1882   : > { %v3135_v14 = vmul.f32 %v3270_v11, %v3128_v12 }
0x1884   : > { %v3142_v15 = vadd.f32 %v3271_v13, %v3135_v14 }
0x1886   : > { %3143 = vst.msk [vmem:[%s644_s0] sm:$0xff] %vm664_vm1, %v3142_v15 }
0x1887 PF: > { %s30_s1 = sadd.s32 1, %s3625_s1  }
0x1888   : > { %p27_p4 = scmp.ge.s32.totalorder %s30_s1, 4  }
0x188a   :  { %29 = sbr.rel (!%p27_p4) target bundleno = 6 (0x6), region = 133 }

// kernel: interaction_block_forward.4
= control target key start
LH: loop header
LB: loop body
LE: loop exit
PB: predicated region body
PF: predicated region fallthrough
CT: control target
= control target key end

     0   :  { %s4818_s0 = inlined_call_operand.vmem [shape: f32[2,8,32], index: 0, kind: input, shape index: {}]   ;;  %s4819_s1 = inlined_call_operand.vmem [shape: f32[2,16,32], index: 1, kind: input, shape index: {}]   ;;  %s4820_s2 = inlined_call_operand.vmem [shape: f32[32,96], index: 2, kind: input, shape index: {}]   ;;  %s4821_s3 = inlined_call_operand.vmem [shape: f32[1,96], index: 3, kind: input, shape index: {}]   ;;  %s4822_s4 = inlined_call_operand.vmem [shape: f32[32,32], index: 4, kind: input, shape index: {}]   ;;  %s4823_s5 = inlined_call_operand.vmem [shape: f32[1,32], index: 5, kind: input, shape index: {}]   ;;  %s4824_s6 = inlined_call_operand.hbm [shape: f32[32,96], index: 6, kind: input, shape index: {}]   ;;  %s4825_s7 = inlined_call_operand.hbm [shape: f32[1,96], index: 7, kind: input, shape index: {}]   ;;  %s4826_s8 = inlined_call_operand.hbm [shape: f32[32,32], index: 8, kind: input, shape index: {}]   ;;  %s4827_s9 = inlined_call_operand.hbm [shape: f32[1,32], index: 9, kind: input, shape index: {}]   ;;  %s4828_s10 = inlined_call_operand.hbm [shape: f32[1,32], index: 10, kind: input, shape index: {}]   ;;  %s4829_s11 = inlined_call_operand.hbm [shape: f32[1,32], index: 11, kind: input, shape index: {}]   ;;  %s4830_s12 = inlined_call_operand.vmem [shape: f32[1,32], index: 12, kind: input, shape index: {}]   ;;  %s4831_s13 = inlined_call_operand.vmem [shape: f32[1,32], index: 13, kind: input, shape index: {}]   ;;  %s4832_s14 = inlined_call_operand.hbm [shape: f32[32,64], index: 14, kind: input, shape index: {}]   ;;  %s4833_s15 = inlined_call_operand.hbm [shape: f32[1,64], index: 15, kind: input, shape index: {}]   ;;  %s4834_s16 = inlined_call_operand.vmem [shape: f32[64,32], index: 16, kind: input, shape index: {}]   ;;  %s4835_s17 = inlined_call_operand.hbm [shape: f32[1,32], index: 17, kind: input, shape index: {}]   ;;  %s4836_s18 = inlined_call_operand.vmem [shape: f32[1,32], index: 18, kind: input, shape index: {}]   ;;  %s4837_s19 = inlined_call_operand.vmem [shape: f32[1,32], index: 19, kind: input, shape index: {}]   ;;  %s4838_s20 = inlined_call_operand.vmem [shape: f32[2,8,32], index: 20, kind: output, shape index: {}]  }
   0x1   :  { %4846 = sst [smem:[#allocation21_spill]] %s4818_s0 }
   0x2   :  { %4847 = sst [smem:[#allocation22_spill]] %s4819_s1 }
   0x3   :  { %4848 = sst [smem:[#allocation23_spill]] %s4820_s2 }
   0x4   :  { %4849 = sst [smem:[#allocation24_spill]] %s4821_s3 }
   0x5   :  { %4850 = sst [smem:[#allocation25_spill]] %s4822_s4 }
   0x6   :  { %25 = vsyncpa [#allocation3], 0 }
   0x7   :  { %26 = vsyncpa [#allocation5], 0 }
   0x8   :  { %27 = vsyncpa [#allocation8], 0 }
   0x9   :  { %28 = vsyncpa [#allocation11], 0 }
   0xa   :  { %29 = vsyncpa [#allocation14], 0  ;;  %s4328_s1 = smov 0  }
   0xb LB: > { %s4199_s22 = smov [#allocation4]   ;;  %s4334_s24 = sadd.s32 4294967295, %s4197_s1   ;;  %s4197_s1 = sphi %s4328_s1, %s35_s1  }
   0xc   : > { %s534_s23 = sshll.u32 %s4199_s22, 4  ;;  %p3418_p0 = scmp.ge.s32.totalorder %s4197_s1, 1  ;;  %s535_s23 = int_to_ptr.vmem [resolvable:$true] %s534_s23 }
   0xd   : > { %p496_p1 = scmp.lt.s32.totalorder %s4197_s1, 3  ;;  %p3849_p2 = scmp.eq.s32.totalorder %s4334_s24, 0 }
   0xe   : > { %s4200_s25 = smov [#allocation7]   ;;  %s4201_s26 = smov [#allocation10]  }
   0xf   : > { %p4339_p3 = pnand %p3418_p0, %p496_p1  ;;  %s558_s3 = sshll.u32 %s4200_s25, 4  ;;  %s4345_s3 = int_to_ptr.vmem [resolvable:$true] %s558_s3 }
  0x10   : > { %s580_s27 = sshll.u32 %s4201_s26, 4  ;;  %s4202_s4 = smov [#allocation13]   ;;  %s4353_s27 = int_to_ptr.vmem [resolvable:$true] %s580_s27 }
  0x11   : > { %p3821_p4 = pneg %p4339_p3  ;;  %s610_s29 = sshll.u32 %s4202_s4, 4  ;;  %s4355_s29 = int_to_ptr.vmem [resolvable:$true] %s610_s29 }
  0x12   : > { %s3948_s0 = scalar_lea.vmem %s535_s23, 16  ;;  %s3955_s21 = scalar_lea.vmem %s535_s23, 32 }
  0x13   : > { %p4349_p5 = pnand %p3849_p2, %p3821_p4  ;;  %p3949_p7 = scmp.ne.s32.totalorder %s535_s23, %s3948_s0 }
  0x14   : > { %p3956_p10 = scmp.lt.s32.totalorder %s535_s23, %s535_s23  ;;  %p3957_p11 = scmp.lt.s32.totalorder %s3955_s21, %s3948_s0 }
  0x15   : > { %p4359_p6 = pneg %p4349_p5 }
  0x16   : > { %p3958_p12 = por %p3957_p11, %p3956_p10 }
  0x17   : > { %p3951_p8 = pnand %p3949_p7, %p4359_p6 }
  0x19   : > { %p3952_p9 = pneg %p3951_p8 }
  0x1b   : > { %p3959_p13 = pnand %p3958_p12, %p3952_p9 }
  0x1d   : > { %3962 = shalt.err (!%p3959_p13)
}
  0x1e   : > { %3827 = dma.hbm_to_vmem [thread:$0]  (!%p4349_p5), %s4825_s7, 16, %s535_s23, [#allocation5]  }
  0x1f   : > { %s3974_s26 = scalar_lea.vmem %s4345_s3, 16  ;;  %s3981_s4 = scalar_lea.vmem %s4345_s3, 32 }
  0x20   : > { %p3975_p0 = scmp.ne.s32.totalorder %s4345_s3, %s3974_s26  ;;  %p3982_p7 = scmp.lt.s32.totalorder %s4345_s3, %s4345_s3 }
  0x21   : > { %p3983_p8 = scmp.lt.s32.totalorder %s3981_s4, %s3974_s26 }
  0x22   : > { %p3977_p1 = pnand %p3975_p0, %p4359_p6 }
  0x23   : > { %p3984_p9 = por %p3983_p8, %p3982_p7 }
  0x24   : > { %p3978_p4 = pneg %p3977_p1 }
  0x26   : > { %p3985_p10 = pnand %p3984_p9, %p3978_p4 }
  0x28   : > { %3988 = shalt.err (!%p3985_p10)
}
  0x29   : > { %3833 = dma.hbm_to_vmem [thread:$0]  (!%p4349_p5), %s4827_s9, 16, %s4345_s3, [#allocation8]  }
  0x2a   : > { %s4000_s23 = scalar_lea.vmem %s4353_s27, 16  ;;  %s4007_s22 = scalar_lea.vmem %s4353_s27, 32 }
  0x2b   : > { %p4001_p11 = scmp.ne.s32.totalorder %s4353_s27, %s4000_s23  ;;  %p4008_p0 = scmp.lt.s32.totalorder %s4353_s27, %s4353_s27 }
  0x2c   : > { %p4009_p1 = scmp.lt.s32.totalorder %s4007_s22, %s4000_s23 }
  0x2d   : > { %p4003_p12 = pnand %p4001_p11, %p4359_p6 }
  0x2e   : > { %p4010_p4 = por %p4009_p1, %p4008_p0 }
  0x2f   : > { %p4004_p13 = pneg %p4003_p12 }
  0x31   : > { %p4011_p7 = pnand %p4010_p4, %p4004_p13 }
  0x33   : > { %4014 = shalt.err (!%p4011_p7)
}
  0x34   : > { %3839 = dma.hbm_to_vmem [thread:$0]  (!%p4349_p5), %s4829_s11, 16, %s4353_s27, [#allocation11]  }
  0x35   : > { %s4026_s3 = scalar_lea.vmem %s4355_s29, 16  ;;  %s4033_s4 = scalar_lea.vmem %s4355_s29, 32 }
  0x36   : > { %p4027_p8 = scmp.ne.s32.totalorder %s4355_s29, %s4026_s3  ;;  %p4034_p11 = scmp.lt.s32.totalorder %s4355_s29, %s4355_s29 }
  0x37   : > { %p4035_p12 = scmp.lt.s32.totalorder %s4033_s4, %s4026_s3 }
  0x38   : > { %p4029_p9 = pnand %p4027_p8, %p4359_p6 }
  0x39   : > { %p4036_p13 = por %p4035_p12, %p4034_p11 }
  0x3a   : > { %p4030_p10 = pneg %p4029_p9 }
  0x3c   : > { %p4037_p0 = pnand %p4036_p13, %p4030_p10 }
  0x3e   : > { %4040 = shalt.err (!%p4037_p0)
}
  0x3f   : > { %3845 = dma.hbm_to_vmem [thread:$0]  (!%p4349_p5), %s4833_s15, 16, %s4355_s29, [#allocation14]  }
  0x40   : > { %s4203_s27 = smov [#allocation2]  }
  0x41   : > { %s520_s23 = sshll.u32 %s4203_s27, 4  ;;  %s521_s23 = int_to_ptr.vmem [resolvable:$true] %s520_s23 }
  0x42   : > { %s4052_s22 = scalar_lea.vmem %s521_s23, 512  ;;  %p4060_p8 = scmp.lt.s32.totalorder %s521_s23, %s521_s23 }
  0x43   : > { %p4053_p1 = scmp.ne.s32.totalorder %s521_s23, %s4052_s22  ;;  %p4061_p9 = scmp.lt.s32.totalorder %s4052_s22, %s4052_s22 }
  0x45   : > { %p4055_p4 = pnand %p4053_p1, %p4359_p6  ;;  %p4062_p10 = por %p4061_p9, %p4060_p8 }
  0x47   : > { %p4056_p7 = pneg %p4055_p4 }
  0x49   : > { %p4063_p11 = pnand %p4062_p10, %p4056_p7 }
  0x4b   : > { %4066 = shalt.err (!%p4063_p11)
}
  0x4c   : > { %s4841_s25 = smov 128   ;;  %s4842_s26 = smov 8  }
  0x4d   : > { %3824 = dma.hbm_to_vmem [thread:$0]  (!%p4349_p5), %s4824_s6, 512, %s521_s23, [#allocation3], %s4841_s25, %s4841_s25, %s4842_s26  }
  0x4e   : > { %s4206_s4 = smov [#allocation6]   ;;  %s4207_s21 = smov [#allocation9]  }
  0x4f   : > { %s544_s0 = sshll.u32 %s4206_s4, 4  ;;  %s569_s27 = sshll.u32 %s4207_s21, 4  ;;  %s545_s0 = int_to_ptr.vmem [resolvable:$true] %s544_s0  ;;  %s570_s27 = int_to_ptr.vmem [resolvable:$true] %s569_s27 }
  0x50   : > { %s4078_s22 = scalar_lea.vmem %s545_s0, 512  ;;  %p4086_p1 = scmp.lt.s32.totalorder %s545_s0, %s545_s0 }
  0x51   : > { %p4079_p12 = scmp.ne.s32.totalorder %s545_s0, %s4078_s22  ;;  %p4087_p4 = scmp.lt.s32.totalorder %s4078_s22, %s4078_s22 }
  0x53   : > { %p4081_p13 = pnand %p4079_p12, %p4359_p6  ;;  %p4088_p7 = por %p4087_p4, %p4086_p1 }
  0x55   : > { %p4082_p0 = pneg %p4081_p13 }
  0x57   : > { %p4089_p8 = pnand %p4088_p7, %p4082_p0 }
  0x59   : > { %4092 = shalt.err (!%p4089_p8)
}
  0x5a   : > { %3830 = dma.hbm_to_vmem [thread:$0]  (!%p4349_p5), %s4826_s8, 512, %s545_s0, [#allocation5], %s4841_s25, %s4841_s25, %s4842_s26  }
  0x5b   : > { %s4104_s3 = scalar_lea.vmem %s570_s27, 16  ;;  %s4111_s4 = scalar_lea.vmem %s570_s27, 32 }
  0x5c   : > { %p4105_p9 = scmp.ne.s32.totalorder %s570_s27, %s4104_s3  ;;  %p4112_p12 = scmp.lt.s32.totalorder %s570_s27, %s570_s27 }
  0x5d   : > { %p4113_p13 = scmp.lt.s32.totalorder %s4111_s4, %s4104_s3 }
  0x5e   : > { %p4107_p10 = pnand %p4105_p9, %p4359_p6 }
  0x5f   : > { %p4114_p0 = por %p4113_p13, %p4112_p12 }
  0x60   : > { %p4108_p11 = pneg %p4107_p10 }
  0x62   : > { %p4115_p1 = pnand %p4114_p0, %p4108_p11 }
  0x64   : > { %4118 = shalt.err (!%p4115_p1)
}
  0x65   : > { %3836 = dma.hbm_to_vmem [thread:$0]  (!%p4349_p5), %s4828_s10, 16, %s570_s27, [#allocation8]  }
  0x66   : > { %s4208_s23 = smov [#allocation12]   ;;  %s4209_s29 = smov [#allocation15]  }
  0x67   : > { %s596_s0 = sshll.u32 %s4208_s23, 4  ;;  %s624_s25 = sshll.u32 %s4209_s29, 4  ;;  %s597_s0 = int_to_ptr.vmem [resolvable:$true] %s596_s0  ;;  %s625_s25 = int_to_ptr.vmem [resolvable:$true] %s624_s25 }
  0x68   : > { %s4130_s26 = scalar_lea.vmem %s597_s0, 512  ;;  %p4138_p9 = scmp.lt.s32.totalorder %s597_s0, %s597_s0 }
  0x69   : > { %p4131_p4 = scmp.ne.s32.totalorder %s597_s0, %s4130_s26  ;;  %p4139_p10 = scmp.lt.s32.totalorder %s4130_s26, %s4130_s26 }
  0x6b   : > { %p4133_p7 = pnand %p4131_p4, %p4359_p6  ;;  %p4140_p11 = por %p4139_p10, %p4138_p9 }
  0x6d   : > { %p4134_p8 = pneg %p4133_p7 }
  0x6f   : > { %p4141_p12 = pnand %p4140_p11, %p4134_p8 }
  0x71   : > { %4144 = shalt.err (!%p4141_p12)
}
  0x72   : > { %s4854_s3 = smov 8   ;;  %s4855_s27 = smov 128  }
  0x73   : > { %3842 = dma.hbm_to_vmem [thread:$0]  (!%p4349_p5), %s4832_s14, 512, %s597_s0, [#allocation11], %s4855_s27, %s4855_s27, %s4854_s3  }
  0x74   : > { %s4156_s22 = scalar_lea.vmem %s625_s25, 16  ;;  %s4163_s23 = scalar_lea.vmem %s625_s25, 32 }
  0x75   : > { %p4157_p13 = scmp.ne.s32.totalorder %s625_s25, %s4156_s22  ;;  %p4164_p4 = scmp.lt.s32.totalorder %s625_s25, %s625_s25 }
  0x76   : > { %p4165_p7 = scmp.lt.s32.totalorder %s4163_s23, %s4156_s22 }
  0x77   : > { %p4159_p0 = pnand %p4157_p13, %p4359_p6 }
  0x78   : > { %p4166_p8 = por %p4165_p7, %p4164_p4 }
  0x79   : > { %p4160_p1 = pneg %p4159_p0 }
  0x7b   : > { %p4167_p9 = pnand %p4166_p8, %p4160_p1 }
  0x7d   : > { %4170 = shalt.err (!%p4167_p9)
}
  0x7e   : > { %3848 = dma.hbm_to_vmem [thread:$0]  (!%p4349_p5), %s4835_s17, 16, %s625_s25, [#allocation14]  }
  0x7f   : > { %658 = sbr.rel (%p4339_p3) target bundleno = 6409 (0x1909), region = 100 }
  0x84   : > { %4176 = dma.done.wait (%p3849_p2), [#allocation3], 512  }
  0x85   : > { %4178 = vsyncadd (%p3849_p2), [#allocation3], 4294966784 }
  0x86   : > { %4180 = dma.done.wait (%p3849_p2), [#allocation5], 528  }
  0x87   : > { %4182 = vsyncadd (%p3849_p2), [#allocation5], 4294966768 }
  0x88   : > { %4184 = dma.done.wait (%p3849_p2), [#allocation8], 32  }
  0x89   : > { %4186 = vsyncadd (%p3849_p2), [#allocation8], 4294967264 }
  0x8a   : > { %4188 = dma.done.wait (%p3849_p2), [#allocation11], 528  }
  0x8b   : > { %4190 = vsyncadd (%p3849_p2), [#allocation11], 4294966768 }
  0x8c   : > { %4192 = dma.done.wait (%p3849_p2), [#allocation14], 32  }
  0x8d   : > { %4194 = vsyncadd (%p3849_p2), [#allocation14], 4294967264  ;;  %p751_p3 = scmp.lt.s32.totalorder %s4334_s24, 1  ;;  %v4210_v0 = vmov 0.0   ;;  %vm4211_vm0 = vmmov 0   ;;  %s4856_s25 = sld [smem:[#allocation23_spill]] }
  0x8e   : > { %3586 = vmatprep.subr.mxu0 %v4210_v0  ;;  %3594 = vmatprep.mubr.msk.f32.mxu0 %vm4211_vm0, %v4210_v0  ;;  %s4857_s23 = sld [smem:[#allocation21_spill]]  ;;  %vm783_vm1 = vcmask 261120   ;;  %s4212_s27 = smov 96   ;;  %vm861_vm2 = vcmask 64512   ;;  %vm2120_vm3 = vcmask 130048   ;;  %vm3158_vm4 = vcmask 523264  }
  0x8f   : > { %s4864_s24 = smov (!%p751_p3, %s4334_s24), 1  ;;  %3602 = vmatprep.subr.mxu1 %v4210_v0  ;;  %3604 = vmatprep.mubr.msk.f32.mxu1 %vm4211_vm0, %v4210_v0  ;;  %s4858_s3 = sld [smem:[#allocation24_spill]] }
  0x90   : > { %s4843_s2 = sshll.u32 %s4864_s24, 3  ;;  %s4213_s4 = smov 120  }
  0x91   : > { %s4214_s21 = smov 88   ;;  %s4215_s22 = smov 56  }
  0x92   : > { %s4218_s29 = smov 112   ;;  %s4859_s0 = sld [smem:[#allocation25_spill]] }
  0x93   : > { %v770_v1 = vld [vmem:[%s4856_s25 + $0x18] sm:$0xff]  ;;  %v769_v2 = vld [vmem:[%s4856_s25 + $0x10] sm:$0xff]  ;;  %v768_v3 = vld [vmem:[%s4856_s25 + $0x8] sm:$0xff]  ;;  %s4220_s28 = smov 104   ;;  %s4221_s30 = smov 48  }
  0x94   : > { %3587 = vmatpush3.msra.mxu0 %v770_v1  ;;  %s754_s26 = scalar_lea.vmem %s4857_s23, %s4843_s2  ;;  %v767_v4 = vld [vmem:[%s4856_s25] sm:$0xff]  ;;  %s4216_s23 = smov 64  }
  0x95   : > { %3588 = vmatprep.subr.mxu0 %v4210_v0  ;;  %v4505_v5 = vld [vmem:[%s754_s26] sm:$0xff]  ;;  %s4217_s26 = smov 80   ;;  %s4860_s2 = sld [smem:[#allocation22_spill]] }
  0x96   : > { %3589 = vmatpush3.msra.mxu0 %v769_v2  ;;  %v3443_v6 = vld [vmem:[%s4858_s3] ss:$0 sm:$0xff] }
  0x97   : > { %3590 = vmatprep.subr.mxu0 %v4210_v0 }
  0x98   : > { %3591 = vmatpush3.msra.mxu0 %v768_v3  ;;  %v772_v38 = vld [vmem:[%s4859_s0] sm:$0xff]  ;;  %v773_v39 = vld [vmem:[%s4859_s0 + $0x8] sm:$0xff]  ;;  %v774_v2 = vld [vmem:[%s4859_s0 + $0x10] sm:$0xff] }
  0x99   : > { %3592 = vmatprep.subr.mxu0 %v4210_v0 }
  0x9a   : > { %3593 = vmatpush3.msra.mxu0 %v767_v4 }
  0x9b   : > { %3595 = vmatmul.mubr.msk.f32.vlgmr.msra.gmra.mxu0 %vm783_vm1, %v4505_v5  ;;  %3597 = vmatprep.subr.mxu0 %v4210_v0 }
  0x9c   : > { %3599 = vmatprep.mubr.msk.f32.mxu0 %vm4211_vm0, %v4210_v0 }
 0x15b   : > { %v853_v7 = vpop.f32.mrf.mxu0 }
 0x15c   : > { %v4516_v8 = vadd.f32 %v3443_v6, %v853_v7 }
 0x15d   : > { %v3596_v9 = vpop.f32.mrf.mxu0 }
 0x15e   : > { %859 = vrot.lane.b32.xlu0 %v4516_v8, %s4212_s27  ;;  %v4521_v10 = vmul.f32 0.35355338, %v4516_v8 }
 0x160   : > { %1024 = vrot.lane.b32.xlu1 %v4521_v10, %s4213_s4 }
 0x162   : > { %1026 = vrot.lane.b32.xlu0 %v4516_v8, %s4214_s21 }
 0x1d0   : > { %v860_v11 = vpop.permute.xlu0 %859 }
 0x1d1   : > { %3598 = vmatpush3.xpose.msk.msra.mxu0 %vm861_vm2, %v860_v11 }
 0x1d2   : > { %3607 = vmatprep.subr.mxu0 %v4210_v0  ;;  %v1025_v13 = vpop.permute.xlu1 %1024 }
 0x1d4   : > { %v1027_v12 = vpop.permute.xlu0 %1026  ;;  %3600 = vmatmul.mubr.msk.f32.vlgmr.msra.gmra.mxu0 %vm861_vm2, %v4521_v10 }
 0x1d5   : > { %3608 = vmatpush3.xpose.msk.msra.mxu0 %vm861_vm2, %v1027_v12  ;;  %3609 = vmatprep.mubr.msk.f32.mxu0 %vm4211_vm0, %v4210_v0 }
 0x1d6   : > { %3617 = vmatprep.subr.mxu0 %v4210_v0 }
 0x1d8   : > { %3610 = vmatmul.mubr.msk.f32.vlgmr.msra.gmra.mxu0 %vm861_vm2, %v1025_v13 }
 0x1d9   : > { %3619 = vmatprep.mubr.msk.f32.mxu0 %vm4211_vm0, %v4210_v0  ;;  %3618 = vmatpush3.msra.mxu0 %v773_v39 }
 0x1da   : > { %3627 = vmatprep.subr.mxu0 %v4210_v0 }
 0x294   : > { %v933_v14 = vpop.f32.mrf.mxu0 }
 0x295   : > { %v937_v15 = vsel %vm861_vm2, %v933_v14, -inf }
 0x296   : > { %938 = vmax.xlane.f32.xlu1 %v937_v15  ;;  %v3601_v16 = vpop.f32.mrf.mxu0 }
 0x297   : > { %v775_v16 = vld [vmem:[%s4859_s0 + $0x18] sm:$0xff] }
 0x298   : > { %v1098_v17 = vpop.f32.mrf.mxu0 }
 0x299   : > { %v1102_v18 = vsel %vm861_vm2, %v1098_v17, -inf }
 0x29a   : > { %1103 = vmax.xlane.f32.xlu0 %v1102_v18  ;;  %v3611_v19 = vpop.f32.mrf.mxu0 }
 0x31f   : > { %v939_v20 = vpop.xlane.xlu1 %938 }
 0x320   : > { %v940_v21 = vsub.f32 %v933_v14, %v939_v20 }
 0x322   : > { %v941_v22 = vmul.f32 1.442695, %v940_v21 }
 0x323   : > { %v1104_v23 = vpop.xlane.xlu0 %1103 }
 0x324   : > { %3899 = vpow2.f32 %v941_v22  ;;  %v1105_v24 = vsub.f32 %v1098_v17, %v1104_v23 }
 0x326   : > { %v1106_v25 = vmul.f32 1.442695, %v1105_v24  ;;  %v3461_v24 = vld [vmem:[%s4823_s5] ss:$0 sm:$0xff] }
 0x328   : > { %3901 = vpow2.f32 %v1106_v25 }
 0x331   : > { %v3900_v26 = vpop.eup %3899 }
 0x332   : > { %v943_v27 = vsel %vm861_vm2, %v3900_v26, 0.0 }
 0x333   : > { %944 = vadd.xlane.f32.xlu0 %v943_v27 }
 0x335   : > { %v3902_v28 = vpop.eup %3901 }
 0x336   : > { %v1108_v29 = vsel %vm861_vm2, %v3902_v28, 0.0 }
 0x337   : > { %1109 = vadd.xlane.f32.xlu1 %v1108_v29 }
 0x348   : > { %1113 = vrot.lane.b32.xlu1 %v4516_v8, %s4215_s22  ;;  %s3499_s22 = sshll.u32 %s4864_s24, 4 }
 0x349   : > { %948 = vrot.lane.b32.xlu0 %v4516_v8, %s4216_s23  ;;  %s4844_s23 = smov 72  }
 0x34c   : > { %1337 = vrot.lane.b32.xlu1 %v4516_v8, %s4217_s26 }
 0x34d   : > { %1335 = vrot.lane.b32.xlu0 %v4521_v10, %s4218_s29 }
 0x3bc   : > { %v945_v30 = vpop.xlane.xlu0 %944 }
 0x3bd   : > { %3903 = vrcp.f32 %v945_v30 }
 0x3c0   : > { %v1110_v31 = vpop.xlane.xlu1 %1109  ;;  %v949_v32 = vpop.permute.xlu0 %948 }
 0x3c1   : > { %3905 = vrcp.f32 %v1110_v31  ;;  %3603 = vmatpush3.msra.mxu1 %v949_v32  ;;  %v1853_v31 = vld [vmem:[#allocation2 + $0x10] sm:$0xff]  ;;  %v1854_v32 = vld [vmem:[#allocation2 + $0x18] sm:$0xff] }
 0x3c2   : > { %3612 = vmatprep.subr.mxu1 %v4210_v0 }
 0x3c4   : > { %v1114_v35 = vpop.permute.xlu1 %1113  ;;  %v1336_v45 = vpop.permute.xlu0 %1335 }
 0x3c8   : > { %v1338_v43 = vpop.permute.xlu1 %1337 }
 0x3ca   : > { %v3904_v33 = vpop.eup %3903 }
 0x3cb   : > { %v947_v34 = vmul.f32 %v3904_v33, %v3900_v26  ;;  %v1852_v33 = vld [vmem:[#allocation2 + $0x8] sm:$0xff] }
 0x3cd   : > { %3605 = vmatmul.mubr.msk.f32.vlgmr.msra.gmra.mxu1 %vm861_vm2, %v947_v34  ;;  %v1851_v34 = vld [vmem:[#allocation2] sm:$0xff] }
 0x3ce   : > { %v3906_v36 = vpop.eup %3905  ;;  %3613 = vmatpush3.msra.mxu1 %v1114_v35  ;;  %3614 = vmatprep.mubr.msk.f32.mxu1 %vm4211_vm0, %v4210_v0 }
 0x3cf   : > { %v1112_v37 = vmul.f32 %v3906_v36, %v3902_v28  ;;  %3622 = vmatprep.subr.mxu1 %v4210_v0 }
 0x3d1   : > { %3615 = vmatmul.mubr.msk.f32.vlgmr.msra.gmra.mxu1 %vm861_vm2, %v1112_v37 }
 0x3d2   : > { %3624 = vmatprep.mubr.msk.f32.mxu1 %vm4211_vm0, %v4210_v0  ;;  %3623 = vmatpush3.msra.mxu1 %v772_v38 }
 0x3d3   : > { %3632 = vmatprep.subr.mxu1 %v4210_v0 }
 0x48d   : > { %v1020_v40 = vpop.f32.mrf.mxu1 }
 0x48e   : > { %3625 = vmatmul.mubr.msk.f32.vlgmr.msra.gmra.mxu1 %vm861_vm2, %v1020_v40  ;;  %v3464_v40 = vld [vmem:[#allocation4] ss:$0 sm:$0xff] }
 0x48f   : > { %v3606_v41 = vpop.f32.mrf.mxu1  ;;  %3634 = vmatprep.mubr.msk.f32.mxu1 %vm4211_vm0, %v4210_v0 }
 0x491   : > { %v1185_v42 = vpop.f32.mrf.mxu1 }
 0x492   : > { %3620 = vmatmul.mubr.msk.f32.vlgmr.msra.gmra.mxu0 %vm861_vm2, %v1185_v42 }
 0x493   : > { %3628 = vmatpush3.xpose.msk.msra.mxu0 %vm861_vm2, %v1338_v43  ;;  %v3616_v44 = vpop.f32.mrf.mxu1  ;;  %3629 = vmatprep.mubr.msk.f32.mxu0 %vm4211_vm0, %v4210_v0 }
 0x494   : > { %3637 = vmatprep.subr.mxu0 %v4210_v0 }
 0x496   : > { %3630 = vmatmul.mubr.msk.f32.vlgmr.msra.gmra.mxu0 %vm861_vm2, %v1336_v45 }
 0x497   : > { %3639 = vmatprep.mubr.msk.f32.mxu0 %vm4211_vm0, %v4210_v0  ;;  %3638 = vmatpush3.msra.mxu0 %v774_v2 }
 0x498   : > { %3647 = vmatprep.subr.mxu0 %v4210_v0 }
 0x54e   : > { %v1331_v46 = vpop.f32.mrf.mxu1 }
 0x550   : > { %v3626_v47 = vpop.f32.mrf.mxu1 }
 0x552   : > { %v1258_v48 = vpop.f32.mrf.mxu0 }
 0x553   : > { %v1332_v49 = vadd.f32 %v1331_v46, %v1258_v48 }
 0x554   : > { %v3621_v50 = vpop.f32.mrf.mxu0 }
 0x555   : > { %v3462_v50 = vld [vmem:[#allocation9] ss:$0 sm:$0xff] }
 0x556   : > { %v1409_v51 = vpop.f32.mrf.mxu0 }
 0x557   : > { %v1413_v52 = vsel %vm861_vm2, %v1409_v51, -inf }
 0x558   : > { %1414 = vmax.xlane.f32.xlu1 %v1413_v52  ;;  %v3631_v53 = vpop.f32.mrf.mxu0  ;;  %v3463_v52 = vld [vmem:[#allocation10] ss:$0 sm:$0xff] }
 0x569   : > { %1576 = vrot.lane.b32.xlu1 %v4516_v8, %s4844_s23  ;;  %s759_s23 = scalar_lea.vmem %s4860_s2, %s3499_s22  ;;  %s4861_s2 = smov 72  }
 0x56a   : > { %v765_v39 = vld [vmem:[%s759_s23] sm:$0xff]  ;;  %v766_v48 = vld [vmem:[%s759_s23 + $0x8] sm:$0xff] }
 0x56d   : > { %1574 = vrot.lane.b32.xlu1 %v4521_v10, %s4220_s28 }
 0x5e1   : > { %v1415_v54 = vpop.xlane.xlu1 %1414 }
 0x5e2   : > { %v1416_v55 = vsub.f32 %v1409_v51, %v1415_v54 }
 0x5e4   : > { %v1417_v56 = vmul.f32 1.442695, %v1416_v55 }
 0x5e5   : > { %v1577_v62 = vpop.permute.xlu1 %1576 }
 0x5e6   : > { %3907 = vpow2.f32 %v1417_v56 }
 0x5e9   : > { %v1575_v1 = vpop.permute.xlu1 %1574 }
 0x5f3   : > { %v3908_v57 = vpop.eup %3907 }
 0x5f4   : > { %v1419_v58 = vsel %vm861_vm2, %v3908_v57, 0.0 }
 0x5f5   : > { %1420 = vadd.xlane.f32.xlu0 %v1419_v58 }
 0x60b   : > { %1424 = vrot.lane.b32.xlu0 %v4516_v8, %s4221_s30  ;;  %s4222_s30 = smov 40  }
 0x67e   : > { %v1421_v59 = vpop.xlane.xlu0 %1420 }
 0x67f   : > { %3909 = vrcp.f32 %v1421_v59 }
 0x682   : > { %v1425_v60 = vpop.permute.xlu0 %1424 }
 0x683   : > { %3633 = vmatpush3.msra.mxu1 %v1425_v60 }
 0x684   : > { %3642 = vmatprep.subr.mxu1 %v4210_v0 }
 0x68c   : > { %v3910_v61 = vpop.eup %3909 }
 0x68d   : > { %v1423_v63 = vmul.f32 %v3910_v61, %v3908_v57 }
 0x68f   : > { %3635 = vmatmul.mubr.msk.f32.vlgmr.msra.gmra.mxu1 %vm861_vm2, %v1423_v63 }
 0x690   : > { %3643 = vmatpush3.xpose.msk.msra.mxu1 %vm861_vm2, %v1577_v62  ;;  %3644 = vmatprep.mubr.msk.f32.mxu1 %vm4211_vm0, %v4210_v0 }
 0x691   : > { %3652 = vmatprep.subr.mxu1 %v4210_v0 }
 0x693   : > { %3645 = vmatmul.mubr.msk.f32.vlgmr.msra.gmra.mxu1 %vm861_vm2, %v1575_v1 }
 0x694   : > { %3654 = vmatprep.mubr.msk.f32.mxu1 %vm4211_vm0, %v4210_v0  ;;  %3653 = vmatpush3.msra.mxu1 %v775_v16 }
 0x74f   : > { %v1496_v3 = vpop.f32.mrf.mxu1 }
 0x750   : > { %3640 = vmatmul.mubr.msk.f32.vlgmr.msra.gmra.mxu0 %vm861_vm2, %v1496_v3 }
 0x751   : > { %v3636_v4 = vpop.f32.mrf.mxu1  ;;  %3649 = vmatprep.mubr.msk.f32.mxu0 %vm4211_vm0, %v4210_v0 }
 0x753   : > { %v1648_v6 = vpop.f32.mrf.mxu1 }
 0x754   : > { %v1652_v7 = vsel %vm861_vm2, %v1648_v6, -inf }
 0x755   : > { %1653 = vmax.xlane.f32.xlu0 %v1652_v7  ;;  %v3646_v9 = vpop.f32.mrf.mxu1 }
 0x76b   : > { %1663 = vrot.lane.b32.xlu0 %v4516_v8, %s4222_s30 }
 0x76f   : > { %1948 = vrot.lane.b32.xlu0 %v1853_v31, %s4212_s27 }
 0x773   : > { %1946 = vrot.lane.b32.xlu0 %v1852_v33, %s4212_s27 }
 0x777   : > { %1944 = vrot.lane.b32.xlu0 %v1851_v34, %s4212_s27 }
 0x7de   : > { %v1654_v10 = vpop.xlane.xlu0 %1653 }
 0x7df   : > { %v1655_v11 = vsub.f32 %v1648_v6, %v1654_v10 }
 0x7e1   : > { %v1656_v12 = vmul.f32 1.442695, %v1655_v11 }
 0x7e2   : > { %v1664_v13 = vpop.permute.xlu0 %1663 }
 0x7e3   : > { %3911 = vpow2.f32 %v1656_v12  ;;  %3648 = vmatpush3.msra.mxu0 %v1664_v13 }
 0x7e4   : > { %3657 = vmatprep.subr.mxu0 %v4210_v0 }
 0x7e6   : > { %v1949_v41 = vpop.permute.xlu0 %1948 }
 0x7ea   : > { %v1947_v44 = vpop.permute.xlu0 %1946 }
 0x7ee   : > { %v1945_v47 = vpop.permute.xlu0 %1944 }
 0x7f0   : > { %v3912_v14 = vpop.eup %3911 }
 0x7f1   : > { %v1658_v15 = vsel %vm861_vm2, %v3912_v14, 0.0 }
 0x7f2   : > { %1659 = vadd.xlane.f32.xlu1 %v1658_v15 }
 0x810   : > { %v1569_v17 = vpop.f32.mrf.mxu0 }
 0x811   : > { %v1573_v18 = vadd.f32 %v1569_v17, %v1332_v49 }
 0x812   : > { %v3641_v8 = vpop.f32.mrf.mxu0 }
 0x813   : > { %v1856_v8 = vld [vmem:[#allocation6] sm:$0xff] }
 0x87b   : > { %v1660_v19 = vpop.xlane.xlu1 %1659 }
 0x87c   : > { %3913 = vrcp.f32 %v1660_v19 }
 0x889   : > { %v3914_v20 = vpop.eup %3913 }
 0x88a   : > { %v1662_v21 = vmul.f32 %v3914_v20, %v3912_v14 }
 0x88c   : > { %3650 = vmatmul.mubr.msk.f32.vlgmr.msra.gmra.mxu0 %vm861_vm2, %v1662_v21 }
 0x88d   : > { %3665 = vmatprep.mubr.msk.f32.mxu0 %vm4211_vm0, %v4210_v0  ;;  %3658 = vmatpush3.msra.mxu0 %v1854_v32 }
 0x88e   : > { %3659 = vmatprep.subr.mxu0 %v4210_v0 }
 0x88f   : > { %3660 = vmatpush3.msra.mxu0 %v1853_v31 }
 0x890   : > { %3661 = vmatprep.subr.mxu0 %v4210_v0 }
 0x891   : > { %3662 = vmatpush3.msra.mxu0 %v1852_v33 }
 0x892   : > { %3663 = vmatprep.subr.mxu0 %v4210_v0 }
 0x893   : > { %3664 = vmatpush3.msra.mxu0 %v1851_v34 }
 0x894   : > { %3679 = vmatprep.subr.mxu0 %v4210_v0 }
 0x94c   : > { %v1735_v22 = vpop.f32.mrf.mxu0 }
 0x94d   : > { %3655 = vmatmul.mubr.msk.f32.vlgmr.msra.gmra.mxu1 %vm861_vm2, %v1735_v22 }
 0x94e   : > { %v3651_v23 = vpop.f32.mrf.mxu0  ;;  %3676 = vmatprep.mubr.msk.f32.mxu1 %vm783_vm1, %v765_v39 }
 0xa0d   : > { %v1808_v25 = vpop.f32.mrf.mxu1 }
 0xa0e   : > { %v1812_v26 = vadd.f32 %v1808_v25, %v1573_v18 }
 0xa0f   : > { %v3656_v27 = vpop.f32.mrf.mxu1 }
 0xa10   : > { %v1819_v28 = vadd.f32 %v3461_v24, %v1812_v26 }
 0xa12   : > { %v1820_v29 = vadd.f32 %v1819_v28, %v4505_v5 }
 0xa14   : > { %v1823_v30 = vsel %vm783_vm1, %v1820_v29, 0.0 }
 0xa15   : > { %1824 = vadd.xlane.f32.xlu1 %v1823_v30 }
 0xa9e   : > { %v1825_v5 = vpop.xlane.xlu1 %1824 }
 0xa9f   : > { %v1827_v35 = vmul.f32 0.03125, %v1825_v5 }
 0xaa1   : > { %v1828_v36 = vsub.f32 %v1820_v29, %v1827_v35  ;;  %v1857_v35 = vld [vmem:[#allocation6 + $0x8] sm:$0xff] }
 0xaa3   : > { %v1829_v37 = vmul.f32 %v1828_v36, %v1828_v36 }
 0xaa5   : > { %v1830_v38 = vsel %vm783_vm1, %v1829_v37, 0.0 }
 0xaa6   : > { %1831 = vadd.xlane.f32.xlu1 %v1830_v38 }
 0xab7   : > { %1950 = vrot.lane.b32.xlu1 %v1854_v32, %s4212_s27 }
 0xabb   : > { %1956 = vrot.lane.b32.xlu1 %v3464_v40, %s4212_s27 }
 0xb2f   : > { %v1832_v42 = vpop.xlane.xlu1 %1831 }
 0xb30   : > { %v1833_v43 = vmul.f32 0.03125, %v1832_v42 }
 0xb32   : > { %v1834_v45 = vadd.f32 1e-05, %v1833_v43 }
 0xb33   : > { %v1951_v46 = vpop.permute.xlu1 %1950 }
 0xb34   : > { %3915 = vrsqrt.f32 %v1834_v45  ;;  %3668 = vmatprep.subr.mxu1 %v1951_v46 }
 0xb35   : > { %3669 = vmatpush3.msra.mxu1 %v1951_v46 }
 0xb36   : > { %3670 = vmatprep.subr.mxu1 %v1949_v41 }
 0xb37   : > { %3671 = vmatpush3.msra.mxu1 %v1949_v41  ;;  %v1957_v55 = vpop.permute.xlu1 %1956 }
 0xb38   : > { %3672 = vmatprep.subr.mxu1 %v1947_v44 }
 0xb39   : > { %3673 = vmatpush3.msra.mxu1 %v1947_v44 }
 0xb3a   : > { %3674 = vmatprep.subr.mxu1 %v1945_v47 }
 0xb3b   : > { %3675 = vmatpush3.msra.mxu1 %v1945_v47 }
 0xb3c   : > { %3677 = vmatmul.mubr.msk.f32.vlgmr.msra.gmra.mxu1 %vm783_vm1, %v766_v48  ;;  %3686 = vmatprep.subr.mxu1 %v4210_v0 }
 0xb3d   : > { %3690 = vmatprep.mubr.msk.f32.mxu1 %vm4211_vm0, %v4210_v0 }
 0xb41   : > { %v3916_v49 = vpop.eup %3915 }
 0xb42   : > { %v1836_v51 = vmul.f32 %v3916_v49, %v1828_v36 }
 0xb44   : > { %v1843_v53 = vmul.f32 %v3462_v50, %v1836_v51 }
 0xb46   : > { %v4633_v54 = vadd.f32 %v3463_v52, %v1843_v53 }
 0xb48   : > { %3666 = vmatmul.mubr.msk.f32.vlgmr.msra.gmra.mxu0 %vm783_vm1, %v4633_v54 }
 0xb49   : > { %3683 = vmatprep.mubr.msk.f32.mxu0 %vm4211_vm0, %v4210_v0 }
 0xbfc   : > { %v3678_v56 = vpop.f32.mrf.mxu1 }
 0xbfd   : > { %v4639_v57 = vadd.f32 %v3678_v56, %v1957_v55 }
 0xbfe   : > { %v2031_v58 = vpop.f32.mrf.mxu1 }
 0xbff   : > { %3680 = vmatpush3.xpose.msk.msra.mxu0 %vm861_vm2, %v4639_v57  ;;  %v4643_v59 = vadd.f32 %v2031_v58, %v1957_v55 }
 0xc00   : > { %3681 = vmatprep.subr.mxu0 %v4210_v0 }
 0xc01   : > { %2132 = vrot.lane.b32.xlu1 %v4643_v59, %s4212_s27 }
 0xc03   : > { %3682 = vmatpush3.xpose.msk.msra.mxu0 %vm861_vm2, %v4643_v59 }
 0xc04   : > { %3700 = vmatprep.subr.mxu0 %v4210_v0 }
 0xc08   : > { %v1936_v60 = vpop.f32.mrf.mxu0 }
 0xc09   : > { %v1937_v61 = vadd.f32 %v3464_v40, %v1936_v60 }
 0xc0a   : > { %v3667_v62 = vpop.f32.mrf.mxu0 }
 0xc0b   : > { %v4651_v63 = vmul.f32 0.35355338, %v1937_v61 }
 0xc0d   : > { %3684 = vmatmul.mubr.msk.f32.vlgmr.msra.gmra.mxu0 %vm861_vm2, %v4651_v63 }
 0xc0e   : > { %3704 = vmatprep.mubr.msk.f32.mxu0 %vm4211_vm0, %v4210_v0 }
 0xc73   : > { %v2133_v10 = vpop.permute.xlu1 %2132 }
 0xccd   : > { %v2116_v1 = vpop.f32.mrf.mxu0 }
 0xcce   : > { %v2121_v2 = vsel %vm2120_vm3, %v2116_v1, -inf }
 0xccf   : > { %2122 = vmax.xlane.f32.xlu0 %v2121_v2  ;;  %v3685_v3 = vpop.f32.mrf.mxu0 }
 0xce5   : > { %2134 = vrot.lane.b32.xlu0 %v4639_v57, %s4212_s27 }
 0xce9   : > { %2215 = vrot.lane.b32.xlu0 %v4639_v57, %s4213_s4 }
 0xced   : > { %2211 = vrot.lane.b32.xlu0 %v4651_v63, %s4213_s4 }
 0xd58   : > { %v2123_v4 = vpop.xlane.xlu0 %2122 }
 0xd59   : > { %v2124_v6 = vsub.f32 %v2116_v1, %v2123_v4 }
 0xd5b   : > { %v2125_v7 = vmul.f32 1.442695, %v2124_v6 }
 0xd5c   : > { %v2135_v9 = vpop.permute.xlu0 %2134 }
 0xd5d   : > { %3917 = vpow2.f32 %v2125_v7  ;;  %3687 = vmatpush3.msra.mxu1 %v2135_v9  ;;  %v1858_v7 = vld [vmem:[#allocation6 + $0x10] sm:$0xff] }
 0xd5e   : > { %3688 = vmatprep.subr.mxu1 %v4210_v0 }
 0xd5f   : > { %3689 = vmatpush3.msra.mxu1 %v2133_v10 }
 0xd60   : > { %3693 = vmatprep.subr.mxu1 %v4210_v0  ;;  %v2216_v16 = vpop.permute.xlu0 %2215 }
 0xd64   : > { %v2212_v18 = vpop.permute.xlu0 %2211 }
 0xd6a   : > { %v3918_v11 = vpop.eup %3917 }
 0xd6b   : > { %v2127_v12 = vsel %vm2120_vm3, %v3918_v11, 0.0 }
 0xd6c   : > { %2128 = vadd.xlane.f32.xlu1 %v2127_v12 }
 0xd7d   : > { %2213 = vrot.lane.b32.xlu1 %v4643_v59, %s4213_s4 }
 0xdf5   : > { %v2129_v13 = vpop.xlane.xlu1 %2128 }
 0xdf6   : > { %3919 = vrcp.f32 %v2129_v13 }
 0xdf9   : > { %v2214_v17 = vpop.permute.xlu1 %2213 }
 0xe03   : > { %v3920_v14 = vpop.eup %3919 }
 0xe04   : > { %v2131_v15 = vmul.f32 %v3920_v14, %v3918_v11 }
 0xe06   : > { %3691 = vmatmul.mubr.msk.f32.vlgmr.msra.gmra.mxu1 %vm2120_vm3, %v2131_v15  ;;  %v1859_v15 = vld [vmem:[#allocation6 + $0x18] sm:$0xff] }
 0xe07   : > { %3694 = vmatpush3.xpose.msk.msra.mxu1 %vm861_vm2, %v2216_v16  ;;  %3697 = vmatprep.mubr.msk.f32.mxu1 %vm4211_vm0, %v4210_v0 }
 0xe08   : > { %3695 = vmatprep.subr.mxu1 %v4210_v0 }
 0xe0b   : > { %3696 = vmatpush3.xpose.msk.msra.mxu1 %vm861_vm2, %v2214_v17 }
 0xe0c   : > { %3712 = vmatprep.subr.mxu1 %v4210_v0 }
 0xe0e   : > { %3698 = vmatmul.mubr.msk.f32.vlgmr.msra.gmra.mxu1 %vm861_vm2, %v2212_v18 }
 0xe0f   : > { %3714 = vmatprep.mubr.msk.f32.mxu1 %vm4211_vm0, %v4210_v0  ;;  %3713 = vmatpush3.msra.mxu1 %v1856_v8 }
 0xe10   : > { %3724 = vmatprep.subr.mxu1 %v4210_v0 }
 0xec6   : > { %v2207_v19 = vpop.f32.mrf.mxu1 }
 0xec7   : > { %3715 = vmatmul.mubr.msk.f32.vlgmr.msra.gmra.mxu1 %vm861_vm2, %v2207_v19 }
 0xec8   : > { %v3692_v20 = vpop.f32.mrf.mxu1  ;;  %3728 = vmatprep.mubr.msk.f32.mxu1 %vm4211_vm0, %v4210_v0 }
 0xece   : > { %v2289_v21 = vpop.f32.mrf.mxu1 }
 0xecf   : > { %v2293_v22 = vsel %vm2120_vm3, %v2289_v21, -inf }
 0xed0   : > { %2294 = vmax.xlane.f32.xlu1 %v2293_v22  ;;  %v3699_v23 = vpop.f32.mrf.mxu1 }
 0xee1   : > { %2304 = vrot.lane.b32.xlu1 %v4643_v59, %s4214_s21 }
 0xee5   : > { %2533 = vrot.lane.b32.xlu1 %v4639_v57, %s4218_s29 }
 0xee9   : > { %2529 = vrot.lane.b32.xlu1 %v4651_v63, %s4218_s29 }
 0xeed   : > { %2777 = vrot.lane.b32.xlu1 %v4643_v59, %s4220_s28 }
 0xf59   : > { %v2295_v24 = vpop.xlane.xlu1 %2294 }
 0xf5a   : > { %v2296_v25 = vsub.f32 %v2289_v21, %v2295_v24  ;;  %v3488_v21 = vld [vmem:[#allocation7] ss:$0 sm:$0xff] }
 0xf5c   : > { %v2297_v26 = vmul.f32 1.442695, %v2296_v25 }
 0xf5d   : > { %v2305_v33 = vpop.permute.xlu1 %2304 }
 0xf5e   : > { %3921 = vpow2.f32 %v2297_v26 }
 0xf61   : > { %v2534_v37 = vpop.permute.xlu1 %2533 }
 0xf65   : > { %v2530_v40 = vpop.permute.xlu1 %2529 }
 0xf69   : > { %v2778_v42 = vpop.permute.xlu1 %2777 }
 0xf6b   : > { %v3922_v27 = vpop.eup %3921 }
 0xf6c   : > { %v2299_v28 = vsel %vm2120_vm3, %v3922_v27, 0.0 }
 0xf6d   : > { %2300 = vadd.xlane.f32.xlu0 %v2299_v28 }
 0xf83   : > { %2306 = vrot.lane.b32.xlu0 %v4639_v57, %s4214_s21  ;;  %s4862_s21 = sshll.u32 %s4864_s24, 3 }
 0xf84   : > { %s763_s23 = scalar_lea.vmem %s4838_s20, %s4862_s21 }
 0xf87   : > { %2531 = vrot.lane.b32.xlu0 %v4643_v59, %s4218_s29  ;;  %v4697_v29 = vpop.f32.mrf.mxu1 }
 0xf89   : > { %v3716_v30 = vpop.f32.mrf.mxu1 }
 0xf8b   : > { %2779 = vrot.lane.b32.xlu0 %v4639_v57, %s4220_s28 }
 0xf8f   : > { %2775 = vrot.lane.b32.xlu0 %v4651_v63, %s4220_s28 }
 0xff6   : > { %v2301_v31 = vpop.xlane.xlu0 %2300 }
 0xff7   : > { %3923 = vrcp.f32 %v2301_v31 }
 0xffa   : > { %v2307_v32 = vpop.permute.xlu0 %2306 }
 0xffb   : > { %3701 = vmatpush3.msra.mxu0 %v2307_v32 }
 0xffc   : > { %3702 = vmatprep.subr.mxu0 %v4210_v0 }
 0xffd   : > { %3703 = vmatpush3.msra.mxu0 %v2305_v33  ;;  %v3061_v33 = vld [vmem:[#allocation12 + $0x18] sm:$0xff] }
 0xffe   : > { %3707 = vmatprep.subr.mxu0 %v4210_v0  ;;  %v2532_v39 = vpop.permute.xlu0 %2531 }
0x1002   : > { %v2780_v41 = vpop.permute.xlu0 %2779 }
0x1004   : > { %v3924_v34 = vpop.eup %3923 }
0x1005   : > { %v2303_v5 = vmul.f32 %v3924_v34, %v3922_v27  ;;  %v3060_v34 = vld [vmem:[#allocation12 + $0x10] sm:$0xff] }
0x1006   : > { %v2776_v43 = vpop.permute.xlu0 %2775 }
0x1007   : > { %3705 = vmatmul.mubr.msk.f32.vlgmr.msra.gmra.mxu0 %vm2120_vm3, %v2303_v5  ;;  %v3059_v5 = vld [vmem:[#allocation12 + $0x8] sm:$0xff] }
0x1008   : > { %3708 = vmatpush3.msra.mxu0 %v1857_v35  ;;  %3709 = vmatprep.mubr.msk.f32.mxu0 %vm4211_vm0, %v4210_v0  ;;  %v3150_v35 = vld [vmem:[%s4834_s16 + $0x38] sm:$0xff] }
0x1009   : > { %3717 = vmatprep.subr.mxu0 %v4210_v0 }
0x10c7   : > { %v2379_v36 = vpop.f32.mrf.mxu0 }
0x10c8   : > { %3710 = vmatmul.mubr.msk.f32.vlgmr.msra.gmra.mxu0 %vm861_vm2, %v2379_v36  ;;  %v3149_v36 = vld [vmem:[%s4834_s16 + $0x30] sm:$0xff] }
0x10c9   : > { %3718 = vmatpush3.xpose.msk.msra.mxu0 %vm861_vm2, %v2534_v37  ;;  %v3706_v38 = vpop.f32.mrf.mxu0  ;;  %3721 = vmatprep.mubr.msk.f32.mxu0 %vm4211_vm0, %v4210_v0  ;;  %v3148_v37 = vld [vmem:[%s4834_s16 + $0x28] sm:$0xff] }
0x10ca   : > { %3719 = vmatprep.subr.mxu0 %v4210_v0  ;;  %v3147_v38 = vld [vmem:[%s4834_s16 + $0x20] sm:$0xff] }
0x10cd   : > { %3720 = vmatpush3.xpose.msk.msra.mxu0 %vm861_vm2, %v2532_v39  ;;  %v3146_v39 = vld [vmem:[%s4834_s16 + $0x18] sm:$0xff] }
0x10ce   : > { %3736 = vmatprep.subr.mxu0 %v4210_v0 }
0x10d0   : > { %3722 = vmatmul.mubr.msk.f32.vlgmr.msra.gmra.mxu0 %vm861_vm2, %v2530_v40 }
0x10d1   : > { %3737 = vmatpush3.xpose.msk.msra.mxu0 %vm861_vm2, %v2780_v41  ;;  %3740 = vmatprep.mubr.msk.f32.mxu0 %vm4211_vm0, %v4210_v0 }
0x10d2   : > { %3738 = vmatprep.subr.mxu0 %v4210_v0 }
0x10d5   : > { %3739 = vmatpush3.xpose.msk.msra.mxu0 %vm861_vm2, %v2778_v42 }
0x10d6   : > { %3755 = vmatprep.subr.mxu0 %v4210_v0 }
0x10d8   : > { %3741 = vmatmul.mubr.msk.f32.vlgmr.msra.gmra.mxu0 %vm861_vm2, %v2776_v43 }
0x10d9   : > { %3763 = vmatprep.mubr.msk.f32.mxu0 %vm4211_vm0, %v4210_v0  ;;  %3756 = vmatpush3.msra.mxu0 %v3061_v33 }
0x10da   : > { %3757 = vmatprep.subr.mxu0 %v4210_v0 }
0x10db   : > { %3758 = vmatpush3.msra.mxu0 %v3060_v34 }
0x10dc   : > { %3759 = vmatprep.subr.mxu0 %v4210_v0 }
0x10dd   : > { %3760 = vmatpush3.msra.mxu0 %v3059_v5 }
0x10de   : > { %3761 = vmatprep.subr.mxu0 %v4210_v0 }
0x1188   : > { %v2452_v44 = vpop.f32.mrf.mxu0 }
0x1189   : > { %v2526_v16 = vadd.f32 %v4697_v29, %v2452_v44  ;;  %v3489_v44 = vld [vmem:[%s4830_s12] ss:$0 sm:$0xff] }
0x118a   : > { %v3711_v45 = vpop.f32.mrf.mxu0 }
0x1190   : > { %v2607_v46 = vpop.f32.mrf.mxu0 }
0x1191   : > { %v2611_v47 = vsel %vm2120_vm3, %v2607_v46, -inf }
0x1192   : > { %2612 = vmax.xlane.f32.xlu1 %v2611_v47  ;;  %v3723_v48 = vpop.f32.mrf.mxu0 }
0x1198   : > { %v2853_v49 = vpop.f32.mrf.mxu0 }
0x1199   : > { %v2857_v51 = vsel %vm2120_vm3, %v2853_v49, -inf }
0x119a   : > { %v3742_v50 = vpop.f32.mrf.mxu0 }
0x119b   : > { %v3144_v50 = vld [vmem:[%s4834_s16 + $0x8] sm:$0xff] }
0x11a3   : > { %2622 = vrot.lane.b32.xlu1 %v4643_v59, %s4217_s26 }
0x11c7   : > { %2858 = vmax.xlane.f32.xlu1 %v2857_v51  ;;  %v3143_v51 = vld [vmem:[%s4834_s16] sm:$0xff] }
0x11d8   : > { %2868 = vrot.lane.b32.xlu1 %v4643_v59, %s4861_s2 }
0x121b   : > { %v2613_v52 = vpop.xlane.xlu1 %2612 }
0x121c   : > { %v2614_v53 = vsub.f32 %v2607_v46, %v2613_v52  ;;  %v3490_v46 = vld [vmem:[%s4831_s13] ss:$0 sm:$0xff]  ;;  %v3491_v52 = vld [vmem:[#allocation13] ss:$0 sm:$0xff] }
0x121e   : > { %v2615_v55 = vmul.f32 1.442695, %v2614_v53 }
0x121f   : > { %v2623_v60 = vpop.permute.xlu1 %2622 }
0x1220   : > { %3925 = vpow2.f32 %v2615_v55 }
0x122d   : > { %v3926_v56 = vpop.eup %3925 }
0x122e   : > { %v2617_v58 = vsel %vm2120_vm3, %v3926_v56, 0.0 }
0x122f   : > { %2618 = vadd.xlane.f32.xlu0 %v2617_v58 }
0x1245   : > { %2624 = vrot.lane.b32.xlu0 %v4639_v57, %s4217_s26 }
0x1250   : > { %v2859_v61 = vpop.xlane.xlu1 %2858 }
0x1251   : > { %v2860_v62 = vsub.f32 %v2853_v49, %v2859_v61  ;;  %v3145_v49 = vld [vmem:[%s4834_s16 + $0x10] sm:$0xff] }
0x1253   : > { %v2861_v63 = vmul.f32 1.442695, %v2860_v62 }
0x1254   : > { %v2869_v13 = vpop.permute.xlu1 %2868 }
0x1255   : > { %3927 = vpow2.f32 %v2861_v63 }
0x1262   : > { %v3928_v1 = vpop.eup %3927 }
0x1263   : > { %v2863_v2 = vsel %vm2120_vm3, %v3928_v1, 0.0 }
0x1264   : > { %2864 = vadd.xlane.f32.xlu0 %v2863_v2 }
0x127a   : > { %2870 = vrot.lane.b32.xlu0 %v4639_v57, %s4861_s2 }
0x12b8   : > { %v2619_v59 = vpop.xlane.xlu0 %2618 }
0x12b9   : > { %3929 = vrcp.f32 %v2619_v59 }
0x12bc   : > { %v2625_v3 = vpop.permute.xlu0 %2624 }
0x12bd   : > { %3725 = vmatpush3.msra.mxu1 %v2625_v3 }
0x12be   : > { %3726 = vmatprep.subr.mxu1 %v4210_v0 }
0x12bf   : > { %3727 = vmatpush3.msra.mxu1 %v2623_v60  ;;  %v3493_v60 = vld [vmem:[#allocation15] ss:$0 sm:$0xff] }
0x12c0   : > { %3731 = vmatprep.subr.mxu1 %v4210_v0 }
0x12c6   : > { %v3930_v4 = vpop.eup %3929 }
0x12c7   : > { %v2621_v6 = vmul.f32 %v3930_v4, %v3926_v56 }
0x12c9   : > { %3729 = vmatmul.mubr.msk.f32.vlgmr.msra.gmra.mxu1 %vm2120_vm3, %v2621_v6 }
0x12ca   : > { %3732 = vmatpush3.msra.mxu1 %v1858_v7  ;;  %3733 = vmatprep.mubr.msk.f32.mxu1 %vm4211_vm0, %v4210_v0 }
0x12cb   : > { %3743 = vmatprep.subr.mxu1 %v4210_v0 }
0x12ed   : > { %v2865_v57 = vpop.xlane.xlu0 %2864 }
0x12ee   : > { %3931 = vrcp.f32 %v2865_v57 }
0x12f1   : > { %v2871_v11 = vpop.permute.xlu0 %2870 }
0x12fb   : > { %v3932_v9 = vpop.eup %3931 }
0x12fc   : > { %v2867_v14 = vmul.f32 %v3932_v9, %v3928_v1 }
0x1389   : > { %v2697_v10 = vpop.f32.mrf.mxu1 }
0x138a   : > { %3734 = vmatmul.mubr.msk.f32.vlgmr.msra.gmra.mxu1 %vm861_vm2, %v2697_v10 }
0x138b   : > { %3744 = vmatpush3.msra.mxu1 %v2871_v11  ;;  %v3730_v12 = vpop.f32.mrf.mxu1  ;;  %3747 = vmatprep.mubr.msk.f32.mxu1 %vm4211_vm0, %v4210_v0  ;;  %v3495_v11 = vld [vmem:[%s4836_s18] ss:$0 sm:$0xff] }
0x138c   : > { %3745 = vmatprep.subr.mxu1 %v4210_v0 }
0x138d   : > { %3746 = vmatpush3.msra.mxu1 %v2869_v13  ;;  %v3496_v13 = vld [vmem:[%s4837_s19] ss:$0 sm:$0xff] }
0x138e   : > { %3748 = vmatmul.mubr.msk.f32.vlgmr.msra.gmra.mxu1 %vm2120_vm3, %v2867_v14  ;;  %3750 = vmatprep.subr.mxu1 %v4210_v0 }
0x138f   : > { %3752 = vmatprep.mubr.msk.f32.mxu1 %vm4211_vm0, %v4210_v0  ;;  %3751 = vmatpush3.msra.mxu1 %v1859_v15 }
0x1390   : > { %3766 = vmatprep.subr.mxu1 %v4210_v0 }
0x144a   : > { %v2770_v17 = vpop.f32.mrf.mxu1 }
0x144b   : > { %v2774_v18 = vadd.f32 %v2770_v17, %v2526_v16 }
0x144c   : > { %v3735_v8 = vpop.f32.mrf.mxu1 }
0x144e   : > { %v2943_v19 = vpop.f32.mrf.mxu1 }
0x144f   : > { %3753 = vmatmul.mubr.msk.f32.vlgmr.msra.gmra.mxu1 %vm861_vm2, %v2943_v19 }
0x1450   : > { %v3749_v20 = vpop.f32.mrf.mxu1  ;;  %3782 = vmatprep.mubr.msk.f32.mxu1 %vm4211_vm0, %v4210_v0  ;;  %3767 = vmatpush3.msra.mxu1 %v3150_v35 }
0x1451   : > { %3768 = vmatprep.subr.mxu1 %v4210_v0 }
0x1452   : > { %3769 = vmatpush3.msra.mxu1 %v3149_v36 }
0x1453   : > { %3770 = vmatprep.subr.mxu1 %v4210_v0 }
0x1454   : > { %3771 = vmatpush3.msra.mxu1 %v3148_v37 }
0x1455   : > { %3772 = vmatprep.subr.mxu1 %v4210_v0 }
0x1456   : > { %3773 = vmatpush3.msra.mxu1 %v3147_v38 }
0x1457   : > { %3774 = vmatprep.subr.mxu1 %v4210_v0 }
0x1458   : > { %3775 = vmatpush3.msra.mxu1 %v3146_v39 }
0x1459   : > { %3776 = vmatprep.subr.mxu1 %v4210_v0 }
0x145a   : > { %3777 = vmatpush3.msra.mxu1 %v3145_v49 }
0x145b   : > { %3778 = vmatprep.subr.mxu1 %v4210_v0 }
0x145c   : > { %3779 = vmatpush3.msra.mxu1 %v3144_v50 }
0x145d   : > { %3780 = vmatprep.subr.mxu1 %v4210_v0 }
0x145e   : > { %3781 = vmatpush3.msra.mxu1 %v3143_v51 }
0x150f   : > { %v3016_v22 = vpop.f32.mrf.mxu1 }
0x1510   : > { %v3020_v23 = vadd.f32 %v3016_v22, %v2774_v18 }
0x1511   : > { %v3754_v24 = vpop.f32.mrf.mxu1 }
0x1512   : > { %v3027_v25 = vadd.f32 %v3488_v21, %v3020_v23 }
0x1514   : > { %v3028_v26 = vadd.f32 %v3027_v25, %v4633_v54  ;;  %v3058_v54 = vld [vmem:[#allocation12] sm:$0xff] }
0x1515   : > { %3762 = vmatpush3.msra.mxu0 %v3058_v54 }
0x1516   : > { %v3031_v27 = vsel %vm783_vm1, %v3028_v26, 0.0 }
0x1517   : > { %3032 = vadd.xlane.f32.xlu1 %v3031_v27 }
0x15a0   : > { %v3033_v28 = vpop.xlane.xlu1 %3032 }
0x15a1   : > { %v3034_v29 = vmul.f32 0.03125, %v3033_v28 }
0x15a3   : > { %v3035_v30 = vsub.f32 %v3028_v26, %v3034_v29 }
0x15a5   : > { %v3036_v31 = vmul.f32 %v3035_v30, %v3035_v30 }
0x15a7   : > { %v3037_v32 = vsel %vm783_vm1, %v3036_v31, 0.0 }
0x15a8   : > { %3038 = vadd.xlane.f32.xlu0 %v3037_v32 }
0x1631   : > { %v3039_v40 = vpop.xlane.xlu0 %3038 }
0x1632   : > { %v3040_v41 = vmul.f32 0.03125, %v3039_v40 }
0x1634   : > { %v3041_v42 = vadd.f32 1e-05, %v3040_v41 }
0x1636   : > { %3933 = vrsqrt.f32 %v3041_v42 }
0x1643   : > { %v3934_v43 = vpop.eup %3933 }
0x1644   : > { %v3043_v45 = vmul.f32 %v3934_v43, %v3035_v30 }
0x1646   : > { %v3050_v47 = vmul.f32 %v3489_v44, %v3043_v45 }
0x1648   : > { %v3057_v48 = vadd.f32 %v3490_v46, %v3050_v47 }
0x164a   : > { %3764 = vmatmul.mubr.msk.f32.vlgmr.msra.gmra.mxu0 %vm783_vm1, %v3057_v48 }
0x170a   : > { %v3138_v53 = vpop.f32.mrf.mxu0 }
0x170b   : > { %v3139_v55 = vadd.f32 %v3491_v52, %v3138_v53 }
0x170c   : > { %v3765_v56 = vpop.f32.mrf.mxu0 }
0x170d   : > { %v3142_v58 = vmax.f32 %v3139_v55, 0.0 }
0x170f   : > { %3783 = vmatmul.mubr.msk.f32.vlgmr.msra.gmra.mxu1 %vm3158_vm4, %v3142_v58 }
0x17cf   : > { %v3228_v61 = vpop.f32.mrf.mxu1 }
0x17d0   : > { %v3229_v62 = vadd.f32 %v3493_v60, %v3228_v61 }
0x17d1   : > { %v3784_v63 = vpop.f32.mrf.mxu1 }
0x17d2   : > { %v3232_v1 = vadd.f32 %v3229_v62, %v3057_v48 }
0x17d4   : > { %v3235_v2 = vsel %vm783_vm1, %v3232_v1, 0.0 }
0x17d5   : > { %3236 = vadd.xlane.f32.xlu0 %v3235_v2 }
0x185e   : > { %v3237_v59 = vpop.xlane.xlu0 %3236 }
0x185f   : > { %v3238_v3 = vmul.f32 0.03125, %v3237_v59 }
0x1861   : > { %v3239_v0 = vsub.f32 %v3232_v1, %v3238_v3 }
0x1863   : > { %v3240_v4 = vmul.f32 %v3239_v0, %v3239_v0 }
0x1865   : > { %v3241_v6 = vsel %vm783_vm1, %v3240_v4, 0.0 }
0x1866   : > { %3242 = vadd.xlane.f32.xlu1 %v3241_v6 }
0x18ef   : > { %v3243_v7 = vpop.xlane.xlu1 %3242 }
0x18f0   : > { %v3244_v57 = vmul.f32 0.03125, %v3243_v7 }
0x18f2   : > { %v3245_v9 = vadd.f32 1e-05, %v3244_v57 }
0x18f4   : > { %3935 = vrsqrt.f32 %v3245_v9 }
0x1901   : > { %v3936_v10 = vpop.eup %3935 }
0x1902   : > { %v3247_v12 = vmul.f32 %v3936_v10, %v3239_v0 }
0x1904   : > { %v3254_v14 = vmul.f32 %v3495_v11, %v3247_v12 }
0x1906   : > { %v3261_v15 = vadd.f32 %v3496_v13, %v3254_v14 }
0x1908   : > { %3262 = vst.msk [vmem:[%s763_s23] sm:$0xff] %vm783_vm1, %v3261_v15 }
0x1909 PF: > { %s35_s1 = sadd.s32 1, %s4197_s1  }
0x190a   : > { %p32_p2 = scmp.ge.s32.totalorder %s35_s1, 4  }
0x190c   :  { %34 = sbr.rel (!%p32_p2) target bundleno = 11 (0xb), region = 170 }
0x1911   :  { %3282 = vsyncpa [#allocation3], 1 }
0x1912   :  { %3284 = vsyncpa [#allocation3 + $0x1], 1 }
0x1913   :  { %3285 = vsyncpa [#allocation5], 1 }
0x1914   :  { %3286 = vsyncpa [#allocation8], 1 }
0x1915   :  { %3287 = vsyncpa [#allocation11], 1 }
0x1916   :  { %3288 = vsyncpa [#allocation14], 1 }

// kernel: interaction_block_forward.7
= control target key start
LH: loop header
LB: loop body
LE: loop exit
PB: predicated region body
PF: predicated region fallthrough
CT: control target
= control target key end

     0   :  { %s4920_s0 = inlined_call_operand.vmem [shape: f32[2,16,32], index: 0, kind: input, shape index: {}]   ;;  %s4921_s1 = inlined_call_operand.vmem [shape: f32[2,8,32], index: 1, kind: input, shape index: {}]   ;;  %s4922_s2 = inlined_call_operand.vmem [shape: f32[32,96], index: 2, kind: input, shape index: {}]   ;;  %s4923_s3 = inlined_call_operand.vmem [shape: f32[1,96], index: 3, kind: input, shape index: {}]   ;;  %s4924_s4 = inlined_call_operand.vmem [shape: f32[32,32], index: 4, kind: input, shape index: {}]   ;;  %s4925_s5 = inlined_call_operand.vmem [shape: f32[1,32], index: 5, kind: input, shape index: {}]   ;;  %s4926_s6 = inlined_call_operand.vmem [shape: f32[32,96], index: 6, kind: input, shape index: {}]   ;;  %s4927_s7 = inlined_call_operand.vmem [shape: f32[1,96], index: 7, kind: input, shape index: {}]   ;;  %s4928_s8 = inlined_call_operand.vmem [shape: f32[32,32], index: 8, kind: input, shape index: {}]   ;;  %s4929_s9 = inlined_call_operand.vmem [shape: f32[1,32], index: 9, kind: input, shape index: {}]   ;;  %s4930_s10 = inlined_call_operand.vmem [shape: f32[1,32], index: 10, kind: input, shape index: {}]   ;;  %s4931_s11 = inlined_call_operand.vmem [shape: f32[1,32], index: 11, kind: input, shape index: {}]   ;;  %s4932_s12 = inlined_call_operand.vmem [shape: f32[1,32], index: 12, kind: input, shape index: {}]   ;;  %s4933_s13 = inlined_call_operand.vmem [shape: f32[1,32], index: 13, kind: input, shape index: {}]   ;;  %s4934_s14 = inlined_call_operand.vmem [shape: f32[32,64], index: 14, kind: input, shape index: {}]   ;;  %s4935_s15 = inlined_call_operand.vmem [shape: f32[1,64], index: 15, kind: input, shape index: {}]   ;;  %s4936_s16 = inlined_call_operand.vmem [shape: f32[64,32], index: 16, kind: input, shape index: {}]   ;;  %s4937_s17 = inlined_call_operand.vmem [shape: f32[1,32], index: 17, kind: input, shape index: {}]   ;;  %s4938_s18 = inlined_call_operand.vmem [shape: f32[1,32], index: 18, kind: input, shape index: {}]   ;;  %s4939_s19 = inlined_call_operand.vmem [shape: f32[1,32], index: 19, kind: input, shape index: {}]   ;;  %s4940_s20 = inlined_call_operand.vmem [shape: f32[1,32], index: 20, kind: input, shape index: {}]   ;;  %s4941_s21 = inlined_call_operand.vmem [shape: f32[1,32], index: 21, kind: input, shape index: {}]   ;;  %s4942_s22 = inlined_call_operand.hbm [shape: f32[2,16,32], index: 22, kind: output, shape index: {}]  }
   0x1   :  { %4961 = sst [smem:[#allocation10_spill]] %s4920_s0 }
   0x2   :  { %4962 = sst [smem:[#allocation11_spill]] %s4921_s1 }
   0x3   :  { %4963 = sst [smem:[#allocation12_spill]] %s4922_s2 }
   0x4   :  { %4964 = sst [smem:[#allocation13_spill]] %s4923_s3 }
   0x5   :  { %4965 = sst [smem:[#allocation14_spill]] %s4924_s4 }
   0x6   :  { %4966 = sst [smem:[#allocation15_spill]] %s4925_s5 }
   0x7   :  { %4967 = sst [smem:[#allocation16_spill]] %s4926_s6 }
   0x8   :  { %4968 = sst [smem:[#allocation17_spill]] %s4927_s7 }
   0x9   :  { %4969 = sst [smem:[#allocation18_spill]] %s4928_s8 }
   0xa   :  { %27 = vsyncpa [#allocation3], 0 }
   0xb   :  { %29 = vsyncpa [#allocation3 + $0x1], 0  ;;  %s4437_s3 = smov 0   ;;  %s4439_s28 = smov 0  }
   0xc   :  { %s4441_s29 = smov 0   ;;  %s4443_s30 = smov 0  }
   0xd LB: > { %4970 = sst [smem:[#allocation5_spill]] %s4292_s3  ;;  %s4458_s4 = sadd.s32 4294967295, %s4304_s30   ;;  %s4304_s30 = sphi %s4443_s30, %s4995_s30   ;;  %s4300_s29 = sphi %s4441_s29, %s4997_s29   ;;  %s4296_s28 = sphi %s4439_s28, %s4999_s28   ;;  %s4292_s3 = sphi %s4437_s3, %s4998_s3  }
   0xe   : > { %4971 = sst [smem:[#allocation6_spill]] %s4300_s29  ;;  %s3700_s0 = sadd.s32 4294967294, %s4304_s30  }
   0xf   : > { %s4462_s23 = sadd.s32 1, %s4304_s30   ;;  %s514_s1 = sadd.s32 1, %s4300_s29 }
  0x10   : > { %4972 = sst [smem:[#allocation7_spill]] %s4462_s23  ;;  %s511_s5 = ssub.s32 %s4304_s30, %s4462_s23 }
  0x11   : > { %p524_p0 = scmp.ne.s32.totalorder %s4300_s29, %s4296_s28  ;;  %p512_p1 = scmp.eq.s32.totalorder %s511_s5, 0 }
  0x12   : > { %p525_p2 = scmp.eq.s32.totalorder %s4458_s4, 1  ;;  %p530_p3 = scmp.ne.s32.totalorder %s4296_s28, %s4292_s3 }
  0x13   : > { %p531_p4 = scmp.eq.s32.totalorder %s3700_s0, 1  ;;  %p3703_p7 = scmp.ge.s32.totalorder %s4304_s30, 1 }
  0x14   : > { %s4473_s24 = scalar_select %p512_p1, %s4300_s29, %s514_s1  }
  0x15   : > { %p4475_p5 = por %p525_p2, %p524_p0  ;;  %p4479_p6 = por %p531_p4, %p530_p3 }
  0x16   : > { %4973 = sst [smem:[#allocation8_spill]] %s4473_s24  ;;  %p624_p8 = scmp.lt.s32.totalorder %s4304_s30, 3 }
  0x17   : > { %s4975_s25 = scalar_select %p4479_p6, 1, 0 }
  0x18   : > { %p625_p9 = pnand %p3703_p7, %p624_p8 }
  0x19   : > { %4976 = sst [smem:[#allocation9_spill]] %s4975_s25  ;;  %p690_p10 = scmp.lt.s32.totalorder (!%p625_p9), %s4458_s4, 1 }
  0x1a   : > { %628 = sbr.rel (%p625_p9) target bundleno = 6341 (0x18c5), region = 108  ;;  %s4977_s27 = sld [smem:[#allocation12_spill]] (!%p625_p9) }
  0x1b   : > { %s4978_s25 = sld [smem:[#allocation10_spill]] (!%p625_p9)  ;;  %s4309_s2 = smov (!%p625_p9), 64  }
  0x1c   : > { %s4979_s26 = sld [smem:[#allocation13_spill]] (!%p625_p9)  ;;  %s4310_s0 = smov (!%p625_p9), 56  }
  0x1d   : > { %s4952_s1 = smov (!%p625_p9), 80   ;;  %s4956_s24 = smov (!%p625_p9), 112  }
  0x1e   : > { %s4951_s5 = smov (!%p625_p9), 72   ;;  %s4984_s7 = sld [smem:[#allocation17_spill]] (!%p625_p9) }
  0x1f   : > { %s4496_s29 = scalar_select %p690_p10, %s4458_s4, 1  ;;  %vm718_vm0 = vcmask 261120   ;;  %vm808_vm1 = vcmask 64512   ;;  %vm894_vm2 = vcmask 130048   ;;  %vm4318_vm3 = vmmov 0  }
  0x20   : > { %v705_v0 = vld [vmem:[%s4977_s27 + $0x18] sm:$0xff]  ;;  %v704_v1 = vld [vmem:[%s4977_s27 + $0x10] sm:$0xff]  ;;  %v703_v2 = vld [vmem:[%s4977_s27 + $0x8] sm:$0xff]  ;;  %s4987_s8 = sld [smem:[#allocation18_spill]]  ;;  %vm3438_vm4 = vcmask 523264  }
  0x21   : > { %3911 = vmatprep.subr.mxu0 %v705_v0  ;;  %v702_v3 = vld [vmem:[%s4977_s27] sm:$0xff]  ;;  %s3796_s23 = sshll.u32 %s4496_s29, 4 }
  0x22   : > { %3912 = vmatpush3.msra.mxu0 %v705_v0  ;;  %s694_s3 = scalar_lea.vmem %s4978_s25, %s3796_s23  ;;  %v3708_v6 = vld [vmem:[%s4979_s26] ss:$0 sm:$0xff]  ;;  %s4307_s23 = smov 96  }
  0x23   : > { %3913 = vmatprep.subr.mxu0 %v704_v1  ;;  %v4505_v4 = vld [vmem:[%s694_s3] sm:$0xff]  ;;  %v4507_v5 = vld [vmem:[%s694_s3 + $0x8] sm:$0xff]  ;;  %s4955_s3 = smov 88   ;;  %s4958_s25 = smov 120  }
  0x24   : > { %3914 = vmatpush3.msra.mxu0 %v704_v1  ;;  %3919 = vmatprep.mubr.msk.f32.mxu0 %vm718_vm0, %v4505_v4  ;;  %s4953_s26 = smov 104  }
  0x25   : > { %3915 = vmatprep.subr.mxu0 %v703_v2 }
  0x26   : > { %3916 = vmatpush3.msra.mxu0 %v703_v2 }
  0x27   : > { %3917 = vmatprep.subr.mxu0 %v702_v3 }
  0x28   : > { %3918 = vmatpush3.msra.mxu0 %v702_v3 }
  0x29   : > { %3920 = vmatmul.mubr.msk.f32.vlgmr.msra.gmra.mxu0 %vm718_vm0, %v4507_v5 }
  0xe9   : > { %v3921_v7 = vpop.f32.mrf.mxu0 }
  0xea   : > { %v4516_v8 = vadd.f32 %v3921_v7, %v3708_v6 }
  0xeb   : > { %v791_v9 = vpop.f32.mrf.mxu0 }
  0xec   : > { %v4518_v10 = vadd.f32 %v3708_v6, %v791_v9  ;;  %1010 = vrot.lane.b32.xlu1 %v4516_v8, %s4955_s3  ;;  %806 = vrot.lane.b32.xlu0 %v4516_v8, %s4307_s23  ;;  %v4534_v12 = vmul.f32 0.35355338, %v4516_v8 }
  0xee   : > { %v4525_v11 = vmul.f32 0.35355338, %v4518_v10 }
  0xf0   : > { %1008 = vrot.lane.b32.xlu1 %v4518_v10, %s4955_s3  ;;  %804 = vrot.lane.b32.xlu0 %v4518_v10, %s4307_s23  ;;  %s4981_s3 = sld [smem:[#allocation16_spill]] }
  0xf1   : > { %3926 = vmatprep.mubr.msk.f32.mxu1 %vm808_vm1, %v4525_v11 }
  0xf4   : > { %1006 = vrot.lane.b32.xlu1 %v4534_v12, %s4958_s25  ;;  %1004 = vrot.lane.b32.xlu0 %v4525_v11, %s4958_s25  ;;  %s4983_s25 = sld [smem:[#allocation15_spill]] }
 0x15e   : > { %v807_v13 = vpop.permute.xlu0 %806  ;;  %v1011_v14 = vpop.permute.xlu1 %1010 }
 0x15f   : > { %3922 = vmatprep.subr.msk.mxu1 %vm808_vm1, %v807_v13 }
 0x160   : > { %3923 = vmatpush3.xpose.msk.msra.mxu1 %vm808_vm1, %v807_v13 }
 0x162   : > { %v805_v15 = vpop.permute.xlu0 %804  ;;  %v1009_v17 = vpop.permute.xlu1 %1008 }
 0x163   : > { %3924 = vmatprep.subr.msk.mxu1 %vm808_vm1, %v805_v15 }
 0x164   : > { %3925 = vmatpush3.xpose.msk.msra.mxu1 %vm808_vm1, %v805_v15 }
 0x165   : > { %3936 = vmatprep.subr.msk.mxu1 %vm808_vm1, %v1011_v14 }
 0x166   : > { %v1005_v16 = vpop.permute.xlu0 %1004  ;;  %v1007_v18 = vpop.permute.xlu1 %1006 }
 0x167   : > { %3927 = vmatmul.mubr.msk.f32.vlgmr.msra.gmra.mxu1 %vm808_vm1, %v4534_v12 }
 0x168   : > { %3937 = vmatpush3.xpose.msk.msra.mxu1 %vm808_vm1, %v1011_v14  ;;  %3940 = vmatprep.mubr.msk.f32.mxu1 %vm808_vm1, %v1005_v16 }
 0x169   : > { %3938 = vmatprep.subr.msk.mxu1 %vm808_vm1, %v1009_v17 }
 0x16c   : > { %3939 = vmatpush3.xpose.msk.msra.mxu1 %vm808_vm1, %v1009_v17 }
 0x16f   : > { %3941 = vmatmul.mubr.msk.f32.vlgmr.msra.gmra.mxu1 %vm808_vm1, %v1007_v18 }
 0x227   : > { %v3928_v19 = vpop.f32.mrf.mxu1 }
 0x228   : > { %v898_v20 = vsel %vm894_vm2, %v3928_v19, -inf }
 0x229   : > { %899 = vmax.xlane.f32.xlu1 %v898_v20  ;;  %v885_v21 = vpop.f32.mrf.mxu1 }
 0x22a   : > { %v895_v22 = vsel %vm894_vm2, %v885_v21, -inf }
 0x22b   : > { %896 = vmax.xlane.f32.xlu0 %v895_v22 }
 0x22f   : > { %v3942_v23 = vpop.f32.mrf.mxu1 }
 0x230   : > { %v1098_v26 = vsel %vm894_vm2, %v3942_v23, -inf }
 0x231   : > { %v1086_v24 = vpop.f32.mrf.mxu1 }
 0x232   : > { %v1095_v25 = vsel %vm894_vm2, %v1086_v24, -inf }
 0x233   : > { %1096 = vmax.xlane.f32.xlu0 %v1095_v25 }
 0x237   : > { %1099 = vmax.xlane.f32.xlu0 %v1098_v26 }
 0x23a   : > { %919 = vrot.lane.b32.xlu1 %v4516_v8, %s4309_s2 }
 0x2b2   : > { %v900_v27 = vpop.xlane.xlu1 %899 }
 0x2b3   : > { %v902_v28 = vsub.f32 %v3928_v19, %v900_v27 }
 0x2b4   : > { %v897_v29 = vpop.xlane.xlu0 %896 }
 0x2b5   : > { %v905_v30 = vmul.f32 1.442695, %v902_v28  ;;  %v901_v31 = vsub.f32 %v885_v21, %v897_v29 }
 0x2b6   : > { %v920_v32 = vpop.permute.xlu1 %919 }
 0x2b7   : > { %4164 = vpow2.f32 %v905_v30  ;;  %v903_v33 = vmul.f32 1.442695, %v901_v31  ;;  %3929 = vmatprep.subr.mxu0 %v920_v32 }
 0x2b8   : > { %3930 = vmatpush3.msra.mxu0 %v920_v32 }
 0x2b9   : > { %4166 = vpow2.f32 %v903_v33 }
 0x2bc   : > { %v1097_v34 = vpop.xlane.xlu0 %1096 }
 0x2bd   : > { %v1101_v44 = vsub.f32 %v1086_v24, %v1097_v34 }
 0x2bf   : > { %v1103_v45 = vmul.f32 1.442695, %v1101_v44 }
 0x2c0   : > { %v1100_v35 = vpop.xlane.xlu0 %1099 }
 0x2c1   : > { %v1102_v36 = vsub.f32 %v3942_v23, %v1100_v35 }
 0x2c3   : > { %v1105_v37 = vmul.f32 1.442695, %v1102_v36 }
 0x2c4   : > { %v4165_v38 = vpop.eup %4164 }
 0x2c5   : > { %4168 = vpow2.f32 %v1105_v37  ;;  %v910_v39 = vsel %vm894_vm2, %v4165_v38, 0.0 }
 0x2c6   : > { %v4167_v40 = vpop.eup %4166  ;;  %911 = vadd.xlane.f32.xlu0 %v910_v39  ;;  %4170 = vpow2.f32 %v1103_v45 }
 0x2c7   : > { %v907_v41 = vsel %vm894_vm2, %v4167_v40, 0.0 }
 0x2c8   : > { %908 = vadd.xlane.f32.xlu1 %v907_v41 }
 0x2d2   : > { %v4169_v42 = vpop.eup %4168 }
 0x2d3   : > { %v1110_v43 = vsel %vm894_vm2, %v4169_v42, 0.0  ;;  %v4171_v46 = vpop.eup %4170 }
 0x2d4   : > { %1111 = vadd.xlane.f32.xlu0 %v1110_v43  ;;  %v1107_v47 = vsel %vm894_vm2, %v4171_v46, 0.0 }
 0x2d9   : > { %1119 = vrot.lane.b32.xlu1 %v4516_v8, %s4310_s0 }
 0x2ea   : > { %917 = vrot.lane.b32.xlu0 %v4518_v10, %s4309_s2  ;;  %s3707_s2 = sshll.u32 %s4496_s29, 3  ;;  %s4989_s29 = smov 88  }
 0x2ee   : > { %1372 = vrot.lane.b32.xlu0 %v4516_v8, %s4952_s1 }
 0x2f2   : > { %1366 = vrot.lane.b32.xlu0 %v4525_v11, %s4956_s24 }
 0x2f6   : > { %1655 = vrot.lane.b32.xlu0 %v4516_v8, %s4951_s5 }
 0x2fa   : > { %1649 = vrot.lane.b32.xlu0 %v4525_v11, %s4953_s26 }
 0x2fd   : > { %1108 = vadd.xlane.f32.xlu1 %v1107_v47 }
 0x30e   : > { %1117 = vrot.lane.b32.xlu1 %v4518_v10, %s4310_s0  ;;  %s4991_s0 = smov 80  }
 0x312   : > { %1370 = vrot.lane.b32.xlu1 %v4518_v10, %s4952_s1  ;;  %s4315_s1 = smov 48  }
 0x316   : > { %1368 = vrot.lane.b32.xlu1 %v4534_v12, %s4956_s24  ;;  %s4982_s24 = smov %s4981_s3 }
 0x31a   : > { %1653 = vrot.lane.b32.xlu1 %v4518_v10, %s4951_s5  ;;  %s4980_s5 = sld [smem:[#allocation14_spill]] }
 0x31e   : > { %1651 = vrot.lane.b32.xlu1 %v4534_v12, %s4953_s26  ;;  %s4316_s26 = smov 40  }
 0x320   : > { %v708_v63 = vld [vmem:[%s4980_s5 + $0x8] sm:$0xff]  ;;  %v707_v0 = vld [vmem:[%s4980_s5] sm:$0xff] }
 0x34f   : > { %v912_v48 = vpop.xlane.xlu0 %911 }
 0x350   : > { %4172 = vrcp.f32 %v912_v48 }
 0x351   : > { %v909_v49 = vpop.xlane.xlu1 %908 }
 0x352   : > { %4174 = vrcp.f32 %v909_v49 }
 0x355   : > { %v1120_v56 = vpop.permute.xlu1 %1119 }
 0x35d   : > { %v1112_v50 = vpop.xlane.xlu0 %1111  ;;  %v4173_v51 = vpop.eup %4172 }
 0x35e   : > { %v916_v55 = vmul.f32 %v4173_v51, %v4165_v38  ;;  %4176 = vrcp.f32 %v1112_v50  ;;  %v709_v50 = vld [vmem:[%s4980_s5 + $0x10] sm:$0xff] }
 0x35f   : > { %v4175_v52 = vpop.eup %4174 }
 0x360   : > { %v915_v53 = vmul.f32 %v4175_v52, %v4167_v40 }
 0x361   : > { %v918_v54 = vpop.permute.xlu0 %917 }
 0x362   : > { %3931 = vmatprep.subr.mxu0 %v918_v54  ;;  %3933 = vmatprep.mubr.msk.f32.mxu0 %vm894_vm2, %v915_v53 }
 0x363   : > { %3932 = vmatpush3.msra.mxu0 %v918_v54 }
 0x364   : > { %3934 = vmatmul.mubr.msk.f32.vlgmr.msra.gmra.mxu0 %vm894_vm2, %v916_v55  ;;  %3943 = vmatprep.subr.mxu0 %v1120_v56 }
 0x365   : > { %3944 = vmatpush3.msra.mxu0 %v1120_v56  ;;  %v1373_v2 = vpop.permute.xlu0 %1372 }
 0x369   : > { %v1367_v9 = vpop.permute.xlu0 %1366 }
 0x36b   : > { %v4177_v59 = vpop.eup %4176 }
 0x36c   : > { %v1116_v62 = vmul.f32 %v4177_v59, %v4169_v42 }
 0x36d   : > { %v1656_v12 = vpop.permute.xlu0 %1655 }
 0x371   : > { %v1650_v14 = vpop.permute.xlu0 %1649 }
 0x386   : > { %v1109_v57 = vpop.xlane.xlu1 %1108 }
 0x387   : > { %4178 = vrcp.f32 %v1109_v57 }
 0x38a   : > { %v1118_v58 = vpop.permute.xlu1 %1117 }
 0x38b   : > { %3945 = vmatprep.subr.mxu0 %v1118_v58 }
 0x38c   : > { %3946 = vmatpush3.msra.mxu0 %v1118_v58 }
 0x38d   : > { %3950 = vmatprep.subr.mxu0 %v708_v63 }
 0x38e   : > { %v1371_v11 = vpop.permute.xlu1 %1370 }
 0x392   : > { %v1369_v13 = vpop.permute.xlu1 %1368 }
 0x394   : > { %v4179_v60 = vpop.eup %4178 }
 0x395   : > { %v1115_v61 = vmul.f32 %v4179_v60, %v4171_v46 }
 0x396   : > { %v1654_v15 = vpop.permute.xlu1 %1653 }
 0x397   : > { %3947 = vmatprep.mubr.msk.f32.mxu0 %vm894_vm2, %v1115_v61 }
 0x398   : > { %3948 = vmatmul.mubr.msk.f32.vlgmr.msra.gmra.mxu0 %vm894_vm2, %v1116_v62 }
 0x399   : > { %3951 = vmatpush3.msra.mxu0 %v708_v63 }
 0x39a   : > { %3955 = vmatprep.subr.mxu0 %v707_v0  ;;  %v1652_v16 = vpop.permute.xlu1 %1651 }
 0x424   : > { %v3935_v1 = vpop.f32.mrf.mxu0 }
 0x426   : > { %v995_v3 = vpop.f32.mrf.mxu0 }
 0x458   : > { %v3949_v6 = vpop.f32.mrf.mxu0 }
 0x45a   : > { %v1195_v7 = vpop.f32.mrf.mxu0 }
 0x45b   : > { %3952 = vmatprep.mubr.msk.f32.mxu0 %vm808_vm1, %v1195_v7 }
 0x45c   : > { %3953 = vmatmul.mubr.msk.f32.vlgmr.msra.gmra.mxu0 %vm808_vm1, %v3949_v6 }
 0x45d   : > { %3956 = vmatpush3.msra.mxu0 %v707_v0  ;;  %3957 = vmatprep.mubr.msk.f32.mxu0 %vm808_vm1, %v995_v3 }
 0x45e   : > { %3960 = vmatprep.subr.msk.mxu0 %vm808_vm1, %v1373_v2 }
 0x460   : > { %3958 = vmatmul.mubr.msk.f32.vlgmr.msra.gmra.mxu0 %vm808_vm1, %v3935_v1 }
 0x461   : > { %3961 = vmatpush3.xpose.msk.msra.mxu0 %vm808_vm1, %v1373_v2  ;;  %3964 = vmatprep.mubr.msk.f32.mxu0 %vm808_vm1, %v1367_v9 }
 0x462   : > { %3962 = vmatprep.subr.msk.mxu0 %vm808_vm1, %v1371_v11 }
 0x465   : > { %3963 = vmatpush3.xpose.msk.msra.mxu0 %vm808_vm1, %v1371_v11 }
 0x466   : > { %3979 = vmatprep.subr.msk.mxu0 %vm808_vm1, %v1656_v12 }
 0x468   : > { %3965 = vmatmul.mubr.msk.f32.vlgmr.msra.gmra.mxu0 %vm808_vm1, %v1369_v13 }
 0x469   : > { %3980 = vmatpush3.xpose.msk.msra.mxu0 %vm808_vm1, %v1656_v12  ;;  %3983 = vmatprep.mubr.msk.f32.mxu0 %vm808_vm1, %v1650_v14 }
 0x46a   : > { %3981 = vmatprep.subr.msk.mxu0 %vm808_vm1, %v1654_v15 }
 0x46d   : > { %3982 = vmatpush3.xpose.msk.msra.mxu0 %vm808_vm1, %v1654_v15  ;;  %v1990_v15 = vld [vmem:[%s4981_s3 + $0x18] sm:$0xff] }
 0x46e   : > { %3998 = vmatprep.subr.mxu0 %v1990_v15 }
 0x470   : > { %3984 = vmatmul.mubr.msk.f32.vlgmr.msra.gmra.mxu0 %vm808_vm1, %v1652_v16  ;;  %v3743_v16 = vld [vmem:[%s4983_s25] ss:$0 sm:$0xff]  ;;  %s4990_s25 = smov 104  }
 0x471   : > { %3999 = vmatpush3.msra.mxu0 %v1990_v15 }
 0x51c   : > { %v3954_v17 = vpop.f32.mrf.mxu0 }
 0x51e   : > { %v1276_v18 = vpop.f32.mrf.mxu0 }
 0x520   : > { %v3959_v19 = vpop.f32.mrf.mxu0 }
 0x521   : > { %v4608_v20 = vadd.f32 %v3959_v19, %v3954_v17 }
 0x522   : > { %v1357_v21 = vpop.f32.mrf.mxu0 }
 0x523   : > { %v4610_v22 = vadd.f32 %v1357_v21, %v1276_v18 }
 0x528   : > { %v3966_v23 = vpop.f32.mrf.mxu0 }
 0x529   : > { %v1460_v24 = vsel %vm894_vm2, %v3966_v23, -inf }
 0x52a   : > { %1461 = vmax.xlane.f32.xlu1 %v1460_v24  ;;  %v1448_v25 = vpop.f32.mrf.mxu0 }
 0x52b   : > { %v1457_v26 = vsel %vm894_vm2, %v1448_v25, -inf }
 0x52c   : > { %1458 = vmax.xlane.f32.xlu0 %v1457_v26 }
 0x530   : > { %v3985_v27 = vpop.f32.mrf.mxu0 }
 0x531   : > { %v1743_v46 = vsel %vm894_vm2, %v3985_v27, -inf }
 0x532   : > { %v1731_v28 = vpop.f32.mrf.mxu0 }
 0x533   : > { %v1740_v29 = vsel %vm894_vm2, %v1731_v28, -inf }
 0x53b   : > { %1481 = vrot.lane.b32.xlu1 %v4516_v8, %s4315_s1 }
 0x55f   : > { %1741 = vmax.xlane.f32.xlu1 %v1740_v29 }
 0x5b3   : > { %v1462_v30 = vpop.xlane.xlu1 %1461 }
 0x5b4   : > { %v1464_v31 = vsub.f32 %v3966_v23, %v1462_v30 }
 0x5b5   : > { %v1459_v32 = vpop.xlane.xlu0 %1458 }
 0x5b6   : > { %v1467_v33 = vmul.f32 1.442695, %v1464_v31  ;;  %v1463_v34 = vsub.f32 %v1448_v25, %v1459_v32 }
 0x5b7   : > { %v1482_v35 = vpop.permute.xlu1 %1481 }
 0x5b8   : > { %4180 = vpow2.f32 %v1467_v33  ;;  %v1465_v36 = vmul.f32 1.442695, %v1463_v34  ;;  %3967 = vmatprep.subr.mxu1 %v1482_v35 }
 0x5b9   : > { %3968 = vmatpush3.msra.mxu1 %v1482_v35 }
 0x5ba   : > { %4182 = vpow2.f32 %v1465_v36 }
 0x5c5   : > { %v4181_v37 = vpop.eup %4180 }
 0x5c6   : > { %v1472_v38 = vsel %vm894_vm2, %v4181_v37, 0.0 }
 0x5c7   : > { %v4183_v39 = vpop.eup %4182  ;;  %1473 = vadd.xlane.f32.xlu0 %v1472_v38 }
 0x5c8   : > { %v1469_v40 = vsel %vm894_vm2, %v4183_v39, 0.0 }
 0x5cb   : > { %1470 = vadd.xlane.f32.xlu0 %v1469_v40  ;;  %v3746_v40 = vld [vmem:[%s4984_s7] ss:$0 sm:$0xff] }
 0x5e1   : > { %1479 = vrot.lane.b32.xlu0 %v4518_v10, %s4315_s1  ;;  %s4992_s1 = smov 72  }
 0x5e8   : > { %v1742_v41 = vpop.xlane.xlu1 %1741 }
 0x5e9   : > { %v1746_v42 = vsub.f32 %v1731_v28, %v1742_v41  ;;  %v4317_v28 = vmov 0.0  }
 0x5eb   : > { %v1748_v43 = vmul.f32 1.442695, %v1746_v42 }
 0x5ed   : > { %4184 = vpow2.f32 %v1748_v43 }
 0x5fa   : > { %v4185_v44 = vpop.eup %4184 }
 0x5fb   : > { %v1752_v45 = vsel %vm894_vm2, %v4185_v44, 0.0 }
 0x5fc   : > { %1753 = vadd.xlane.f32.xlu1 %v1752_v45 }
 0x600   : > { %1744 = vmax.xlane.f32.xlu0 %v1743_v46 }
 0x60d   : > { %1764 = vrot.lane.b32.xlu1 %v4516_v8, %s4316_s26 }
 0x650   : > { %v1474_v47 = vpop.xlane.xlu0 %1473 }
 0x651   : > { %4186 = vrcp.f32 %v1474_v47 }
 0x654   : > { %v1471_v48 = vpop.xlane.xlu0 %1470 }
 0x655   : > { %4188 = vrcp.f32 %v1471_v48 }
 0x658   : > { %v1480_v49 = vpop.permute.xlu0 %1479 }
 0x659   : > { %3969 = vmatprep.subr.mxu1 %v1480_v49 }
 0x65a   : > { %3970 = vmatpush3.msra.mxu1 %v1480_v49 }
 0x65b   : > { %3974 = vmatprep.subr.mxu1 %v709_v50 }
 0x65e   : > { %v4187_v51 = vpop.eup %4186 }
 0x65f   : > { %v1478_v54 = vmul.f32 %v4187_v51, %v4181_v37 }
 0x662   : > { %v4189_v52 = vpop.eup %4188 }
 0x663   : > { %v1477_v53 = vmul.f32 %v4189_v52, %v4183_v39  ;;  %v3744_v52 = vld [vmem:[%s4930_s10] ss:$0 sm:$0xff] }
 0x665   : > { %3971 = vmatprep.mubr.msk.f32.mxu1 %vm894_vm2, %v1477_v53 }
 0x666   : > { %3972 = vmatmul.mubr.msk.f32.vlgmr.msra.gmra.mxu1 %vm894_vm2, %v1478_v54 }
 0x667   : > { %3975 = vmatpush3.msra.mxu1 %v709_v50 }
 0x685   : > { %v1754_v8 = vpop.xlane.xlu1 %1753 }
 0x689   : > { %v1765_v55 = vpop.permute.xlu1 %1764  ;;  %v1745_v56 = vpop.xlane.xlu0 %1744 }
 0x68a   : > { %v1747_v57 = vsub.f32 %v3985_v27, %v1745_v56  ;;  %3986 = vmatprep.subr.mxu1 %v1765_v55  ;;  %v1989_v27 = vld [vmem:[%s4982_s24 + $0x10] sm:$0xff]  ;;  %v3745_v56 = vld [vmem:[%s4931_s11] ss:$0 sm:$0xff] }
 0x68b   : > { %4000 = vmatprep.subr.mxu0 %v1989_v27 }
 0x68c   : > { %v1750_v58 = vmul.f32 1.442695, %v1747_v57  ;;  %4001 = vmatpush3.msra.mxu0 %v1989_v27 }
 0x68e   : > { %4190 = vpow2.f32 %v1750_v58 }
 0x68f   : > { %4192 = vrcp.f32 %v1754_v8 }
 0x69b   : > { %v4191_v59 = vpop.eup %4190 }
 0x69c   : > { %v1755_v60 = vsel %vm894_vm2, %v4191_v59, 0.0  ;;  %v4193_v61 = vpop.eup %4192 }
 0x69d   : > { %1756 = vadd.xlane.f32.xlu0 %v1755_v60  ;;  %v1760_v1 = vmul.f32 %v4193_v61, %v4185_v44 }
 0x6b3   : > { %1762 = vrot.lane.b32.xlu0 %v4518_v10, %s4316_s26  ;;  %v710_v10 = vld [vmem:[%s4980_s5 + $0x18] sm:$0xff]  ;;  %s4985_s26 = sld [smem:[#allocation11_spill]] }
 0x6b9   : > { %s698_s5 = scalar_lea.vmem %s4985_s26, %s3707_s2  ;;  %s4988_s26 = smov 112  }
 0x6ba   : > { %v701_v49 = vld [vmem:[%s698_s5] sm:$0xff]  ;;  %s4986_s5 = smov 120  }
 0x726   : > { %v3973_v62 = vpop.f32.mrf.mxu1  ;;  %v1757_v63 = vpop.xlane.xlu0 %1756 }
 0x727   : > { %4194 = vrcp.f32 %v1757_v63 }
 0x728   : > { %v1557_v0 = vpop.f32.mrf.mxu1 }
 0x729   : > { %3976 = vmatprep.mubr.msk.f32.mxu1 %vm808_vm1, %v1557_v0 }
 0x72a   : > { %3977 = vmatmul.mubr.msk.f32.vlgmr.msra.gmra.mxu1 %vm808_vm1, %v3973_v62  ;;  %v1763_v2 = vpop.permute.xlu0 %1762 }
 0x72b   : > { %3987 = vmatpush3.msra.mxu1 %v1765_v55  ;;  %3990 = vmatprep.mubr.msk.f32.mxu1 %vm894_vm2, %v1760_v1 }
 0x72c   : > { %3988 = vmatprep.subr.mxu1 %v1763_v2 }
 0x72d   : > { %3989 = vmatpush3.msra.mxu1 %v1763_v2 }
 0x72e   : > { %3993 = vmatprep.subr.mxu1 %v710_v10 }
 0x734   : > { %v4195_v3 = vpop.eup %4194 }
 0x735   : > { %v1761_v6 = vmul.f32 %v4195_v3, %v4191_v59 }
 0x737   : > { %3991 = vmatmul.mubr.msk.f32.vlgmr.msra.gmra.mxu1 %vm894_vm2, %v1761_v6 }
 0x738   : > { %3994 = vmatpush3.msra.mxu1 %v710_v10 }
 0x739   : > { %4009 = vmatprep.subr.mxu1 %v4317_v28 }
 0x7ea   : > { %v3978_v7 = vpop.f32.mrf.mxu1 }
 0x7eb   : > { %v1648_v9 = vadd.f32 %v3978_v7, %v4608_v20 }
 0x7ec   : > { %v1638_v11 = vpop.f32.mrf.mxu1 }
 0x7ed   : > { %v1647_v12 = vadd.f32 %v1638_v11, %v4610_v22 }
 0x7f7   : > { %v3992_v13 = vpop.f32.mrf.mxu1 }
 0x7f9   : > { %v1840_v14 = vpop.f32.mrf.mxu1 }
 0x7fa   : > { %3995 = vmatprep.mubr.msk.f32.mxu1 %vm808_vm1, %v1840_v14 }
 0x7fb   : > { %3996 = vmatmul.mubr.msk.f32.vlgmr.msra.gmra.mxu1 %vm808_vm1, %v3992_v13 }
 0x7fc   : > { %4017 = vmatprep.mubr.msk.f32.mxu1 %vm4318_vm3, %v4317_v28 }
 0x8bb   : > { %v3997_v17 = vpop.f32.mrf.mxu1 }
 0x8bc   : > { %v1931_v18 = vadd.f32 %v3997_v17, %v1648_v9 }
 0x8bd   : > { %v1921_v19 = vpop.f32.mrf.mxu1 }
 0x8be   : > { %v1939_v20 = vadd.f32 %v3743_v16, %v1931_v18  ;;  %v1930_v21 = vadd.f32 %v1921_v19, %v1647_v12 }
 0x8c0   : > { %v1938_v22 = vadd.f32 %v3743_v16, %v1930_v21  ;;  %v1941_v23 = vadd.f32 %v1939_v20, %v4507_v5  ;;  %v1988_v5 = vld [vmem:[%s4982_s24 + $0x8] sm:$0xff] }
 0x8c1   : > { %4002 = vmatprep.subr.mxu0 %v1988_v5 }
 0x8c2   : > { %v1947_v24 = vsel %vm718_vm0, %v1941_v23, 0.0  ;;  %v1940_v25 = vadd.f32 %v1938_v22, %v4505_v4  ;;  %v1987_v4 = vld [vmem:[%s4982_s24] sm:$0xff]  ;;  %4003 = vmatpush3.msra.mxu0 %v1988_v5 }
 0x8c3   : > { %1948 = vadd.xlane.f32.xlu0 %v1947_v24  ;;  %4004 = vmatprep.subr.mxu0 %v1987_v4 }
 0x8c4   : > { %v1944_v26 = vsel %vm718_vm0, %v1940_v25, 0.0  ;;  %4005 = vmatpush3.msra.mxu0 %v1987_v4 }
 0x8c5   : > { %1945 = vadd.xlane.f32.xlu1 %v1944_v26 }
 0x8d6   : > { %2094 = vrot.lane.b32.xlu1 %v1990_v15, %s4307_s23 }
 0x94c   : > { %v1949_v29 = vpop.xlane.xlu0 %1948 }
 0x94d   : > { %v1952_v30 = vmul.f32 0.03125, %v1949_v29 }
 0x94e   : > { %v1946_v31 = vpop.xlane.xlu1 %1945 }
 0x94f   : > { %v1954_v32 = vsub.f32 %v1941_v23, %v1952_v30  ;;  %v1951_v33 = vmul.f32 0.03125, %v1946_v31 }
 0x951   : > { %v1953_v34 = vsub.f32 %v1940_v25, %v1951_v33  ;;  %v1956_v35 = vmul.f32 %v1954_v32, %v1954_v32 }
 0x952   : > { %v2095_v36 = vpop.permute.xlu1 %2094 }
 0x953   : > { %v1960_v37 = vsel %vm718_vm0, %v1956_v35, 0.0  ;;  %v1955_v38 = vmul.f32 %v1953_v34, %v1953_v34  ;;  %4010 = vmatpush3.msra.mxu1 %v2095_v36 }
 0x954   : > { %1961 = vadd.xlane.f32.xlu0 %v1960_v37  ;;  %4011 = vmatprep.subr.mxu1 %v4317_v28 }
 0x955   : > { %v1957_v39 = vsel %vm718_vm0, %v1955_v38, 0.0  ;;  %v1993_v38 = vld [vmem:[%s4987_s8 + $0x8] sm:$0xff] }
 0x956   : > { %1958 = vadd.xlane.f32.xlu1 %v1957_v39 }
 0x967   : > { %2090 = vrot.lane.b32.xlu1 %v1988_v5, %s4307_s23 }
 0x96a   : > { %2092 = vrot.lane.b32.xlu0 %v1989_v27, %s4307_s23 }
 0x96b   : > { %2088 = vrot.lane.b32.xlu1 %v1987_v4, %s4307_s23 }
 0x96e   : > { %2100 = vrot.lane.b32.xlu0 %v3746_v40, %s4307_s23 }
 0x9dd   : > { %v1962_v41 = vpop.xlane.xlu0 %1961 }
 0x9de   : > { %v1964_v42 = vmul.f32 0.03125, %v1962_v41 }
 0x9df   : > { %v1959_v43 = vpop.xlane.xlu1 %1958 }
 0x9e0   : > { %v1966_v44 = vadd.f32 1e-05, %v1964_v42  ;;  %v1963_v45 = vmul.f32 0.03125, %v1959_v43 }
 0x9e1   : > { %v2093_v46 = vpop.permute.xlu0 %2092 }
 0x9e2   : > { %4196 = vrsqrt.f32 %v1966_v44  ;;  %v1965_v47 = vadd.f32 1e-05, %v1963_v45  ;;  %4012 = vmatpush3.msra.mxu1 %v2093_v46 }
 0x9e3   : > { %v2091_v48 = vpop.permute.xlu1 %2090  ;;  %4013 = vmatprep.subr.mxu1 %v4317_v28 }
 0x9e4   : > { %4198 = vrsqrt.f32 %v1965_v47  ;;  %4014 = vmatpush3.msra.mxu1 %v2091_v48 }
 0x9e5   : > { %4015 = vmatprep.subr.mxu1 %v4317_v28  ;;  %v2101_v60 = vpop.permute.xlu0 %2100 }
 0x9e7   : > { %v2089_v50 = vpop.permute.xlu1 %2088 }
 0x9e8   : > { %4016 = vmatpush3.msra.mxu1 %v2089_v50 }
 0x9e9   : > { %4018 = vmatmul.mubr.msk.f32.vlgmr.msra.gmra.mxu1 %vm718_vm0, %v701_v49 }
 0x9ef   : > { %v4197_v51 = vpop.eup %4196 }
 0x9f0   : > { %v1970_v53 = vmul.f32 %v4197_v51, %v1954_v32 }
 0x9f1   : > { %v4199_v54 = vpop.eup %4198 }
 0x9f2   : > { %v1969_v8 = vmul.f32 %v4199_v54, %v1953_v34  ;;  %v1978_v55 = vmul.f32 %v3744_v52, %v1970_v53  ;;  %v1992_v54 = vld [vmem:[%s4987_s8] sm:$0xff] }
 0x9f4   : > { %v1977_v57 = vmul.f32 %v3744_v52, %v1969_v8  ;;  %v4682_v59 = vadd.f32 %v3745_v56, %v1978_v55 }
 0x9f6   : > { %v4680_v58 = vadd.f32 %v3745_v56, %v1977_v57 }
 0x9f8   : > { %4006 = vmatprep.mubr.msk.f32.mxu0 %vm718_vm0, %v4680_v58 }
 0x9f9   : > { %4007 = vmatmul.mubr.msk.f32.vlgmr.msra.gmra.mxu0 %vm718_vm0, %v4682_v59 }
 0xaa9   : > { %v2172_v61 = vpop.f32.mrf.mxu1 }
 0xaaa   : > { %v4688_v62 = vadd.f32 %v2172_v61, %v2101_v60 }
 0xaab   : > { %v4019_v63 = vpop.f32.mrf.mxu1 }
 0xaac   : > { %2372 = vrot.lane.b32.xlu1 %v4688_v62, %s4986_s5  ;;  %4020 = vmatprep.subr.msk.mxu0 %vm808_vm1, %v4688_v62 }
 0xaad   : > { %4021 = vmatpush3.xpose.msk.msra.mxu0 %vm808_vm1, %v4688_v62 }
 0xab9   : > { %v4008_v0 = vpop.f32.mrf.mxu0 }
 0xaba   : > { %v2081_v1 = vadd.f32 %v4008_v0, %v3746_v40 }
 0xabb   : > { %v2075_v2 = vpop.f32.mrf.mxu0 }
 0xabc   : > { %v4696_v3 = vmul.f32 0.35355338, %v2081_v1  ;;  %v2076_v6 = vadd.f32 %v3746_v40, %v2075_v2 }
 0xabe   : > { %v4698_v10 = vmul.f32 0.35355338, %v2076_v6  ;;  %2370 = vrot.lane.b32.xlu1 %v4696_v3, %s4986_s5 }
 0xac0   : > { %2368 = vrot.lane.b32.xlu0 %v4698_v10, %s4986_s5  ;;  %4022 = vmatprep.mubr.msk.f32.mxu0 %vm808_vm1, %v4698_v10 }
 0xac1   : > { %4023 = vmatmul.mubr.msk.f32.vlgmr.msra.gmra.mxu0 %vm808_vm1, %v4696_v3 }
 0xb1e   : > { %v2373_v7 = vpop.permute.xlu1 %2372 }
 0xb1f   : > { %4030 = vmatprep.subr.msk.mxu0 %vm808_vm1, %v2373_v7 }
 0xb20   : > { %4031 = vmatpush3.xpose.msk.msra.mxu0 %vm808_vm1, %v2373_v7 }
 0xb21   : > { %4040 = vmatprep.subr.mxu0 %v1993_v38 }
 0xb30   : > { %v2371_v11 = vpop.permute.xlu1 %2370 }
 0xb32   : > { %v2369_v9 = vpop.permute.xlu0 %2368 }
 0xb33   : > { %4032 = vmatprep.mubr.msk.f32.mxu0 %vm808_vm1, %v2369_v9 }
 0xb34   : > { %4033 = vmatmul.mubr.msk.f32.vlgmr.msra.gmra.mxu0 %vm808_vm1, %v2371_v11 }
 0xb35   : > { %4041 = vmatpush3.msra.mxu0 %v1993_v38 }
 0xb81   : > { %v4024_v12 = vpop.f32.mrf.mxu0 }
 0xb82   : > { %v2265_v13 = vsel %vm808_vm1, %v4024_v12, -inf }
 0xb83   : > { %2266 = vmax.xlane.f32.xlu1 %v2265_v13  ;;  %v2253_v14 = vpop.f32.mrf.mxu0 }
 0xb84   : > { %v2262_v15 = vsel %vm808_vm1, %v2253_v14, -inf }
 0xb85   : > { %2263 = vmax.xlane.f32.xlu0 %v2262_v15 }
 0xbf4   : > { %v4034_v16 = vpop.f32.mrf.mxu0 }
 0xbf5   : > { %v2458_v19 = vsel %vm808_vm1, %v4034_v16, -inf }
 0xbf6   : > { %v2446_v17 = vpop.f32.mrf.mxu0 }
 0xbf7   : > { %v2455_v18 = vsel %vm808_vm1, %v2446_v17, -inf }
 0xbf8   : > { %2456 = vmax.xlane.f32.xlu0 %v2455_v18 }
 0xbfc   : > { %2459 = vmax.xlane.f32.xlu0 %v2458_v19 }
 0xc0c   : > { %v2267_v20 = vpop.xlane.xlu1 %2266 }
 0xc0d   : > { %v2269_v21 = vsub.f32 %v4024_v12, %v2267_v20 }
 0xc0e   : > { %v2264_v22 = vpop.xlane.xlu0 %2263 }
 0xc0f   : > { %v2272_v23 = vmul.f32 1.442695, %v2269_v21  ;;  %v2268_v24 = vsub.f32 %v2253_v14, %v2264_v22 }
 0xc11   : > { %4200 = vpow2.f32 %v2272_v23  ;;  %v2270_v25 = vmul.f32 1.442695, %v2268_v24 }
 0xc13   : > { %4202 = vpow2.f32 %v2270_v25 }
 0xc1e   : > { %v4201_v26 = vpop.eup %4200 }
 0xc1f   : > { %v2277_v27 = vsel %vm808_vm1, %v4201_v26, 0.0 }
 0xc20   : > { %v4203_v5 = vpop.eup %4202  ;;  %2278 = vadd.xlane.f32.xlu0 %v2277_v27 }
 0xc21   : > { %v2274_v4 = vsel %vm808_vm1, %v4203_v5, 0.0 }
 0xc22   : > { %2275 = vadd.xlane.f32.xlu1 %v2274_v4 }
 0xc81   : > { %v2457_v28 = vpop.xlane.xlu0 %2456 }
 0xc82   : > { %v2461_v29 = vsub.f32 %v2446_v17, %v2457_v28  ;;  %v1994_v28 = vld [vmem:[%s4987_s8 + $0x10] sm:$0xff] }
 0xc84   : > { %v2463_v30 = vmul.f32 1.442695, %v2461_v29 }
 0xc85   : > { %v2460_v31 = vpop.xlane.xlu0 %2459 }
 0xc86   : > { %4204 = vpow2.f32 %v2463_v30  ;;  %v2462_v32 = vsub.f32 %v4034_v16, %v2460_v31 }
 0xc88   : > { %v2465_v33 = vmul.f32 1.442695, %v2462_v32 }
 0xc8a   : > { %4206 = vpow2.f32 %v2465_v33 }
 0xc93   : > { %v4205_v34 = vpop.eup %4204 }
 0xc94   : > { %v2467_v35 = vsel %vm808_vm1, %v4205_v34, 0.0 }
 0xc95   : > { %2468 = vadd.xlane.f32.xlu1 %v2467_v35 }
 0xc97   : > { %v4207_v36 = vpop.eup %4206 }
 0xc98   : > { %v2470_v37 = vsel %vm808_vm1, %v4207_v36, 0.0 }
 0xc99   : > { %2471 = vadd.xlane.f32.xlu0 %v2470_v37 }
 0xca6   : > { %2284 = vrot.lane.b32.xlu1 %v4688_v62, %s4307_s23 }
 0xca9   : > { %v2279_v42 = vpop.xlane.xlu0 %2278 }
 0xcaa   : > { %2727 = vrot.lane.b32.xlu1 %v4688_v62, %s4988_s26 }
 0xcab   : > { %v2276_v39 = vpop.xlane.xlu1 %2275 }
 0xcac   : > { %4208 = vrcp.f32 %v2276_v39 }
 0xcad   : > { %4210 = vrcp.f32 %v2279_v42 }
 0xcae   : > { %2723 = vrot.lane.b32.xlu1 %v4698_v10, %s4988_s26 }
 0xcaf   : > { %2477 = vrot.lane.b32.xlu0 %v4688_v62, %s4989_s29  ;;  %s3797_s29 = sshll.u32 %s4458_s4, 8 }
 0xcb0   : > { %s4875_s5 = scalar_lea.hbm %s4942_s22, %s3797_s29 }
 0xcb3   : > { %2725 = vrot.lane.b32.xlu0 %v4696_v3, %s4988_s26 }
 0xcb9   : > { %v4209_v40 = vpop.eup %4208 }
 0xcba   : > { %v2282_v41 = vmul.f32 %v4209_v40, %v4203_v5  ;;  %v4211_v44 = vpop.eup %4210 }
 0xcbb   : > { %v2283_v47 = vmul.f32 %v4211_v44, %v4201_v26 }
 0xcbc   : > { %4027 = vmatprep.mubr.msk.f32.mxu1 %vm808_vm1, %v2282_v41 }
 0xd1e   : > { %v2469_v43 = vpop.xlane.xlu1 %2468 }
 0xd1f   : > { %4212 = vrcp.f32 %v2469_v43 }
 0xd22   : > { %v2285_v45 = vpop.permute.xlu1 %2284  ;;  %v2472_v46 = vpop.xlane.xlu0 %2471 }
 0xd23   : > { %4214 = vrcp.f32 %v2472_v46  ;;  %4025 = vmatprep.subr.mxu1 %v2285_v45  ;;  %v1995_v46 = vld [vmem:[%s4987_s8 + $0x18] sm:$0xff] }
 0xd24   : > { %4026 = vmatpush3.msra.mxu1 %v2285_v45 }
 0xd25   : > { %4028 = vmatmul.mubr.msk.f32.vlgmr.msra.gmra.mxu1 %vm808_vm1, %v2283_v47 }
 0xd26   : > { %v2728_v48 = vpop.permute.xlu1 %2727  ;;  %v2478_v49 = vpop.permute.xlu0 %2477 }
 0xd27   : > { %4035 = vmatprep.subr.mxu1 %v2478_v49  ;;  %4050 = vmatprep.subr.msk.mxu0 %vm808_vm1, %v2728_v48 }
 0xd28   : > { %4036 = vmatpush3.msra.mxu1 %v2478_v49 }
 0xd29   : > { %4045 = vmatprep.subr.mxu1 %v1992_v54 }
 0xd2a   : > { %v2724_v60 = vpop.permute.xlu1 %2723  ;;  %v2726_v61 = vpop.permute.xlu0 %2725 }
 0xd2c   : > { %v4213_v50 = vpop.eup %4212 }
 0xd2d   : > { %v2475_v51 = vmul.f32 %v4213_v50, %v4205_v34 }
 0xd2f   : > { %4037 = vmatprep.mubr.msk.f32.mxu1 %vm808_vm1, %v2475_v51 }
 0xd30   : > { %v4215_v52 = vpop.eup %4214 }
 0xd31   : > { %v2476_v53 = vmul.f32 %v4215_v52, %v4207_v36 }
 0xd33   : > { %4038 = vmatmul.mubr.msk.f32.vlgmr.msra.gmra.mxu1 %vm808_vm1, %v2476_v53 }
 0xd34   : > { %4046 = vmatpush3.msra.mxu1 %v1992_v54 }
 0xde5   : > { %v4029_v8 = vpop.f32.mrf.mxu1 }
 0xde7   : > { %v2359_v55 = vpop.f32.mrf.mxu1 }
 0xde8   : > { %4047 = vmatprep.mubr.msk.f32.mxu1 %vm808_vm1, %v2359_v55 }
 0xde9   : > { %4048 = vmatmul.mubr.msk.f32.vlgmr.msra.gmra.mxu1 %vm808_vm1, %v4029_v8 }
 0xdf3   : > { %v4039_v56 = vpop.f32.mrf.mxu1 }
 0xdf5   : > { %v2552_v57 = vpop.f32.mrf.mxu1 }
 0xdf6   : > { %4042 = vmatprep.mubr.msk.f32.mxu0 %vm808_vm1, %v2552_v57 }
 0xdf7   : > { %4043 = vmatmul.mubr.msk.f32.vlgmr.msra.gmra.mxu0 %vm808_vm1, %v4039_v56 }
 0xdf8   : > { %4051 = vmatpush3.xpose.msk.msra.mxu0 %vm808_vm1, %v2728_v48  ;;  %4052 = vmatprep.mubr.msk.f32.mxu0 %vm808_vm1, %v2724_v60 }
 0xdf9   : > { %4060 = vmatprep.subr.mxu0 %v1994_v28 }
 0xdfb   : > { %4053 = vmatmul.mubr.msk.f32.vlgmr.msra.gmra.mxu0 %vm808_vm1, %v2726_v61 }
 0xdfc   : > { %4061 = vmatpush3.msra.mxu0 %v1994_v28 }
 0xea9   : > { %v4049_v63 = vpop.f32.mrf.mxu1 }
 0xeab   : > { %v2714_v29 = vpop.f32.mrf.mxu1 }
 0xeb7   : > { %v4044_v0 = vpop.f32.mrf.mxu0 }
 0xeb8   : > { %v4748_v1 = vadd.f32 %v4049_v63, %v4044_v0  ;;  %v3778_v0 = vld [vmem:[%s4929_s9] ss:$0 sm:$0xff] }
 0xeb9   : > { %v4750_v2 = vpop.f32.mrf.mxu0 }
 0xeba   : > { %v2715_v57 = vadd.f32 %v2714_v29, %v4750_v2 }
 0xebb   : > { %v4054_v6 = vpop.f32.mrf.mxu0 }
 0xebc   : > { %v2813_v7 = vsel %vm808_vm1, %v4054_v6, -inf }
 0xebd   : > { %2814 = vmax.xlane.f32.xlu0 %v2813_v7  ;;  %v2801_v9 = vpop.f32.mrf.mxu0 }
 0xebe   : > { %v2810_v11 = vsel %vm808_vm1, %v2801_v9, -inf }
 0xebf   : > { %2811 = vmax.xlane.f32.xlu1 %v2810_v11 }
 0xf46   : > { %v2815_v12 = vpop.xlane.xlu0 %2814 }
 0xf47   : > { %v2817_v13 = vsub.f32 %v4054_v6, %v2815_v12 }
 0xf48   : > { %v2812_v14 = vpop.xlane.xlu1 %2811 }
 0xf49   : > { %v2820_v15 = vmul.f32 1.442695, %v2817_v13  ;;  %v2816_v16 = vsub.f32 %v2801_v9, %v2812_v14 }
 0xf4b   : > { %4216 = vpow2.f32 %v2820_v15  ;;  %v2818_v17 = vmul.f32 1.442695, %v2816_v16 }
 0xf4d   : > { %4218 = vpow2.f32 %v2818_v17 }
 0xf58   : > { %v4217_v18 = vpop.eup %4216 }
 0xf59   : > { %v2825_v19 = vsel %vm808_vm1, %v4217_v18, 0.0 }
 0xf5a   : > { %v4219_v20 = vpop.eup %4218  ;;  %2826 = vadd.xlane.f32.xlu1 %v2825_v19 }
 0xf5b   : > { %v2822_v21 = vsel %vm808_vm1, %v4219_v20, 0.0 }
 0xf5c   : > { %2823 = vadd.xlane.f32.xlu0 %v2822_v21 }
 0xf6b   : > { %3003 = vrot.lane.b32.xlu1 %v4688_v62, %s4990_s25 }
 0xf6f   : > { %2999 = vrot.lane.b32.xlu1 %v4698_v10, %s4990_s25 }
 0xf72   : > { %2832 = vrot.lane.b32.xlu0 %v4688_v62, %s4991_s0 }
 0xf76   : > { %3001 = vrot.lane.b32.xlu0 %v4696_v3, %s4990_s25  ;;  %s687_s25 = sand.u32 1, %s4296_s28  }
 0xf77   : > { %s3704_s2 = sshll.u32 %s687_s25, 4 }
 0xf78   : > { %s689_s23 = scalar_lea.vmem [#allocation2], %s3704_s2  ;;  %s4319_s2 = smov [#allocation2]  }
 0xf79   : > { %s3626_s3 = sshll.u32 %s689_s23, 4  ;;  %s4248_s26 = sshll.u32 %s4319_s2, 4  ;;  %s4877_s3 = int_to_ptr.vmem [resolvable:$true] %s3626_s3  ;;  %s4249_s26 = int_to_ptr.vmem [resolvable:$false] %s4248_s26 }
 0xf7a   : > { %s4244_s4 = scalar_lea.vmem %s4877_s3, 256  ;;  %s4250_s7 = scalar_lea.vmem %s4249_s26, 512 }
 0xf7b   : > { %p4245_p11 = scmp.ne.s32.totalorder %s4877_s3, %s4244_s4  ;;  %p4251_p0 = scmp.lt.s32.totalorder %s4877_s3, %s4249_s26 }
 0xf7c   : > { %p4252_p1 = scmp.lt.s32.totalorder %s4250_s7, %s4244_s4 }
 0xf7d   : > { %p4246_p12 = pnand %p4245_p11, %p4475_p5 }
 0xf7e   : > { %p4253_p2 = por %p4252_p1, %p4251_p0 }
 0xf7f   : > { %p4247_p13 = pneg %p4246_p12 }
 0xf81   : > { %p4254_p3 = pnand %p4253_p2, %p4247_p13 }
 0xfe3   : > { %v2827_v22 = vpop.xlane.xlu1 %2826 }
 0xfe4   : > { %4220 = vrcp.f32 %v2827_v22 }
 0xfe5   : > { %v2824_v23 = vpop.xlane.xlu0 %2823 }
 0xfe6   : > { %4222 = vrcp.f32 %v2824_v23  ;;  %v3331_v23 = vld [vmem:[%s4934_s14 + $0x10] sm:$0xff] }
 0xfe7   : > { %v3004_v25 = vpop.permute.xlu1 %3003 }
 0xfe9   : > { %v2833_v24 = vpop.permute.xlu0 %2832 }
 0xfea   : > { %4055 = vmatprep.subr.mxu1 %v2833_v24 }
 0xfeb   : > { %4056 = vmatpush3.msra.mxu1 %v2833_v24  ;;  %v3000_v4 = vpop.permute.xlu1 %2999  ;;  %v3330_v24 = vld [vmem:[%s4934_s14 + $0x8] sm:$0xff] }
 0xfec   : > { %4065 = vmatprep.subr.msk.mxu1 %vm808_vm1, %v3004_v25 }
 0xfed   : > { %v3002_v3 = vpop.permute.xlu0 %3001 }
 0xff1   : > { %v4221_v26 = vpop.eup %4220 }
 0xff2   : > { %v2831_v10 = vmul.f32 %v4221_v26, %v4217_v18  ;;  %v3430_v26 = vld [vmem:[%s4936_s16 + $0x38] sm:$0xff] }
 0xff3   : > { %v4223_v27 = vpop.eup %4222 }
 0xff4   : > { %v2830_v5 = vmul.f32 %v4223_v27, %v4219_v20  ;;  %v3429_v27 = vld [vmem:[%s4936_s16 + $0x30] sm:$0xff] }
 0xff6   : > { %4057 = vmatprep.mubr.msk.f32.mxu1 %vm808_vm1, %v2830_v5  ;;  %v3428_v5 = vld [vmem:[%s4936_s16 + $0x28] sm:$0xff] }
 0xff7   : > { %4058 = vmatmul.mubr.msk.f32.vlgmr.msra.gmra.mxu1 %vm808_vm1, %v2831_v10  ;;  %v3427_v10 = vld [vmem:[%s4936_s16 + $0x20] sm:$0xff] }
 0xff8   : > { %4066 = vmatpush3.xpose.msk.msra.mxu1 %vm808_vm1, %v3004_v25  ;;  %4067 = vmatprep.mubr.msk.f32.mxu1 %vm808_vm1, %v3000_v4  ;;  %v3329_v25 = vld [vmem:[%s4934_s14] sm:$0xff] }
 0xff9   : > { %4075 = vmatprep.subr.mxu1 %v1995_v46 }
 0xffb   : > { %4068 = vmatmul.mubr.msk.f32.vlgmr.msra.gmra.mxu1 %vm808_vm1, %v3002_v3 }
 0xffc   : > { %4076 = vmatpush3.msra.mxu1 %v1995_v46  ;;  %v3781_v46 = vld [vmem:[%s4935_s15] ss:$0 sm:$0xff] }
 0xffd   : > { %4091 = vmatprep.subr.mxu1 %v3430_v26 }
0x10b7   : > { %v4059_v30 = vpop.f32.mrf.mxu1 }
0x10b9   : > { %v2907_v31 = vpop.f32.mrf.mxu1 }
0x10ba   : > { %4062 = vmatprep.mubr.msk.f32.mxu0 %vm808_vm1, %v2907_v31 }
0x10bb   : > { %4063 = vmatmul.mubr.msk.f32.vlgmr.msra.gmra.mxu0 %vm808_vm1, %v4059_v30  ;;  %v4069_v32 = vpop.f32.mrf.mxu1 }
0x10bc   : > { %v3089_v33 = vsel %vm808_vm1, %v4069_v32, -inf }
0x10bd   : > { %3090 = vmax.xlane.f32.xlu0 %v3089_v33  ;;  %v3077_v34 = vpop.f32.mrf.mxu1  ;;  %v3779_v33 = vld [vmem:[%s4932_s12] ss:$0 sm:$0xff] }
0x10be   : > { %v3086_v35 = vsel %vm808_vm1, %v3077_v34, -inf }
0x10bf   : > { %3087 = vmax.xlane.f32.xlu1 %v3086_v35  ;;  %v3780_v35 = vld [vmem:[%s4933_s13] ss:$0 sm:$0xff] }
0x1146   : > { %v3091_v36 = vpop.xlane.xlu0 %3090 }
0x1147   : > { %v3093_v37 = vsub.f32 %v4069_v32, %v3091_v36 }
0x1148   : > { %v3088_v38 = vpop.xlane.xlu1 %3087 }
0x1149   : > { %v3096_v39 = vmul.f32 1.442695, %v3093_v37  ;;  %v3092_v40 = vsub.f32 %v3077_v34, %v3088_v38 }
0x114b   : > { %4224 = vpow2.f32 %v3096_v39  ;;  %v3094_v41 = vmul.f32 1.442695, %v3092_v40 }
0x114d   : > { %4226 = vpow2.f32 %v3094_v41 }
0x1158   : > { %v4225_v42 = vpop.eup %4224 }
0x1159   : > { %v3101_v43 = vsel %vm808_vm1, %v4225_v42, 0.0 }
0x115a   : > { %v4227_v44 = vpop.eup %4226  ;;  %3102 = vadd.xlane.f32.xlu1 %v3101_v43  ;;  %v3425_v43 = vld [vmem:[%s4936_s16 + $0x10] sm:$0xff] }
0x115b   : > { %v3098_v45 = vsel %vm808_vm1, %v4227_v44, 0.0 }
0x115c   : > { %3099 = vadd.xlane.f32.xlu0 %v3098_v45  ;;  %v3423_v45 = vld [vmem:[%s4936_s16] sm:$0xff] }
0x1172   : > { %3108 = vrot.lane.b32.xlu0 %v4688_v62, %s4992_s1  ;;  %s4880_s1 = scalar_lea.sflag [#allocation3], %s687_s25 }
0x117b   : > { %v4064_v47 = vpop.f32.mrf.mxu0 }
0x117c   : > { %v2998_v48 = vadd.f32 %v4064_v47, %v4748_v1 }
0x117d   : > { %v2988_v8 = vpop.f32.mrf.mxu0 }
0x117e   : > { %v2997_v61 = vadd.f32 %v2988_v8, %v2715_v57 }
0x11e3   : > { %v3103_v49 = vpop.xlane.xlu1 %3102 }
0x11e4   : > { %4228 = vrcp.f32 %v3103_v49 }
0x11e5   : > { %v3100_v50 = vpop.xlane.xlu0 %3099 }
0x11e6   : > { %4230 = vrcp.f32 %v3100_v50 }
0x11e9   : > { %v3109_v51 = vpop.permute.xlu0 %3108 }
0x11ea   : > { %4070 = vmatprep.subr.mxu0 %v3109_v51 }
0x11eb   : > { %4071 = vmatpush3.msra.mxu0 %v3109_v51 }
0x11f1   : > { %v4229_v52 = vpop.eup %4228 }
0x11f2   : > { %v3107_v62 = vmul.f32 %v4229_v52, %v4225_v42  ;;  %v3426_v42 = vld [vmem:[%s4936_s16 + $0x18] sm:$0xff] }
0x11f3   : > { %v4231_v53 = vpop.eup %4230 }
0x11f4   : > { %v3106_v54 = vmul.f32 %v4231_v53, %v4227_v44  ;;  %v3424_v44 = vld [vmem:[%s4936_s16 + $0x8] sm:$0xff] }
0x11f6   : > { %4072 = vmatprep.mubr.msk.f32.mxu0 %vm808_vm1, %v3106_v54  ;;  %v3784_v54 = vld [vmem:[%s4937_s17] ss:$0 sm:$0xff] }
0x11f7   : > { %4073 = vmatmul.mubr.msk.f32.vlgmr.msra.gmra.mxu0 %vm808_vm1, %v3107_v62 }
0x12b7   : > { %v4074_v55 = vpop.f32.mrf.mxu0 }
0x12b9   : > { %v3183_v56 = vpop.f32.mrf.mxu0 }
0x12ba   : > { %4077 = vmatprep.mubr.msk.f32.mxu1 %vm808_vm1, %v3183_v56 }
0x12bb   : > { %4078 = vmatmul.mubr.msk.f32.vlgmr.msra.gmra.mxu1 %vm808_vm1, %v4074_v55 }
0x12bc   : > { %4092 = vmatpush3.msra.mxu1 %v3430_v26 }
0x12bd   : > { %4093 = vmatprep.subr.mxu1 %v3429_v27 }
0x12be   : > { %4094 = vmatpush3.msra.mxu1 %v3429_v27 }
0x12bf   : > { %4095 = vmatprep.subr.mxu1 %v3428_v5 }
0x12c0   : > { %4096 = vmatpush3.msra.mxu1 %v3428_v5 }
0x12c1   : > { %4097 = vmatprep.subr.mxu1 %v3427_v10 }
0x12c2   : > { %4098 = vmatpush3.msra.mxu1 %v3427_v10 }
0x12c3   : > { %4099 = vmatprep.subr.mxu1 %v3426_v42 }
0x12c4   : > { %4100 = vmatpush3.msra.mxu1 %v3426_v42 }
0x12c5   : > { %4101 = vmatprep.subr.mxu1 %v3425_v43 }
0x12c6   : > { %4102 = vmatpush3.msra.mxu1 %v3425_v43  ;;  %v3789_v43 = vld [vmem:[%s4940_s20] ss:$0 sm:$0xff] }
0x12c7   : > { %4103 = vmatprep.subr.mxu1 %v3424_v44 }
0x12c8   : > { %4104 = vmatpush3.msra.mxu1 %v3424_v44 }
0x12c9   : > { %4105 = vmatprep.subr.mxu1 %v3423_v45 }
0x12ca   : > { %4106 = vmatpush3.msra.mxu1 %v3423_v45  ;;  %v3790_v45 = vld [vmem:[%s4941_s21] ss:$0 sm:$0xff] }
0x137b   : > { %v4079_v60 = vpop.f32.mrf.mxu1 }
0x137c   : > { %v3274_v63 = vadd.f32 %v4079_v60, %v2998_v48 }
0x137d   : > { %v3264_v1 = vpop.f32.mrf.mxu1 }
0x137e   : > { %v3273_v6 = vadd.f32 %v3264_v1, %v2997_v61  ;;  %v3282_v7 = vadd.f32 %v3778_v0, %v3274_v63 }
0x1380   : > { %v3281_v9 = vadd.f32 %v3778_v0, %v3273_v6  ;;  %v3284_v13 = vadd.f32 %v3282_v7, %v4682_v59  ;;  %v3332_v59 = vld [vmem:[%s4934_s14 + $0x18] sm:$0xff] }
0x1381   : > { %4080 = vmatprep.subr.mxu0 %v3332_v59 }
0x1382   : > { %v3283_v11 = vadd.f32 %v3281_v9, %v4680_v58  ;;  %v3290_v2 = vsel %vm718_vm0, %v3284_v13, 0.0  ;;  %4081 = vmatpush3.msra.mxu0 %v3332_v59 }
0x1383   : > { %4082 = vmatprep.subr.mxu0 %v3331_v23 }
0x1384   : > { %v3287_v12 = vsel %vm718_vm0, %v3283_v11, 0.0  ;;  %4083 = vmatpush3.msra.mxu0 %v3331_v23 }
0x1385   : > { %3288 = vadd.xlane.f32.xlu1 %v3287_v12  ;;  %4084 = vmatprep.subr.mxu0 %v3330_v24 }
0x1386   : > { %4085 = vmatpush3.msra.mxu0 %v3330_v24 }
0x1387   : > { %4086 = vmatprep.subr.mxu0 %v3329_v25 }
0x1388   : > { %4087 = vmatpush3.msra.mxu0 %v3329_v25 }
0x1389   : > { %3291 = vadd.xlane.f32.xlu1 %v3290_v2 }
0x140e   : > { %v3289_v14 = vpop.xlane.xlu1 %3288 }
0x140f   : > { %v3293_v15 = vmul.f32 0.03125, %v3289_v14 }
0x1411   : > { %v3295_v16 = vsub.f32 %v3283_v11, %v3293_v15 }
0x1412   : > { %v3292_v17 = vpop.xlane.xlu1 %3291 }
0x1413   : > { %v3294_v18 = vmul.f32 0.03125, %v3292_v17  ;;  %v3297_v19 = vmul.f32 %v3295_v16, %v3295_v16 }
0x1415   : > { %v3296_v20 = vsub.f32 %v3284_v13, %v3294_v18  ;;  %v3299_v21 = vsel %vm718_vm0, %v3297_v19, 0.0 }
0x1416   : > { %3300 = vadd.xlane.f32.xlu1 %v3299_v21  ;;  %v3787_v21 = vld [vmem:[%s4938_s18] ss:$0 sm:$0xff] }
0x1417   : > { %v3298_v22 = vmul.f32 %v3296_v20, %v3296_v20 }
0x1419   : > { %v3302_v58 = vsel %vm718_vm0, %v3298_v22, 0.0 }
0x141a   : > { %3303 = vadd.xlane.f32.xlu1 %v3302_v58  ;;  %v3788_v58 = vld [vmem:[%s4939_s19] ss:$0 sm:$0xff] }
0x149f   : > { %v3301_v4 = vpop.xlane.xlu1 %3300 }
0x14a0   : > { %v3305_v3 = vmul.f32 0.03125, %v3301_v4 }
0x14a2   : > { %v3307_v28 = vadd.f32 1e-05, %v3305_v3 }
0x14a3   : > { %v3304_v29 = vpop.xlane.xlu1 %3303 }
0x14a4   : > { %4232 = vrsqrt.f32 %v3307_v28  ;;  %v3306_v30 = vmul.f32 0.03125, %v3304_v29 }
0x14a6   : > { %v3308_v31 = vadd.f32 1e-05, %v3306_v30 }
0x14a8   : > { %4234 = vrsqrt.f32 %v3308_v31 }
0x14b1   : > { %v4233_v32 = vpop.eup %4232 }
0x14b2   : > { %v3311_v34 = vmul.f32 %v4233_v32, %v3295_v16 }
0x14b4   : > { %v3319_v36 = vmul.f32 %v3779_v33, %v3311_v34 }
0x14b5   : > { %v4235_v37 = vpop.eup %4234 }
0x14b6   : > { %v3312_v38 = vmul.f32 %v4235_v37, %v3296_v20  ;;  %v3327_v39 = vadd.f32 %v3780_v35, %v3319_v36 }
0x14b8   : > { %v3320_v40 = vmul.f32 %v3779_v33, %v3312_v38  ;;  %4088 = vmatprep.mubr.msk.f32.mxu0 %vm718_vm0, %v3327_v39 }
0x14ba   : > { %v3328_v41 = vadd.f32 %v3780_v35, %v3320_v40 }
0x14bc   : > { %4089 = vmatmul.mubr.msk.f32.vlgmr.msra.gmra.mxu0 %vm718_vm0, %v3328_v41 }
0x157c   : > { %v4090_v47 = vpop.f32.mrf.mxu0 }
0x157d   : > { %v3418_v48 = vadd.f32 %v4090_v47, %v3781_v46 }
0x157e   : > { %v3412_v49 = vpop.f32.mrf.mxu0 }
0x157f   : > { %v3413_v50 = vadd.f32 %v3781_v46, %v3412_v49  ;;  %v3422_v52 = vmax.f32 %v3418_v48, 0.0 }
0x1581   : > { %v3421_v51 = vmax.f32 %v3413_v50, 0.0 }
0x1583   : > { %4107 = vmatprep.mubr.msk.f32.mxu1 %vm3438_vm4, %v3421_v51 }
0x1584   : > { %4108 = vmatmul.mubr.msk.f32.vlgmr.msra.gmra.mxu1 %vm3438_vm4, %v3422_v52 }
0x1644   : > { %v4109_v53 = vpop.f32.mrf.mxu1 }
0x1645   : > { %v3517_v8 = vadd.f32 %v4109_v53, %v3784_v54 }
0x1646   : > { %v3511_v62 = vpop.f32.mrf.mxu1 }
0x1647   : > { %v3512_v55 = vadd.f32 %v3784_v54, %v3511_v62  ;;  %v3521_v60 = vadd.f32 %v3517_v8, %v3328_v41 }
0x1649   : > { %v3520_v56 = vadd.f32 %v3512_v55, %v3327_v39  ;;  %v3527_v61 = vsel %vm718_vm0, %v3521_v60, 0.0 }
0x164b   : > { %v3524_v57 = vsel %vm718_vm0, %v3520_v56, 0.0 }
0x164c   : > { %3525 = vadd.xlane.f32.xlu1 %v3524_v57 }
0x1650   : > { %3528 = vadd.xlane.f32.xlu1 %v3527_v61 }
0x16d5   : > { %v3526_v63 = vpop.xlane.xlu1 %3525 }
0x16d6   : > { %v3530_v0 = vmul.f32 0.03125, %v3526_v63 }
0x16d8   : > { %v3532_v1 = vsub.f32 %v3520_v56, %v3530_v0 }
0x16d9   : > { %v3529_v6 = vpop.xlane.xlu1 %3528 }
0x16da   : > { %v3531_v7 = vmul.f32 0.03125, %v3529_v6  ;;  %v3534_v9 = vmul.f32 %v3532_v1, %v3532_v1 }
0x16dc   : > { %v3533_v11 = vsub.f32 %v3521_v60, %v3531_v7  ;;  %v3536_v12 = vsel %vm718_vm0, %v3534_v9, 0.0 }
0x16dd   : > { %3537 = vadd.xlane.f32.xlu0 %v3536_v12 }
0x16de   : > { %v3535_v13 = vmul.f32 %v3533_v11, %v3533_v11 }
0x16e0   : > { %v3539_v2 = vsel %vm718_vm0, %v3535_v13, 0.0 }
0x16e1   : > { %3540 = vadd.xlane.f32.xlu1 %v3539_v2 }
0x1766   : > { %v3538_v14 = vpop.xlane.xlu0 %3537 }
0x1767   : > { %v3542_v15 = vmul.f32 0.03125, %v3538_v14 }
0x1769   : > { %v3544_v16 = vadd.f32 1e-05, %v3542_v15 }
0x176a   : > { %v3541_v17 = vpop.xlane.xlu1 %3540 }
0x176b   : > { %4236 = vrsqrt.f32 %v3544_v16  ;;  %v3543_v18 = vmul.f32 0.03125, %v3541_v17 }
0x176d   : > { %v3545_v19 = vadd.f32 1e-05, %v3543_v18 }
0x176f   : > { %4238 = vrsqrt.f32 %v3545_v19 }
0x1778   : > { %v4237_v20 = vpop.eup %4236 }
0x1779   : > { %v3548_v22 = vmul.f32 %v4237_v20, %v3532_v1 }
0x177b   : > { %v3556_v59 = vmul.f32 %v3787_v21, %v3548_v22 }
0x177c   : > { %v4239_v23 = vpop.eup %4238 }
0x177d   : > { %v3564_v24 = vadd.f32 %v3788_v58, %v3556_v59  ;;  %v3549_v25 = vmul.f32 %v4239_v23, %v3533_v11 }
0x177f   : > { %v3568_v26 = vsel %vm718_vm0, %v3564_v24, 0.0  ;;  %v3557_v27 = vmul.f32 %v3787_v21, %v3549_v25 }
0x1780   : > { %3569 = vadd.xlane.f32.xlu1 %v3568_v26 }
0x1781   : > { %v3565_v5 = vadd.f32 %v3788_v58, %v3557_v27 }
0x1783   : > { %v3571_v10 = vsel %vm718_vm0, %v3565_v5, 0.0 }
0x1784   : > { %3572 = vadd.xlane.f32.xlu1 %v3571_v10 }
0x1809   : > { %v3570_v4 = vpop.xlane.xlu1 %3569 }
0x180a   : > { %v3574_v3 = vmul.f32 0.03125, %v3570_v4 }
0x180c   : > { %v3576_v28 = vsub.f32 %v3564_v24, %v3574_v3 }
0x180d   : > { %v3573_v29 = vpop.xlane.xlu1 %3572 }
0x180e   : > { %v3575_v30 = vmul.f32 0.03125, %v3573_v29  ;;  %v3578_v31 = vmul.f32 %v3576_v28, %v3576_v28 }
0x1810   : > { %v3577_v32 = vsub.f32 %v3565_v5, %v3575_v30  ;;  %v3580_v33 = vsel %vm718_vm0, %v3578_v31, 0.0 }
0x1811   : > { %3581 = vadd.xlane.f32.xlu1 %v3580_v33 }
0x1812   : > { %v3579_v34 = vmul.f32 %v3577_v32, %v3577_v32 }
0x1814   : > { %v3583_v35 = vsel %vm718_vm0, %v3579_v34, 0.0 }
0x1815   : > { %3584 = vadd.xlane.f32.xlu1 %v3583_v35 }
0x189a   : > { %v3582_v36 = vpop.xlane.xlu1 %3581 }
0x189b   : > { %v3586_v37 = vmul.f32 0.03125, %v3582_v36 }
0x189d   : > { %v3588_v38 = vadd.f32 1e-05, %v3586_v37 }
0x189e   : > { %v3585_v39 = vpop.xlane.xlu1 %3584 }
0x189f   : > { %4240 = vrsqrt.f32 %v3588_v38  ;;  %v3587_v40 = vmul.f32 0.03125, %v3585_v39 }
0x18a1   : > { %v3589_v41 = vadd.f32 1e-05, %v3587_v40 }
0x18a3   : > { %4242 = vrsqrt.f32 %v3589_v41 }
0x18ac   : > { %v4241_v42 = vpop.eup %4240 }
0x18ad   : > { %v3592_v44 = vmul.f32 %v4241_v42, %v3576_v28 }
0x18af   : > { %v3600_v46 = vmul.f32 %v3789_v43, %v3592_v44 }
0x18b0   : > { %v4243_v47 = vpop.eup %4242 }
0x18b1   : > { %v3593_v48 = vmul.f32 %v4243_v47, %v3577_v32  ;;  %v3608_v49 = vadd.f32 %v3790_v45, %v3600_v46 }
0x18b3   : > { %v3601_v50 = vmul.f32 %v3789_v43, %v3593_v48  ;;  %3610 = vst.msk [vmem:[%s689_s23] sm:$0xff] %vm718_vm0, %v3608_v49 }
0x18b5   : > { %v3609_v51 = vadd.f32 %v3790_v45, %v3601_v50 }
0x18b7   : > { %3611 = vst.msk [vmem:[%s689_s23 + $0x8] sm:$0xff] %vm718_vm0, %v3609_v51 }
0x18b8   : > { %4257 = shalt.err (!%p4254_p3)
}
0x18b9   : > { %s4258_s25 = scalar_lea.hbm %s4875_s5, 256  ;;  %s4262_s0 = scalar_lea.hbm %s4942_s22, 512 }
0x18ba   : > { %p4259_p4 = scmp.ne.s32.totalorder %s4875_s5, %s4258_s25  ;;  %p4263_p9 = scmp.lt.s32.totalorder %s4875_s5, %s4942_s22 }
0x18bb   : > { %p4264_p10 = scmp.lt.s32.totalorder %s4262_s0, %s4258_s25 }
0x18bc   : > { %p4260_p7 = pnand %p4259_p4, %p4475_p5 }
0x18bd   : > { %p4265_p11 = por %p4264_p10, %p4263_p9 }
0x18be   : > { %p4261_p8 = pneg %p4260_p7 }
0x18c0   : > { %p4266_p12 = pnand %p4265_p11, %p4261_p8 }
0x18c2   : > { %4269 = shalt.err (!%p4266_p12)
}
0x18c3   : > { %s4320_s4 = smov 128   ;;  %s4321_s26 = smov 8  }
0x18c4   : > { %4110 = dma.vmem_to_hbm [thread:$0]  (%p4475_p5), %s4877_s3, 256, %s4875_s5, %s4880_s1, %s4320_s4, %s4320_s4, %s4321_s26  }
0x18c5 PF: > { %s4993_s7 = sld [smem:[#allocation5_spill]]  ;;  %p4116_p13 = scmp.ge.s32.totalorder %s4304_s30, 2 }
0x18c7   : > { %p4113_p0 = pnand %p4116_p13, %p4479_p6 }
0x18c9   : > { %p4114_p1 = pneg %p4113_p0 }
0x18cb   : > { %s3641_s23 = sand.u32 1, %s4993_s7  }
0x18cc   : > { %s3642_s8 = scalar_lea.sflag [#allocation3], %s3641_s23 }
0x18cd   : > { %4287 = dma.done.wait (%p4114_p1), %s3642_s8, 256  }
0x18ce   : > { %4289 = vsyncadd (%p4114_p1), %s3642_s8, 4294967040  ;;  %s4995_s30 = sld [smem:[#allocation7_spill]]  ;;  %s4998_s3 = smov %s4296_s28 }
0x18cf   : > { %s4996_s25 = sld [smem:[#allocation6_spill]] }
0x18d0   : > { %s4997_s29 = sld [smem:[#allocation8_spill]] }
0x18d4   : > { %p32_p2 = scmp.ge.s32.totalorder %s4995_s30, 4  }
0x18d5   : > { %s4999_s28 = smov %s4996_s25 }
0x18d6   :  { %34 = sbr.rel (!%p32_p2) target bundleno = 13 (0xd), region = 146 }
0x18db   :  { %3647 = vsyncpa [#allocation3], 1 }
0x18dc   :  { %3649 = vsyncpa [#allocation3 + $0x1], 1 }

// kernel: interaction_block_forward.6
= control target key start
LH: loop header
LB: loop body
LE: loop exit
PB: predicated region body
PF: predicated region fallthrough
CT: control target
= control target key end

     0   :  { %s4605_s0 = inlined_call_operand.vmem [shape: f32[2,16,32], index: 0, kind: input, shape index: {}]   ;;  %s4606_s1 = inlined_call_operand.vmem [shape: f32[2,8,32], index: 1, kind: input, shape index: {}]   ;;  %s4607_s2 = inlined_call_operand.vmem [shape: f32[32,96], index: 2, kind: input, shape index: {}]   ;;  %s4608_s3 = inlined_call_operand.vmem [shape: f32[1,96], index: 3, kind: input, shape index: {}]   ;;  %s4609_s4 = inlined_call_operand.vmem [shape: f32[32,32], index: 4, kind: input, shape index: {}]   ;;  %s4610_s5 = inlined_call_operand.vmem [shape: f32[1,32], index: 5, kind: input, shape index: {}]   ;;  %s4611_s6 = inlined_call_operand.vmem [shape: f32[32,96], index: 6, kind: input, shape index: {}]   ;;  %s4612_s7 = inlined_call_operand.vmem [shape: f32[1,96], index: 7, kind: input, shape index: {}]   ;;  %s4613_s8 = inlined_call_operand.vmem [shape: f32[32,32], index: 8, kind: input, shape index: {}]   ;;  %s4614_s9 = inlined_call_operand.vmem [shape: f32[1,32], index: 9, kind: input, shape index: {}]   ;;  %s4615_s10 = inlined_call_operand.vmem [shape: f32[1,32], index: 10, kind: input, shape index: {}]   ;;  %s4616_s11 = inlined_call_operand.vmem [shape: f32[1,32], index: 11, kind: input, shape index: {}]   ;;  %s4617_s12 = inlined_call_operand.vmem [shape: f32[1,32], index: 12, kind: input, shape index: {}]   ;;  %s4618_s13 = inlined_call_operand.vmem [shape: f32[1,32], index: 13, kind: input, shape index: {}]   ;;  %s4619_s14 = inlined_call_operand.vmem [shape: f32[32,64], index: 14, kind: input, shape index: {}]   ;;  %s4620_s15 = inlined_call_operand.vmem [shape: f32[1,64], index: 15, kind: input, shape index: {}]   ;;  %s4621_s16 = inlined_call_operand.vmem [shape: f32[64,32], index: 16, kind: input, shape index: {}]   ;;  %s4622_s17 = inlined_call_operand.vmem [shape: f32[1,32], index: 17, kind: input, shape index: {}]   ;;  %s4623_s18 = inlined_call_operand.vmem [shape: f32[1,32], index: 18, kind: input, shape index: {}]   ;;  %s4624_s19 = inlined_call_operand.vmem [shape: f32[1,32], index: 19, kind: input, shape index: {}]   ;;  %s4625_s20 = inlined_call_operand.vmem [shape: f32[2,16,32], index: 20, kind: output, shape index: {}]  }
   0x1   :  { %4634 = sst [smem:[#allocation2_spill]] %s4605_s0 }
   0x2   :  { %4635 = sst [smem:[#allocation3_spill]] %s4606_s1  ;;  %s4213_s1 = smov 0  }
   0x3   :  { %4636 = sst [smem:[#allocation4_spill]] %s4607_s2 }
   0x4   :  { %4637 = sst [smem:[#allocation5_spill]] %s4608_s3 }
   0x5   :  { %4638 = sst [smem:[#allocation6_spill]] %s4609_s4 }
   0x6 LB: > { %s3583_s22 = sadd.s32 4294967295, %s4093_s1   ;;  %p3587_p0 = scmp.ge.s32.totalorder %s4093_s1, 1  ;;  %s4093_s1 = sphi %s4213_s1, %s30_s1  }
   0x7   : > { %p571_p1 = scmp.lt.s32.totalorder %s4093_s1, 3 }
   0x9   : > { %p572_p2 = pnand %p3587_p0, %p571_p1 }
   0xa   : > { %s4639_s2 = sld [smem:[#allocation4_spill]] (!%p572_p2)  ;;  %p633_p3 = scmp.lt.s32.totalorder (!%p572_p2), %s3583_s22, 1 }
   0xb   : > { %575 = sbr.rel (%p572_p2) target bundleno = 6004 (0x1774), region = 100  ;;  %s4640_s21 = sld [smem:[#allocation2_spill]] (!%p572_p2) }
   0xc   : > { %s4641_s3 = sld [smem:[#allocation5_spill]] (!%p572_p2)  ;;  %s4633_s26 = smov (!%p572_p2), 88  }
   0xd   : > { %s4096_s27 = smov (!%p572_p2), 96   ;;  %s4097_s28 = smov (!%p572_p2), 120  }
   0xe   : > { %s4098_s4 = smov (!%p572_p2), 64   ;;  %s4099_s30 = smov (!%p572_p2), 56  }
   0xf   : > { %s4630_s0 = smov (!%p572_p2), 80   ;;  %s4631_s24 = smov (!%p572_p2), 104  }
  0x10   : > { %v653_v0 = vld [vmem:[%s4639_s2 + $0x18] sm:$0xff]  ;;  %v652_v1 = vld [vmem:[%s4639_s2 + $0x10] sm:$0xff]  ;;  %v651_v2 = vld [vmem:[%s4639_s2 + $0x8] sm:$0xff]  ;;  %s4650_s22 = smov (!%p633_p3, %s3583_s22), 1  ;;  %vm666_vm0 = vcmask 261120   ;;  %vm756_vm1 = vcmask 64512  }
  0x11   : > { %3791 = vmatprep.subr.mxu0 %v653_v0  ;;  %v650_v3 = vld [vmem:[%s4639_s2] sm:$0xff]  ;;  %s4628_s29 = sshll.u32 %s4650_s22, 4  ;;  %vm842_vm2 = vcmask 130048   ;;  %s4105_s25 = smov 40   ;;  %vm4107_vm3 = vmmov 0   ;;  %vm3386_vm4 = vcmask 523264  }
  0x12   : > { %3792 = vmatpush3.msra.mxu0 %v653_v0  ;;  %s637_s23 = scalar_lea.vmem %s4640_s21, %s4628_s29  ;;  %v3593_v6 = vld [vmem:[%s4641_s3] ss:$0 sm:$0xff]  ;;  %s4101_s21 = smov 112  }
  0x13   : > { %3793 = vmatprep.subr.mxu0 %v652_v1  ;;  %v4241_v4 = vld [vmem:[%s637_s23] sm:$0xff]  ;;  %v4243_v5 = vld [vmem:[%s637_s23 + $0x8] sm:$0xff]  ;;  %s4629_s23 = smov 72   ;;  %s4104_s29 = smov 48  }
  0x14   : > { %3794 = vmatpush3.msra.mxu0 %v652_v1  ;;  %3799 = vmatprep.mubr.msk.f32.mxu0 %vm666_vm0, %v4241_v4  ;;  %s3590_s3 = sshll.u32 %s4650_s22, 3 }
  0x15   : > { %3795 = vmatprep.subr.mxu0 %v651_v2 }
  0x16   : > { %3796 = vmatpush3.msra.mxu0 %v651_v2 }
  0x17   : > { %3797 = vmatprep.subr.mxu0 %v650_v3 }
  0x18   : > { %3798 = vmatpush3.msra.mxu0 %v650_v3 }
  0x19   : > { %3800 = vmatmul.mubr.msk.f32.vlgmr.msra.gmra.mxu0 %vm666_vm0, %v4243_v5 }
  0xd9   : > { %v3801_v7 = vpop.f32.mrf.mxu0 }
  0xda   : > { %v4252_v8 = vadd.f32 %v3801_v7, %v3593_v6 }
  0xdb   : > { %v739_v9 = vpop.f32.mrf.mxu0 }
  0xdc   : > { %v4254_v10 = vadd.f32 %v3593_v6, %v739_v9  ;;  %958 = vrot.lane.b32.xlu1 %v4252_v8, %s4633_s26  ;;  %754 = vrot.lane.b32.xlu0 %v4252_v8, %s4096_s27  ;;  %v4270_v12 = vmul.f32 0.35355338, %v4252_v8 }
  0xde   : > { %v4261_v11 = vmul.f32 0.35355338, %v4254_v10 }
  0xe0   : > { %956 = vrot.lane.b32.xlu1 %v4254_v10, %s4633_s26  ;;  %752 = vrot.lane.b32.xlu0 %v4254_v10, %s4096_s27 }
  0xe1   : > { %3806 = vmatprep.mubr.msk.f32.mxu1 %vm756_vm1, %v4261_v11 }
  0xe4   : > { %954 = vrot.lane.b32.xlu1 %v4270_v12, %s4097_s28  ;;  %952 = vrot.lane.b32.xlu0 %v4261_v11, %s4097_s28 }
 0x14e   : > { %v755_v13 = vpop.permute.xlu0 %754  ;;  %v959_v14 = vpop.permute.xlu1 %958 }
 0x14f   : > { %3802 = vmatprep.subr.msk.mxu1 %vm756_vm1, %v755_v13 }
 0x150   : > { %3803 = vmatpush3.xpose.msk.msra.mxu1 %vm756_vm1, %v755_v13 }
 0x152   : > { %v753_v15 = vpop.permute.xlu0 %752  ;;  %v957_v17 = vpop.permute.xlu1 %956 }
 0x153   : > { %3804 = vmatprep.subr.msk.mxu1 %vm756_vm1, %v753_v15 }
 0x154   : > { %3805 = vmatpush3.xpose.msk.msra.mxu1 %vm756_vm1, %v753_v15 }
 0x155   : > { %3816 = vmatprep.subr.msk.mxu1 %vm756_vm1, %v959_v14 }
 0x156   : > { %v953_v16 = vpop.permute.xlu0 %952  ;;  %v955_v18 = vpop.permute.xlu1 %954 }
 0x157   : > { %3807 = vmatmul.mubr.msk.f32.vlgmr.msra.gmra.mxu1 %vm756_vm1, %v4270_v12 }
 0x158   : > { %3817 = vmatpush3.xpose.msk.msra.mxu1 %vm756_vm1, %v959_v14  ;;  %3820 = vmatprep.mubr.msk.f32.mxu1 %vm756_vm1, %v953_v16 }
 0x159   : > { %3818 = vmatprep.subr.msk.mxu1 %vm756_vm1, %v957_v17 }
 0x15c   : > { %3819 = vmatpush3.xpose.msk.msra.mxu1 %vm756_vm1, %v957_v17 }
 0x15f   : > { %3821 = vmatmul.mubr.msk.f32.vlgmr.msra.gmra.mxu1 %vm756_vm1, %v955_v18 }
 0x217   : > { %v3808_v19 = vpop.f32.mrf.mxu1 }
 0x218   : > { %v846_v20 = vsel %vm842_vm2, %v3808_v19, -inf }
 0x219   : > { %847 = vmax.xlane.f32.xlu1 %v846_v20  ;;  %v833_v21 = vpop.f32.mrf.mxu1 }
 0x21a   : > { %v843_v22 = vsel %vm842_vm2, %v833_v21, -inf }
 0x21b   : > { %844 = vmax.xlane.f32.xlu0 %v843_v22 }
 0x21f   : > { %v3822_v23 = vpop.f32.mrf.mxu1 }
 0x220   : > { %v1046_v26 = vsel %vm842_vm2, %v3822_v23, -inf }
 0x221   : > { %v1034_v24 = vpop.f32.mrf.mxu1 }
 0x222   : > { %v1043_v25 = vsel %vm842_vm2, %v1034_v24, -inf }
 0x223   : > { %1044 = vmax.xlane.f32.xlu0 %v1043_v25 }
 0x227   : > { %1047 = vmax.xlane.f32.xlu0 %v1046_v26 }
 0x22a   : > { %867 = vrot.lane.b32.xlu1 %v4252_v8, %s4098_s4 }
 0x2a2   : > { %v848_v27 = vpop.xlane.xlu1 %847 }
 0x2a3   : > { %v850_v28 = vsub.f32 %v3808_v19, %v848_v27 }
 0x2a4   : > { %v845_v29 = vpop.xlane.xlu0 %844 }
 0x2a5   : > { %v853_v30 = vmul.f32 1.442695, %v850_v28  ;;  %v849_v31 = vsub.f32 %v833_v21, %v845_v29 }
 0x2a6   : > { %v868_v32 = vpop.permute.xlu1 %867 }
 0x2a7   : > { %4011 = vpow2.f32 %v853_v30  ;;  %v851_v33 = vmul.f32 1.442695, %v849_v31  ;;  %3809 = vmatprep.subr.mxu0 %v868_v32 }
 0x2a8   : > { %3810 = vmatpush3.msra.mxu0 %v868_v32 }
 0x2a9   : > { %4013 = vpow2.f32 %v851_v33 }
 0x2ac   : > { %v1045_v34 = vpop.xlane.xlu0 %1044 }
 0x2ad   : > { %v1049_v44 = vsub.f32 %v1034_v24, %v1045_v34 }
 0x2af   : > { %v1051_v45 = vmul.f32 1.442695, %v1049_v44 }
 0x2b0   : > { %v1048_v35 = vpop.xlane.xlu0 %1047 }
 0x2b1   : > { %v1050_v36 = vsub.f32 %v3822_v23, %v1048_v35 }
 0x2b3   : > { %v1053_v37 = vmul.f32 1.442695, %v1050_v36 }
 0x2b4   : > { %v4012_v38 = vpop.eup %4011 }
 0x2b5   : > { %4015 = vpow2.f32 %v1053_v37  ;;  %v858_v39 = vsel %vm842_vm2, %v4012_v38, 0.0 }
 0x2b6   : > { %v4014_v40 = vpop.eup %4013  ;;  %859 = vadd.xlane.f32.xlu0 %v858_v39  ;;  %4017 = vpow2.f32 %v1051_v45 }
 0x2b7   : > { %v855_v41 = vsel %vm842_vm2, %v4014_v40, 0.0 }
 0x2b8   : > { %856 = vadd.xlane.f32.xlu1 %v855_v41 }
 0x2c2   : > { %v4016_v42 = vpop.eup %4015 }
 0x2c3   : > { %v1058_v43 = vsel %vm842_vm2, %v4016_v42, 0.0  ;;  %v4018_v46 = vpop.eup %4017 }
 0x2c4   : > { %1059 = vadd.xlane.f32.xlu0 %v1058_v43  ;;  %v1055_v47 = vsel %vm842_vm2, %v4018_v46, 0.0 }
 0x2c9   : > { %1067 = vrot.lane.b32.xlu1 %v4252_v8, %s4099_s30 }
 0x2da   : > { %865 = vrot.lane.b32.xlu0 %v4254_v10, %s4098_s4  ;;  %s4642_s4 = sld [smem:[#allocation6_spill]] }
 0x2de   : > { %1320 = vrot.lane.b32.xlu0 %v4252_v8, %s4630_s0 }
 0x2e0   : > { %v656_v63 = vld [vmem:[%s4642_s4 + $0x8] sm:$0xff]  ;;  %v655_v0 = vld [vmem:[%s4642_s4] sm:$0xff] }
 0x2e2   : > { %1314 = vrot.lane.b32.xlu0 %v4261_v11, %s4101_s21 }
 0x2e6   : > { %1603 = vrot.lane.b32.xlu0 %v4252_v8, %s4629_s23 }
 0x2ea   : > { %1597 = vrot.lane.b32.xlu0 %v4261_v11, %s4631_s24 }
 0x2ed   : > { %1056 = vadd.xlane.f32.xlu1 %v1055_v47 }
 0x2fe   : > { %1065 = vrot.lane.b32.xlu1 %v4254_v10, %s4099_s30 }
 0x302   : > { %1318 = vrot.lane.b32.xlu1 %v4254_v10, %s4630_s0 }
 0x306   : > { %1316 = vrot.lane.b32.xlu1 %v4270_v12, %s4101_s21 }
 0x30a   : > { %1601 = vrot.lane.b32.xlu1 %v4254_v10, %s4629_s23  ;;  %s4647_s23 = smov 72  }
 0x30e   : > { %1599 = vrot.lane.b32.xlu1 %v4270_v12, %s4631_s24 }
 0x33f   : > { %v860_v48 = vpop.xlane.xlu0 %859 }
 0x340   : > { %4019 = vrcp.f32 %v860_v48 }
 0x341   : > { %v857_v49 = vpop.xlane.xlu1 %856 }
 0x342   : > { %4021 = vrcp.f32 %v857_v49 }
 0x345   : > { %v1068_v56 = vpop.permute.xlu1 %1067 }
 0x34d   : > { %v1060_v50 = vpop.xlane.xlu0 %1059  ;;  %v4020_v51 = vpop.eup %4019 }
 0x34e   : > { %v864_v55 = vmul.f32 %v4020_v51, %v4012_v38  ;;  %4023 = vrcp.f32 %v1060_v50  ;;  %v657_v50 = vld [vmem:[%s4642_s4 + $0x10] sm:$0xff] }
 0x34f   : > { %v4022_v52 = vpop.eup %4021 }
 0x350   : > { %v863_v53 = vmul.f32 %v4022_v52, %v4014_v40 }
 0x351   : > { %v866_v54 = vpop.permute.xlu0 %865 }
 0x352   : > { %3811 = vmatprep.subr.mxu0 %v866_v54  ;;  %3813 = vmatprep.mubr.msk.f32.mxu0 %vm842_vm2, %v863_v53 }
 0x353   : > { %3812 = vmatpush3.msra.mxu0 %v866_v54 }
 0x354   : > { %3814 = vmatmul.mubr.msk.f32.vlgmr.msra.gmra.mxu0 %vm842_vm2, %v864_v55  ;;  %3823 = vmatprep.subr.mxu0 %v1068_v56 }
 0x355   : > { %3824 = vmatpush3.msra.mxu0 %v1068_v56  ;;  %v1321_v2 = vpop.permute.xlu0 %1320 }
 0x359   : > { %v1315_v9 = vpop.permute.xlu0 %1314 }
 0x35b   : > { %v4024_v59 = vpop.eup %4023 }
 0x35c   : > { %v1064_v62 = vmul.f32 %v4024_v59, %v4016_v42 }
 0x35d   : > { %v1604_v12 = vpop.permute.xlu0 %1603 }
 0x361   : > { %v1598_v14 = vpop.permute.xlu0 %1597 }
 0x376   : > { %v1057_v57 = vpop.xlane.xlu1 %1056 }
 0x377   : > { %4025 = vrcp.f32 %v1057_v57 }
 0x37a   : > { %v1066_v58 = vpop.permute.xlu1 %1065 }
 0x37b   : > { %3825 = vmatprep.subr.mxu0 %v1066_v58 }
 0x37c   : > { %3826 = vmatpush3.msra.mxu0 %v1066_v58 }
 0x37d   : > { %3830 = vmatprep.subr.mxu0 %v656_v63 }
 0x37e   : > { %v1319_v11 = vpop.permute.xlu1 %1318 }
 0x382   : > { %v1317_v13 = vpop.permute.xlu1 %1316 }
 0x384   : > { %v4026_v60 = vpop.eup %4025 }
 0x385   : > { %v1063_v61 = vmul.f32 %v4026_v60, %v4018_v46 }
 0x386   : > { %v1602_v15 = vpop.permute.xlu1 %1601 }
 0x387   : > { %3827 = vmatprep.mubr.msk.f32.mxu0 %vm842_vm2, %v1063_v61 }
 0x388   : > { %3828 = vmatmul.mubr.msk.f32.vlgmr.msra.gmra.mxu0 %vm842_vm2, %v1064_v62 }
 0x389   : > { %3831 = vmatpush3.msra.mxu0 %v656_v63 }
 0x38a   : > { %3835 = vmatprep.subr.mxu0 %v655_v0  ;;  %v1600_v16 = vpop.permute.xlu1 %1599 }
 0x414   : > { %v3815_v1 = vpop.f32.mrf.mxu0 }
 0x416   : > { %v943_v3 = vpop.f32.mrf.mxu0 }
 0x448   : > { %v3829_v6 = vpop.f32.mrf.mxu0 }
 0x44a   : > { %v1143_v7 = vpop.f32.mrf.mxu0 }
 0x44b   : > { %3832 = vmatprep.mubr.msk.f32.mxu0 %vm756_vm1, %v1143_v7 }
 0x44c   : > { %3833 = vmatmul.mubr.msk.f32.vlgmr.msra.gmra.mxu0 %vm756_vm1, %v3829_v6 }
 0x44d   : > { %3836 = vmatpush3.msra.mxu0 %v655_v0  ;;  %3837 = vmatprep.mubr.msk.f32.mxu0 %vm756_vm1, %v943_v3 }
 0x44e   : > { %3840 = vmatprep.subr.msk.mxu0 %vm756_vm1, %v1321_v2 }
 0x450   : > { %3838 = vmatmul.mubr.msk.f32.vlgmr.msra.gmra.mxu0 %vm756_vm1, %v3815_v1 }
 0x451   : > { %3841 = vmatpush3.xpose.msk.msra.mxu0 %vm756_vm1, %v1321_v2  ;;  %3844 = vmatprep.mubr.msk.f32.mxu0 %vm756_vm1, %v1315_v9 }
 0x452   : > { %3842 = vmatprep.subr.msk.mxu0 %vm756_vm1, %v1319_v11 }
 0x455   : > { %3843 = vmatpush3.xpose.msk.msra.mxu0 %vm756_vm1, %v1319_v11 }
 0x456   : > { %3859 = vmatprep.subr.msk.mxu0 %vm756_vm1, %v1604_v12 }
 0x458   : > { %3845 = vmatmul.mubr.msk.f32.vlgmr.msra.gmra.mxu0 %vm756_vm1, %v1317_v13 }
 0x459   : > { %3860 = vmatpush3.xpose.msk.msra.mxu0 %vm756_vm1, %v1604_v12  ;;  %3863 = vmatprep.mubr.msk.f32.mxu0 %vm756_vm1, %v1598_v14 }
 0x45a   : > { %3861 = vmatprep.subr.msk.mxu0 %vm756_vm1, %v1602_v15 }
 0x45d   : > { %3862 = vmatpush3.xpose.msk.msra.mxu0 %vm756_vm1, %v1602_v15  ;;  %v1938_v15 = vld [vmem:[%s4611_s6 + $0x18] sm:$0xff] }
 0x45e   : > { %3878 = vmatprep.subr.mxu0 %v1938_v15 }
 0x460   : > { %3864 = vmatmul.mubr.msk.f32.vlgmr.msra.gmra.mxu0 %vm756_vm1, %v1600_v16  ;;  %v3628_v16 = vld [vmem:[%s4610_s5] ss:$0 sm:$0xff] }
 0x461   : > { %3879 = vmatpush3.msra.mxu0 %v1938_v15 }
 0x50c   : > { %v3834_v17 = vpop.f32.mrf.mxu0 }
 0x50e   : > { %v1224_v18 = vpop.f32.mrf.mxu0 }
 0x510   : > { %v3839_v19 = vpop.f32.mrf.mxu0 }
 0x511   : > { %v4344_v20 = vadd.f32 %v3839_v19, %v3834_v17 }
 0x512   : > { %v1305_v21 = vpop.f32.mrf.mxu0 }
 0x513   : > { %v4346_v22 = vadd.f32 %v1305_v21, %v1224_v18 }
 0x518   : > { %v3846_v23 = vpop.f32.mrf.mxu0 }
 0x519   : > { %v1408_v24 = vsel %vm842_vm2, %v3846_v23, -inf }
 0x51a   : > { %1409 = vmax.xlane.f32.xlu1 %v1408_v24  ;;  %v1396_v25 = vpop.f32.mrf.mxu0 }
 0x51b   : > { %v1405_v26 = vsel %vm842_vm2, %v1396_v25, -inf }
 0x51c   : > { %1406 = vmax.xlane.f32.xlu0 %v1405_v26 }
 0x520   : > { %v3865_v27 = vpop.f32.mrf.mxu0 }
 0x521   : > { %v1691_v46 = vsel %vm842_vm2, %v3865_v27, -inf }
 0x522   : > { %v1679_v28 = vpop.f32.mrf.mxu0 }
 0x523   : > { %v1688_v29 = vsel %vm842_vm2, %v1679_v28, -inf }
 0x52b   : > { %1429 = vrot.lane.b32.xlu1 %v4252_v8, %s4104_s29 }
 0x54f   : > { %1689 = vmax.xlane.f32.xlu1 %v1688_v29 }
 0x5a3   : > { %v1410_v30 = vpop.xlane.xlu1 %1409 }
 0x5a4   : > { %v1412_v31 = vsub.f32 %v3846_v23, %v1410_v30 }
 0x5a5   : > { %v1407_v32 = vpop.xlane.xlu0 %1406 }
 0x5a6   : > { %v1415_v33 = vmul.f32 1.442695, %v1412_v31  ;;  %v1411_v34 = vsub.f32 %v1396_v25, %v1407_v32 }
 0x5a7   : > { %v1430_v35 = vpop.permute.xlu1 %1429 }
 0x5a8   : > { %4027 = vpow2.f32 %v1415_v33  ;;  %v1413_v36 = vmul.f32 1.442695, %v1411_v34  ;;  %3847 = vmatprep.subr.mxu1 %v1430_v35 }
 0x5a9   : > { %3848 = vmatpush3.msra.mxu1 %v1430_v35 }
 0x5aa   : > { %4029 = vpow2.f32 %v1413_v36 }
 0x5b5   : > { %v4028_v37 = vpop.eup %4027 }
 0x5b6   : > { %v1420_v38 = vsel %vm842_vm2, %v4028_v37, 0.0 }
 0x5b7   : > { %v4030_v39 = vpop.eup %4029  ;;  %1421 = vadd.xlane.f32.xlu0 %v1420_v38 }
 0x5b8   : > { %v1417_v40 = vsel %vm842_vm2, %v4030_v39, 0.0 }
 0x5bb   : > { %1418 = vadd.xlane.f32.xlu0 %v1417_v40  ;;  %v3631_v40 = vld [vmem:[%s4612_s7] ss:$0 sm:$0xff] }
 0x5d1   : > { %1427 = vrot.lane.b32.xlu0 %v4254_v10, %s4104_s29  ;;  %s4646_s29 = smov 80  }
 0x5d8   : > { %v1690_v41 = vpop.xlane.xlu1 %1689 }
 0x5d9   : > { %v1694_v42 = vsub.f32 %v1679_v28, %v1690_v41  ;;  %v4106_v28 = vmov 0.0  }
 0x5db   : > { %v1696_v43 = vmul.f32 1.442695, %v1694_v42 }
 0x5dd   : > { %4031 = vpow2.f32 %v1696_v43 }
 0x5ea   : > { %v4032_v44 = vpop.eup %4031 }
 0x5eb   : > { %v1700_v45 = vsel %vm842_vm2, %v4032_v44, 0.0 }
 0x5ec   : > { %1701 = vadd.xlane.f32.xlu1 %v1700_v45 }
 0x5f0   : > { %1692 = vmax.xlane.f32.xlu0 %v1691_v46 }
 0x5fd   : > { %1712 = vrot.lane.b32.xlu1 %v4252_v8, %s4105_s25 }
 0x640   : > { %v1422_v47 = vpop.xlane.xlu0 %1421 }
 0x641   : > { %4033 = vrcp.f32 %v1422_v47 }
 0x644   : > { %v1419_v48 = vpop.xlane.xlu0 %1418 }
 0x645   : > { %4035 = vrcp.f32 %v1419_v48 }
 0x648   : > { %v1428_v49 = vpop.permute.xlu0 %1427 }
 0x649   : > { %3849 = vmatprep.subr.mxu1 %v1428_v49 }
 0x64a   : > { %3850 = vmatpush3.msra.mxu1 %v1428_v49 }
 0x64b   : > { %3854 = vmatprep.subr.mxu1 %v657_v50 }
 0x64e   : > { %v4034_v51 = vpop.eup %4033 }
 0x64f   : > { %v1426_v54 = vmul.f32 %v4034_v51, %v4028_v37 }
 0x652   : > { %v4036_v52 = vpop.eup %4035 }
 0x653   : > { %v1425_v53 = vmul.f32 %v4036_v52, %v4030_v39  ;;  %v3629_v52 = vld [vmem:[%s4615_s10] ss:$0 sm:$0xff] }
 0x655   : > { %3851 = vmatprep.mubr.msk.f32.mxu1 %vm842_vm2, %v1425_v53 }
 0x656   : > { %3852 = vmatmul.mubr.msk.f32.vlgmr.msra.gmra.mxu1 %vm842_vm2, %v1426_v54 }
 0x657   : > { %3855 = vmatpush3.msra.mxu1 %v657_v50 }
 0x675   : > { %v1702_v8 = vpop.xlane.xlu1 %1701 }
 0x679   : > { %v1713_v55 = vpop.permute.xlu1 %1712  ;;  %v1693_v56 = vpop.xlane.xlu0 %1692 }
 0x67a   : > { %v1695_v57 = vsub.f32 %v3865_v27, %v1693_v56  ;;  %3866 = vmatprep.subr.mxu1 %v1713_v55  ;;  %v1937_v27 = vld [vmem:[%s4611_s6 + $0x10] sm:$0xff]  ;;  %v3630_v56 = vld [vmem:[%s4616_s11] ss:$0 sm:$0xff] }
 0x67b   : > { %3880 = vmatprep.subr.mxu0 %v1937_v27 }
 0x67c   : > { %v1698_v58 = vmul.f32 1.442695, %v1695_v57  ;;  %3881 = vmatpush3.msra.mxu0 %v1937_v27 }
 0x67e   : > { %4037 = vpow2.f32 %v1698_v58 }
 0x67f   : > { %4039 = vrcp.f32 %v1702_v8 }
 0x68b   : > { %v4038_v59 = vpop.eup %4037 }
 0x68c   : > { %v1703_v60 = vsel %vm842_vm2, %v4038_v59, 0.0  ;;  %v4040_v61 = vpop.eup %4039 }
 0x68d   : > { %1704 = vadd.xlane.f32.xlu0 %v1703_v60  ;;  %v1708_v1 = vmul.f32 %v4040_v61, %v4032_v44 }
 0x6a3   : > { %1710 = vrot.lane.b32.xlu0 %v4254_v10, %s4105_s25  ;;  %v658_v10 = vld [vmem:[%s4642_s4 + $0x18] sm:$0xff]  ;;  %s4643_s25 = sld [smem:[#allocation3_spill]] }
 0x6a9   : > { %s641_s24 = scalar_lea.vmem %s4643_s25, %s3590_s3  ;;  %s4645_s3 = smov 104  }
 0x6aa   : > { %v649_v49 = vld [vmem:[%s641_s24] sm:$0xff]  ;;  %s4644_s24 = smov 88  }
 0x716   : > { %v3853_v62 = vpop.f32.mrf.mxu1  ;;  %v1705_v63 = vpop.xlane.xlu0 %1704 }
 0x717   : > { %4041 = vrcp.f32 %v1705_v63 }
 0x718   : > { %v1505_v0 = vpop.f32.mrf.mxu1 }
 0x719   : > { %3856 = vmatprep.mubr.msk.f32.mxu1 %vm756_vm1, %v1505_v0 }
 0x71a   : > { %3857 = vmatmul.mubr.msk.f32.vlgmr.msra.gmra.mxu1 %vm756_vm1, %v3853_v62  ;;  %v1711_v2 = vpop.permute.xlu0 %1710 }
 0x71b   : > { %3867 = vmatpush3.msra.mxu1 %v1713_v55  ;;  %3870 = vmatprep.mubr.msk.f32.mxu1 %vm842_vm2, %v1708_v1 }
 0x71c   : > { %3868 = vmatprep.subr.mxu1 %v1711_v2 }
 0x71d   : > { %3869 = vmatpush3.msra.mxu1 %v1711_v2 }
 0x71e   : > { %3873 = vmatprep.subr.mxu1 %v658_v10 }
 0x724   : > { %v4042_v3 = vpop.eup %4041 }
 0x725   : > { %v1709_v6 = vmul.f32 %v4042_v3, %v4038_v59 }
 0x727   : > { %3871 = vmatmul.mubr.msk.f32.vlgmr.msra.gmra.mxu1 %vm842_vm2, %v1709_v6 }
 0x728   : > { %3874 = vmatpush3.msra.mxu1 %v658_v10 }
 0x729   : > { %3889 = vmatprep.subr.mxu1 %v4106_v28 }
 0x7da   : > { %v3858_v7 = vpop.f32.mrf.mxu1 }
 0x7db   : > { %v1596_v9 = vadd.f32 %v3858_v7, %v4344_v20 }
 0x7dc   : > { %v1586_v11 = vpop.f32.mrf.mxu1 }
 0x7dd   : > { %v1595_v12 = vadd.f32 %v1586_v11, %v4346_v22 }
 0x7e7   : > { %v3872_v13 = vpop.f32.mrf.mxu1 }
 0x7e9   : > { %v1788_v14 = vpop.f32.mrf.mxu1 }
 0x7ea   : > { %3875 = vmatprep.mubr.msk.f32.mxu1 %vm756_vm1, %v1788_v14 }
 0x7eb   : > { %3876 = vmatmul.mubr.msk.f32.vlgmr.msra.gmra.mxu1 %vm756_vm1, %v3872_v13 }
 0x7ec   : > { %3897 = vmatprep.mubr.msk.f32.mxu1 %vm4107_vm3, %v4106_v28 }
 0x8ab   : > { %v3877_v17 = vpop.f32.mrf.mxu1 }
 0x8ac   : > { %v1879_v18 = vadd.f32 %v3877_v17, %v1596_v9 }
 0x8ad   : > { %v1869_v19 = vpop.f32.mrf.mxu1 }
 0x8ae   : > { %v1887_v20 = vadd.f32 %v3628_v16, %v1879_v18  ;;  %v1878_v21 = vadd.f32 %v1869_v19, %v1595_v12 }
 0x8b0   : > { %v1886_v22 = vadd.f32 %v3628_v16, %v1878_v21  ;;  %v1889_v23 = vadd.f32 %v1887_v20, %v4243_v5  ;;  %v1936_v5 = vld [vmem:[%s4611_s6 + $0x8] sm:$0xff] }
 0x8b1   : > { %3882 = vmatprep.subr.mxu0 %v1936_v5 }
 0x8b2   : > { %v1895_v24 = vsel %vm666_vm0, %v1889_v23, 0.0  ;;  %v1888_v25 = vadd.f32 %v1886_v22, %v4241_v4  ;;  %v1935_v4 = vld [vmem:[%s4611_s6] sm:$0xff]  ;;  %3883 = vmatpush3.msra.mxu0 %v1936_v5 }
 0x8b3   : > { %1896 = vadd.xlane.f32.xlu0 %v1895_v24  ;;  %3884 = vmatprep.subr.mxu0 %v1935_v4 }
 0x8b4   : > { %v1892_v26 = vsel %vm666_vm0, %v1888_v25, 0.0  ;;  %3885 = vmatpush3.msra.mxu0 %v1935_v4 }
 0x8b5   : > { %1893 = vadd.xlane.f32.xlu1 %v1892_v26 }
 0x8c6   : > { %2042 = vrot.lane.b32.xlu1 %v1938_v15, %s4096_s27 }
 0x93c   : > { %v1897_v29 = vpop.xlane.xlu0 %1896 }
 0x93d   : > { %v1900_v30 = vmul.f32 0.03125, %v1897_v29 }
 0x93e   : > { %v1894_v31 = vpop.xlane.xlu1 %1893 }
 0x93f   : > { %v1902_v32 = vsub.f32 %v1889_v23, %v1900_v30  ;;  %v1899_v33 = vmul.f32 0.03125, %v1894_v31 }
 0x941   : > { %v1901_v34 = vsub.f32 %v1888_v25, %v1899_v33  ;;  %v1904_v35 = vmul.f32 %v1902_v32, %v1902_v32 }
 0x942   : > { %v2043_v36 = vpop.permute.xlu1 %2042 }
 0x943   : > { %v1908_v37 = vsel %vm666_vm0, %v1904_v35, 0.0  ;;  %v1903_v38 = vmul.f32 %v1901_v34, %v1901_v34  ;;  %3890 = vmatpush3.msra.mxu1 %v2043_v36 }
 0x944   : > { %1909 = vadd.xlane.f32.xlu0 %v1908_v37  ;;  %3891 = vmatprep.subr.mxu1 %v4106_v28 }
 0x945   : > { %v1905_v39 = vsel %vm666_vm0, %v1903_v38, 0.0  ;;  %v1941_v38 = vld [vmem:[%s4613_s8 + $0x8] sm:$0xff] }
 0x946   : > { %1906 = vadd.xlane.f32.xlu1 %v1905_v39 }
 0x957   : > { %2038 = vrot.lane.b32.xlu1 %v1936_v5, %s4096_s27 }
 0x95a   : > { %2040 = vrot.lane.b32.xlu0 %v1937_v27, %s4096_s27 }
 0x95b   : > { %2036 = vrot.lane.b32.xlu1 %v1935_v4, %s4096_s27 }
 0x95e   : > { %2048 = vrot.lane.b32.xlu0 %v3631_v40, %s4096_s27 }
 0x9cd   : > { %v1910_v41 = vpop.xlane.xlu0 %1909 }
 0x9ce   : > { %v1912_v42 = vmul.f32 0.03125, %v1910_v41 }
 0x9cf   : > { %v1907_v43 = vpop.xlane.xlu1 %1906 }
 0x9d0   : > { %v1914_v44 = vadd.f32 1e-05, %v1912_v42  ;;  %v1911_v45 = vmul.f32 0.03125, %v1907_v43 }
 0x9d1   : > { %v2041_v46 = vpop.permute.xlu0 %2040 }
 0x9d2   : > { %4043 = vrsqrt.f32 %v1914_v44  ;;  %v1913_v47 = vadd.f32 1e-05, %v1911_v45  ;;  %3892 = vmatpush3.msra.mxu1 %v2041_v46 }
 0x9d3   : > { %v2039_v48 = vpop.permute.xlu1 %2038  ;;  %3893 = vmatprep.subr.mxu1 %v4106_v28 }
 0x9d4   : > { %4045 = vrsqrt.f32 %v1913_v47  ;;  %3894 = vmatpush3.msra.mxu1 %v2039_v48 }
 0x9d5   : > { %3895 = vmatprep.subr.mxu1 %v4106_v28  ;;  %v2049_v60 = vpop.permute.xlu0 %2048 }
 0x9d7   : > { %v2037_v50 = vpop.permute.xlu1 %2036 }
 0x9d8   : > { %3896 = vmatpush3.msra.mxu1 %v2037_v50 }
 0x9d9   : > { %3898 = vmatmul.mubr.msk.f32.vlgmr.msra.gmra.mxu1 %vm666_vm0, %v649_v49 }
 0x9df   : > { %v4044_v51 = vpop.eup %4043 }
 0x9e0   : > { %v1918_v53 = vmul.f32 %v4044_v51, %v1902_v32 }
 0x9e1   : > { %v4046_v54 = vpop.eup %4045 }
 0x9e2   : > { %v1917_v8 = vmul.f32 %v4046_v54, %v1901_v34  ;;  %v1926_v55 = vmul.f32 %v3629_v52, %v1918_v53  ;;  %v1940_v54 = vld [vmem:[%s4613_s8] sm:$0xff] }
 0x9e4   : > { %v1925_v57 = vmul.f32 %v3629_v52, %v1917_v8  ;;  %v4418_v59 = vadd.f32 %v3630_v56, %v1926_v55 }
 0x9e6   : > { %v4416_v58 = vadd.f32 %v3630_v56, %v1925_v57 }
 0x9e8   : > { %3886 = vmatprep.mubr.msk.f32.mxu0 %vm666_vm0, %v4416_v58 }
 0x9e9   : > { %3887 = vmatmul.mubr.msk.f32.vlgmr.msra.gmra.mxu0 %vm666_vm0, %v4418_v59 }
 0xa99   : > { %v2120_v61 = vpop.f32.mrf.mxu1 }
 0xa9a   : > { %v4424_v62 = vadd.f32 %v2120_v61, %v2049_v60 }
 0xa9b   : > { %v3899_v63 = vpop.f32.mrf.mxu1 }
 0xa9c   : > { %2320 = vrot.lane.b32.xlu1 %v4424_v62, %s4097_s28  ;;  %3900 = vmatprep.subr.msk.mxu0 %vm756_vm1, %v4424_v62 }
 0xa9d   : > { %3901 = vmatpush3.xpose.msk.msra.mxu0 %vm756_vm1, %v4424_v62 }
 0xaa9   : > { %v3888_v0 = vpop.f32.mrf.mxu0 }
 0xaaa   : > { %v2029_v1 = vadd.f32 %v3888_v0, %v3631_v40 }
 0xaab   : > { %v2023_v2 = vpop.f32.mrf.mxu0 }
 0xaac   : > { %v4432_v3 = vmul.f32 0.35355338, %v2029_v1  ;;  %v2024_v6 = vadd.f32 %v3631_v40, %v2023_v2 }
 0xaae   : > { %v4434_v10 = vmul.f32 0.35355338, %v2024_v6  ;;  %2318 = vrot.lane.b32.xlu1 %v4432_v3, %s4097_s28 }
 0xab0   : > { %2316 = vrot.lane.b32.xlu0 %v4434_v10, %s4097_s28  ;;  %3902 = vmatprep.mubr.msk.f32.mxu0 %vm756_vm1, %v4434_v10 }
 0xab1   : > { %3903 = vmatmul.mubr.msk.f32.vlgmr.msra.gmra.mxu0 %vm756_vm1, %v4432_v3 }
 0xb0e   : > { %v2321_v7 = vpop.permute.xlu1 %2320 }
 0xb0f   : > { %3910 = vmatprep.subr.msk.mxu0 %vm756_vm1, %v2321_v7 }
 0xb10   : > { %3911 = vmatpush3.xpose.msk.msra.mxu0 %vm756_vm1, %v2321_v7 }
 0xb11   : > { %3920 = vmatprep.subr.mxu0 %v1941_v38 }
 0xb20   : > { %v2319_v11 = vpop.permute.xlu1 %2318 }
 0xb22   : > { %v2317_v9 = vpop.permute.xlu0 %2316 }
 0xb23   : > { %3912 = vmatprep.mubr.msk.f32.mxu0 %vm756_vm1, %v2317_v9 }
 0xb24   : > { %3913 = vmatmul.mubr.msk.f32.vlgmr.msra.gmra.mxu0 %vm756_vm1, %v2319_v11 }
 0xb25   : > { %3921 = vmatpush3.msra.mxu0 %v1941_v38 }
 0xb71   : > { %v3904_v12 = vpop.f32.mrf.mxu0 }
 0xb72   : > { %v2213_v13 = vsel %vm756_vm1, %v3904_v12, -inf }
 0xb73   : > { %2214 = vmax.xlane.f32.xlu1 %v2213_v13  ;;  %v2201_v14 = vpop.f32.mrf.mxu0 }
 0xb74   : > { %v2210_v15 = vsel %vm756_vm1, %v2201_v14, -inf }
 0xb75   : > { %2211 = vmax.xlane.f32.xlu0 %v2210_v15 }
 0xbe4   : > { %v3914_v16 = vpop.f32.mrf.mxu0 }
 0xbe5   : > { %v2406_v19 = vsel %vm756_vm1, %v3914_v16, -inf }
 0xbe6   : > { %v2394_v17 = vpop.f32.mrf.mxu0 }
 0xbe7   : > { %v2403_v18 = vsel %vm756_vm1, %v2394_v17, -inf }
 0xbe8   : > { %2404 = vmax.xlane.f32.xlu0 %v2403_v18 }
 0xbec   : > { %2407 = vmax.xlane.f32.xlu0 %v2406_v19 }
 0xbfc   : > { %v2215_v20 = vpop.xlane.xlu1 %2214 }
 0xbfd   : > { %v2217_v21 = vsub.f32 %v3904_v12, %v2215_v20 }
 0xbfe   : > { %v2212_v22 = vpop.xlane.xlu0 %2211 }
 0xbff   : > { %v2220_v23 = vmul.f32 1.442695, %v2217_v21  ;;  %v2216_v24 = vsub.f32 %v2201_v14, %v2212_v22 }
 0xc01   : > { %4047 = vpow2.f32 %v2220_v23  ;;  %v2218_v25 = vmul.f32 1.442695, %v2216_v24 }
 0xc03   : > { %4049 = vpow2.f32 %v2218_v25 }
 0xc0e   : > { %v4048_v26 = vpop.eup %4047 }
 0xc0f   : > { %v2225_v27 = vsel %vm756_vm1, %v4048_v26, 0.0 }
 0xc10   : > { %v4050_v5 = vpop.eup %4049  ;;  %2226 = vadd.xlane.f32.xlu0 %v2225_v27 }
 0xc11   : > { %v2222_v4 = vsel %vm756_vm1, %v4050_v5, 0.0 }
 0xc12   : > { %2223 = vadd.xlane.f32.xlu1 %v2222_v4 }
 0xc71   : > { %v2405_v28 = vpop.xlane.xlu0 %2404 }
 0xc72   : > { %v2409_v29 = vsub.f32 %v2394_v17, %v2405_v28  ;;  %v1942_v28 = vld [vmem:[%s4613_s8 + $0x10] sm:$0xff] }
 0xc74   : > { %v2411_v30 = vmul.f32 1.442695, %v2409_v29 }
 0xc75   : > { %v2408_v31 = vpop.xlane.xlu0 %2407 }
 0xc76   : > { %4051 = vpow2.f32 %v2411_v30  ;;  %v2410_v32 = vsub.f32 %v3914_v16, %v2408_v31 }
 0xc78   : > { %v2413_v33 = vmul.f32 1.442695, %v2410_v32 }
 0xc7a   : > { %4053 = vpow2.f32 %v2413_v33 }
 0xc83   : > { %v4052_v34 = vpop.eup %4051 }
 0xc84   : > { %v2415_v35 = vsel %vm756_vm1, %v4052_v34, 0.0 }
 0xc85   : > { %2416 = vadd.xlane.f32.xlu1 %v2415_v35 }
 0xc87   : > { %v4054_v36 = vpop.eup %4053 }
 0xc88   : > { %v2418_v37 = vsel %vm756_vm1, %v4054_v36, 0.0 }
 0xc89   : > { %2419 = vadd.xlane.f32.xlu0 %v2418_v37 }
 0xc96   : > { %2232 = vrot.lane.b32.xlu1 %v4424_v62, %s4096_s27 }
 0xc99   : > { %v2227_v42 = vpop.xlane.xlu0 %2226 }
 0xc9a   : > { %2675 = vrot.lane.b32.xlu1 %v4424_v62, %s4101_s21 }
 0xc9b   : > { %v2224_v39 = vpop.xlane.xlu1 %2223 }
 0xc9c   : > { %4055 = vrcp.f32 %v2224_v39 }
 0xc9d   : > { %4057 = vrcp.f32 %v2227_v42 }
 0xc9e   : > { %2671 = vrot.lane.b32.xlu1 %v4434_v10, %s4101_s21 }
 0xc9f   : > { %2425 = vrot.lane.b32.xlu0 %v4424_v62, %s4644_s24 }
 0xca3   : > { %2673 = vrot.lane.b32.xlu0 %v4432_v3, %s4101_s21 }
 0xca9   : > { %v4056_v40 = vpop.eup %4055 }
 0xcaa   : > { %v2230_v41 = vmul.f32 %v4056_v40, %v4050_v5  ;;  %v4058_v44 = vpop.eup %4057 }
 0xcab   : > { %v2231_v47 = vmul.f32 %v4058_v44, %v4048_v26 }
 0xcac   : > { %3907 = vmatprep.mubr.msk.f32.mxu1 %vm756_vm1, %v2230_v41 }
 0xd0e   : > { %v2417_v43 = vpop.xlane.xlu1 %2416 }
 0xd0f   : > { %4059 = vrcp.f32 %v2417_v43 }
 0xd12   : > { %v2233_v45 = vpop.permute.xlu1 %2232  ;;  %v2420_v46 = vpop.xlane.xlu0 %2419 }
 0xd13   : > { %4061 = vrcp.f32 %v2420_v46  ;;  %3905 = vmatprep.subr.mxu1 %v2233_v45  ;;  %v1943_v46 = vld [vmem:[%s4613_s8 + $0x18] sm:$0xff] }
 0xd14   : > { %3906 = vmatpush3.msra.mxu1 %v2233_v45 }
 0xd15   : > { %3908 = vmatmul.mubr.msk.f32.vlgmr.msra.gmra.mxu1 %vm756_vm1, %v2231_v47 }
 0xd16   : > { %v2676_v48 = vpop.permute.xlu1 %2675  ;;  %v2426_v49 = vpop.permute.xlu0 %2425 }
 0xd17   : > { %3915 = vmatprep.subr.mxu1 %v2426_v49  ;;  %3930 = vmatprep.subr.msk.mxu0 %vm756_vm1, %v2676_v48 }
 0xd18   : > { %3916 = vmatpush3.msra.mxu1 %v2426_v49 }
 0xd19   : > { %3925 = vmatprep.subr.mxu1 %v1940_v54 }
 0xd1a   : > { %v2672_v60 = vpop.permute.xlu1 %2671  ;;  %v2674_v61 = vpop.permute.xlu0 %2673 }
 0xd1c   : > { %v4060_v50 = vpop.eup %4059 }
 0xd1d   : > { %v2423_v51 = vmul.f32 %v4060_v50, %v4052_v34 }
 0xd1f   : > { %3917 = vmatprep.mubr.msk.f32.mxu1 %vm756_vm1, %v2423_v51 }
 0xd20   : > { %v4062_v52 = vpop.eup %4061 }
 0xd21   : > { %v2424_v53 = vmul.f32 %v4062_v52, %v4054_v36 }
 0xd23   : > { %3918 = vmatmul.mubr.msk.f32.vlgmr.msra.gmra.mxu1 %vm756_vm1, %v2424_v53 }
 0xd24   : > { %3926 = vmatpush3.msra.mxu1 %v1940_v54 }
 0xdd5   : > { %v3909_v8 = vpop.f32.mrf.mxu1 }
 0xdd7   : > { %v2307_v55 = vpop.f32.mrf.mxu1 }
 0xdd8   : > { %3927 = vmatprep.mubr.msk.f32.mxu1 %vm756_vm1, %v2307_v55 }
 0xdd9   : > { %3928 = vmatmul.mubr.msk.f32.vlgmr.msra.gmra.mxu1 %vm756_vm1, %v3909_v8 }
 0xde3   : > { %v3919_v56 = vpop.f32.mrf.mxu1 }
 0xde5   : > { %v2500_v57 = vpop.f32.mrf.mxu1 }
 0xde6   : > { %3922 = vmatprep.mubr.msk.f32.mxu0 %vm756_vm1, %v2500_v57 }
 0xde7   : > { %3923 = vmatmul.mubr.msk.f32.vlgmr.msra.gmra.mxu0 %vm756_vm1, %v3919_v56 }
 0xde8   : > { %3931 = vmatpush3.xpose.msk.msra.mxu0 %vm756_vm1, %v2676_v48  ;;  %3932 = vmatprep.mubr.msk.f32.mxu0 %vm756_vm1, %v2672_v60 }
 0xde9   : > { %3940 = vmatprep.subr.mxu0 %v1942_v28 }
 0xdeb   : > { %3933 = vmatmul.mubr.msk.f32.vlgmr.msra.gmra.mxu0 %vm756_vm1, %v2674_v61 }
 0xdec   : > { %3941 = vmatpush3.msra.mxu0 %v1942_v28 }
 0xe99   : > { %v3929_v63 = vpop.f32.mrf.mxu1 }
 0xe9b   : > { %v2662_v29 = vpop.f32.mrf.mxu1 }
 0xea7   : > { %v3924_v0 = vpop.f32.mrf.mxu0 }
 0xea8   : > { %v4484_v1 = vadd.f32 %v3929_v63, %v3924_v0  ;;  %v3663_v0 = vld [vmem:[%s4614_s9] ss:$0 sm:$0xff] }
 0xea9   : > { %v4486_v2 = vpop.f32.mrf.mxu0 }
 0xeaa   : > { %v2663_v57 = vadd.f32 %v2662_v29, %v4486_v2 }
 0xeab   : > { %v3934_v6 = vpop.f32.mrf.mxu0 }
 0xeac   : > { %v2761_v7 = vsel %vm756_vm1, %v3934_v6, -inf }
 0xead   : > { %2762 = vmax.xlane.f32.xlu0 %v2761_v7  ;;  %v2749_v9 = vpop.f32.mrf.mxu0 }
 0xeae   : > { %v2758_v11 = vsel %vm756_vm1, %v2749_v9, -inf }
 0xeaf   : > { %2759 = vmax.xlane.f32.xlu1 %v2758_v11 }
 0xf36   : > { %v2763_v12 = vpop.xlane.xlu0 %2762 }
 0xf37   : > { %v2765_v13 = vsub.f32 %v3934_v6, %v2763_v12 }
 0xf38   : > { %v2760_v14 = vpop.xlane.xlu1 %2759 }
 0xf39   : > { %v2768_v15 = vmul.f32 1.442695, %v2765_v13  ;;  %v2764_v16 = vsub.f32 %v2749_v9, %v2760_v14 }
 0xf3b   : > { %4063 = vpow2.f32 %v2768_v15  ;;  %v2766_v17 = vmul.f32 1.442695, %v2764_v16 }
 0xf3d   : > { %4065 = vpow2.f32 %v2766_v17 }
 0xf48   : > { %v4064_v18 = vpop.eup %4063 }
 0xf49   : > { %v2773_v19 = vsel %vm756_vm1, %v4064_v18, 0.0 }
 0xf4a   : > { %v4066_v20 = vpop.eup %4065  ;;  %2774 = vadd.xlane.f32.xlu1 %v2773_v19 }
 0xf4b   : > { %v2770_v21 = vsel %vm756_vm1, %v4066_v20, 0.0 }
 0xf4c   : > { %2771 = vadd.xlane.f32.xlu0 %v2770_v21 }
 0xf5b   : > { %2951 = vrot.lane.b32.xlu1 %v4424_v62, %s4645_s3 }
 0xf5f   : > { %2947 = vrot.lane.b32.xlu1 %v4434_v10, %s4645_s3 }
 0xf62   : > { %2780 = vrot.lane.b32.xlu0 %v4424_v62, %s4646_s29  ;;  %s4648_s29 = sshll.u32 %s4650_s22, 4 }
 0xf66   : > { %2949 = vrot.lane.b32.xlu0 %v4432_v3, %s4645_s3 }
 0xfd3   : > { %v2775_v22 = vpop.xlane.xlu1 %2774 }
 0xfd4   : > { %4067 = vrcp.f32 %v2775_v22 }
 0xfd5   : > { %v2772_v23 = vpop.xlane.xlu0 %2771 }
 0xfd6   : > { %4069 = vrcp.f32 %v2772_v23  ;;  %v3279_v23 = vld [vmem:[%s4619_s14 + $0x10] sm:$0xff] }
 0xfd7   : > { %v2952_v25 = vpop.permute.xlu1 %2951 }
 0xfd9   : > { %v2781_v24 = vpop.permute.xlu0 %2780 }
 0xfda   : > { %3935 = vmatprep.subr.mxu1 %v2781_v24 }
 0xfdb   : > { %3936 = vmatpush3.msra.mxu1 %v2781_v24  ;;  %v2948_v4 = vpop.permute.xlu1 %2947  ;;  %v3278_v24 = vld [vmem:[%s4619_s14 + $0x8] sm:$0xff] }
 0xfdc   : > { %3945 = vmatprep.subr.msk.mxu1 %vm756_vm1, %v2952_v25 }
 0xfdd   : > { %v2950_v3 = vpop.permute.xlu0 %2949 }
 0xfe1   : > { %v4068_v26 = vpop.eup %4067 }
 0xfe2   : > { %v2779_v10 = vmul.f32 %v4068_v26, %v4064_v18  ;;  %v3378_v26 = vld [vmem:[%s4621_s16 + $0x38] sm:$0xff] }
 0xfe3   : > { %v4070_v27 = vpop.eup %4069 }
 0xfe4   : > { %v2778_v5 = vmul.f32 %v4070_v27, %v4066_v20  ;;  %v3377_v27 = vld [vmem:[%s4621_s16 + $0x30] sm:$0xff] }
 0xfe6   : > { %3937 = vmatprep.mubr.msk.f32.mxu1 %vm756_vm1, %v2778_v5  ;;  %v3376_v5 = vld [vmem:[%s4621_s16 + $0x28] sm:$0xff] }
 0xfe7   : > { %3938 = vmatmul.mubr.msk.f32.vlgmr.msra.gmra.mxu1 %vm756_vm1, %v2779_v10  ;;  %v3375_v10 = vld [vmem:[%s4621_s16 + $0x20] sm:$0xff] }
 0xfe8   : > { %3946 = vmatpush3.xpose.msk.msra.mxu1 %vm756_vm1, %v2952_v25  ;;  %3947 = vmatprep.mubr.msk.f32.mxu1 %vm756_vm1, %v2948_v4  ;;  %v3277_v25 = vld [vmem:[%s4619_s14] sm:$0xff] }
 0xfe9   : > { %3955 = vmatprep.subr.mxu1 %v1943_v46 }
 0xfeb   : > { %3948 = vmatmul.mubr.msk.f32.vlgmr.msra.gmra.mxu1 %vm756_vm1, %v2950_v3 }
 0xfec   : > { %3956 = vmatpush3.msra.mxu1 %v1943_v46  ;;  %v3666_v46 = vld [vmem:[%s4620_s15] ss:$0 sm:$0xff] }
 0xfed   : > { %3971 = vmatprep.subr.mxu1 %v3378_v26 }
0x10a7   : > { %v3939_v30 = vpop.f32.mrf.mxu1 }
0x10a9   : > { %v2855_v31 = vpop.f32.mrf.mxu1 }
0x10aa   : > { %3942 = vmatprep.mubr.msk.f32.mxu0 %vm756_vm1, %v2855_v31 }
0x10ab   : > { %3943 = vmatmul.mubr.msk.f32.vlgmr.msra.gmra.mxu0 %vm756_vm1, %v3939_v30  ;;  %v3949_v32 = vpop.f32.mrf.mxu1 }
0x10ac   : > { %v3037_v33 = vsel %vm756_vm1, %v3949_v32, -inf }
0x10ad   : > { %3038 = vmax.xlane.f32.xlu0 %v3037_v33  ;;  %v3025_v34 = vpop.f32.mrf.mxu1  ;;  %v3664_v33 = vld [vmem:[%s4617_s12] ss:$0 sm:$0xff] }
0x10ae   : > { %v3034_v35 = vsel %vm756_vm1, %v3025_v34, -inf }
0x10af   : > { %3035 = vmax.xlane.f32.xlu1 %v3034_v35  ;;  %v3665_v35 = vld [vmem:[%s4618_s13] ss:$0 sm:$0xff] }
0x1136   : > { %v3039_v36 = vpop.xlane.xlu0 %3038 }
0x1137   : > { %v3041_v37 = vsub.f32 %v3949_v32, %v3039_v36 }
0x1138   : > { %v3036_v38 = vpop.xlane.xlu1 %3035 }
0x1139   : > { %v3044_v39 = vmul.f32 1.442695, %v3041_v37  ;;  %v3040_v40 = vsub.f32 %v3025_v34, %v3036_v38 }
0x113b   : > { %4071 = vpow2.f32 %v3044_v39  ;;  %v3042_v41 = vmul.f32 1.442695, %v3040_v40 }
0x113d   : > { %4073 = vpow2.f32 %v3042_v41 }
0x1148   : > { %v4072_v42 = vpop.eup %4071 }
0x1149   : > { %v3049_v43 = vsel %vm756_vm1, %v4072_v42, 0.0 }
0x114a   : > { %v4074_v44 = vpop.eup %4073  ;;  %3050 = vadd.xlane.f32.xlu1 %v3049_v43  ;;  %v3373_v43 = vld [vmem:[%s4621_s16 + $0x10] sm:$0xff] }
0x114b   : > { %v3046_v45 = vsel %vm756_vm1, %v4074_v44, 0.0 }
0x114c   : > { %3047 = vadd.xlane.f32.xlu0 %v3046_v45  ;;  %v3371_v45 = vld [vmem:[%s4621_s16] sm:$0xff] }
0x1162   : > { %3056 = vrot.lane.b32.xlu0 %v4424_v62, %s4647_s23  ;;  %s646_s23 = scalar_lea.vmem %s4625_s20, %s4648_s29 }
0x116b   : > { %v3944_v47 = vpop.f32.mrf.mxu0 }
0x116c   : > { %v2946_v48 = vadd.f32 %v3944_v47, %v4484_v1 }
0x116d   : > { %v2936_v8 = vpop.f32.mrf.mxu0 }
0x116e   : > { %v2945_v61 = vadd.f32 %v2936_v8, %v2663_v57 }
0x11d3   : > { %v3051_v49 = vpop.xlane.xlu1 %3050 }
0x11d4   : > { %4075 = vrcp.f32 %v3051_v49 }
0x11d5   : > { %v3048_v50 = vpop.xlane.xlu0 %3047 }
0x11d6   : > { %4077 = vrcp.f32 %v3048_v50 }
0x11d9   : > { %v3057_v51 = vpop.permute.xlu0 %3056 }
0x11da   : > { %3950 = vmatprep.subr.mxu0 %v3057_v51 }
0x11db   : > { %3951 = vmatpush3.msra.mxu0 %v3057_v51 }
0x11e1   : > { %v4076_v52 = vpop.eup %4075 }
0x11e2   : > { %v3055_v62 = vmul.f32 %v4076_v52, %v4072_v42  ;;  %v3374_v42 = vld [vmem:[%s4621_s16 + $0x18] sm:$0xff] }
0x11e3   : > { %v4078_v53 = vpop.eup %4077 }
0x11e4   : > { %v3054_v54 = vmul.f32 %v4078_v53, %v4074_v44  ;;  %v3372_v44 = vld [vmem:[%s4621_s16 + $0x8] sm:$0xff] }
0x11e6   : > { %3952 = vmatprep.mubr.msk.f32.mxu0 %vm756_vm1, %v3054_v54  ;;  %v3669_v54 = vld [vmem:[%s4622_s17] ss:$0 sm:$0xff] }
0x11e7   : > { %3953 = vmatmul.mubr.msk.f32.vlgmr.msra.gmra.mxu0 %vm756_vm1, %v3055_v62 }
0x12a7   : > { %v3954_v55 = vpop.f32.mrf.mxu0 }
0x12a9   : > { %v3131_v56 = vpop.f32.mrf.mxu0 }
0x12aa   : > { %3957 = vmatprep.mubr.msk.f32.mxu1 %vm756_vm1, %v3131_v56 }
0x12ab   : > { %3958 = vmatmul.mubr.msk.f32.vlgmr.msra.gmra.mxu1 %vm756_vm1, %v3954_v55 }
0x12ac   : > { %3972 = vmatpush3.msra.mxu1 %v3378_v26 }
0x12ad   : > { %3973 = vmatprep.subr.mxu1 %v3377_v27 }
0x12ae   : > { %3974 = vmatpush3.msra.mxu1 %v3377_v27 }
0x12af   : > { %3975 = vmatprep.subr.mxu1 %v3376_v5 }
0x12b0   : > { %3976 = vmatpush3.msra.mxu1 %v3376_v5 }
0x12b1   : > { %3977 = vmatprep.subr.mxu1 %v3375_v10 }
0x12b2   : > { %3978 = vmatpush3.msra.mxu1 %v3375_v10 }
0x12b3   : > { %3979 = vmatprep.subr.mxu1 %v3374_v42 }
0x12b4   : > { %3980 = vmatpush3.msra.mxu1 %v3374_v42 }
0x12b5   : > { %3981 = vmatprep.subr.mxu1 %v3373_v43 }
0x12b6   : > { %3982 = vmatpush3.msra.mxu1 %v3373_v43 }
0x12b7   : > { %3983 = vmatprep.subr.mxu1 %v3372_v44 }
0x12b8   : > { %3984 = vmatpush3.msra.mxu1 %v3372_v44 }
0x12b9   : > { %3985 = vmatprep.subr.mxu1 %v3371_v45 }
0x12ba   : > { %3986 = vmatpush3.msra.mxu1 %v3371_v45 }
0x136b   : > { %v3959_v60 = vpop.f32.mrf.mxu1 }
0x136c   : > { %v3222_v63 = vadd.f32 %v3959_v60, %v2946_v48 }
0x136d   : > { %v3212_v1 = vpop.f32.mrf.mxu1 }
0x136e   : > { %v3221_v6 = vadd.f32 %v3212_v1, %v2945_v61  ;;  %v3230_v7 = vadd.f32 %v3663_v0, %v3222_v63 }
0x1370   : > { %v3229_v9 = vadd.f32 %v3663_v0, %v3221_v6  ;;  %v3232_v13 = vadd.f32 %v3230_v7, %v4418_v59  ;;  %v3280_v59 = vld [vmem:[%s4619_s14 + $0x18] sm:$0xff] }
0x1371   : > { %3960 = vmatprep.subr.mxu0 %v3280_v59 }
0x1372   : > { %v3231_v11 = vadd.f32 %v3229_v9, %v4416_v58  ;;  %v3238_v2 = vsel %vm666_vm0, %v3232_v13, 0.0  ;;  %3961 = vmatpush3.msra.mxu0 %v3280_v59 }
0x1373   : > { %3962 = vmatprep.subr.mxu0 %v3279_v23 }
0x1374   : > { %v3235_v12 = vsel %vm666_vm0, %v3231_v11, 0.0  ;;  %3963 = vmatpush3.msra.mxu0 %v3279_v23 }
0x1375   : > { %3236 = vadd.xlane.f32.xlu1 %v3235_v12  ;;  %3964 = vmatprep.subr.mxu0 %v3278_v24 }
0x1376   : > { %3965 = vmatpush3.msra.mxu0 %v3278_v24 }
0x1377   : > { %3966 = vmatprep.subr.mxu0 %v3277_v25 }
0x1378   : > { %3967 = vmatpush3.msra.mxu0 %v3277_v25 }
0x1379   : > { %3239 = vadd.xlane.f32.xlu1 %v3238_v2 }
0x13fe   : > { %v3237_v14 = vpop.xlane.xlu1 %3236 }
0x13ff   : > { %v3241_v15 = vmul.f32 0.03125, %v3237_v14 }
0x1401   : > { %v3243_v16 = vsub.f32 %v3231_v11, %v3241_v15 }
0x1402   : > { %v3240_v17 = vpop.xlane.xlu1 %3239 }
0x1403   : > { %v3242_v18 = vmul.f32 0.03125, %v3240_v17  ;;  %v3245_v19 = vmul.f32 %v3243_v16, %v3243_v16 }
0x1405   : > { %v3244_v20 = vsub.f32 %v3232_v13, %v3242_v18  ;;  %v3247_v21 = vsel %vm666_vm0, %v3245_v19, 0.0 }
0x1406   : > { %3248 = vadd.xlane.f32.xlu1 %v3247_v21  ;;  %v3672_v21 = vld [vmem:[%s4623_s18] ss:$0 sm:$0xff] }
0x1407   : > { %v3246_v22 = vmul.f32 %v3244_v20, %v3244_v20 }
0x1409   : > { %v3250_v58 = vsel %vm666_vm0, %v3246_v22, 0.0 }
0x140a   : > { %3251 = vadd.xlane.f32.xlu1 %v3250_v58  ;;  %v3673_v58 = vld [vmem:[%s4624_s19] ss:$0 sm:$0xff] }
0x148f   : > { %v3249_v4 = vpop.xlane.xlu1 %3248 }
0x1490   : > { %v3253_v3 = vmul.f32 0.03125, %v3249_v4 }
0x1492   : > { %v3255_v28 = vadd.f32 1e-05, %v3253_v3 }
0x1493   : > { %v3252_v29 = vpop.xlane.xlu1 %3251 }
0x1494   : > { %4079 = vrsqrt.f32 %v3255_v28  ;;  %v3254_v30 = vmul.f32 0.03125, %v3252_v29 }
0x1496   : > { %v3256_v31 = vadd.f32 1e-05, %v3254_v30 }
0x1498   : > { %4081 = vrsqrt.f32 %v3256_v31 }
0x14a1   : > { %v4080_v32 = vpop.eup %4079 }
0x14a2   : > { %v3259_v34 = vmul.f32 %v4080_v32, %v3243_v16 }
0x14a4   : > { %v3267_v36 = vmul.f32 %v3664_v33, %v3259_v34 }
0x14a5   : > { %v4082_v37 = vpop.eup %4081 }
0x14a6   : > { %v3260_v38 = vmul.f32 %v4082_v37, %v3244_v20  ;;  %v3275_v39 = vadd.f32 %v3665_v35, %v3267_v36 }
0x14a8   : > { %v3268_v40 = vmul.f32 %v3664_v33, %v3260_v38  ;;  %3968 = vmatprep.mubr.msk.f32.mxu0 %vm666_vm0, %v3275_v39 }
0x14aa   : > { %v3276_v41 = vadd.f32 %v3665_v35, %v3268_v40 }
0x14ac   : > { %3969 = vmatmul.mubr.msk.f32.vlgmr.msra.gmra.mxu0 %vm666_vm0, %v3276_v41 }
0x156c   : > { %v3970_v47 = vpop.f32.mrf.mxu0 }
0x156d   : > { %v3366_v48 = vadd.f32 %v3970_v47, %v3666_v46 }
0x156e   : > { %v3360_v49 = vpop.f32.mrf.mxu0 }
0x156f   : > { %v3361_v50 = vadd.f32 %v3666_v46, %v3360_v49  ;;  %v3370_v52 = vmax.f32 %v3366_v48, 0.0 }
0x1571   : > { %v3369_v51 = vmax.f32 %v3361_v50, 0.0 }
0x1573   : > { %3987 = vmatprep.mubr.msk.f32.mxu1 %vm3386_vm4, %v3369_v51 }
0x1574   : > { %3988 = vmatmul.mubr.msk.f32.vlgmr.msra.gmra.mxu1 %vm3386_vm4, %v3370_v52 }
0x1634   : > { %v3989_v53 = vpop.f32.mrf.mxu1 }
0x1635   : > { %v3465_v8 = vadd.f32 %v3989_v53, %v3669_v54 }
0x1636   : > { %v3459_v62 = vpop.f32.mrf.mxu1 }
0x1637   : > { %v3460_v55 = vadd.f32 %v3669_v54, %v3459_v62  ;;  %v3469_v60 = vadd.f32 %v3465_v8, %v3276_v41 }
0x1639   : > { %v3468_v56 = vadd.f32 %v3460_v55, %v3275_v39  ;;  %v3475_v61 = vsel %vm666_vm0, %v3469_v60, 0.0 }
0x163b   : > { %v3472_v57 = vsel %vm666_vm0, %v3468_v56, 0.0 }
0x163c   : > { %3473 = vadd.xlane.f32.xlu1 %v3472_v57 }
0x1640   : > { %3476 = vadd.xlane.f32.xlu1 %v3475_v61 }
0x16c5   : > { %v3474_v63 = vpop.xlane.xlu1 %3473 }
0x16c6   : > { %v3478_v0 = vmul.f32 0.03125, %v3474_v63 }
0x16c8   : > { %v3480_v1 = vsub.f32 %v3468_v56, %v3478_v0 }
0x16c9   : > { %v3477_v6 = vpop.xlane.xlu1 %3476 }
0x16ca   : > { %v3479_v7 = vmul.f32 0.03125, %v3477_v6  ;;  %v3482_v9 = vmul.f32 %v3480_v1, %v3480_v1 }
0x16cc   : > { %v3481_v11 = vsub.f32 %v3469_v60, %v3479_v7  ;;  %v3484_v12 = vsel %vm666_vm0, %v3482_v9, 0.0 }
0x16cd   : > { %3485 = vadd.xlane.f32.xlu0 %v3484_v12 }
0x16ce   : > { %v3483_v13 = vmul.f32 %v3481_v11, %v3481_v11 }
0x16d0   : > { %v3487_v2 = vsel %vm666_vm0, %v3483_v13, 0.0 }
0x16d1   : > { %3488 = vadd.xlane.f32.xlu1 %v3487_v2 }
0x1756   : > { %v3486_v14 = vpop.xlane.xlu0 %3485 }
0x1757   : > { %v3490_v15 = vmul.f32 0.03125, %v3486_v14 }
0x1759   : > { %v3492_v16 = vadd.f32 1e-05, %v3490_v15 }
0x175a   : > { %v3489_v17 = vpop.xlane.xlu1 %3488 }
0x175b   : > { %4083 = vrsqrt.f32 %v3492_v16  ;;  %v3491_v18 = vmul.f32 0.03125, %v3489_v17 }
0x175d   : > { %v3493_v19 = vadd.f32 1e-05, %v3491_v18 }
0x175f   : > { %4085 = vrsqrt.f32 %v3493_v19 }
0x1768   : > { %v4084_v20 = vpop.eup %4083 }
0x1769   : > { %v3496_v22 = vmul.f32 %v4084_v20, %v3480_v1 }
0x176b   : > { %v3504_v59 = vmul.f32 %v3672_v21, %v3496_v22 }
0x176c   : > { %v4086_v23 = vpop.eup %4085 }
0x176d   : > { %v3512_v24 = vadd.f32 %v3673_v58, %v3504_v59  ;;  %v3497_v25 = vmul.f32 %v4086_v23, %v3481_v11 }
0x176f   : > { %3514 = vst.msk [vmem:[%s646_s23] sm:$0xff] %vm666_vm0, %v3512_v24  ;;  %v3505_v26 = vmul.f32 %v3672_v21, %v3497_v25 }
0x1771   : > { %v3513_v27 = vadd.f32 %v3673_v58, %v3505_v26 }
0x1773   : > { %3515 = vst.msk [vmem:[%s646_s23 + $0x8] sm:$0xff] %vm666_vm0, %v3513_v27 }
0x1774 PF: > { %s30_s1 = sadd.s32 1, %s4093_s1  }
0x1775   : > { %p27_p4 = scmp.ge.s32.totalorder %s30_s1, 4  }
0x1777   :  { %29 = sbr.rel (!%p27_p4) target bundleno = 6 (0x6), region = 133 }

</bundles_post_ra>
